<compile_context>
chip_gen: v6e
topology: v6e:2x2x1
jax: 0.10.0
libtpu: 0.0.40
codegen_flags: <defaults>
</compile_context>

<pallas_src>
import functools

import jax
import jax.numpy as jnp
from jax import lax
from jax.experimental import pallas as pl
from jax.experimental.pallas import tpu as pltpu


def _dncnn_fused_kernel(x_ref, w_ref, shift_ref, o_ref, apad_ref,
                        *, H, W, F, L):
    """Runs the whole DnCNN stack for one image.

    x_ref    : (1, H, W, F)   f32 input, NHWC, channels zero-padded C -> F
    w_ref    : (L, 9*F, F)    bf16 stacked weights (BN scale folded in),
                              rows ordered (dy, dx, cin)
    shift_ref: (L, 1, F)      f32 folded-BN shift (0 where no BN)
    o_ref    : (1, H, W, F)   f32 residual x - dncnn(x), lane-dense (padded)
    apad_ref : (H+2, W+2, F)  bf16 activation buffer; 1-pixel halo kept zero
    """
    HW = H * W

    # Zero only the halo strips (cheap) every grid step: correct regardless of
    # how the batch grid is split across TensorCores, and avoids the full
    # (H+2)(W+2)*F buffer zero.  The interior is fully overwritten below.
    zrow = jnp.zeros((1, W + 2, F), jnp.bfloat16)
    apad_ref[0:1, :, :] = zrow
    apad_ref[H + 1:H + 2, :, :] = zrow
    zcol = jnp.zeros((H + 2, 1, F), jnp.bfloat16)
    apad_ref[:, 0:1, :] = zcol
    apad_ref[:, W + 1:W + 2, :] = zcol

    # Load the input once; keep an f32 copy for the fused residual.
    x0 = x_ref[0].astype(jnp.float32)                        # (H, W, F)
    apad_ref[1:H + 1, 1:W + 1, :] = x0.astype(jnp.bfloat16)

    def conv_layer(l):
        # im2col: 9 shifted windows concatenated along channels -> (HW, 9F).
        cols = [apad_ref[dy:dy + H, dx:dx + W, :].reshape(HW, F)
                for dy in range(3) for dx in range(3)]
        slab = jnp.concatenate(cols, axis=1)                 # (HW, 9F) bf16
        # One wide bf16 MXU matmul per layer, f32 accumulation; BN scale is
        # already folded into the weights so only the shift remains.
        y = jnp.dot(slab, w_ref[l], preferred_element_type=jnp.float32)
        return y + shift_ref[l]                              # (HW, F) f32

    # Layers 0 .. L-2: conv (+BN shift) + ReLU, written back to VMEM in bf16.
    def body(l, carry):
        y = jnp.maximum(conv_layer(l), 0.0)
        apad_ref[1:H + 1, 1:W + 1, :] = y.astype(jnp.bfloat16).reshape(H, W, F)
        return carry

    lax.fori_loop(0, L - 1, body, 0)

    # Last layer (no BN, no ReLU) fused with the residual.  Channels >= C of
    # both x and y are zero (zero-padded weight cols / input channels), so the
    # padded output block is lane-dense and the wrapper slices back to C.
    y_last = conv_layer(L - 1)                               # (HW, F) f32
    o_ref[0] = (x0 - y_last.reshape(H, W, F)).astype(o_ref.dtype)


def dncnn_fused(x_nchw, w_stack, shift_stack, features):
    """Fused DnCNN forward: returns x - dncnn(x), NCHW in / NCHW out."""
    N, C, H, W = x_nchw.shape
    F = features
    L = w_stack.shape[0]
    assert w_stack.shape == (L, 9 * F, F) and L >= 2

    # NHWC for the TPU kernel; channel-pad C -> F so all in-kernel loads and
    # stores are full minor-width (padded weight rows/cols are zero).
    x_nhwc = jnp.transpose(x_nchw, (0, 2, 3, 1))
    x_nhwc_pad = jnp.pad(x_nhwc, ((0, 0), (0, 0), (0, 0), (0, F - C)))

    kernel = functools.partial(_dncnn_fused_kernel, H=H, W=W, F=F, L=L)
    out_nhwc_pad = pl.pallas_call(
        kernel,
        out_shape=jax.ShapeDtypeStruct((N, H, W, F), x_nchw.dtype),
        grid=(N,),
        in_specs=[
            pl.BlockSpec((1, H, W, F), lambda b: (b, 0, 0, 0)),
            pl.BlockSpec((L, 9 * F, F), lambda b: (0, 0, 0)),  # weights resident
            pl.BlockSpec((L, 1, F), lambda b: (0, 0, 0)),
        ],
        out_specs=pl.BlockSpec((1, H, W, F), lambda b: (b, 0, 0, 0)),
        scratch_shapes=[pltpu.VMEM((H + 2, W + 2, F), jnp.bfloat16)],
        compiler_params=pltpu.CompilerParams(
            dimension_semantics=("parallel",),   # v7x: 2 TCs split the batch
        ),
    )(x_nhwc_pad, w_stack, shift_stack)

    # Lane-dense kernel output: slice the real channels and restore NCHW.
    return jnp.transpose(out_nhwc_pad[..., :C], (0, 3, 1, 2))


def make_dncnn_params(key, channels=3, num_of_layers=17, features=64,
                      dtype=jnp.float32):
    """Deterministic synthetic params. Each entry: (w_hwio, scale, shift, relu)."""
    eps = 1e-5  # nn.BatchNorm2d default
    params = []
    keys = jax.random.split(key, num_of_layers * 3)

    def conv_w(k, cin, cout):
        std = (2.0 / (9.0 * cin)) ** 0.5
        return (std * jax.random.normal(k, (3, 3, cin, cout))).astype(dtype)

    # layer 0: conv(channels -> features) + ReLU
    params.append((conv_w(keys[0], channels, features),
                   jnp.ones((features,), dtype), jnp.zeros((features,), dtype),
                   True))
    # middle layers: conv(features -> features) + BN + ReLU (eval-mode folding)
    for i in range(num_of_layers - 2):
        kw, kg, kb = keys[3 * i + 1], keys[3 * i + 2], keys[3 * i + 3]
        w = conv_w(kw, features, features)
        gamma = 1.0 + 0.1 * jax.random.normal(kg, (features,))
        beta = 0.1 * jax.random.normal(kb, (features,))
        run_mean = jnp.zeros((features,))
        run_var = jnp.ones((features,))
        inv_std = 1.0 / jnp.sqrt(run_var + eps)
        scale = (gamma * inv_std).astype(dtype)
        shift = (beta - run_mean * gamma * inv_std).astype(dtype)
        params.append((w, scale, shift, True))
    # last layer: conv(features -> channels), no BN, no ReLU
    params.append((conv_w(keys[-1], channels := channels, features := features)
                   if False else conv_w(keys[-1], 64, 3),
                   jnp.ones((3,), dtype), jnp.zeros((3,), dtype),
                   False))
    return params


def pack_params(params, features):
    """Stack per-layer params for the fused kernel.

    BN scale is folded into the conv weights, channel dims are zero-padded to
    `features`, weights are reshaped to the im2col layout (9*F, F) and cast to
    bf16; only the f32 shift is applied in-kernel.
    """
    F = features
    w_list, b_list = [], []
    for (w, scale, shift, _relu) in params:
        _, _, cin, cout = w.shape
        w_scaled = w.astype(jnp.float32) * scale.reshape(1, 1, 1, -1).astype(jnp.float32)
        wp = jnp.zeros((3, 3, F, F), jnp.float32).at[:, :, :cin, :cout].set(w_scaled)
        bp = jnp.zeros((F,), jnp.float32).at[:cout].set(
            shift.reshape(-1).astype(jnp.float32))
        w_list.append(wp.reshape(9 * F, F).astype(jnp.bfloat16))  # rows = (dy, dx, cin)
        b_list.append(bp.reshape(1, F))
    return jnp.stack(w_list), jnp.stack(b_list)


def dncnn_reference(x_nchw, params, quantize_bf16=False):
    """Pure-JAX reference (lax conv).  With quantize_bf16=True it mirrors the
    kernel's dataflow exactly: bf16 weights/activations, f32 accumulation."""
    h = jnp.transpose(x_nchw, (0, 2, 3, 1))
    for (w, scale, shift, relu) in params:
        w_f = w.astype(jnp.float32) * scale.reshape(1, 1, 1, -1).astype(jnp.float32)
        if quantize_bf16:
            w_f = w_f.astype(jnp.bfloat16)
            h_in = h.astype(jnp.bfloat16)
        else:
            h_in = h
        y = jax.lax.conv_general_dilated(
            h_in, w_f, window_strides=(1, 1), padding="SAME",
            dimension_numbers=("NHWC", "HWIO", "NHWC"),
            preferred_element_type=jnp.float32)
        y = y + shift.reshape(1, 1, 1, -1).astype(jnp.float32)
        if relu:
            y = jnp.maximum(y, 0.0)
        h = y
    return x_nchw - jnp.transpose(h, (0, 3, 1, 2))


if __name__ == "__main__":
    key = jax.random.PRNGKey(0)
    k_param, k_x = jax.random.split(key)

    # Small shapes consistent with the module: N=2, C=3 (default), 16x16.
    # num_of_layers reduced from the default 17 to 5 to keep the demo quick;
    # the layer structure (conv/ReLU, conv/BN/ReLU blocks, final conv) is the same.
    channels, num_of_layers, features = 3, 5, 64
    params = make_dncnn_params(k_param, channels=channels,
                               num_of_layers=num_of_layers, features=features)
    x = jax.random.normal(k_x, (2, channels, 16, 16), dtype=jnp.float32)

    w_stack, shift_stack = pack_params(params, features)
    y = dncnn_fused(x, w_stack, shift_stack, features)
    y = jax.block_until_ready(y)
    assert y.shape == x.shape and y.dtype == x.dtype

    # Exact-dataflow reference (bf16 weights/activations, f32 accumulation).
    y_ref_bf16 = jax.block_until_ready(dncnn_reference(x, params, quantize_bf16=True))
    assert jnp.allclose(y, y_ref_bf16, atol=2e-3, rtol=2e-3), "mismatch vs bf16 reference"

    # Loose sanity check against the pure-f32 (PyTorch-equivalent) math.
    y_ref_f32 = jax.block_until_ready(dncnn_reference(x, params, quantize_bf16=False))
    assert jnp.allclose(y, y_ref_f32, atol=1e-1, rtol=1e-1), "mismatch vs f32 reference"

    print("KERNEL_OK")
</pallas_src>

<mosaic_0001>
module attributes {stable_mosaic.version = 11 : i64} {
  func.func @_dncnn_fused_kernel(%arg0: i32, %arg1: memref<1x16x16x64xf32, #tpu.memory_space<vmem>>, %arg2: memref<5x576x64xbf16, #tpu.memory_space<vmem>>, %arg3: memref<5x1x64xf32, #tpu.memory_space<vmem>>, %arg4: memref<1x16x16x64xf32, #tpu.memory_space<vmem>>, %arg5: memref<18x18x64xbf16, #tpu.memory_space<vmem>>) attributes {dimension_semantics = [#tpu.dimension_semantics<parallel>], iteration_bounds = array<i64: 2>, scalar_prefetch = 0 : i64, scratch_operands = 1 : i64, tpu.core_type = #tpu.core_type<tc>, window_params = [{transform_indices = @transform_0, window_bounds = array<i64: 1, 16, 16, 64>}, {pipeline_mode = #tpu.pipeline_mode<synchronous>, transform_indices = @transform_1, window_bounds = array<i64: 5, 576, 64>}, {pipeline_mode = #tpu.pipeline_mode<synchronous>, transform_indices = @transform_2, window_bounds = array<i64: 5, 1, 64>}, {transform_indices = @transform_3, window_bounds = array<i64: 1, 16, 16, 64>}]} {
    %cst = arith.constant 0.000000e+00 : bf16
    %0 = vector.broadcast %cst : bf16 to vector<1x18x64xbf16>
    %c0 = arith.constant 0 : index
    %c0_0 = arith.constant 0 : index
    %c0_1 = arith.constant 0 : index
    %1 = vector.load %arg5[%c0, %c0_0, %c0_1] : memref<18x18x64xbf16, #tpu.memory_space<vmem>>, vector<1x18x64xbf16>
    tpu.vector_store %arg5[%c0, %c0_0, %c0_1], %0 {strides = array<i32>} : memref<18x18x64xbf16, #tpu.memory_space<vmem>>, vector<1x18x64xbf16>,
    %c17 = arith.constant 17 : index
    %c0_2 = arith.constant 0 : index
    %c0_3 = arith.constant 0 : index
    %2 = vector.load %arg5[%c17, %c0_2, %c0_3] : memref<18x18x64xbf16, #tpu.memory_space<vmem>>, vector<1x18x64xbf16>
    tpu.vector_store %arg5[%c17, %c0_2, %c0_3], %0 {strides = array<i32>} : memref<18x18x64xbf16, #tpu.memory_space<vmem>>, vector<1x18x64xbf16>,
    %cst_4 = arith.constant 0.000000e+00 : bf16
    %3 = vector.broadcast %cst_4 : bf16 to vector<18x1x64xbf16>
    %c0_5 = arith.constant 0 : index
    %c0_6 = arith.constant 0 : index
    %c0_7 = arith.constant 0 : index
    %4 = vector.load %arg5[%c0_5, %c0_6, %c0_7] : memref<18x18x64xbf16, #tpu.memory_space<vmem>>, vector<18x1x64xbf16>
    tpu.vector_store %arg5[%c0_5, %c0_6, %c0_7], %3 {strides = array<i32>} : memref<18x18x64xbf16, #tpu.memory_space<vmem>>, vector<18x1x64xbf16>,
    %c0_8 = arith.constant 0 : index
    %c17_9 = arith.constant 17 : index
    %c0_10 = arith.constant 0 : index
    %5 = vector.load %arg5[%c0_8, %c17_9, %c0_10] : memref<18x18x64xbf16, #tpu.memory_space<vmem>>, vector<18x1x64xbf16>
    tpu.vector_store %arg5[%c0_8, %c17_9, %c0_10], %3 {strides = array<i32>} : memref<18x18x64xbf16, #tpu.memory_space<vmem>>, vector<18x1x64xbf16>,
    %c0_11 = arith.constant 0 : index
    %c0_12 = arith.constant 0 : index
    %c0_13 = arith.constant 0 : index
    %c0_14 = arith.constant 0 : index
    %6 = vector.load %arg1[%c0_11, %c0_12, %c0_13, %c0_14] : memref<1x16x16x64xf32, #tpu.memory_space<vmem>>, vector<1x16x16x64xf32>
    %7 = vector.shape_cast %6 : vector<1x16x16x64xf32> to vector<16x16x64xf32>
    %8 = arith.truncf %7 : vector<16x16x64xf32> to vector<16x16x64xbf16>
    %c1 = arith.constant 1 : index
    %c1_15 = arith.constant 1 : index
    %c0_16 = arith.constant 0 : index
    %9 = vector.load %arg5[%c1, %c1_15, %c0_16] : memref<18x18x64xbf16, #tpu.memory_space<vmem>>, vector<16x16x64xbf16>
    tpu.vector_store %arg5[%c1, %c1_15, %c0_16], %8 {strides = array<i32>} : memref<18x18x64xbf16, #tpu.memory_space<vmem>>, vector<16x16x64xbf16>,
    %c0_i32 = arith.constant 0 : i32
    %c4_i32 = arith.constant 4 : i32
    %10 = arith.addi %c0_i32, %c4_i32 : i32
    %c1_i32 = arith.constant 1 : i32
    scf.for %arg6 = %c0_i32 to %10 step %c1_i32  : i32 {
      %c0_54 = arith.constant 0 : index
      %c0_55 = arith.constant 0 : index
      %c0_56 = arith.constant 0 : index
      %42 = vector.load %arg5[%c0_54, %c0_55, %c0_56] : memref<18x18x64xbf16, #tpu.memory_space<vmem>>, vector<16x16x64xbf16>
      %43 = vector.shape_cast %42 : vector<16x16x64xbf16> to vector<256x64xbf16>
      %c0_57 = arith.constant 0 : index
      %c1_58 = arith.constant 1 : index
      %c0_59 = arith.constant 0 : index
      %44 = vector.load %arg5[%c0_57, %c1_58, %c0_59] : memref<18x18x64xbf16, #tpu.memory_space<vmem>>, vector<16x16x64xbf16>
      %45 = vector.shape_cast %44 : vector<16x16x64xbf16> to vector<256x64xbf16>
      %c0_60 = arith.constant 0 : index
      %c2_61 = arith.constant 2 : index
      %c0_62 = arith.constant 0 : index
      %46 = vector.load %arg5[%c0_60, %c2_61, %c0_62] : memref<18x18x64xbf16, #tpu.memory_space<vmem>>, vector<16x16x64xbf16>
      %47 = vector.shape_cast %46 : vector<16x16x64xbf16> to vector<256x64xbf16>
      %c1_63 = arith.constant 1 : index
      %c0_64 = arith.constant 0 : index
      %c0_65 = arith.constant 0 : index
      %48 = vector.load %arg5[%c1_63, %c0_64, %c0_65] : memref<18x18x64xbf16, #tpu.memory_space<vmem>>, vector<16x16x64xbf16>
      %49 = vector.shape_cast %48 : vector<16x16x64xbf16> to vector<256x64xbf16>
      %c1_66 = arith.constant 1 : index
      %c1_67 = arith.constant 1 : index
      %c0_68 = arith.constant 0 : index
      %50 = vector.load %arg5[%c1_66, %c1_67, %c0_68] : memref<18x18x64xbf16, #tpu.memory_space<vmem>>, vector<16x16x64xbf16>
      %51 = vector.shape_cast %50 : vector<16x16x64xbf16> to vector<256x64xbf16>
      %c1_69 = arith.constant 1 : index
      %c2_70 = arith.constant 2 : index
      %c0_71 = arith.constant 0 : index
      %52 = vector.load %arg5[%c1_69, %c2_70, %c0_71] : memref<18x18x64xbf16, #tpu.memory_space<vmem>>, vector<16x16x64xbf16>
      %53 = vector.shape_cast %52 : vector<16x16x64xbf16> to vector<256x64xbf16>
      %c2_72 = arith.constant 2 : index
      %c0_73 = arith.constant 0 : index
      %c0_74 = arith.constant 0 : index
      %54 = vector.load %arg5[%c2_72, %c0_73, %c0_74] : memref<18x18x64xbf16, #tpu.memory_space<vmem>>, vector<16x16x64xbf16>
      %55 = vector.shape_cast %54 : vector<16x16x64xbf16> to vector<256x64xbf16>
      %c2_75 = arith.constant 2 : index
      %c1_76 = arith.constant 1 : index
      %c0_77 = arith.constant 0 : index
      %56 = vector.load %arg5[%c2_75, %c1_76, %c0_77] : memref<18x18x64xbf16, #tpu.memory_space<vmem>>, vector<16x16x64xbf16>
      %57 = vector.shape_cast %56 : vector<16x16x64xbf16> to vector<256x64xbf16>
      %c2_78 = arith.constant 2 : index
      %c2_79 = arith.constant 2 : index
      %c0_80 = arith.constant 0 : index
      %58 = vector.load %arg5[%c2_78, %c2_79, %c0_80] : memref<18x18x64xbf16, #tpu.memory_space<vmem>>, vector<16x16x64xbf16>
      %59 = vector.shape_cast %58 : vector<16x16x64xbf16> to vector<256x64xbf16>
      %60 = tpu.concatenate %43, %45, %47, %49, %51, %53, %55, %57, %59 in 1 : vector<256x64xbf16>, vector<256x64xbf16>, vector<256x64xbf16>, vector<256x64xbf16>, vector<256x64xbf16>, vector<256x64xbf16>, vector<256x64xbf16>, vector<256x64xbf16>, vector<256x64xbf16> -> vector<256x576xbf16>
      %61 = arith.index_cast %arg6 : i32 to index
      %c0_81 = arith.constant 0 : index
      %c0_82 = arith.constant 0 : index
      %62 = vector.load %arg2[%61, %c0_81, %c0_82] : memref<5x576x64xbf16, #tpu.memory_space<vmem>>, vector<1x576x64xbf16>
      %63 = vector.shape_cast %62 : vector<1x576x64xbf16> to vector<576x64xbf16>
      %cst_83 = arith.constant dense<0.000000e+00> : vector<256x64xf32>
      %64 = tpu.matmul %60, %63, %cst_83 {dimension_numbers = #tpu.dot_dimension_numbers<[1], [0], [0], [1], [0, 0, 1, 1], [], []>} : vector<256x576xbf16>, vector<576x64xbf16>, vector<256x64xf32> -> vector<256x64xf32>
      %65 = arith.index_cast %arg6 : i32 to index
      %c0_84 = arith.constant 0 : index
      %c0_85 = arith.constant 0 : index
      %66 = vector.load %arg3[%65, %c0_84, %c0_85] : memref<5x1x64xf32, #tpu.memory_space<vmem>>, vector<1x1x64xf32>
      %67 = vector.shape_cast %66 : vector<1x1x64xf32> to vector<1x64xf32>
      %68 = vector.broadcast %67 : vector<1x64xf32> to vector<256x64xf32>
      %69 = arith.addf %64, %68 : vector<256x64xf32>
      %cst_86 = arith.constant 0.000000e+00 : f32
      %70 = vector.broadcast %cst_86 : f32 to vector<256x64xf32>
      %71 = arith.maximumf %69, %70 : vector<256x64xf32>
      %72 = arith.truncf %71 : vector<256x64xf32> to vector<256x64xbf16>
      %73 = vector.shape_cast %72 : vector<256x64xbf16> to vector<16x16x64xbf16>
      %c1_87 = arith.constant 1 : index
      %c1_88 = arith.constant 1 : index
      %c0_89 = arith.constant 0 : index
      %74 = vector.load %arg5[%c1_87, %c1_88, %c0_89] : memref<18x18x64xbf16, #tpu.memory_space<vmem>>, vector<16x16x64xbf16>
      tpu.vector_store %arg5[%c1_87, %c1_88, %c0_89], %73 {strides = array<i32>} : memref<18x18x64xbf16, #tpu.memory_space<vmem>>, vector<16x16x64xbf16>,
    }
    %c4_i32_17 = arith.constant 4 : i32
    %c0_18 = arith.constant 0 : index
    %c0_19 = arith.constant 0 : index
    %c0_20 = arith.constant 0 : index
    %11 = vector.load %arg5[%c0_18, %c0_19, %c0_20] : memref<18x18x64xbf16, #tpu.memory_space<vmem>>, vector<16x16x64xbf16>
    %12 = vector.shape_cast %11 : vector<16x16x64xbf16> to vector<256x64xbf16>
    %c0_21 = arith.constant 0 : index
    %c1_22 = arith.constant 1 : index
    %c0_23 = arith.constant 0 : index
    %13 = vector.load %arg5[%c0_21, %c1_22, %c0_23] : memref<18x18x64xbf16, #tpu.memory_space<vmem>>, vector<16x16x64xbf16>
    %14 = vector.shape_cast %13 : vector<16x16x64xbf16> to vector<256x64xbf16>
    %c0_24 = arith.constant 0 : index
    %c2 = arith.constant 2 : index
    %c0_25 = arith.constant 0 : index
    %15 = vector.load %arg5[%c0_24, %c2, %c0_25] : memref<18x18x64xbf16, #tpu.memory_space<vmem>>, vector<16x16x64xbf16>
    %16 = vector.shape_cast %15 : vector<16x16x64xbf16> to vector<256x64xbf16>
    %c1_26 = arith.constant 1 : index
    %c0_27 = arith.constant 0 : index
    %c0_28 = arith.constant 0 : index
    %17 = vector.load %arg5[%c1_26, %c0_27, %c0_28] : memref<18x18x64xbf16, #tpu.memory_space<vmem>>, vector<16x16x64xbf16>
    %18 = vector.shape_cast %17 : vector<16x16x64xbf16> to vector<256x64xbf16>
    %c1_29 = arith.constant 1 : index
    %c1_30 = arith.constant 1 : index
    %c0_31 = arith.constant 0 : index
    %19 = vector.load %arg5[%c1_29, %c1_30, %c0_31] : memref<18x18x64xbf16, #tpu.memory_space<vmem>>, vector<16x16x64xbf16>
    %20 = vector.shape_cast %19 : vector<16x16x64xbf16> to vector<256x64xbf16>
    %c1_32 = arith.constant 1 : index
    %c2_33 = arith.constant 2 : index
    %c0_34 = arith.constant 0 : index
    %21 = vector.load %arg5[%c1_32, %c2_33, %c0_34] : memref<18x18x64xbf16, #tpu.memory_space<vmem>>, vector<16x16x64xbf16>
    %22 = vector.shape_cast %21 : vector<16x16x64xbf16> to vector<256x64xbf16>
    %c2_35 = arith.constant 2 : index
    %c0_36 = arith.constant 0 : index
    %c0_37 = arith.constant 0 : index
    %23 = vector.load %arg5[%c2_35, %c0_36, %c0_37] : memref<18x18x64xbf16, #tpu.memory_space<vmem>>, vector<16x16x64xbf16>
    %24 = vector.shape_cast %23 : vector<16x16x64xbf16> to vector<256x64xbf16>
    %c2_38 = arith.constant 2 : index
    %c1_39 = arith.constant 1 : index
    %c0_40 = arith.constant 0 : index
    %25 = vector.load %arg5[%c2_38, %c1_39, %c0_40] : memref<18x18x64xbf16, #tpu.memory_space<vmem>>, vector<16x16x64xbf16>
    %26 = vector.shape_cast %25 : vector<16x16x64xbf16> to vector<256x64xbf16>
    %c2_41 = arith.constant 2 : index
    %c2_42 = arith.constant 2 : index
    %c0_43 = arith.constant 0 : index
    %27 = vector.load %arg5[%c2_41, %c2_42, %c0_43] : memref<18x18x64xbf16, #tpu.memory_space<vmem>>, vector<16x16x64xbf16>
    %28 = vector.shape_cast %27 : vector<16x16x64xbf16> to vector<256x64xbf16>
    %29 = tpu.concatenate %12, %14, %16, %18, %20, %22, %24, %26, %28 in 1 : vector<256x64xbf16>, vector<256x64xbf16>, vector<256x64xbf16>, vector<256x64xbf16>, vector<256x64xbf16>, vector<256x64xbf16>, vector<256x64xbf16>, vector<256x64xbf16>, vector<256x64xbf16> -> vector<256x576xbf16>
    %c4 = arith.constant 4 : index
    %c0_44 = arith.constant 0 : index
    %c0_45 = arith.constant 0 : index
    %30 = vector.load %arg2[%c4, %c0_44, %c0_45] : memref<5x576x64xbf16, #tpu.memory_space<vmem>>, vector<1x576x64xbf16>
    %31 = vector.shape_cast %30 : vector<1x576x64xbf16> to vector<576x64xbf16>
    %cst_46 = arith.constant dense<0.000000e+00> : vector<256x64xf32>
    %32 = tpu.matmul %29, %31, %cst_46 {dimension_numbers = #tpu.dot_dimension_numbers<[1], [0], [0], [1], [0, 0, 1, 1], [], []>} : vector<256x576xbf16>, vector<576x64xbf16>, vector<256x64xf32> -> vector<256x64xf32>
    %c4_47 = arith.constant 4 : index
    %c0_48 = arith.constant 0 : index
    %c0_49 = arith.constant 0 : index
    %33 = vector.load %arg3[%c4_47, %c0_48, %c0_49] : memref<5x1x64xf32, #tpu.memory_space<vmem>>, vector<1x1x64xf32>
    %34 = vector.shape_cast %33 : vector<1x1x64xf32> to vector<1x64xf32>
    %35 = vector.broadcast %34 : vector<1x64xf32> to vector<256x64xf32>
    %36 = arith.addf %32, %35 : vector<256x64xf32>
    %37 = vector.shape_cast %36 : vector<256x64xf32> to vector<16x16x64xf32>
    %38 = arith.subf %7, %37 : vector<16x16x64xf32>
    %c0_50 = arith.constant 0 : index
    %c0_51 = arith.constant 0 : index
    %c0_52 = arith.constant 0 : index
    %c0_53 = arith.constant 0 : index
    %39 = vector.load %arg4[%c0_50, %c0_51, %c0_52, %c0_53] : memref<1x16x16x64xf32, #tpu.memory_space<vmem>>, vector<1x16x16x64xf32>
    %40 = vector.shape_cast %39 : vector<1x16x16x64xf32> to vector<16x16x64xf32>
    %41 = vector.shape_cast %38 : vector<16x16x64xf32> to vector<1x16x16x64xf32>
    tpu.vector_store %arg4[%c0_50, %c0_51, %c0_52, %c0_53], %41 {strides = array<i32>} : memref<1x16x16x64xf32, #tpu.memory_space<vmem>>, vector<1x16x16x64xf32>,
    return
  }
  func.func @transform_0(%arg0: i32) -> (i32, i32, i32, i32) {
    %c0_i32 = arith.constant 0 : i32
    %c0_i32_0 = arith.constant 0 : i32
    %c0_i32_1 = arith.constant 0 : i32
    %c0_i32_2 = arith.constant 0 : i32
    return %arg0, %c0_i32, %c0_i32_0, %c0_i32_1 : i32, i32, i32, i32
  }
  func.func @transform_1(%arg0: i32) -> (i32, i32, i32) {
    %c0_i32 = arith.constant 0 : i32
    %c0_i32_0 = arith.constant 0 : i32
    %c0_i32_1 = arith.constant 0 : i32
    %c0_i32_2 = arith.constant 0 : i32
    return %c0_i32, %c0_i32_0, %c0_i32_1 : i32, i32, i32
  }
  func.func @transform_2(%arg0: i32) -> (i32, i32, i32) {
    %c0_i32 = arith.constant 0 : i32
    %c0_i32_0 = arith.constant 0 : i32
    %c0_i32_1 = arith.constant 0 : i32
    %c0_i32_2 = arith.constant 0 : i32
    return %c0_i32, %c0_i32_0, %c0_i32_1 : i32, i32, i32
  }
  func.func @transform_3(%arg0: i32) -> (i32, i32, i32, i32) {
    %c0_i32 = arith.constant 0 : i32
    %c0_i32_0 = arith.constant 0 : i32
    %c0_i32_1 = arith.constant 0 : i32
    %c0_i32_2 = arith.constant 0 : i32
    return %arg0, %c0_i32, %c0_i32_0, %c0_i32_1 : i32, i32, i32, i32
  }
}

</mosaic_0001>

<bundles_post_ra>
// kernel: tpu_custom_call.1
= control target key start
LH: loop header
LB: loop body
LE: loop exit
PB: predicated region body
PF: predicated region fallthrough
CT: control target
= control target key end

     0   :  { %8 = vsyncpa [#allocation4], 0  ;;  %s13856_s0 = inlined_call_operand.vmem [shape: f32[2,16,16,64], index: 0, kind: input, shape index: {}]   ;;  %s13857_s1 = inlined_call_operand.vmem [shape: bf16[5,576,64], index: 1, kind: input, shape index: {}]   ;;  %s13858_s2 = inlined_call_operand.vmem [shape: f32[5,1,64], index: 2, kind: input, shape index: {}]   ;;  %s13859_s3 = inlined_call_operand.hbm [shape: f32[2,16,16,64], index: 3, kind: output, shape index: {}]  }
   0x1   :  { %10 = vsyncpa [#allocation4 + $0x1], 0  ;;  %s10530_s12 = smov 0   ;;  %s10532_s13 = smov 0  }
   0x2   :  { %s10534_s14 = smov 0   ;;  %s10536_s15 = smov 0  }
   0x3 LB: > { %s10551_s16 = sadd.s32 4294967295, %s10498_s15   ;;  %s8620_s17 = sadd.s32 4294967294, %s10498_s15   ;;  %s10498_s15 = sphi %s10536_s15, %s14064_s15   ;;  %s10494_s14 = sphi %s10534_s14, %s14063_s14   ;;  %s10490_s13 = sphi %s10532_s13, %s14062_s13   ;;  %s10486_s12 = sphi %s10530_s12, %s14061_s12  }
   0x4   : > { %s10555_s18 = sadd.s32 1, %s10498_s15   ;;  %s91_s19 = sadd.s32 1, %s10494_s14 }
   0x5   : > { %s88_s20 = ssub.s32 %s10498_s15, %s10555_s18  ;;  %p101_p0 = scmp.ne.s32.totalorder %s10494_s14, %s10490_s13 }
   0x6   : > { %p89_p1 = scmp.eq.s32.totalorder %s88_s20, 0  ;;  %p102_p2 = scmp.eq.s32.totalorder %s10551_s16, 1 }
   0x7   : > { %p107_p3 = scmp.ne.s32.totalorder %s10490_s13, %s10486_s12  ;;  %p108_p4 = scmp.eq.s32.totalorder %s8620_s17, 1 }
   0x8   : > { %s10566_s21 = scalar_select %p89_p1, %s10494_s14, %s91_s19  }
   0x9   : > { %p10568_p5 = por %p102_p2, %p101_p0  ;;  %p10572_p6 = por %p108_p4, %p107_p3 }
   0xa   : > { %p8623_p7 = scmp.ge.s32.totalorder %s10498_s15, 1  ;;  %p140_p8 = scmp.lt.s32.totalorder %s10498_s15, 3 }
   0xc   : > { %p141_p9 = pnand %p8623_p7, %p140_p8 }
   0xe   : > { %144 = sbr.rel (%p141_p9) target bundleno = 1220 (0x4c4), region = 32 }
  0x13   : > { %s161_s24 = sand.u32 1, %s10490_s13   ;;  %vm170_vm0 = vcmask 519168   ;;  %vm173_vm1 = vcmask 516096   ;;  %vm180_vm2 = vsmask.f32 256  ;;  %v10504_v0 = vmov 0  }
  0x14   : > { %s10581_s25 = sshll.u32 %s161_s24, 8  ;;  %171 = vst.msk [vmem:[#allocation2] sm:$0xf] %vm170_vm0, %v10504_v0  ;;  %172 = vst.msk [vmem:[#allocation2 + $0x4] sm:$0xf] %vm170_vm0, %v10504_v0  ;;  %v13904_v1 = vmov 0 }
  0x15   : > { %176 = vst.msk [vmem:[#allocation2 + $0xcc] sm:$0xf] %vm170_vm0, %v10504_v0  ;;  %177 = vst.msk [vmem:[#allocation2 + $0xd0] sm:$0xf] %vm170_vm0, %v10504_v0  ;;  %vm236_vm4 = vsmask.f32 7938 }
  0x16   : > { %174 = vst.msk [vmem:[#allocation2 + $0x8] sm:$0x1] %vm173_vm1, %v10504_v0  ;;  %vm10590_vm3 = vmand %vm173_vm1, %vm180_vm2  ;;  %v185_v2 = vld [vmem:[#allocation2 + $0xc] sm:$0x1]  ;;  %p164_p10 = scmp.lt.s32.totalorder %s10551_s16, 1  ;;  %s10967_s4 = scalar_lea.vmem [#allocation3], %s10581_s25 }
  0x17   : > { %v13905_v1 = vsel %vm10590_vm3, 4294967295, %v13904_v1  ;;  %178 = vst.msk [vmem:[#allocation2 + $0xd4] sm:$0x1] %vm173_vm1, %v10504_v0  ;;  %v186_v3 = vsel %vm10590_vm3, 0, %v185_v2  ;;  %v188_v4 = vld [vmem:[#allocation2 + $0x18] sm:$0x1]  ;;  %vm10616_vm5 = vmand %vm173_vm1, %vm236_vm4 }
  0x18   : > { %13906 = vst [vmem:[#allocation6_spill] sm:$0xff] %v13905_v1  ;;  %v191_v5 = vld [vmem:[#allocation2 + $0x24] sm:$0x1]  ;;  %187 = vst [vmem:[#allocation2 + $0xc] sm:$0x1] %v186_v3  ;;  %v189_v6 = vsel %vm10590_vm3, 0, %v188_v4 }
  0x19   : > { %v192_v7 = vsel %vm10590_vm3, 0, %v191_v5  ;;  %v194_v8 = vld [vmem:[#allocation2 + $0x30] sm:$0x1]  ;;  %v197_v9 = vld [vmem:[#allocation2 + $0x3c] sm:$0x1]  ;;  %s165_s26 = scalar_select %p164_p10, %s10551_s16, 1  ;;  %vm10714_vm7 = vmand %vm170_vm0, %vm236_vm4 }
  0x1a   : > { %190 = vst [vmem:[#allocation2 + $0x18] sm:$0x1] %v189_v6  ;;  %193 = vst [vmem:[#allocation2 + $0x24] sm:$0x1] %v192_v7  ;;  %v195_v10 = vsel %vm10590_vm3, 0, %v194_v8  ;;  %v198_v11 = vsel %vm10590_vm3, 0, %v197_v9 }
  0x1b   : > { %v200_v12 = vld [vmem:[#allocation2 + $0x48] sm:$0x1]  ;;  %v203_v13 = vld [vmem:[#allocation2 + $0x54] sm:$0x1]  ;;  %196 = vst [vmem:[#allocation2 + $0x30] sm:$0x1] %v195_v10 }
  0x1c   : > { %199 = vst [vmem:[#allocation2 + $0x3c] sm:$0x1] %v198_v11  ;;  %v201_v14 = vsel %vm10590_vm3, 0, %v200_v12  ;;  %v204_v15 = vsel %vm10590_vm3, 0, %v203_v13  ;;  %v206_v16 = vld [vmem:[#allocation2 + $0x60] sm:$0x1] }
  0x1d   : > { %v209_v17 = vld [vmem:[#allocation2 + $0x6c] sm:$0x1]  ;;  %202 = vst [vmem:[#allocation2 + $0x48] sm:$0x1] %v201_v14  ;;  %205 = vst [vmem:[#allocation2 + $0x54] sm:$0x1] %v204_v15 }
  0x1e   : > { %v207_v18 = vsel %vm10590_vm3, 0, %v206_v16  ;;  %v210_v19 = vsel %vm10590_vm3, 0, %v209_v17  ;;  %v212_v20 = vld [vmem:[#allocation2 + $0x78] sm:$0x1]  ;;  %v215_v21 = vld [vmem:[#allocation2 + $0x84] sm:$0x1] }
  0x1f   : > { %208 = vst [vmem:[#allocation2 + $0x60] sm:$0x1] %v207_v18  ;;  %211 = vst [vmem:[#allocation2 + $0x6c] sm:$0x1] %v210_v19  ;;  %v213_v23 = vsel %vm10590_vm3, 0, %v212_v20  ;;  %v216_v24 = vsel %vm10590_vm3, 0, %v215_v21 }
  0x20   : > { %v218_v25 = vld [vmem:[#allocation2 + $0x90] sm:$0x1]  ;;  %v221_v26 = vld [vmem:[#allocation2 + $0x9c] sm:$0x1]  ;;  %214 = vst [vmem:[#allocation2 + $0x78] sm:$0x1] %v213_v23 }
  0x21   : > { %217 = vst [vmem:[#allocation2 + $0x84] sm:$0x1] %v216_v24  ;;  %v219_v27 = vsel %vm10590_vm3, 0, %v218_v25  ;;  %v222_v28 = vsel %vm10590_vm3, 0, %v221_v26  ;;  %v224_v29 = vld [vmem:[#allocation2 + $0xa8] sm:$0x1] }
  0x22   : > { %v227_v30 = vld [vmem:[#allocation2 + $0xb4] sm:$0x1]  ;;  %220 = vst [vmem:[#allocation2 + $0x90] sm:$0x1] %v219_v27  ;;  %223 = vst [vmem:[#allocation2 + $0x9c] sm:$0x1] %v222_v28 }
  0x23   : > { %v225_v31 = vsel %vm10590_vm3, 0, %v224_v29  ;;  %v228_v32 = vsel %vm10590_vm3, 0, %v227_v30  ;;  %v230_v33 = vld [vmem:[#allocation2 + $0xc0] sm:$0x1]  ;;  %v241_v34 = vld [vmem:[#allocation2 + $0x14] sm:$0x1] }
  0x24   : > { %226 = vst [vmem:[#allocation2 + $0xa8] sm:$0x1] %v225_v31  ;;  %229 = vst [vmem:[#allocation2 + $0xb4] sm:$0x1] %v228_v32  ;;  %v231_v35 = vsel %vm10590_vm3, 0, %v230_v33  ;;  %v242_v36 = vsel %vm10616_vm5, 0, %v241_v34 }
  0x25   : > { %v244_v37 = vld [vmem:[#allocation2 + $0x20] sm:$0x1]  ;;  %v247_v38 = vld [vmem:[#allocation2 + $0x2c] sm:$0x1]  ;;  %232 = vst [vmem:[#allocation2 + $0xc0] sm:$0x1] %v231_v35 }
  0x26   : > { %243 = vst [vmem:[#allocation2 + $0x14] sm:$0x1] %v242_v36  ;;  %v245_v39 = vsel %vm10616_vm5, 0, %v244_v37  ;;  %v248_v40 = vsel %vm10616_vm5, 0, %v247_v38  ;;  %v250_v41 = vld [vmem:[#allocation2 + $0x38] sm:$0x1] }
  0x27   : > { %v253_v42 = vld [vmem:[#allocation2 + $0x44] sm:$0x1]  ;;  %246 = vst [vmem:[#allocation2 + $0x20] sm:$0x1] %v245_v39  ;;  %249 = vst [vmem:[#allocation2 + $0x2c] sm:$0x1] %v248_v40 }
  0x28   : > { %v251_v43 = vsel %vm10616_vm5, 0, %v250_v41  ;;  %v254_v44 = vsel %vm10616_vm5, 0, %v253_v42  ;;  %v256_v45 = vld [vmem:[#allocation2 + $0x50] sm:$0x1]  ;;  %v259_v46 = vld [vmem:[#allocation2 + $0x5c] sm:$0x1] }
  0x29   : > { %252 = vst [vmem:[#allocation2 + $0x38] sm:$0x1] %v251_v43  ;;  %255 = vst [vmem:[#allocation2 + $0x44] sm:$0x1] %v254_v44  ;;  %v257_v47 = vsel %vm10616_vm5, 0, %v256_v45  ;;  %v260_v48 = vsel %vm10616_vm5, 0, %v259_v46 }
  0x2a   : > { %v262_v49 = vld [vmem:[#allocation2 + $0x68] sm:$0x1]  ;;  %v265_v50 = vld [vmem:[#allocation2 + $0x74] sm:$0x1]  ;;  %258 = vst [vmem:[#allocation2 + $0x50] sm:$0x1] %v257_v47 }
  0x2b   : > { %261 = vst [vmem:[#allocation2 + $0x5c] sm:$0x1] %v260_v48  ;;  %v263_v51 = vsel %vm10616_vm5, 0, %v262_v49  ;;  %v266_v52 = vsel %vm10616_vm5, 0, %v265_v50  ;;  %v268_v53 = vld [vmem:[#allocation2 + $0x80] sm:$0x1] }
  0x2c   : > { %v271_v54 = vld [vmem:[#allocation2 + $0x8c] sm:$0x1]  ;;  %264 = vst [vmem:[#allocation2 + $0x68] sm:$0x1] %v263_v51  ;;  %267 = vst [vmem:[#allocation2 + $0x74] sm:$0x1] %v266_v52 }
  0x2d   : > { %v269_v55 = vsel %vm10616_vm5, 0, %v268_v53  ;;  %v272_v56 = vsel %vm10616_vm5, 0, %v271_v54  ;;  %v274_v57 = vld [vmem:[#allocation2 + $0x98] sm:$0x1]  ;;  %v277_v58 = vld [vmem:[#allocation2 + $0xa4] sm:$0x1] }
  0x2e   : > { %270 = vst [vmem:[#allocation2 + $0x80] sm:$0x1] %v269_v55  ;;  %273 = vst [vmem:[#allocation2 + $0x8c] sm:$0x1] %v272_v56  ;;  %v275_v59 = vsel %vm10616_vm5, 0, %v274_v57  ;;  %v278_v60 = vsel %vm10616_vm5, 0, %v277_v58 }
  0x2f   : > { %v280_v61 = vld [vmem:[#allocation2 + $0xb0] sm:$0x1]  ;;  %v283_v62 = vld [vmem:[#allocation2 + $0xbc] sm:$0x1]  ;;  %276 = vst [vmem:[#allocation2 + $0x98] sm:$0x1] %v275_v59 }
  0x30   : > { %279 = vst [vmem:[#allocation2 + $0xa4] sm:$0x1] %v278_v60  ;;  %v281_v63 = vsel %vm10616_vm5, 0, %v280_v61  ;;  %v284_v0 = vsel %vm10616_vm5, 0, %v283_v62  ;;  %v286_v2 = vld [vmem:[#allocation2 + $0xc8] sm:$0x1] }
  0x31   : > { %v182_v3 = vld [vmem:[#allocation2] sm:$0x1]  ;;  %282 = vst [vmem:[#allocation2 + $0xb0] sm:$0x1] %v281_v63  ;;  %285 = vst [vmem:[#allocation2 + $0xbc] sm:$0x1] %v284_v0 }
  0x32   : > { %v287_v4 = vsel %vm10616_vm5, 0, %v286_v2  ;;  %v183_v5 = vsel %vm10590_vm3, 0, %v182_v3  ;;  %v233_v6 = vld [vmem:[#allocation2 + $0xcc] sm:$0x1]  ;;  %v238_v7 = vld [vmem:[#allocation2 + $0x8] sm:$0x1] }
  0x33   : > { %288 = vst [vmem:[#allocation2 + $0xc8] sm:$0x1] %v287_v4  ;;  %184 = vst [vmem:[#allocation2] sm:$0x1] %v183_v5  ;;  %v234_v8 = vsel %vm10590_vm3, 0, %v233_v6  ;;  %v239_v9 = vsel %vm10616_vm5, 0, %v238_v7 }
  0x34   : > { %v289_v10 = vld [vmem:[#allocation2 + $0xd4] sm:$0x1]  ;;  %235 = vst [vmem:[#allocation2 + $0xcc] sm:$0x1] %v234_v8  ;;  %240 = vst [vmem:[#allocation2 + $0x8] sm:$0x1] %v239_v9 }
  0x35   : > { %v290_v11 = vsel %vm10616_vm5, 0, %v289_v10  ;;  %s9260_s27 = sshll.u32 %s165_s26, 8  ;;  %vm420_vm6 = vsmask.f32 4368  ;;  %v13915_v32 = vmov 0  ;;  %v13918_v38 = vmov 0 }
  0x36   : > { %291 = vst [vmem:[#allocation2 + $0xd4] sm:$0x1] %v290_v11  ;;  %s10680_s30 = scalar_lea.vmem %s13856_s0, %s9260_s27  ;;  %v13916_v32 = vsel %vm10714_vm7, 4294967295, %v13915_v32  ;;  %v745_v34 = vld [vmem:[#allocation2 + $0xc] sm:$0xf]  ;;  %vm10720_vm8 = vmor %vm180_vm2, %vm420_vm6  ;;  %s10969_s5 = smov 0  }
  0x37   : > { %v10683_v12 = vld [vmem:[%s10680_s30] sm:$0xff]  ;;  %v10686_v13 = vld [vmem:[%s10680_s30 + $0x8] sm:$0xff]  ;;  %v10689_v14 = vld [vmem:[%s10680_s30 + $0x10] sm:$0xff]  ;;  %13917 = vst [vmem:[#allocation13_spill] sm:$0xff] %v13916_v32  ;;  %v13919_v38 = vsel %vm10720_vm8, 4294967295, %v13918_v38 }
  0x38   : > { %13909 = vst [vmem:[#allocation7_spill] sm:$0xff] %v10683_v12  ;;  %13910 = vst [vmem:[#allocation8_spill] sm:$0xff] %v10686_v13  ;;  %v9261_v15 = vpack.c.bf16 %v10683_v12, %v10683_v12  ;;  %v9262_v16 = vpack.c.bf16 %v10686_v13, %v10686_v13  ;;  %v9263_v17 = vpack.c.bf16 %v10689_v14, %v10689_v14  ;;  %v10698_v18 = vld [vmem:[%s10680_s30 + $0x18] sm:$0xff]  ;;  %v10701_v19 = vld [vmem:[%s10680_s30 + $0x20] sm:$0xff] }
  0x39   : > { %13911 = vst [vmem:[#allocation9_spill] sm:$0xff] %v10689_v14  ;;  %13912 = vst [vmem:[#allocation10_spill] sm:$0xff] %v10698_v18  ;;  %v10704_v20 = vld [vmem:[%s10680_s30 + $0x28] sm:$0xff]  ;;  %v9264_v21 = vpack.c.bf16 %v10698_v18, %v10698_v18  ;;  %v9265_v22 = vpack.c.bf16 %v10701_v19, %v10701_v19  ;;  %v749_v39 = vld [vmem:[#allocation2 + $0x14] sm:$0x1] }
  0x3a   : > { %13913 = vst [vmem:[#allocation11_spill] sm:$0xff] %v10701_v19  ;;  %13914 = vst [vmem:[#allocation12_spill] sm:$0xff] %v10704_v20  ;;  %v9266_v23 = vpack.c.bf16 %v10704_v20, %v10704_v20  ;;  %v423_v24 = vshrl.u32 %v9261_v15, 16  ;;  %v426_v25 = vshll.u32 %v9261_v15, 16  ;;  %v431_v26 = vshrl.u32 %v9262_v16, 16  ;;  %v10725_v54 = vld [vmem:[%s10680_s30 + $0x30] sm:$0xff] }
  0x3b   : > { %v434_v27 = vshll.u32 %v9262_v16, 16  ;;  %v440_v28 = vshrl.u32 %v9263_v17, 16  ;;  %v443_v29 = vshll.u32 %v9263_v17, 16  ;;  %v448_v30 = vshrl.u32 %v9264_v21, 16  ;;  %13920 = vst [vmem:[#allocation14_spill] sm:$0xff] %v13919_v38  ;;  %13921 = vst [vmem:[#allocation15_spill] sm:$0xff] %v10725_v54 }
  0x3c   : > { %v451_v31 = vshll.u32 %v9264_v21, 16  ;;  %v425_v33 = vrot.slane %v423_v24, 7  ;;  %v433_v35 = vrot.slane %v431_v26, 7  ;;  %v457_v36 = vshrl.u32 %v9265_v22, 16  ;;  %v752_v48 = vld [vmem:[#allocation2 + $0x18] sm:$0xf] }
  0x3d   : > { %v460_v37 = vshll.u32 %v9265_v22, 16  ;;  %v442_v40 = vrot.slane %v440_v28, 7  ;;  %v450_v41 = vrot.slane %v448_v30, 7  ;;  %v465_v42 = vshrl.u32 %v9266_v23, 16  ;;  %v756_v49 = vld [vmem:[#allocation2 + $0x20] sm:$0x1] }
  0x3e   : > { %v468_v43 = vshll.u32 %v9266_v23, 16  ;;  %v428_v44 = vor.u32 %v426_v25, %v425_v33  ;;  %v429_v45 = vrot.slane %v425_v33, 4  ;;  %v436_v46 = vor.u32 %v434_v27, %v433_v35  ;;  %v10728_v55 = vld [vmem:[%s10680_s30 + $0x38] sm:$0xff]  ;;  %v10737_v60 = vld [vmem:[%s10680_s30 + $0x40] sm:$0xff]  ;;  %v10740_v61 = vld [vmem:[%s10680_s30 + $0x48] sm:$0xff] }
  0x3f   : > { %v438_v47 = vrot.slane %v433_v35, 4  ;;  %v445_v50 = vor.u32 %v443_v29, %v442_v40  ;;  %v446_v51 = vrot.slane %v442_v40, 4  ;;  %v453_v52 = vor.u32 %v451_v31, %v450_v41  ;;  %13922 = vst [vmem:[#allocation16_spill] sm:$0xff] %v10728_v55  ;;  %13923 = vst [vmem:[#allocation17_spill] sm:$0xff] %v10737_v60  ;;  %v759_v2 = vld [vmem:[#allocation2 + $0x24] sm:$0xf] }
  0x40   : > { %v455_v53 = vrot.slane %v450_v41, 4  ;;  %v746_v56 = vsel %vm10714_vm7, %v428_v44, %v745_v34  ;;  %v437_v57 = vsel %vm10720_vm8, %v429_v45, %v436_v46  ;;  %v459_v59 = vrot.slane %v457_v36, 7  ;;  %13924 = vst [vmem:[#allocation18_spill] sm:$0xff] %v10740_v61  ;;  %v763_v6 = vld [vmem:[#allocation2 + $0x2c] sm:$0x1]  ;;  %v10761_v23 = vld [vmem:[%s10680_s30 + $0x50] sm:$0xff] }
  0x41   : > { %v750_v58 = vsel %vm10590_vm3, %v438_v47, %v749_v39  ;;  %747 = vst [vmem:[#allocation2 + $0xc] sm:$0xf] %v746_v56  ;;  %748 = vst.msk [vmem:[#allocation2 + $0x10] sm:$0xf] %vm170_vm0, %v437_v57  ;;  %v753_v62 = vsel %vm10714_vm7, %v445_v50, %v752_v48  ;;  %v454_v63 = vsel %vm10720_vm8, %v446_v51, %v453_v52  ;;  %v467_v3 = vrot.slane %v465_v42, 7  ;;  %v10764_v24 = vld [vmem:[%s10680_s30 + $0x58] sm:$0xff] }
  0x42   : > { %751 = vst [vmem:[#allocation2 + $0x14] sm:$0x1] %v750_v58  ;;  %v757_v0 = vsel %vm10590_vm3, %v455_v53, %v756_v49  ;;  %754 = vst [vmem:[#allocation2 + $0x18] sm:$0xf] %v753_v62  ;;  %v462_v4 = vor.u32 %v460_v37, %v459_v59  ;;  %v463_v5 = vrot.slane %v459_v59, 4  ;;  %v9267_v7 = vpack.c.bf16 %v10725_v54, %v10725_v54  ;;  %v10776_v50 = vld [vmem:[%s10680_s30 + $0x60] sm:$0xff] }
  0x43   : > { %755 = vst.msk [vmem:[#allocation2 + $0x1c] sm:$0xf] %vm170_vm0, %v454_v63  ;;  %758 = vst [vmem:[#allocation2 + $0x20] sm:$0x1] %v757_v0  ;;  %v9268_v8 = vpack.c.bf16 %v10728_v55, %v10728_v55  ;;  %v470_v9 = vor.u32 %v468_v43, %v467_v3  ;;  %v472_v10 = vrot.slane %v467_v3, 4  ;;  %v9269_v11 = vpack.c.bf16 %v10737_v60, %v10737_v60  ;;  %v10779_v51 = vld [vmem:[%s10680_s30 + $0x68] sm:$0xff] }
  0x44   : > { %v9270_v15 = vpack.c.bf16 %v10740_v61, %v10740_v61  ;;  %v760_v16 = vsel %vm10714_vm7, %v462_v4, %v759_v2  ;;  %v474_v17 = vshrl.u32 %v9267_v7, 16  ;;  %v477_v21 = vshll.u32 %v9267_v7, 16  ;;  %13925 = vst [vmem:[#allocation19_spill] sm:$0xff] %v10761_v23  ;;  %13926 = vst [vmem:[#allocation20_spill] sm:$0xff] %v10764_v24  ;;  %v766_v34 = vld [vmem:[#allocation2 + $0x30] sm:$0xf] }
  0x45   : > { %v482_v22 = vshrl.u32 %v9268_v8, 16  ;;  %761 = vst [vmem:[#allocation2 + $0x24] sm:$0xf] %v760_v16  ;;  %v471_v25 = vsel %vm10720_vm8, %v463_v5, %v470_v9  ;;  %v764_v26 = vsel %vm10590_vm3, %v472_v10, %v763_v6  ;;  %v485_v27 = vshll.u32 %v9268_v8, 16  ;;  %v770_v35 = vld [vmem:[#allocation2 + $0x38] sm:$0x1] }
  0x46   : > { %v491_v28 = vshrl.u32 %v9269_v11, 16  ;;  %762 = vst.msk [vmem:[#allocation2 + $0x28] sm:$0xf] %vm170_vm0, %v471_v25  ;;  %765 = vst [vmem:[#allocation2 + $0x2c] sm:$0x1] %v764_v26  ;;  %v476_v29 = vrot.slane %v474_v17, 7  ;;  %v9271_v39 = vpack.c.bf16 %v10761_v23, %v10761_v23  ;;  %v9272_v40 = vpack.c.bf16 %v10764_v24, %v10764_v24 }
  0x47   : > { %v484_v30 = vrot.slane %v482_v22, 7  ;;  %v494_v31 = vshll.u32 %v9269_v11, 16  ;;  %v499_v33 = vshrl.u32 %v9270_v15, 16  ;;  %v502_v37 = vshll.u32 %v9270_v15, 16  ;;  %v773_v45 = vld [vmem:[#allocation2 + $0x3c] sm:$0xf] }
  0x48   : > { %v493_v36 = vrot.slane %v491_v28, 7  ;;  %v479_v41 = vor.u32 %v477_v21, %v476_v29  ;;  %v480_v42 = vrot.slane %v476_v29, 4  ;;  %v508_v49 = vshrl.u32 %v9271_v39, 16  ;;  %13927 = vst [vmem:[#allocation21_spill] sm:$0xff] %v10776_v50  ;;  %13928 = vst [vmem:[#allocation22_spill] sm:$0xff] %v10779_v51  ;;  %v10795_v7 = vld [vmem:[%s10680_s30 + $0x70] sm:$0xff] }
  0x49   : > { %v487_v43 = vor.u32 %v485_v27, %v484_v30  ;;  %v489_v44 = vrot.slane %v484_v30, 4  ;;  %v501_v48 = vrot.slane %v499_v33, 7  ;;  %v777_v57 = vld [vmem:[#allocation2 + $0x44] sm:$0x1]  ;;  %v511_v58 = vshll.u32 %v9271_v39, 16  ;;  %13929 = vst [vmem:[#allocation23_spill] sm:$0xff] %v10795_v7 }
  0x4a   : > { %v496_v46 = vor.u32 %v494_v31, %v493_v36  ;;  %v497_v47 = vrot.slane %v493_v36, 4  ;;  %v767_v52 = vsel %vm10714_vm7, %v479_v41, %v766_v34  ;;  %v510_v0 = vrot.slane %v508_v49, 7  ;;  %v780_v2 = vld [vmem:[#allocation2 + $0x48] sm:$0xf]  ;;  %v10798_v8 = vld [vmem:[%s10680_s30 + $0x78] sm:$0xff]  ;;  %v10812_v36 = vld [vmem:[%s10680_s30 + $0x80] sm:$0xff] }
  0x4b   : > { %v488_v53 = vsel %vm10720_vm8, %v480_v42, %v487_v43  ;;  %v771_v56 = vsel %vm10590_vm3, %v489_v44, %v770_v35  ;;  %768 = vst [vmem:[#allocation2 + $0x30] sm:$0xf] %v767_v52  ;;  %v504_v62 = vor.u32 %v502_v37, %v501_v48  ;;  %v506_v63 = vrot.slane %v501_v48, 4  ;;  %13930 = vst [vmem:[#allocation24_spill] sm:$0xff] %v10798_v8  ;;  %v784_v26 = vld [vmem:[#allocation2 + $0x50] sm:$0x1] }
  0x4c   : > { %769 = vst.msk [vmem:[#allocation2 + $0x34] sm:$0xf] %vm170_vm0, %v488_v53  ;;  %772 = vst [vmem:[#allocation2 + $0x38] sm:$0x1] %v771_v56  ;;  %v774_v59 = vsel %vm10714_vm7, %v496_v46, %v773_v45  ;;  %v516_v3 = vshrl.u32 %v9272_v40, 16  ;;  %v519_v4 = vshll.u32 %v9272_v40, 16  ;;  %v9273_v5 = vpack.c.bf16 %v10776_v50, %v10776_v50 }
  0x4d   : > { %775 = vst [vmem:[#allocation2 + $0x3c] sm:$0xf] %v774_v59  ;;  %v9274_v6 = vpack.c.bf16 %v10779_v51, %v10779_v51  ;;  %v505_v9 = vsel %vm10720_vm8, %v497_v47, %v504_v62  ;;  %v778_v10 = vsel %vm10590_vm3, %v506_v63, %v777_v57  ;;  %v513_v11 = vor.u32 %v511_v58, %v510_v0  ;;  %v787_v34 = vld [vmem:[#allocation2 + $0x54] sm:$0xf]  ;;  %v10815_v42 = vld [vmem:[%s10680_s30 + $0x88] sm:$0xff] }
  0x4e   : > { %v514_v15 = vrot.slane %v510_v0, 4  ;;  %776 = vst.msk [vmem:[#allocation2 + $0x40] sm:$0xf] %vm170_vm0, %v505_v9  ;;  %779 = vst [vmem:[#allocation2 + $0x44] sm:$0x1] %v778_v10  ;;  %v518_v16 = vrot.slane %v516_v3, 7  ;;  %v9275_v28 = vpack.c.bf16 %v10795_v7, %v10795_v7  ;;  %v9276_v29 = vpack.c.bf16 %v10798_v8, %v10798_v8 }
  0x4f   : > { %v525_v17 = vshrl.u32 %v9273_v5, 16  ;;  %v528_v21 = vshll.u32 %v9273_v5, 16  ;;  %v533_v22 = vshrl.u32 %v9274_v6, 16  ;;  %v781_v25 = vsel %vm10714_vm7, %v513_v11, %v780_v2  ;;  %13931 = vst [vmem:[#allocation25_spill] sm:$0xff] %v10812_v36  ;;  %13932 = vst [vmem:[#allocation26_spill] sm:$0xff] %v10815_v42  ;;  %v10818_v43 = vld [vmem:[%s10680_s30 + $0x90] sm:$0xff] }
  0x50   : > { %v536_v27 = vshll.u32 %v9274_v6, 16  ;;  %782 = vst [vmem:[#allocation2 + $0x48] sm:$0xf] %v781_v25  ;;  %v521_v30 = vor.u32 %v519_v4, %v518_v16  ;;  %v523_v31 = vrot.slane %v518_v16, 4  ;;  %v542_v37 = vshrl.u32 %v9275_v28, 16  ;;  %13933 = vst [vmem:[#allocation27_spill] sm:$0xff] %v10818_v43 }
  0x51   : > { %v527_v33 = vrot.slane %v525_v17, 7  ;;  %v535_v35 = vrot.slane %v533_v22, 7  ;;  %v545_v39 = vshll.u32 %v9275_v28, 16  ;;  %v550_v40 = vshrl.u32 %v9276_v29, 16  ;;  %v791_v48 = vld [vmem:[#allocation2 + $0x5c] sm:$0x1] }
  0x52   : > { %v553_v41 = vshll.u32 %v9276_v29, 16  ;;  %v522_v44 = vsel %vm10720_vm8, %v514_v15, %v521_v30  ;;  %v785_v45 = vsel %vm10590_vm3, %v523_v31, %v784_v26  ;;  %v544_v53 = vrot.slane %v542_v37, 7  ;;  %v794_v58 = vld [vmem:[#allocation2 + $0x60] sm:$0xf]  ;;  %v798_v5 = vld [vmem:[#allocation2 + $0x68] sm:$0x1] }
  0x53   : > { %v530_v46 = vor.u32 %v528_v21, %v527_v33  ;;  %v531_v47 = vrot.slane %v527_v33, 4  ;;  %783 = vst.msk [vmem:[#allocation2 + $0x4c] sm:$0xf] %vm170_vm0, %v522_v44  ;;  %786 = vst [vmem:[#allocation2 + $0x50] sm:$0x1] %v785_v45  ;;  %v538_v49 = vor.u32 %v536_v27, %v535_v35  ;;  %v540_v52 = vrot.slane %v535_v35, 4 }
  0x54   : > { %v552_v56 = vrot.slane %v550_v40, 7  ;;  %v9277_v59 = vpack.c.bf16 %v10812_v36, %v10812_v36  ;;  %v9278_v62 = vpack.c.bf16 %v10815_v42, %v10815_v42  ;;  %v9279_v63 = vpack.c.bf16 %v10818_v43, %v10818_v43  ;;  %v10839_v15 = vld [vmem:[%s10680_s30 + $0x98] sm:$0xff]  ;;  %v10842_v16 = vld [vmem:[%s10680_s30 + $0xa0] sm:$0xff]  ;;  %v10847_v26 = vld [vmem:[%s10680_s30 + $0xa8] sm:$0xff] }
  0x55   : > { %v788_v57 = vsel %vm10714_vm7, %v530_v46, %v787_v34  ;;  %v539_v0 = vsel %vm10720_vm8, %v531_v47, %v538_v49  ;;  %v792_v2 = vsel %vm10590_vm3, %v540_v52, %v791_v48  ;;  %v547_v3 = vor.u32 %v545_v39, %v544_v53  ;;  %13934 = vst [vmem:[#allocation28_spill] sm:$0xff] %v10839_v15  ;;  %v10850_v27 = vld [vmem:[%s10680_s30 + $0xb0] sm:$0xff]  ;;  %v801_v33 = vld [vmem:[#allocation2 + $0x6c] sm:$0xf]  ;;  %v808_v45 = vld [vmem:[#allocation2 + $0x78] sm:$0xf] }
  0x56   : > { %789 = vst [vmem:[#allocation2 + $0x54] sm:$0xf] %v788_v57  ;;  %v548_v4 = vrot.slane %v544_v53, 4  ;;  %790 = vst.msk [vmem:[#allocation2 + $0x58] sm:$0xf] %vm170_vm0, %v539_v0  ;;  %v555_v6 = vor.u32 %v553_v41, %v552_v56  ;;  %v557_v9 = vrot.slane %v552_v56, 4  ;;  %v9280_v37 = vpack.c.bf16 %v10839_v15, %v10839_v15 }
  0x57   : > { %793 = vst [vmem:[#allocation2 + $0x5c] sm:$0x1] %v792_v2  ;;  %v559_v10 = vshrl.u32 %v9277_v59, 16  ;;  %v562_v11 = vshll.u32 %v9277_v59, 16  ;;  %13935 = vst [vmem:[#allocation29_spill] sm:$0xff] %v10842_v16  ;;  %v795_v17 = vsel %vm10714_vm7, %v547_v3, %v794_v58  ;;  %v567_v21 = vshrl.u32 %v9278_v62, 16 }
  0x58   : > { %v570_v22 = vshll.u32 %v9278_v62, 16  ;;  %v576_v25 = vshrl.u32 %v9279_v63, 16  ;;  %13936 = vst [vmem:[#allocation30_spill] sm:$0xff] %v10847_v26  ;;  %13937 = vst [vmem:[#allocation31_spill] sm:$0xff] %v10850_v27  ;;  %v556_v28 = vsel %vm10720_vm8, %v548_v4, %v555_v6  ;;  %v799_v29 = vsel %vm10590_vm3, %v557_v9, %v798_v5  ;;  %v805_v44 = vld [vmem:[#allocation2 + $0x74] sm:$0x1] }
  0x59   : > { %796 = vst [vmem:[#allocation2 + $0x60] sm:$0xf] %v795_v17  ;;  %v561_v30 = vrot.slane %v559_v10, 7  ;;  %v579_v31 = vshll.u32 %v9279_v63, 16  ;;  %797 = vst.msk [vmem:[#allocation2 + $0x64] sm:$0xf] %vm170_vm0, %v556_v28  ;;  %v9281_v39 = vpack.c.bf16 %v10842_v16, %v10842_v16  ;;  %v9282_v46 = vpack.c.bf16 %v10847_v26, %v10847_v26 }
  0x5a   : > { %800 = vst [vmem:[#allocation2 + $0x68] sm:$0x1] %v799_v29  ;;  %v569_v34 = vrot.slane %v567_v21, 7  ;;  %v578_v35 = vrot.slane %v576_v25, 7  ;;  %v9283_v47 = vpack.c.bf16 %v10850_v27, %v10850_v27  ;;  %v584_v57 = vshrl.u32 %v9280_v37, 16  ;;  %v10868_v62 = vld [vmem:[%s10680_s30 + $0xb8] sm:$0xff] }
  0x5b   : > { %v564_v40 = vor.u32 %v562_v11, %v561_v30  ;;  %v565_v41 = vrot.slane %v561_v30, 4  ;;  %v587_v58 = vshll.u32 %v9280_v37, 16  ;;  %v593_v59 = vshrl.u32 %v9281_v39, 16  ;;  %13938 = vst [vmem:[#allocation32_spill] sm:$0xff] %v10868_v62  ;;  %v10871_v63 = vld [vmem:[%s10680_s30 + $0xc0] sm:$0xff] }
  0x5c   : > { %v572_v48 = vor.u32 %v570_v22, %v569_v34  ;;  %v574_v49 = vrot.slane %v569_v34, 4  ;;  %v581_v52 = vor.u32 %v579_v31, %v578_v35  ;;  %v582_v53 = vrot.slane %v578_v35, 4  ;;  %13939 = vst [vmem:[#allocation33_spill] sm:$0xff] %v10871_v63  ;;  %v812_v11 = vld [vmem:[#allocation2 + $0x80] sm:$0x1] }
  0x5d   : > { %v802_v56 = vsel %vm10714_vm7, %v564_v40, %v801_v33  ;;  %v596_v4 = vshll.u32 %v9281_v39, 16  ;;  %v586_v5 = vrot.slane %v584_v57, 7  ;;  %v595_v6 = vrot.slane %v593_v59, 7  ;;  %v815_v17 = vld [vmem:[#allocation2 + $0x84] sm:$0xf]  ;;  %v10885_v40 = vld [vmem:[%s10680_s30 + $0xc8] sm:$0xff] }
  0x5e   : > { %803 = vst [vmem:[#allocation2 + $0x6c] sm:$0xf] %v802_v56  ;;  %v573_v0 = vsel %vm10720_vm8, %v565_v41, %v572_v48  ;;  %v806_v2 = vsel %vm10590_vm3, %v574_v49, %v805_v44  ;;  %v809_v3 = vsel %vm10714_vm7, %v581_v52, %v808_v45  ;;  %v601_v9 = vshrl.u32 %v9282_v46, 16  ;;  %13940 = vst [vmem:[#allocation34_spill] sm:$0xff] %v10885_v40  ;;  %v10894_v49 = vld [vmem:[%s10680_s30 + $0xd0] sm:$0xff] }
  0x5f   : > { %804 = vst.msk [vmem:[#allocation2 + $0x70] sm:$0xf] %vm170_vm0, %v573_v0  ;;  %807 = vst [vmem:[#allocation2 + $0x74] sm:$0x1] %v806_v2  ;;  %v604_v10 = vshll.u32 %v9282_v46, 16  ;;  %v610_v21 = vshrl.u32 %v9283_v47, 16  ;;  %v9284_v25 = vpack.c.bf16 %v10868_v62, %v10868_v62  ;;  %v9285_v28 = vpack.c.bf16 %v10871_v63, %v10871_v63 }
  0x60   : > { %810 = vst [vmem:[#allocation2 + $0x78] sm:$0xf] %v809_v3  ;;  %v613_v22 = vshll.u32 %v9283_v47, 16  ;;  %v589_v29 = vor.u32 %v587_v58, %v586_v5  ;;  %v591_v30 = vrot.slane %v586_v5, 4  ;;  %v598_v31 = vor.u32 %v596_v4, %v595_v6  ;;  %v819_v46 = vld [vmem:[#allocation2 + $0x8c] sm:$0x1] }
  0x61   : > { %v599_v33 = vrot.slane %v595_v6, 4  ;;  %v603_v34 = vrot.slane %v601_v9, 7  ;;  %v612_v35 = vrot.slane %v610_v21, 7  ;;  %v618_v37 = vshrl.u32 %v9284_v25, 16  ;;  %v822_v47 = vld [vmem:[#allocation2 + $0x90] sm:$0xf] }
  0x62   : > { %v621_v39 = vshll.u32 %v9284_v25, 16  ;;  %v590_v41 = vsel %vm10720_vm8, %v582_v53, %v589_v29  ;;  %v813_v44 = vsel %vm10590_vm3, %v591_v30, %v812_v11  ;;  %v816_v45 = vsel %vm10714_vm7, %v598_v31, %v815_v17  ;;  %13941 = vst [vmem:[#allocation35_spill] sm:$0xff] %v10894_v49  ;;  %v826_v6 = vld [vmem:[#allocation2 + $0x98] sm:$0x1]  ;;  %v829_v9 = vld [vmem:[#allocation2 + $0x9c] sm:$0xf] }
  0x63   : > { %v627_v48 = vshrl.u32 %v9285_v28, 16  ;;  %811 = vst.msk [vmem:[#allocation2 + $0x7c] sm:$0xf] %vm170_vm0, %v590_v41  ;;  %814 = vst [vmem:[#allocation2 + $0x80] sm:$0x1] %v813_v44  ;;  %v606_v52 = vor.u32 %v604_v10, %v603_v34  ;;  %v608_v56 = vrot.slane %v603_v34, 4  ;;  %v615_v57 = vor.u32 %v613_v22, %v612_v35 }
  0x64   : > { %817 = vst [vmem:[#allocation2 + $0x84] sm:$0xf] %v816_v45  ;;  %v616_v53 = vrot.slane %v612_v35, 4  ;;  %v620_v58 = vrot.slane %v618_v37, 7  ;;  %v630_v0 = vshll.u32 %v9285_v28, 16  ;;  %v9286_v2 = vpack.c.bf16 %v10885_v40, %v10885_v40  ;;  %v10908_v11 = vld [vmem:[%s10680_s30 + $0xd8] sm:$0xff] }
  0x65   : > { %v629_v59 = vrot.slane %v627_v48, 7  ;;  %v607_v3 = vsel %vm10720_vm8, %v599_v33, %v606_v52  ;;  %v820_v4 = vsel %vm10590_vm3, %v608_v56, %v819_v46  ;;  %v823_v5 = vsel %vm10714_vm7, %v615_v57, %v822_v47  ;;  %13942 = vst [vmem:[#allocation36_spill] sm:$0xff] %v10908_v11  ;;  %v10912_v28 = vld [vmem:[%s10680_s30 + $0xe0] sm:$0xff]  ;;  %v10915_v29 = vld [vmem:[%s10680_s30 + $0xe8] sm:$0xff]  ;;  %v10918_v35 = vld [vmem:[%s10680_s30 + $0xf0] sm:$0xff] }
  0x66   : > { %v9287_v10 = vpack.c.bf16 %v10894_v49, %v10894_v49  ;;  %818 = vst.msk [vmem:[#allocation2 + $0x88] sm:$0xf] %vm170_vm0, %v607_v3  ;;  %821 = vst [vmem:[#allocation2 + $0x8c] sm:$0x1] %v820_v4  ;;  %v623_v17 = vor.u32 %v621_v39, %v620_v58  ;;  %v625_v21 = vrot.slane %v620_v58, 4  ;;  %v635_v30 = vshrl.u32 %v9286_v2, 16 }
  0x67   : > { %824 = vst [vmem:[#allocation2 + $0x90] sm:$0xf] %v823_v5  ;;  %v632_v22 = vor.u32 %v630_v0, %v629_v59  ;;  %v633_v25 = vrot.slane %v629_v59, 4  ;;  %13943 = vst [vmem:[#allocation37_spill] sm:$0xff] %v10912_v28  ;;  %v638_v31 = vshll.u32 %v9286_v2, 16  ;;  %v10921_v37 = vld [vmem:[%s10680_s30 + $0xf8] sm:$0xff]  ;;  %v9288_v45 = vpack.c.bf16 %v10908_v11, %v10908_v11 }
  0x68   : > { %13944 = vst [vmem:[#allocation38_spill] sm:$0xff] %v10915_v29  ;;  %v644_v33 = vshrl.u32 %v9287_v10, 16  ;;  %v647_v34 = vshll.u32 %v9287_v10, 16  ;;  %13945 = vst [vmem:[#allocation39_spill] sm:$0xff] %v10918_v35  ;;  %v624_v41 = vsel %vm10720_vm8, %v616_v53, %v623_v17  ;;  %v827_v39 = vsel %vm10590_vm3, %v625_v21, %v826_v6  ;;  %v833_v56 = vld [vmem:[#allocation2 + $0xa4] sm:$0x1] }
  0x69   : > { %13946 = vst [vmem:[#allocation40_spill] sm:$0xff] %v10921_v37  ;;  %v830_v44 = vsel %vm10714_vm7, %v632_v22, %v829_v9  ;;  %825 = vst.msk [vmem:[#allocation2 + $0x94] sm:$0xf] %vm170_vm0, %v624_v41  ;;  %v637_v46 = vrot.slane %v635_v30, 7  ;;  %v9289_v48 = vpack.c.bf16 %v10912_v28, %v10912_v28  ;;  %v9290_v52 = vpack.c.bf16 %v10915_v29, %v10915_v29  ;;  %v836_v57 = vld [vmem:[#allocation2 + $0xa8] sm:$0xf] }
  0x6a   : > { %828 = vst [vmem:[#allocation2 + $0x98] sm:$0x1] %v827_v39  ;;  %831 = vst [vmem:[#allocation2 + $0x9c] sm:$0xf] %v830_v44  ;;  %v646_v47 = vrot.slane %v644_v33, 7  ;;  %v652_v53 = vshrl.u32 %v9288_v45, 16  ;;  %v9291_v59 = vpack.c.bf16 %v10918_v35, %v10918_v35  ;;  %v9292_v0 = vpack.c.bf16 %v10921_v37, %v10921_v37 }
  0x6b   : > { %v655_v58 = vshll.u32 %v9288_v45, 16  ;;  %v640_v2 = vor.u32 %v638_v31, %v637_v46  ;;  %v642_v3 = vrot.slane %v637_v46, 4  ;;  %v661_v9 = vshrl.u32 %v9289_v48, 16  ;;  %v840_v33 = vld [vmem:[#allocation2 + $0xb0] sm:$0x1] }
  0x6c   : > { %v649_v4 = vor.u32 %v647_v34, %v646_v47  ;;  %v650_v5 = vrot.slane %v646_v47, 4  ;;  %v654_v6 = vrot.slane %v652_v53, 7  ;;  %v664_v10 = vshll.u32 %v9289_v48, 16  ;;  %v843_v45 = vld [vmem:[#allocation2 + $0xb4] sm:$0xf] }
  0x6d   : > { %v669_v17 = vshrl.u32 %v9290_v52, 16  ;;  %v641_v21 = vsel %vm10720_vm8, %v633_v25, %v640_v2  ;;  %v834_v22 = vsel %vm10590_vm3, %v642_v3, %v833_v56  ;;  %v672_v41 = vshll.u32 %v9290_v52, 16  ;;  %v847_v2 = vld [vmem:[#allocation2 + $0xbc] sm:$0x1] }
  0x6e   : > { %v837_v30 = vsel %vm10714_vm7, %v649_v4, %v836_v57  ;;  %832 = vst.msk [vmem:[#allocation2 + $0xa0] sm:$0xf] %vm170_vm0, %v641_v21  ;;  %835 = vst [vmem:[#allocation2 + $0xa4] sm:$0x1] %v834_v22  ;;  %v657_v31 = vor.u32 %v655_v58, %v654_v6  ;;  %v659_v34 = vrot.slane %v654_v6, 4  ;;  %v663_v39 = vrot.slane %v661_v9, 7 }
  0x6f   : > { %838 = vst [vmem:[#allocation2 + $0xa8] sm:$0xf] %v837_v30  ;;  %v671_v44 = vrot.slane %v669_v17, 7  ;;  %v678_v46 = vshrl.u32 %v9291_v59, 16  ;;  %v681_v47 = vshll.u32 %v9291_v59, 16  ;;  %v686_v25 = vshrl.u32 %v9292_v0, 16 }
  0x70   : > { %v689_v48 = vshll.u32 %v9292_v0, 16  ;;  %v658_v56 = vsel %vm10720_vm8, %v650_v5, %v657_v31  ;;  %v841_v57 = vsel %vm10590_vm3, %v659_v34, %v840_v33  ;;  %v666_v52 = vor.u32 %v664_v10, %v663_v39  ;;  %v850_v0 = vld [vmem:[#allocation2 + $0xc0] sm:$0xf]  ;;  %v854_v21 = vld [vmem:[#allocation2 + $0xc8] sm:$0x1] }
  0x71   : > { %v667_v53 = vrot.slane %v663_v39, 4  ;;  %839 = vst.msk [vmem:[#allocation2 + $0xac] sm:$0xf] %vm170_vm0, %v658_v56  ;;  %842 = vst [vmem:[#allocation2 + $0xb0] sm:$0x1] %v841_v57  ;;  %v674_v58 = vor.u32 %v672_v41, %v671_v44  ;;  %v676_v3 = vrot.slane %v671_v44, 4 }
  0x72   : > { %v680_v4 = vrot.slane %v678_v46, 7  ;;  %v688_v6 = vrot.slane %v686_v25, 7  ;;  %v844_v59 = vsel %vm10714_vm7, %v666_v52, %v843_v45 }
  0x73   : > { %845 = vst [vmem:[#allocation2 + $0xb4] sm:$0xf] %v844_v59  ;;  %v675_v5 = vsel %vm10720_vm8, %v667_v53, %v674_v58  ;;  %v848_v9 = vsel %vm10590_vm3, %v676_v3, %v847_v2 }
  0x74   : > { %v683_v10 = vor.u32 %v681_v47, %v680_v4  ;;  %v684_v17 = vrot.slane %v680_v4, 4  ;;  %846 = vst.msk [vmem:[#allocation2 + $0xb8] sm:$0xf] %vm170_vm0, %v675_v5  ;;  %849 = vst [vmem:[#allocation2 + $0xbc] sm:$0x1] %v848_v9  ;;  %v691_v22 = vor.u32 %v689_v48, %v688_v6  ;;  %v693_v30 = vrot.slane %v688_v6, 4 }
  0x76   : > { %v851_v33 = vsel %vm10714_vm7, %v683_v10, %v850_v0  ;;  %v692_v41 = vsel %vm10720_vm8, %v684_v17, %v691_v22  ;;  %v855_v31 = vsel %vm10590_vm3, %v693_v30, %v854_v21 }
  0x77   : > { %852 = vst [vmem:[#allocation2 + $0xc0] sm:$0xf] %v851_v33  ;;  %853 = vst.msk [vmem:[#allocation2 + $0xc4] sm:$0xf] %vm170_vm0, %v692_v41 }
  0x78   : > { %856 = vst [vmem:[#allocation2 + $0xc8] sm:$0x1] %v855_v31 }
  0x79 LB: >> { %v10974_v34 = vld [vmem:[#allocation2 + $0x9c] sm:$0xf]  ;;  %v10976_v39 = vld [vmem:[#allocation2 + $0xa0] sm:$0xf]  ;;  %v10980_v45 = vld [vmem:[#allocation2 + $0xc] sm:$0xf]  ;;  %s3634_s19 = scalar_lea.vmem %s13858_s2, %s10502_s5  ;;  %s10502_s5 = sphi %s10969_s5, %s862_s5  }
  0x7a   : >> { %v8767_v44 = vcombine.low %v10974_v34, %v10976_v39  ;;  %v10982_v46 = vld [vmem:[#allocation2 + $0x10] sm:$0xf]  ;;  %s10505_s6 = smov 64   ;;  %v888_v48 = vld [vmem:[#allocation2 + $0x94] sm:$0xf]  ;;  %s9293_s7 = smul.u32 288, %s10502_s5 }
  0x7b   : >> { %v887_v47 = vld [vmem:[#allocation2 + $0x90] sm:$0xf]  ;;  %v8755_v25 = vcombine.low %v10980_v45, %v10982_v46  ;;  %v907_v56 = vld [vmem:[#allocation2 + $0x98] sm:$0x1]  ;;  %vm911_vm9 = vsmask.f32 3328 }
  0x7c   : >> { %2974 = vrot.lane.b32.xlu0 %v8767_v44, %s10505_s6  ;;  %vm912_vm10 = vsmask.f32 7440  ;;  %v1203_v57 = vshrl.u32 %v887_v47, 16  ;;  %v1206_v52 = vshll.u32 %v887_v47, 16  ;;  %v1212_v53 = vshll.u32 %v888_v48, 16  ;;  %s10992_s10 = scalar_lea.vmem %s13857_s1, %s9293_s7  ;;  %s862_s5 = sadd.s32 1, %s10502_s5  }
  0x7d   : >> { %2950 = vrot.lane.b32.xlu1 %v8755_v25, %s10505_s6  ;;  %v863_v2 = vld [vmem:[#allocation2] sm:$0xf]  ;;  %v1216_v58 = vshrl.u32 %v888_v48, 16  ;;  %v1222_v3 = vshll.u32 %v907_v56, 16  ;;  %v864_v4 = vld [vmem:[#allocation2 + $0x4] sm:$0xf]  ;;  %vm10997_vm11 = vmor %vm911_vm9, %vm912_vm10 }
  0x7e   : >> { %v895_v6 = vld [vmem:[#allocation2 + $0x8] sm:$0x1]  ;;  %v1205_v59 = vrot.slane %v1203_v57, 4  ;;  %v1208_v0 = vrot.slane %v1206_v52, 5  ;;  %v1214_v5 = vrot.slane %v1212_v53, 5  ;;  %v915_v9 = vshrl.u32 %v863_v2, 16 }
  0x7f   : >> { %v1218_v10 = vrot.slane %v1216_v58, 4  ;;  %v918_v17 = vshll.u32 %v863_v2, 16  ;;  %v924_v21 = vshll.u32 %v864_v4, 16  ;;  %v928_v33 = vshrl.u32 %v864_v4, 16  ;;  %v9994_v31 = vld [vmem:[%s10992_s10 + $0x78] sm:$0xff]   ;;  %v9998_v35 = vld [vmem:[%s10992_s10 + $0x30] sm:$0xff]  }
  0x80   : >> { %v1209_v22 = vor.u32 %v1208_v0, %v1205_v59  ;;  %v917_v30 = vrot.slane %v915_v9, 4  ;;  %v934_v41 = vshll.u32 %v895_v6, 16  ;;  %v13947_v44 = vmov 0  ;;  %v889_v57 = vld [vmem:[#allocation2 + $0x9c] sm:$0xf]  ;;  %9895 = vmatprep.subr.bf16.mxu1 %v9994_v31  ;;  %9327 = vmatprep.subr.bf16.mxu0 %v9994_v31  ;;  %v10006_v26 = vld [vmem:[%s10992_s10 + $0x10] sm:$0xff]  }
  0x81   : >> { %v13948_v44 = vsel %vm10997_vm11, 4294967295, %v13947_v44  ;;  %v1219_v47 = vor.u32 %v1218_v10, %v1214_v5  ;;  %v1224_v25 = vrot.slane %v1222_v3, 5  ;;  %v920_v48 = vrot.slane %v918_v17, 5  ;;  %v9995_v52 = vld [vmem:[%s10992_s10 + $0x38] sm:$0xff]   ;;  %v890_v58 = vld [vmem:[#allocation2 + $0xa0] sm:$0xf] }
  0x82   : >> { %13949 = vst [vmem:[#allocation41_spill] sm:$0xff] %v13948_v44  ;;  %v926_v56 = vrot.slane %v924_v21, 5  ;;  %v1210_v53 = vrot.slane %v1209_v22, 4  ;;  %v930_v2 = vrot.slane %v928_v33, 4  ;;  %9903 = vmatpush3.bf16.msra.mxu1 %v9995_v52  ;;  %9328 = vmatpush3.bf16.msra.mxu0 %v9995_v52  ;;  %v936_v3 = vrot.slane %v934_v41, 5  ;;  %p859_p11 = scmp.ge.s32.totalorder %s862_s5, 4  }
  0x83   : >> { %v1220_v4 = vrot.slane %v1219_v47, 4  ;;  %v921_v6 = vor.u32 %v920_v48, %v917_v30  ;;  %v1503_v9 = vld [vmem:[#allocation2 + $0xa8] sm:$0xf]  ;;  %v908_v10 = vld [vmem:[#allocation2 + $0xa4] sm:$0x1]  ;;  %v1227_v17 = vshrl.u32 %v889_v57, 16 }
  0x84   : >> { %v1215_v59 = vsel %vm10997_vm11, %v1210_v53, %v1214_v5  ;;  %v931_v0 = vor.u32 %v930_v2, %v926_v56  ;;  %v1504_v33 = vld [vmem:[#allocation2 + $0xac] sm:$0xf]  ;;  %v1230_v31 = vshll.u32 %v889_v57, 16  ;;  %v1236_v37 = vshll.u32 %v890_v58, 16  ;;  %v9996_v47 = vld [vmem:[%s10992_s10 + $0x70] sm:$0xff]   ;;  %s10506_s26 = smov (%p859_p11), 64  }
  0x85   : >> { %v1225_v21 = vsel %vm10997_vm11, %v1220_v4, %v1224_v25  ;;  %v922_v22 = vrot.slane %v921_v6, 4  ;;  %v1229_v52 = vrot.slane %v1227_v17, 4  ;;  %v1240_v29 = vshrl.u32 %v890_v58, 16  ;;  %v865_v28 = vld [vmem:[#allocation2 + $0xc] sm:$0xf]  ;;  %9896 = vmatprep.subr.bf16.mxu1 %v9996_v47  ;;  %9329 = vmatprep.subr.bf16.mxu0 %v9996_v47  ;;  %s9326_s20 = sshll.u32 (%p859_p11), %s10551_s16, 12 }
  0x86   : >> { %v8735_v30 = vcombine.low %v1215_v59, %v1225_v21  ;;  %v932_v48 = vrot.slane %v931_v0, 4  ;;  %v1232_v41 = vrot.slane %v1230_v31, 5  ;;  %v1238_v53 = vrot.slane %v1236_v37, 5  ;;  %v866_v6 = vld [vmem:[#allocation2 + $0x10] sm:$0xf]  ;;  %9904 = vmatpush3.bf16.msra.mxu1 %v9998_v35  ;;  %9330 = vmatpush3.bf16.msra.mxu0 %v9998_v35  ;;  %s8550_s25 = sshll.u32 (%p859_p11), %s10967_s4, 4  ;;  %s13807_s29 = scalar_lea.hbm (%p859_p11), %s13859_s3, %s9326_s20  ;;  %s13809_s25 = int_to_ptr.vmem [resolvable:$true] %s8550_s25 }
  0x87   : >> { %v927_v5 = vsel %vm10997_vm11, %v922_v22, %v926_v56  ;;  %v1246_v2 = vshll.u32 %v908_v10, 16  ;;  %v8768_v57 = vcombine.low %v1503_v9, %v1504_v33  ;;  %v1242_v4 = vrot.slane %v1240_v29, 4  ;;  %v11013_v0 = vld [vmem:[#allocation2 + $0x18] sm:$0xf]  ;;  %v11015_v56 = vld [vmem:[#allocation2 + $0x1c] sm:$0xf] }
  0x88   : >> { %2830 = vrot.lane.b32.xlu0 %v8735_v30, %s10505_s6  ;;  %v937_v25 = vsel %vm10997_vm11, %v932_v48, %v936_v3  ;;  %v1233_v59 = vor.u32 %v1232_v41, %v1229_v52  ;;  %v896_v37 = vld [vmem:[#allocation2 + $0x14] sm:$0x1]  ;;  %v939_v21 = vshrl.u32 %v865_v28, 16  ;;  %v9999_v22 = vld [vmem:[%s10992_s10 + $0x68] sm:$0xff]   ;;  %v942_v3 = vshll.u32 %v865_v28, 16  ;;  %s13816_s16 = scalar_lea.sflag (%p859_p11), [#allocation4], %s161_s24 }
  0x89   : >> { %v8723_v58 = vcombine.low %v927_v5, %v937_v25  ;;  %v1243_v10 = vor.u32 %v1242_v4, %v1238_v53  ;;  %v1248_v17 = vrot.slane %v1246_v2, 5  ;;  %v948_v9 = vshll.u32 %v866_v6, 16  ;;  %v1505_v33 = vld [vmem:[#allocation2 + $0xb4] sm:$0xf]  ;;  %v1506_v47 = vld [vmem:[#allocation2 + $0xb8] sm:$0xf]  ;;  %9897 = vmatprep.subr.bf16.mxu1 %v9999_v22  ;;  %9331 = vmatprep.subr.bf16.mxu0 %v9999_v22 }
  0x8a   : >> { %v1234_v31 = vrot.slane %v1233_v59, 4  ;;  %v952_v29 = vshrl.u32 %v866_v6, 16  ;;  %v8756_v35 = vcombine.low %v11013_v0, %v11015_v56  ;;  %v941_v48 = vrot.slane %v939_v21, 4  ;;  %v891_v5 = vld [vmem:[#allocation2 + $0xa8] sm:$0xf]  ;;  %v10001_v59 = vld [vmem:[%s10992_s10 + $0x60] sm:$0xff]  }
  0x8b   : >> { %2806 = vrot.lane.b32.xlu1 %v8723_v58, %s10505_s6  ;;  %v1244_v30 = vrot.slane %v1243_v10, 4  ;;  %v958_v52 = vshll.u32 %v896_v37, 16  ;;  %v944_v28 = vrot.slane %v942_v3, 5  ;;  %v950_v2 = vrot.slane %v948_v9, 5  ;;  %v892_v4 = vld [vmem:[#allocation2 + $0xac] sm:$0xf] }
  0x8c   : >> { %2976 = vrot.lane.b32.xlu0 %v8768_v57, %s10505_s6  ;;  %v1239_v41 = vsel %vm10997_vm11, %v1234_v31, %v1238_v53  ;;  %v954_v25 = vrot.slane %v952_v29, 4  ;;  %v10000_v6 = vld [vmem:[%s10992_s10 + $0x28] sm:$0xff]   ;;  %v909_v58 = vld [vmem:[#allocation2 + $0xb0] sm:$0x1]  ;;  %v8769_v11 = vcombine.low %v1505_v33, %v1506_v47  ;;  %v1251_v53 = vshrl.u32 %v891_v5, 16  ;;  %s10434_s30 = scalar_lea.vmem (%p859_p11), %s13809_s25, 4096 }
  0x8d   : >> { %v1249_v57 = vsel %vm10997_vm11, %v1244_v30, %v1248_v17  ;;  %v945_v40 = vor.u32 %v944_v28, %v941_v48  ;;  %v960_v37 = vrot.slane %v958_v52, 5  ;;  %9905 = vmatpush3.bf16.msra.mxu1 %v10000_v6  ;;  %v1254_v31 = vshll.u32 %v891_v5, 16  ;;  %v11029_v9 = vld [vmem:[#allocation2 + $0x24] sm:$0xf]  ;;  %9332 = vmatpush3.bf16.msra.mxu0 %v10000_v6  ;;  %v11053_v49 = vld [vmem:[#allocation2 + $0x30] sm:$0xf]  ;;  %p10435_p12 = scmp.ne.s32.totalorder (%p859_p11), %s13809_s25, %s10434_s30 }
  0x8e   : >> { %v8736_v10 = vcombine.low %v1239_v41, %v1249_v57  ;;  %v955_v21 = vor.u32 %v954_v25, %v950_v2  ;;  %v1260_v3 = vshll.u32 %v892_v4, 16  ;;  %v1264_v29 = vshrl.u32 %v892_v4, 16  ;;  %v11032_v41 = vld [vmem:[#allocation2 + $0x28] sm:$0xf]  ;;  %9898 = vmatprep.subr.bf16.mxu1 %v10001_v59  ;;  %9333 = vmatprep.subr.bf16.mxu0 %v10001_v59  ;;  %v868_v25 = vld [vmem:[#allocation2 + $0x1c] sm:$0xf] }
  0x8f   : >> { %v946_v22 = vrot.slane %v945_v40, 4  ;;  %v1270_v30 = vshll.u32 %v909_v58, 16  ;;  %v1253_v48 = vrot.slane %v1251_v53, 4  ;;  %v1256_v52 = vrot.slane %v1254_v31, 5  ;;  %v897_v57 = vld [vmem:[#allocation2 + $0x20] sm:$0x1]  ;;  %p10436_p13 = pnand (%p859_p11), %p10435_p12, %p10568_p5 }
  0x90   : >> { %2952 = vrot.lane.b32.xlu0 %v8756_v35, %s10505_s6  ;;  %2832 = vrot.lane.b32.xlu1 %v8736_v10, %s10505_s6  ;;  %v956_v17 = vrot.slane %v955_v21, 4  ;;  %v1262_v28 = vrot.slane %v1260_v3, 5  ;;  %v867_v35 = vld [vmem:[#allocation2 + $0x18] sm:$0xf]  ;;  %v1266_v5 = vrot.slane %v1264_v29, 4  ;;  %v8757_v10 = vcombine.low %v11029_v9, %v11032_v41  ;;  %s10507_s5 = smov (%p859_p11), [#allocation3]  }
  0x91   : >> { %v951_v33 = vsel %vm10997_vm11, %v946_v22, %v950_v2  ;;  %v1257_v4 = vor.u32 %v1256_v52, %v1253_v48  ;;  %v1272_v6 = vrot.slane %v1270_v30, 5  ;;  %v963_v21 = vshrl.u32 %v867_v35, 16  ;;  %v1507_v31 = vld [vmem:[#allocation2 + $0xc0] sm:$0xf]  ;;  %v1508_v29 = vld [vmem:[#allocation2 + $0xc4] sm:$0xf]  ;;  %p10437_p0 = pneg (%p859_p11), %p10436_p13 }
  0x92   : >> { %v961_v47 = vsel %vm10997_vm11, %v956_v17, %v960_v37  ;;  %v1267_v58 = vor.u32 %v1266_v5, %v1262_v28  ;;  %v966_v59 = vshll.u32 %v867_v35, 16  ;;  %v972_v53 = vshll.u32 %v868_v25, 16  ;;  %v1909_v62 = vld [vmem:[#allocation2 + $0xc] sm:$0xe]  ;;  %v873_v43 = vld [vmem:[#allocation2 + $0x3c] sm:$0xf] }
  0x93   : >> { %v8724_v40 = vcombine.low %v951_v33, %v961_v47  ;;  %v1258_v2 = vrot.slane %v1257_v4, 4  ;;  %v976_v37 = vshrl.u32 %v868_v25, 16  ;;  %v965_v22 = vrot.slane %v963_v21, 4  ;;  %v893_v33 = vld [vmem:[#allocation2 + $0xb4] sm:$0xf]  ;;  %v10002_v47 = vld [vmem:[%s10992_s10 + $0x20] sm:$0xff]  }
  0x94   : >> { %2978 = vrot.lane.b32.xlu0 %v8769_v11, %s10505_s6  ;;  %v1268_v3 = vrot.slane %v1267_v58, 4  ;;  %v968_v17 = vrot.slane %v966_v59, 5  ;;  %v982_v11 = vshll.u32 %v897_v57, 16  ;;  %v974_v52 = vrot.slane %v972_v53, 5  ;;  %v894_v57 = vld [vmem:[#allocation2 + $0xb8] sm:$0xf]  ;;  %9906 = vmatpush3.bf16.msra.mxu1 %v10002_v47 }
  0x95   : >> { %2808 = vrot.lane.b32.xlu1 %v8724_v40, %s10505_s6  ;;  %v1263_v48 = vsel %vm10997_vm11, %v1258_v2, %v1262_v28  ;;  %v978_v35 = vrot.slane %v976_v37, 4  ;;  %v1814_v5 = vshrl.u32 %v10974_v34, 16  ;;  %v910_v58 = vld [vmem:[#allocation2 + $0xbc] sm:$0x1]  ;;  %v8770_v2 = vcombine.low %v1507_v31, %v1508_v29  ;;  %9334 = vmatpush3.bf16.msra.mxu0 %v10002_v47  ;;  %v11057_v31 = vld [vmem:[#allocation2 + $0x34] sm:$0xf] }
  0x96   : >> { %v1273_v40 = vsel %vm10997_vm11, %v1268_v3, %v1272_v6  ;;  %v969_v4 = vor.u32 %v968_v17, %v965_v22  ;;  %v984_v28 = vrot.slane %v982_v11, 5  ;;  %v1275_v30 = vshrl.u32 %v893_v33, 16  ;;  %v10004_v47 = vld [vmem:[%s10992_s10 + $0x18] sm:$0xff]   ;;  %v1519_v1 = vld [vmem:[#allocation2 + $0x8c] sm:$0x1] }
  0x97   : >> { %v8737_v21 = vcombine.low %v1263_v48, %v1273_v40  ;;  %v979_v59 = vor.u32 %v978_v35, %v974_v52  ;;  %v1278_v63 = vshll.u32 %v893_v33, 16  ;;  %v1284_v3 = vshll.u32 %v894_v57, 16  ;;  %v869_v33 = vld [vmem:[#allocation2 + $0x24] sm:$0xf]  ;;  %v2086_v53 = vld [vmem:[#allocation2 + $0x18] sm:$0xf] }
  0x98   : >> { %2954 = vrot.lane.b32.xlu0 %v8757_v10, %s10505_s6  ;;  %v10003_v10 = vld [vmem:[%s10992_s10 + $0x58] sm:$0xff]   ;;  %v970_v37 = vrot.slane %v969_v4, 4  ;;  %v1288_v22 = vshrl.u32 %v894_v57, 16  ;;  %v1294_v17 = vshll.u32 %v910_v58, 16  ;;  %v1277_v48 = vrot.slane %v1275_v30, 4 }
  0x99   : >> { %2834 = vrot.lane.b32.xlu1 %v8737_v21, %s10505_s6  ;;  %v980_v6 = vrot.slane %v979_v59, 4  ;;  %v1280_v35 = vrot.slane %v1278_v63, 5  ;;  %vm1362_vm12 = vcmask 1042432   ;;  %9899 = vmatprep.subr.bf16.mxu1 %v10003_v10  ;;  %v11063_v40 = vrot.slane %v1814_v5, 4  ;;  %v870_v21 = vld [vmem:[#allocation2 + $0x28] sm:$0xf] }
  0x9a   : >> { %v975_v29 = vsel %vm10997_vm11, %v970_v37, %v974_v52  ;;  %9335 = vmatprep.subr.bf16.mxu0 %v10003_v10  ;;  %v1286_v57 = vrot.slane %v1284_v3, 5  ;;  %v1290_v58 = vrot.slane %v1288_v22, 4  ;;  %v10005_v59 = vld [vmem:[%s10992_s10 + $0x50] sm:$0xff]   ;;  %v1296_v30 = vrot.slane %v1294_v17, 5  ;;  %v898_v63 = vld [vmem:[#allocation2 + $0x2c] sm:$0x1]  ;;  %9907 = vmatpush3.bf16.msra.mxu1 %v10004_v47 }
  0x9b   : >> { %13950 = vst [vmem:[#allocation42_spill] sm:$0xff] %v11063_v40  ;;  %v985_v4 = vsel %vm10997_vm11, %v980_v6, %v984_v28  ;;  %v1281_v52 = vor.u32 %v1280_v35, %v1277_v48  ;;  %9336 = vmatpush3.bf16.msra.mxu0 %v10004_v47  ;;  %v8758_v5 = vcombine.low %v11053_v49, %v11057_v31  ;;  %v987_v10 = vshrl.u32 %v869_v33, 16  ;;  %v2087_v47 = vld [vmem:[#allocation2 + $0x1c] sm:$0xf]  ;;  %v2128_v12 = vld [vmem:[#allocation2 + $0x98] sm:$0x1] }
  0x9c   : >> { %2980 = vrot.lane.b32.xlu0 %v8770_v2, %s10505_s6  ;;  %v1550_v2 = vshrl.u32 %v11013_v0, 16  ;;  %v8725_v25 = vcombine.low %v975_v29, %v985_v4  ;;  %v1291_v37 = vor.u32 %v1290_v58, %v1286_v57  ;;  %v990_v11 = vshll.u32 %v869_v33, 16  ;;  %9900 = vmatprep.subr.bf16.mxu1 %v10005_v59  ;;  %v2111_v32 = vld [vmem:[#allocation2 + $0xac] sm:$0xf]  ;;  %v2130_v40 = vld [vmem:[#allocation2 + $0xb0] sm:$0x1] }
  0x9d   : >> { %9337 = vmatprep.subr.bf16.mxu0 %v10005_v59  ;;  %v1553_v28 = vshll.u32 %v11013_v0, 16  ;;  %v1282_v6 = vrot.slane %v1281_v52, 4  ;;  %v996_v3 = vshll.u32 %v870_v21, 16  ;;  %v1000_v22 = vshrl.u32 %v870_v21, 16  ;;  %v2118_v59 = vld [vmem:[#allocation2 + $0x20] sm:$0x1] }
  0x9e   : >> { %2810 = vrot.lane.b32.xlu1 %v8725_v25, %s10505_s6  ;;  %v1292_v17 = vrot.slane %v1291_v37, 4  ;;  %v989_v29 = vrot.slane %v987_v10, 4  ;;  %v992_v48 = vrot.slane %v990_v11, 5  ;;  %v1006_v35 = vshll.u32 %v898_v63, 16  ;;  %9908 = vmatpush3.bf16.msra.mxu1 %v10006_v26 }
  0x9f   : >> { %v1287_v33 = vsel %vm10997_vm11, %v1282_v6, %v1286_v57  ;;  %v998_v4 = vrot.slane %v996_v3, 5  ;;  %v1002_v58 = vrot.slane %v1000_v22, 4  ;;  %v2135_v0 = vshrl.u32 %v2086_v53, 16  ;;  %9338 = vmatpush3.bf16.msra.mxu0 %v10006_v26  ;;  %v1509_v22 = vld [vmem:[#allocation2 + $0x14] sm:$0x1] }
  0xa0   : >> { %2956 = vrot.lane.b32.xlu0 %v8758_v5, %s10505_s6  ;;  %v1297_v25 = vsel %vm10997_vm11, %v1292_v17, %v1296_v30  ;;  %v993_v52 = vor.u32 %v992_v48, %v989_v29  ;;  %v1008_v21 = vrot.slane %v1006_v35, 5  ;;  %v2138_v37 = vshll.u32 %v2086_v53, 16  ;;  %v11116_v53 = vld [vmem:[#allocation2 + $0x2c] sm:$0x1] }
  0xa1   : >> { %v8738_v5 = vcombine.low %v1287_v33, %v1297_v25  ;;  %v1003_v10 = vor.u32 %v1002_v58, %v998_v4  ;;  %v2137_v11 = vrot.slane %v2135_v0, 4  ;;  %v2144_v63 = vshll.u32 %v2087_v47, 16  ;;  %v11090_v33 = vld [vmem:[#allocation2 + $0x40] sm:$0xf] }
  0xa2   : >> { %v994_v16 = vrot.slane %v993_v52, 4  ;;  %v2140_v57 = vrot.slane %v2138_v37, 5  ;;  %v2148_v6 = vshrl.u32 %v2087_v47, 16  ;;  %v2154_v3 = vshll.u32 %v2118_v59, 16  ;;  %v11088_v47 = vld [vmem:[#allocation2 + $0x3c] sm:$0xf] }
  0xa3   : >> { %2836 = vrot.lane.b32.xlu1 %v8738_v5, %s10505_s6  ;;  %v1004_v27 = vrot.slane %v1003_v10, 4  ;;  %v2146_v30 = vrot.slane %v2144_v63, 5  ;;  %vm1363_vm13 = vcmask 1046532   ;;  %v8675_v17 = vrot.slane %v1909_v62, 9  ;;  %v872_v10 = vld [vmem:[#allocation2 + $0x34] sm:$0xf] }
  0xa4   : >> { %v999_v29 = vsel %vm10997_vm11, %v994_v16, %v998_v4  ;;  %v2141_v48 = vor.u32 %v2140_v57, %v2137_v11  ;;  %v2150_v35 = vrot.slane %v2148_v6, 4  ;;  %vm11084_vm14 = vmor %vm1362_vm12, %vm1363_vm13  ;;  %v13951_v26 = vmov 0  ;;  %v871_v16 = vld [vmem:[#allocation2 + $0x30] sm:$0xf]  ;;  %v10007_v4 = vld [vmem:[%s10992_s10 + $0x48] sm:$0xff]  }
  0xa5   : >> { %v13952_v26 = vsel %vm11084_vm14, 4294967295, %v13951_v26  ;;  %v11092_v58 = vrot.slane %v1550_v2, 4  ;;  %v1009_v62 = vsel %vm10997_vm11, %v1004_v27, %v1008_v21  ;;  %v1975_v59 = vrot.slane %v10982_v46, 5  ;;  %v899_v27 = vld [vmem:[#allocation2 + $0x38] sm:$0x1]  ;;  %9901 = vmatprep.subr.bf16.mxu1 %v10007_v4  ;;  %9339 = vmatprep.subr.bf16.mxu0 %v10007_v4  ;;  %v10009_v4 = vld [vmem:[%s10992_s10 + $0x40] sm:$0xff]  }
  0xa6   : >> { %13953 = vst [vmem:[#allocation43_spill] sm:$0xff] %v13952_v26  ;;  %v1978_v0 = vrot.slane %v1509_v22, 5  ;;  %v8726_v25 = vcombine.low %v999_v29, %v1009_v62  ;;  %v2142_v52 = vrot.slane %v2141_v48, 4  ;;  %v2151_v37 = vor.u32 %v2150_v35, %v2146_v30  ;;  %v2088_v22 = vld [vmem:[#allocation2 + $0x24] sm:$0xf]  ;;  %v10008_v29 = vld [vmem:[%s10992_s10 + $0x8] sm:$0xff]  }
  0xa7   : >> { %v2156_v5 = vrot.slane %v2154_v3, 5  ;;  %v11098_v11 = vrot.slane %v1553_v28, 5  ;;  %v1976_v2 = vsel %vm11084_vm14, %v8675_v17, %v1975_v59  ;;  %v1977_v57 = vrot.slane %v1975_v59, 4  ;;  %v11111_v59 = vld [vmem:[#allocation2 + $0x28] sm:$0xf]  ;;  %9909 = vmatpush3.bf16.msra.mxu1 %v10008_v29  ;;  %9340 = vmatpush3.bf16.msra.mxu0 %v10008_v29 }
  0xa8   : >> { %2812 = vrot.lane.b32.xlu1 %v8726_v25, %s10505_s6  ;;  %v2147_v21 = vsel %vm10997_vm11, %v2142_v52, %v2146_v30  ;;  %v2152_v6 = vrot.slane %v2151_v37, 4  ;;  %v8759_v28 = vcombine.low %v11088_v47, %v11090_v33  ;;  %v1011_v3 = vshrl.u32 %v871_v16, 16  ;;  %9902 = vmatprep.subr.bf16.mxu1 %v10009_v4 }
  0xa9   : >> { %v1979_v17 = vsel %vm11084_vm14, %v1977_v57, %v1978_v0  ;;  %v1014_v48 = vshll.u32 %v871_v16, 16  ;;  %v1020_v35 = vshll.u32 %v872_v10, 16  ;;  %v1024_v62 = vshrl.u32 %v872_v10, 16  ;;  %9341 = vmatprep.subr.bf16.mxu0 %v10009_v4  ;;  %v10010_v10 = vld [vmem:[%s10992_s10] sm:$0xff]  }
  0xaa   : >> { %v2157_v30 = vsel %vm10997_vm11, %v2152_v6, %v2156_v5  ;;  %v8787_v25 = vcombine.low %v1976_v2, %v1979_v17  ;;  %v1013_v52 = vrot.slane %v1011_v3, 4  ;;  %v1030_v37 = vshll.u32 %v899_v27, 16  ;;  %v1910_v3 = vld [vmem:[#allocation2 + $0x18] sm:$0xe] }
  0xab   : >> { %v8819_v63 = vcombine.low %v2147_v21, %v2157_v30  ;;  %v1016_v42 = vrot.slane %v1014_v48, 5  ;;  %v1022_v0 = vrot.slane %v1020_v35, 5  ;;  %v1026_v16 = vrot.slane %v1024_v62, 4  ;;  %v1510_v62 = vld [vmem:[#allocation2 + $0x20] sm:$0x1]  ;;  %9910 = vmatpush3.bf16.msra.mxu1 %v10010_v10  ;;  %9342 = vmatpush3.bf16.msra.mxu0 %v10010_v10 }
  0xac   : >> { %3078 = vrot.lane.b32.xlu1 %v8787_v25, %s10505_s6  ;;  %v1032_v57 = vrot.slane %v1030_v37, 5  ;;  %v2159_v15 = vshrl.u32 %v2088_v22, 16  ;;  %v2162_v36 = vshll.u32 %v2088_v22, 16  ;;  %v2168_v5 = vshll.u32 %v11111_v59, 16 }
  0xad   : >> { %3222 = vrot.lane.b32.xlu0 %v8819_v63, %s10505_s6  ;;  %v1017_v2 = vor.u32 %v1016_v42, %v1013_v52  ;;  %v1027_v27 = vor.u32 %v1026_v16, %v1022_v0  ;;  %v2172_v6 = vshrl.u32 %v11111_v59, 16  ;;  %v2178_v21 = vshll.u32 %v11116_v53, 16  ;;  %v10011_v16 = vld [vmem:[%s10992_s10 + $0xf8] sm:$0xff]  }
  0xae   : >> { %v1577_v29 = vshll.u32 %v11029_v9, 16  ;;  %v2161_v17 = vrot.slane %v2159_v15, 4  ;;  %v2164_v48 = vrot.slane %v2162_v36, 5  ;;  %v2170_v35 = vrot.slane %v2168_v5, 5  ;;  %9439 = vmatprep.subr.bf16.mxu1 %v10011_v16 }
  0xaf   : >> { %v1598_v22 = vshrl.u32 %v11053_v49, 16  ;;  %v1018_v4 = vrot.slane %v1017_v2, 4  ;;  %v1028_v63 = vrot.slane %v1027_v27, 4  ;;  %v2174_v42 = vrot.slane %v2172_v6, 4 }
  0xb0   : >> { %v2165_v30 = vor.u32 %v2164_v48, %v2161_v17  ;;  %v2180_v25 = vrot.slane %v2178_v21, 5  ;;  %v8676_v52 = vrot.slane %v1910_v3, 9  ;;  %v1982_v37 = vrot.slane %v11015_v56, 5  ;;  %v11135_v3 = vld [vmem:[#allocation2 + $0x48] sm:$0xf] }
  0xb1   : >> { %2958 = vrot.lane.b32.xlu0 %v8759_v28, %s10505_s6  ;;  %v1023_v36 = vsel %vm10997_vm11, %v1018_v4, %v1022_v0  ;;  %v1033_v15 = vsel %vm10997_vm11, %v1028_v63, %v1032_v57  ;;  %v2175_v10 = vor.u32 %v2174_v42, %v2170_v35  ;;  %v1985_v5 = vrot.slane %v1510_v62, 5  ;;  %v11137_v56 = vld [vmem:[#allocation2 + $0x4c] sm:$0xf]  ;;  %v874_v62 = vld [vmem:[#allocation2 + $0x40] sm:$0xf] }
  0xb2   : >> { %v8727_v2 = vcombine.low %v1023_v36, %v1033_v15  ;;  %v2166_v27 = vrot.slane %v2165_v30, 4  ;;  %v1983_v6 = vsel %vm11084_vm14, %v8676_v52, %v1982_v37  ;;  %v1984_v21 = vrot.slane %v1982_v37, 4  ;;  %v900_v42 = vld [vmem:[#allocation2 + $0x44] sm:$0x1]  ;;  %v2090_v52 = vld [vmem:[#allocation2 + $0x30] sm:$0xf] }
  0xb3   : >> { %v13954_v28 = vshrl.u32 %v11029_v9, 16  ;;  %v11143_v17 = vrot.slane %v1577_v29, 5  ;;  %v11145_v57 = vrot.slane %v1598_v22, 4  ;;  %v2176_v48 = vrot.slane %v2175_v10, 4  ;;  %v2091_v36 = vld [vmem:[#allocation2 + $0x34] sm:$0xf] }
  0xb4   : >> { %2814 = vrot.lane.b32.xlu1 %v8727_v2, %s10505_s6  ;;  %v2171_v4 = vsel %vm10997_vm11, %v2166_v27, %v2170_v35  ;;  %v1986_v63 = vsel %vm11084_vm14, %v1984_v21, %v1985_v5  ;;  %v1035_v30 = vshrl.u32 %v873_v43, 16  ;;  %v1038_v9 = vshll.u32 %v873_v43, 16  ;;  %v10016_v27 = vld [vmem:[%s10992_s10 + $0x118] sm:$0xff]  }
  0xb5   : >> { %v11141_v0 = vrot.slane %v13954_v28, 4  ;;  %v1601_v29 = vshll.u32 %v11053_v49, 16  ;;  %v2181_v22 = vsel %vm10997_vm11, %v2176_v48, %v2180_v25  ;;  %v8788_v37 = vcombine.low %v1983_v6, %v1986_v63  ;;  %v2120_v28 = vld [vmem:[#allocation2 + $0x38] sm:$0x1]  ;;  %v1911_v63 = vld [vmem:[#allocation2 + $0x24] sm:$0xe]  ;;  %9815 = vmatprep.subr.bf16.mxu0 %v10016_v27 }
  0xb6   : >> { %v8760_v16 = vcombine.low %v11135_v3, %v11137_v56  ;;  %v8820_v15 = vcombine.low %v2171_v4, %v2181_v22  ;;  %v1037_v10 = vrot.slane %v1035_v30, 4  ;;  %v1040_v35 = vrot.slane %v1038_v9, 5  ;;  %v1511_v22 = vld [vmem:[#allocation2 + $0x2c] sm:$0x1] }
  0xb7   : >> { %v1044_v2 = vshll.u32 %v874_v62, 16  ;;  %v1048_v5 = vshrl.u32 %v874_v62, 16  ;;  %v1054_v21 = vshll.u32 %v900_v42, 16  ;;  %v2183_v43 = vshrl.u32 %v2090_v52, 16 }
  0xb8   : >> { %v2186_v51 = vshll.u32 %v2090_v52, 16  ;;  %3224 = vrot.lane.b32.xlu0 %v8820_v15, %s10505_s6  ;;  %3080 = vrot.lane.b32.xlu1 %v8788_v37, %s10505_s6  ;;  %v1041_v49 = vor.u32 %v1040_v35, %v1037_v10  ;;  %v2192_v6 = vshll.u32 %v2091_v36, 16  ;;  %v2196_v48 = vshrl.u32 %v2091_v36, 16 }
  0xb9   : >> { %v1046_v25 = vrot.slane %v1044_v2, 5  ;;  %v1050_v8 = vrot.slane %v1048_v5, 4  ;;  %v1056_v4 = vrot.slane %v1054_v21, 5  ;;  %v2185_v30 = vrot.slane %v2183_v43, 4  ;;  %v11162_v2 = vld [vmem:[#allocation2 + $0x54] sm:$0xf] }
  0xba   : >> { %v2188_v9 = vrot.slane %v2186_v51, 5  ;;  %v1042_v62 = vrot.slane %v1041_v49, 4  ;;  %v2194_v42 = vrot.slane %v2192_v6, 5  ;;  %v2198_v50 = vrot.slane %v2196_v48, 4  ;;  %v875_v5 = vld [vmem:[#allocation2 + $0x48] sm:$0xf] }
  0xbb   : >> { %v2202_v7 = vshll.u32 %v2120_v28, 16  ;;  %v1051_v52 = vor.u32 %v1050_v8, %v1046_v25  ;;  %v8677_v15 = vrot.slane %v1911_v63, 9  ;;  %v1989_v37 = vrot.slane %v11032_v41, 5  ;;  %v11166_v28 = vld [vmem:[#allocation2 + $0x58] sm:$0xf] }
  0xbc   : >> { %v2189_v61 = vor.u32 %v2188_v9, %v2185_v30  ;;  %2960 = vrot.lane.b32.xlu0 %v8760_v16, %s10505_s6  ;;  %v2199_v10 = vor.u32 %v2198_v50, %v2194_v42  ;;  %v1992_v35 = vrot.slane %v1511_v22, 5  ;;  %v1047_v51 = vsel %vm10997_vm11, %v1042_v62, %v1046_v25  ;;  %v901_v6 = vld [vmem:[#allocation2 + $0x50] sm:$0x1]  ;;  %v2093_v62 = vld [vmem:[#allocation2 + $0x40] sm:$0xf] }
  0xbd   : >> { %v2204_v36 = vrot.slane %v2202_v7, 5  ;;  %v1052_v27 = vrot.slane %v1051_v52, 4  ;;  %v1991_v43 = vrot.slane %v1989_v37, 4  ;;  %v11168_v8 = vrot.slane %v1601_v29, 5  ;;  %v876_v7 = vld [vmem:[#allocation2 + $0x4c] sm:$0xf] }
  0xbe   : >> { %v2190_v21 = vrot.slane %v2189_v61, 4  ;;  %v1622_v41 = vshrl.u32 %v11088_v47, 16  ;;  %v2200_v49 = vrot.slane %v2199_v10, 4  ;;  %v1990_v50 = vsel %vm11084_vm14, %v8677_v15, %v1989_v37  ;;  %v2092_v29 = vld [vmem:[#allocation2 + $0x3c] sm:$0xf] }
  0xbf   : >> { %v1057_v16 = vsel %vm10997_vm11, %v1052_v27, %v1056_v4  ;;  %v1993_v61 = vsel %vm11084_vm14, %v1991_v43, %v1992_v35  ;;  %v1059_v48 = vshrl.u32 %v875_v5, 16  ;;  %v1625_v63 = vshll.u32 %v11088_v47, 16  ;;  %v2121_v37 = vld [vmem:[#allocation2 + $0x44] sm:$0x1]  ;;  %v1512_v47 = vld [vmem:[#allocation2 + $0x38] sm:$0x1] }
  0xc0   : >> { %v2195_v25 = vsel %vm10997_vm11, %v2190_v21, %v2194_v42  ;;  %v8728_v30 = vcombine.low %v1047_v51, %v1057_v16  ;;  %v2205_v9 = vsel %vm10997_vm11, %v2200_v49, %v2204_v36  ;;  %v8761_v22 = vcombine.low %v11162_v2, %v11166_v28  ;;  %v1912_v51 = vld [vmem:[#allocation2 + $0x30] sm:$0xe] }
  0xc1   : >> { %v8821_v4 = vcombine.low %v2195_v25, %v2205_v9  ;;  %v8789_v52 = vcombine.low %v1990_v50, %v1993_v61  ;;  %v1061_v15 = vrot.slane %v1059_v48, 4  ;;  %v1062_v42 = vshll.u32 %v875_v5, 16 }
  0xc2   : >> { %2816 = vrot.lane.b32.xlu1 %v8728_v30, %s10505_s6  ;;  %v1068_v10 = vshll.u32 %v876_v7, 16  ;;  %v1072_v35 = vshrl.u32 %v876_v7, 16  ;;  %v1078_v27 = vshll.u32 %v901_v6, 16  ;;  %v2207_v21 = vshrl.u32 %v2092_v29, 16 }
  0xc3   : >> { %3226 = vrot.lane.b32.xlu0 %v8821_v4, %s10505_s6  ;;  %v1064_v36 = vrot.slane %v1062_v42, 5  ;;  %v2210_v43 = vshll.u32 %v2092_v29, 16  ;;  %v2216_v49 = vshll.u32 %v2093_v62, 16  ;;  %v2220_v16 = vshrl.u32 %v2093_v62, 16 }
  0xc4   : >> { %v1070_v24 = vrot.slane %v1068_v10, 5  ;;  %v1074_v25 = vrot.slane %v1072_v35, 4  ;;  %v1080_v50 = vrot.slane %v1078_v27, 5  ;;  %v2209_v61 = vrot.slane %v2207_v21, 4  ;;  %v1491_v10 = vld [vmem:[#allocation2 + $0x60] sm:$0xf] }
  0xc5   : >> { %v1065_v5 = vor.u32 %v1064_v36, %v1061_v15  ;;  %v2212_v48 = vrot.slane %v2210_v43, 5  ;;  %v2218_v9 = vrot.slane %v2216_v49, 5  ;;  %v2222_v30 = vrot.slane %v2220_v16, 4  ;;  %v11189_v35 = vld [vmem:[#allocation2 + $0x64] sm:$0xf] }
  0xc6   : >> { %3082 = vrot.lane.b32.xlu1 %v8789_v52, %s10505_s6  ;;  %v1075_v7 = vor.u32 %v1074_v25, %v1070_v24  ;;  %v2226_v6 = vshll.u32 %v2121_v37, 16  ;;  %v8678_v60 = vrot.slane %v1912_v51, 9  ;;  %v1996_v23 = vrot.slane %v11057_v31, 5  ;;  %v877_v15 = vld [vmem:[#allocation2 + $0x54] sm:$0xf] }
  0xc7   : >> { %2962 = vrot.lane.b32.xlu0 %v8761_v22, %s10505_s6  ;;  %v1066_v29 = vrot.slane %v1065_v5, 4  ;;  %v2213_v4 = vor.u32 %v2212_v48, %v2209_v61  ;;  %v2223_v62 = vor.u32 %v2222_v30, %v2218_v9  ;;  %v1999_v42 = vrot.slane %v1512_v47, 5  ;;  %v878_v43 = vld [vmem:[#allocation2 + $0x58] sm:$0xf]  ;;  %v902_v49 = vld [vmem:[#allocation2 + $0x5c] sm:$0x1] }
  0xc8   : >> { %v11191_v27 = vrot.slane %v1622_v41, 4  ;;  %v1076_v21 = vrot.slane %v1075_v7, 4  ;;  %v2228_v36 = vrot.slane %v2226_v6, 5  ;;  %v1998_v52 = vrot.slane %v1996_v23, 4  ;;  %v2094_v61 = vld [vmem:[#allocation2 + $0x48] sm:$0xf] }
  0xc9   : >> { %v1071_v37 = vsel %vm10997_vm11, %v1066_v29, %v1070_v24  ;;  %v2214_v51 = vrot.slane %v2213_v4, 4  ;;  %v2224_v31 = vrot.slane %v2223_v62, 4  ;;  %v1997_v22 = vsel %vm11084_vm14, %v8678_v60, %v1996_v23  ;;  %v2095_v23 = vld [vmem:[#allocation2 + $0x4c] sm:$0xf] }
  0xca   : >> { %v11197_v47 = vrot.slane %v1625_v63, 5  ;;  %v1081_v41 = vsel %vm10997_vm11, %v1076_v21, %v1080_v50  ;;  %v2000_v25 = vsel %vm11084_vm14, %v1998_v52, %v1999_v42  ;;  %v8762_v7 = vcombine.low %v1491_v10, %v11189_v35  ;;  %v2122_v50 = vld [vmem:[#allocation2 + $0x50] sm:$0x1]  ;;  %v1513_v10 = vld [vmem:[#allocation2 + $0x44] sm:$0x1] }
  0xcb   : >> { %v8729_v5 = vcombine.low %v1071_v37, %v1081_v41  ;;  %v2219_v48 = vsel %vm10997_vm11, %v2214_v51, %v2218_v9  ;;  %v2229_v60 = vsel %vm10997_vm11, %v2224_v31, %v2228_v36  ;;  %v8790_v30 = vcombine.low %v1997_v22, %v2000_v25  ;;  %v1913_v36 = vld [vmem:[#allocation2 + $0x3c] sm:$0xe] }
  0xcc   : >> { %v8822_v63 = vcombine.low %v2219_v48, %v2229_v60  ;;  %v1083_v6 = vshrl.u32 %v877_v15, 16  ;;  %v1086_v29 = vshll.u32 %v877_v15, 16  ;;  %v1092_v4 = vshll.u32 %v878_v43, 16 }
  0xcd   : >> { %2818 = vrot.lane.b32.xlu1 %v8729_v5, %s10505_s6  ;;  %v1096_v62 = vshrl.u32 %v878_v43, 16  ;;  %v1102_v42 = vshll.u32 %v902_v49, 16  ;;  %v2231_v9 = vshrl.u32 %v2094_v61, 16  ;;  %v2234_v52 = vshll.u32 %v2094_v61, 16 }
  0xce   : >> { %3228 = vrot.lane.b32.xlu0 %v8822_v63, %s10505_s6  ;;  %v1085_v21 = vrot.slane %v1083_v6, 4  ;;  %v2240_v37 = vshll.u32 %v2095_v23, 16  ;;  %v1088_v51 = vrot.slane %v1086_v29, 5  ;;  %v1094_v31 = vrot.slane %v1092_v4, 5 }
  0xcf   : >> { %v1098_v22 = vrot.slane %v1096_v62, 4  ;;  %v1104_v41 = vrot.slane %v1102_v42, 5  ;;  %v2233_v25 = vrot.slane %v2231_v9, 4  ;;  %v2236_v48 = vrot.slane %v2234_v52, 5  ;;  %v1493_v62 = vld [vmem:[#allocation2 + $0x6c] sm:$0xf] }
  0xd0   : >> { %v2242_v60 = vrot.slane %v2240_v37, 5  ;;  %v2244_v5 = vshrl.u32 %v2095_v23, 16  ;;  %v1089_v15 = vor.u32 %v1088_v51, %v1085_v21  ;;  %v2250_v49 = vshll.u32 %v2122_v50, 16  ;;  %v11215_v42 = vld [vmem:[#allocation2 + $0x70] sm:$0xf] }
  0xd1   : >> { %3084 = vrot.lane.b32.xlu1 %v8790_v30, %s10505_s6  ;;  %v1099_v43 = vor.u32 %v1098_v22, %v1094_v31  ;;  %v8679_v63 = vrot.slane %v1913_v36, 9  ;;  %v2237_v61 = vor.u32 %v2236_v48, %v2233_v25  ;;  %v2003_v29 = vrot.slane %v11090_v33, 5  ;;  %v880_v51 = vld [vmem:[#allocation2 + $0x64] sm:$0xf]  ;;  %v2096_v25 = vld [vmem:[#allocation2 + $0x54] sm:$0xf] }
  0xd2   : >> { %2964 = vrot.lane.b32.xlu0 %v8762_v7, %s10505_s6  ;;  %v2246_v6 = vrot.slane %v2244_v5, 4  ;;  %v2006_v4 = vrot.slane %v1513_v10, 5  ;;  %v1090_v52 = vrot.slane %v1089_v15, 4  ;;  %v2252_v37 = vrot.slane %v2250_v49, 5  ;;  %v879_v7 = vld [vmem:[#allocation2 + $0x60] sm:$0xf] }
  0xd3   : >> { %v1100_v23 = vrot.slane %v1099_v43, 4  ;;  %v2238_v30 = vrot.slane %v2237_v61, 4  ;;  %v2004_v50 = vsel %vm11084_vm14, %v8679_v63, %v2003_v29  ;;  %v2005_v36 = vrot.slane %v2003_v29, 4  ;;  %v903_v10 = vld [vmem:[#allocation2 + $0x68] sm:$0x1] }
  0xd4   : >> { %v2247_v21 = vor.u32 %v2246_v6, %v2242_v60  ;;  %v1095_v33 = vsel %vm10997_vm11, %v1090_v52, %v1094_v31  ;;  %v2097_v49 = vld [vmem:[#allocation2 + $0x58] sm:$0xf]  ;;  %v1649_v63 = vshll.u32 %v11135_v3, 16  ;;  %v8763_v6 = vcombine.low %v1493_v62, %v11215_v42  ;;  %v2123_v29 = vld [vmem:[#allocation2 + $0x5c] sm:$0x1] }
  0xd5   : >> { %v1105_v22 = vsel %vm10997_vm11, %v1100_v23, %v1104_v41  ;;  %v2243_v5 = vsel %vm10997_vm11, %v2238_v30, %v2242_v60  ;;  %v2007_v43 = vsel %vm11084_vm14, %v2005_v36, %v2006_v4  ;;  %v1107_v31 = vshrl.u32 %v879_v7, 16  ;;  %v1914_v30 = vld [vmem:[#allocation2 + $0x48] sm:$0xe] }
  0xd6   : >> { %v8730_v48 = vcombine.low %v1095_v33, %v1105_v22  ;;  %v2248_v15 = vrot.slane %v2247_v21, 4  ;;  %v8791_v61 = vcombine.low %v2004_v50, %v2007_v43  ;;  %v1110_v52 = vshll.u32 %v879_v7, 16 }
  0xd7   : >> { %v1116_v23 = vshll.u32 %v880_v51, 16  ;;  %v1120_v60 = vshrl.u32 %v880_v51, 16  ;;  %v1109_v33 = vrot.slane %v1107_v31, 4  ;;  %v1126_v4 = vshll.u32 %v903_v10, 16 }
  0xd8   : >> { %2820 = vrot.lane.b32.xlu1 %v8730_v48, %s10505_s6  ;;  %v2253_v41 = vsel %vm10997_vm11, %v2248_v15, %v2252_v37  ;;  %v2255_v36 = vshrl.u32 %v2096_v25, 16  ;;  %v1112_v22 = vrot.slane %v1110_v52, 5  ;;  %v2258_v43 = vshll.u32 %v2096_v25, 16 }
  0xd9   : >> { %v8823_v21 = vcombine.low %v2243_v5, %v2253_v41  ;;  %v1118_v24 = vrot.slane %v1116_v23, 5  ;;  %v1122_v50 = vrot.slane %v1120_v60, 4  ;;  %v1128_v62 = vrot.slane %v1126_v4, 5  ;;  %v1514_v5 = vld [vmem:[#allocation2 + $0x50] sm:$0x1] }
  0xda   : >> { %v2257_v16 = vrot.slane %v2255_v36, 4  ;;  %v2264_v48 = vshll.u32 %v2097_v49, 16  ;;  %v2268_v9 = vshrl.u32 %v2097_v49, 16  ;;  %v1113_v37 = vor.u32 %v1112_v22, %v1109_v33  ;;  %v1495_v4 = vld [vmem:[#allocation2 + $0x78] sm:$0xf] }
  0xdb   : >> { %3230 = vrot.lane.b32.xlu0 %v8823_v21, %s10505_s6  ;;  %v1123_v7 = vor.u32 %v1122_v50, %v1118_v24  ;;  %v2260_v51 = vrot.slane %v2258_v43, 5  ;;  %v2274_v15 = vshll.u32 %v2123_v29, 16  ;;  %v8680_v41 = vrot.slane %v1914_v30, 9  ;;  %v11236_v36 = vld [vmem:[#allocation2 + $0x7c] sm:$0xf] }
  0xdc   : >> { %3086 = vrot.lane.b32.xlu1 %v8791_v61, %s10505_s6  ;;  %v2266_v31 = vrot.slane %v2264_v48, 5  ;;  %v2270_v10 = vrot.slane %v2268_v9, 4  ;;  %v2010_v52 = vrot.slane %v11137_v56, 5  ;;  %v1114_v23 = vrot.slane %v1113_v37, 4  ;;  %v881_v49 = vld [vmem:[#allocation2 + $0x6c] sm:$0xf] }
  0xdd   : >> { %v1124_v25 = vrot.slane %v1123_v7, 4  ;;  %v2261_v60 = vor.u32 %v2260_v51, %v2257_v16  ;;  %v2276_v21 = vrot.slane %v2274_v15, 5  ;;  %v2013_v22 = vrot.slane %v1514_v5, 5  ;;  %v882_v9 = vld [vmem:[#allocation2 + $0x70] sm:$0xf] }
  0xde   : >> { %v2271_v61 = vor.u32 %v2270_v10, %v2266_v31  ;;  %v2011_v29 = vsel %vm11084_vm14, %v8680_v41, %v2010_v52  ;;  %v2012_v33 = vrot.slane %v2010_v52, 4  ;;  %v13955_v30 = vshrl.u32 %v11135_v3, 16  ;;  %v904_v48 = vld [vmem:[#allocation2 + $0x74] sm:$0x1]  ;;  %v2099_v10 = vld [vmem:[#allocation2 + $0x64] sm:$0xf] }
  0xdf   : >> { %2966 = vrot.lane.b32.xlu0 %v8763_v6, %s10505_s6  ;;  %v1119_v16 = vsel %vm10997_vm11, %v1114_v23, %v1118_v24  ;;  %v1129_v50 = vsel %vm10997_vm11, %v1124_v25, %v1128_v62  ;;  %v2262_v43 = vrot.slane %v2261_v60, 4  ;;  %v2098_v6 = vld [vmem:[#allocation2 + $0x60] sm:$0xf]  ;;  %v11249_v37 = vrot.slane %v1649_v63, 5  ;;  %v2124_v52 = vld [vmem:[#allocation2 + $0x68] sm:$0x1] }
  0xe0   : >> { %v11243_v56 = vrot.slane %v13955_v30, 4  ;;  %v8731_v7 = vcombine.low %v1119_v16, %v1129_v50  ;;  %v2272_v51 = vrot.slane %v2271_v61, 4  ;;  %v2014_v15 = vsel %vm11084_vm14, %v2012_v33, %v2013_v22 }
  0xe1   : >> { %v2267_v3 = vsel %vm10997_vm11, %v2262_v43, %v2266_v31  ;;  %v8792_v5 = vcombine.low %v2011_v29, %v2014_v15  ;;  %v8764_v62 = vcombine.low %v1495_v4, %v11236_v36  ;;  %v1131_v41 = vshrl.u32 %v881_v49, 16  ;;  %v1915_v29 = vld [vmem:[#allocation2 + $0x54] sm:$0xe]  ;;  %v1515_v15 = vld [vmem:[#allocation2 + $0x5c] sm:$0x1] }
  0xe2   : >> { %2822 = vrot.lane.b32.xlu1 %v8731_v7, %s10505_s6  ;;  %v2277_v24 = vsel %vm10997_vm11, %v2272_v51, %v2276_v21  ;;  %v1134_v63 = vshll.u32 %v881_v49, 16  ;;  %v1140_v25 = vshll.u32 %v882_v9, 16  ;;  %v1144_v60 = vshrl.u32 %v882_v9, 16 }
  0xe3   : >> { %v8824_v23 = vcombine.low %v2267_v3, %v2277_v24  ;;  %v1150_v61 = vshll.u32 %v904_v48, 16  ;;  %v1133_v33 = vrot.slane %v1131_v41, 4  ;;  %v2279_v30 = vshrl.u32 %v2098_v6, 16 }
  0xe4   : >> { %v1136_v22 = vrot.slane %v1134_v63, 5  ;;  %v2282_v31 = vshll.u32 %v2098_v6, 16  ;;  %v1142_v16 = vrot.slane %v1140_v25, 5  ;;  %v1146_v50 = vrot.slane %v1144_v60, 4  ;;  %v11262_v25 = vld [vmem:[#allocation2 + $0x84] sm:$0xf] }
  0xe5   : >> { %3232 = vrot.lane.b32.xlu0 %v8824_v23, %s10505_s6  ;;  %v1152_v43 = vrot.slane %v1150_v61, 5  ;;  %v2288_v21 = vshll.u32 %v2099_v10, 16  ;;  %v2281_v49 = vrot.slane %v2279_v30, 4  ;;  %v2292_v51 = vshrl.u32 %v2099_v10, 16  ;;  %v11265_v61 = vld [vmem:[#allocation2 + $0x88] sm:$0xf] }
  0xe6   : >> { %3088 = vrot.lane.b32.xlu1 %v8792_v5, %s10505_s6  ;;  %v1137_v4 = vor.u32 %v1136_v22, %v1133_v33  ;;  %v2284_v7 = vrot.slane %v2282_v31, 5  ;;  %v1147_v9 = vor.u32 %v1146_v50, %v1142_v16  ;;  %v2298_v3 = vshll.u32 %v2124_v52, 16  ;;  %v883_v33 = vld [vmem:[#allocation2 + $0x78] sm:$0xf]  ;;  %v884_v31 = vld [vmem:[#allocation2 + $0x7c] sm:$0xf] }
  0xe7   : >> { %v2290_v48 = vrot.slane %v2288_v21, 5  ;;  %v8681_v24 = vrot.slane %v1915_v29, 9  ;;  %v2294_v63 = vrot.slane %v2292_v51, 4  ;;  %v2017_v23 = vrot.slane %v11166_v28, 5  ;;  %v905_v29 = vld [vmem:[#allocation2 + $0x80] sm:$0x1] }
  0xe8   : >> { %v1138_v41 = vrot.slane %v1137_v4, 4  ;;  %v2285_v6 = vor.u32 %v2284_v7, %v2281_v49  ;;  %v1148_v60 = vrot.slane %v1147_v9, 4  ;;  %v2020_v5 = vrot.slane %v1515_v15, 5  ;;  %v2100_v4 = vld [vmem:[#allocation2 + $0x6c] sm:$0xf] }
  0xe9   : >> { %2968 = vrot.lane.b32.xlu0 %v8764_v62, %s10505_s6  ;;  %v2295_v52 = vor.u32 %v2294_v63, %v2290_v48  ;;  %v2300_v30 = vrot.slane %v2298_v3, 5  ;;  %v2018_v62 = vsel %vm11084_vm14, %v8681_v24, %v2017_v23  ;;  %v2019_v21 = vrot.slane %v2017_v23, 4  ;;  %v2101_v15 = vld [vmem:[#allocation2 + $0x70] sm:$0xf] }
  0xea   : >> { %v1143_v10 = vsel %vm10997_vm11, %v1138_v41, %v1142_v16  ;;  %v2286_v22 = vrot.slane %v2285_v6, 4  ;;  %v1153_v28 = vsel %vm10997_vm11, %v1148_v60, %v1152_v43  ;;  %v1673_v49 = vshll.u32 %v11162_v2, 16  ;;  %v2125_v6 = vld [vmem:[#allocation2 + $0x74] sm:$0x1] }
  0xeb   : >> { %v8732_v7 = vcombine.low %v1143_v10, %v1153_v28  ;;  %v2296_v51 = vrot.slane %v2295_v52, 4  ;;  %v2021_v9 = vsel %vm11084_vm14, %v2019_v21, %v2020_v5  ;;  %v8765_v3 = vcombine.low %v11262_v25, %v11265_v61 }
  0xec   : >> { %v2291_v16 = vsel %vm10997_vm11, %v2286_v22, %v2290_v48  ;;  %v1155_v43 = vshrl.u32 %v883_v33, 16  ;;  %v1158_v41 = vshll.u32 %v883_v33, 16  ;;  %v8793_v63 = vcombine.low %v2018_v62, %v2021_v9  ;;  %v1916_v33 = vld [vmem:[#allocation2 + $0x60] sm:$0xe] }
  0xed   : >> { %2824 = vrot.lane.b32.xlu1 %v8732_v7, %s10505_s6  ;;  %v2301_v24 = vsel %vm10997_vm11, %v2296_v51, %v2300_v30  ;;  %v1164_v23 = vshll.u32 %v884_v31, 16  ;;  %v1168_v60 = vshrl.u32 %v884_v31, 16  ;;  %v1174_v52 = vshll.u32 %v905_v29, 16  ;;  %v1516_v29 = vld [vmem:[#allocation2 + $0x68] sm:$0x1] }
  0xee   : >> { %v8825_v48 = vcombine.low %v2291_v16, %v2301_v24  ;;  %v1157_v10 = vrot.slane %v1155_v43, 4  ;;  %v1160_v22 = vrot.slane %v1158_v41, 5  ;;  %v11284_v28 = vpop.permute.xlu0 %2974  ;;  %v2303_v25 = vshrl.u32 %v2100_v4, 16 }
  0xef   : >> { %v1166_v5 = vrot.slane %v1164_v23, 5  ;;  %v1170_v21 = vrot.slane %v1168_v60, 4  ;;  %v2306_v50 = vshll.u32 %v2100_v4, 16  ;;  %v1176_v20 = vrot.slane %v1174_v52, 5  ;;  %v11288_v9 = vpop.permute.xlu1 %2950 }
  0xf0   : >> { %3234 = vrot.lane.b32.xlu0 %v8825_v48, %s10505_s6  ;;  %v1161_v7 = vor.u32 %v1160_v22, %v1157_v10  ;;  %v2312_v55 = vshll.u32 %v2101_v15, 16  ;;  %v2316_v30 = vshrl.u32 %v2101_v15, 16  ;;  %v2305_v62 = vrot.slane %v2303_v25, 4  ;;  %v11291_v10 = vld [vmem:[#allocation2 + $0x90] sm:$0xf] }
  0xf1   : >> { %3090 = vrot.lane.b32.xlu1 %v8793_v63, %s10505_s6  ;;  %v1171_v31 = vor.u32 %v1170_v21, %v1166_v5  ;;  %v2308_v16 = vrot.slane %v2306_v50, 5  ;;  %v2322_v51 = vshll.u32 %v2125_v6, 16  ;;  %v8682_v4 = vrot.slane %v1916_v33, 9  ;;  %v11293_v15 = vld [vmem:[#allocation2 + $0x94] sm:$0xf] }
  0xf2   : >> { %v1162_v43 = vrot.slane %v1161_v7, 4  ;;  %v2314_v41 = vrot.slane %v2312_v55, 5  ;;  %v2318_v24 = vrot.slane %v2316_v30, 4  ;;  %v2024_v48 = vrot.slane %v11189_v35, 5  ;;  %v885_v63 = vld [vmem:[#allocation2 + $0x84] sm:$0xf] }
  0xf3   : >> { %v1172_v23 = vrot.slane %v1171_v31, 4  ;;  %v2309_v60 = vor.u32 %v2308_v16, %v2305_v62  ;;  %v2324_v22 = vrot.slane %v2322_v51, 5  ;;  %v2027_v52 = vrot.slane %v1516_v29, 5  ;;  %v886_v7 = vld [vmem:[#allocation2 + $0x88] sm:$0xf] }
  0xf4   : >> { %2970 = vrot.lane.b32.xlu0 %v8765_v3, %s10505_s6  ;;  %v1167_v50 = vsel %vm10997_vm11, %v1162_v43, %v1166_v5  ;;  %v2319_v6 = vor.u32 %v2318_v24, %v2314_v41  ;;  %v2025_v35 = vsel %vm11084_vm14, %v8682_v4, %v2024_v48  ;;  %v2026_v33 = vrot.slane %v2024_v48, 4  ;;  %v906_v30 = vld [vmem:[#allocation2 + $0x8c] sm:$0x1]  ;;  %v2102_v16 = vld [vmem:[#allocation2 + $0x78] sm:$0xf] }
  0xf5   : >> { %v1177_v21 = vsel %vm10997_vm11, %v1172_v23, %v1176_v20  ;;  %v2310_v25 = vrot.slane %v2309_v60, 4  ;;  %v13956_v3 = vshrl.u32 %v11162_v2, 16  ;;  %v11308_v51 = vrot.slane %v1673_v49, 5  ;;  %v2103_v24 = vld [vmem:[#allocation2 + $0x7c] sm:$0xf] }
  0xf6   : >> { %v8733_v5 = vcombine.low %v1167_v50, %v1177_v21  ;;  %v2320_v62 = vrot.slane %v2319_v6, 4  ;;  %v2028_v20 = vsel %vm11084_vm14, %v2026_v33, %v2027_v52  ;;  %v1179_v43 = vshrl.u32 %v885_v63, 16  ;;  %v2126_v48 = vld [vmem:[#allocation2 + $0x80] sm:$0x1]  ;;  %v1917_v52 = vld [vmem:[#allocation2 + $0x6c] sm:$0xe] }
  0xf7   : >> { %v11306_v31 = vrot.slane %v13956_v3, 4  ;;  %v2315_v29 = vsel %vm10997_vm11, %v2310_v25, %v2314_v41  ;;  %v8794_v23 = vcombine.low %v2025_v35, %v2028_v20  ;;  %v8766_v49 = vcombine.low %v11291_v10, %v11293_v15 }
  0xf8   : >> { %2826 = vrot.lane.b32.xlu1 %v8733_v5, %s10505_s6  ;;  %v2325_v2 = vsel %vm10997_vm11, %v2320_v62, %v2324_v22  ;;  %v1182_v60 = vshll.u32 %v885_v63, 16  ;;  %v1181_v41 = vrot.slane %v1179_v43, 4  ;;  %v1188_v6 = vshll.u32 %v886_v7, 16 }
  0xf9   : >> { %v8826_v50 = vcombine.low %v2315_v29, %v2325_v2  ;;  %v1192_v21 = vshrl.u32 %v886_v7, 16  ;;  %v1198_v3 = vshll.u32 %v906_v30, 16  ;;  %v2327_v19 = vshrl.u32 %v2102_v16, 16  ;;  %v1517_v7 = vld [vmem:[#allocation2 + $0x74] sm:$0x1] }
  0xfa   : >> { %v11298_v55 = vpop.permute.xlu0 %2830  ;;  %v1184_v33 = vrot.slane %v1182_v60, 5  ;;  %v2330_v5 = vshll.u32 %v2102_v16, 16  ;;  %v1190_v22 = vrot.slane %v1188_v6, 5  ;;  %v2336_v62 = vshll.u32 %v2103_v24, 16  ;;  %v2104_v30 = vld [vmem:[#allocation2 + $0x84] sm:$0xf] }
  0xfb   : >> { %3236 = vrot.lane.b32.xlu0 %v8826_v50, %s10505_s6  ;;  %v1194_v35 = vrot.slane %v1192_v21, 4  ;;  %v2340_v20 = vshrl.u32 %v2103_v24, 16  ;;  %v1200_v63 = vrot.slane %v1198_v3, 5  ;;  %v2329_v29 = vrot.slane %v2327_v19, 4  ;;  %v2105_v24 = vld [vmem:[#allocation2 + $0x88] sm:$0xf] }
  0xfc   : >> { %3092 = vrot.lane.b32.xlu1 %v8794_v23, %s10505_s6  ;;  %v1185_v10 = vor.u32 %v1184_v33, %v1181_v41  ;;  %v2332_v43 = vrot.slane %v2330_v5, 5  ;;  %v2338_v54 = vrot.slane %v2336_v62, 5  ;;  %v2346_v60 = vshll.u32 %v2126_v48, 16  ;;  %v2127_v3 = vld [vmem:[#allocation2 + $0x8c] sm:$0x1] }
  0xfd   : >> { %v11314_v4 = vpop.permute.xlu1 %2806  ;;  %v1195_v2 = vor.u32 %v1194_v35, %v1190_v22  ;;  %v2342_v13 = vrot.slane %v2340_v20, 4  ;;  %v8683_v6 = vrot.slane %v1917_v52, 9  ;;  %v2031_v21 = vrot.slane %v11215_v42, 5  ;;  %v1518_v20 = vld [vmem:[#allocation2 + $0x80] sm:$0x1] }
  0xfe   : >> { %v11321_v25 = vpop.permute.xlu0 %2976  ;;  %v1186_v16 = vrot.slane %v1185_v10, 4  ;;  %v2333_v50 = vor.u32 %v2332_v43, %v2329_v29  ;;  %v2348_v19 = vrot.slane %v2346_v60, 5  ;;  %v2034_v33 = vrot.slane %v1517_v7, 5  ;;  %v1918_v42 = vld [vmem:[#allocation2 + $0x78] sm:$0xe] }
  0xff   : >> { %2972 = vrot.lane.b32.xlu0 %v8766_v49, %s10505_s6  ;;  %v1196_v23 = vrot.slane %v1195_v2, 4  ;;  %v2343_v41 = vor.u32 %v2342_v13, %v2338_v54  ;;  %v2032_v62 = vsel %vm11084_vm14, %v8683_v6, %v2031_v21  ;;  %v2033_v52 = vrot.slane %v2031_v21, 4  ;;  %v2106_v43 = vld [vmem:[#allocation2 + $0x90] sm:$0xf] }
 0x100   : >> { %v1191_v48 = vsel %vm10997_vm11, %v1186_v16, %v1190_v22  ;;  %v2334_v35 = vrot.slane %v2333_v50, 4  ;;  %v2351_v13 = vshrl.u32 %v2104_v30, 16  ;;  %v2354_v29 = vshll.u32 %v2104_v30, 16 }
 0x101   : >> { %v1201_v49 = vsel %vm10997_vm11, %v1196_v23, %v1200_v63  ;;  %v2344_v10 = vrot.slane %v2343_v41, 4  ;;  %v2035_v22 = vsel %vm11084_vm14, %v2033_v52, %v2034_v33  ;;  %v2360_v60 = vshll.u32 %v2105_v24, 16  ;;  %v2107_v23 = vld [vmem:[#allocation2 + $0x94] sm:$0xf] }
 0x102   : >> { %v11325_v18 = vpop.permute.xlu1 %2832  ;;  %v11329_v5 = vpop.permute.xlu0 %2952  ;;  %v8734_v7 = vcombine.low %v1191_v48, %v1201_v49  ;;  %v2339_v2 = vsel %vm10997_vm11, %v2334_v35, %v2338_v54  ;;  %v8795_v6 = vcombine.low %v2032_v62, %v2035_v22  ;;  %v2353_v21 = vrot.slane %v2351_v13, 4  ;;  %v1310_v22 = vld [vmem:[#allocation2 + $0x90] sm:$0xe] }
 0x103   : >> { %v2349_v50 = vsel %vm10997_vm11, %v2344_v10, %v2348_v19  ;;  %v2356_v63 = vrot.slane %v2354_v29, 5  ;;  %v2362_v41 = vrot.slane %v2360_v60, 5  ;;  %v2364_v48 = vshrl.u32 %v2105_v24, 16 }
 0x104   : >> { %2828 = vrot.lane.b32.xlu1 %v8734_v7, %s10505_s6  ;;  %v8827_v30 = vcombine.low %v2339_v2, %v2349_v50  ;;  %v2370_v49 = vshll.u32 %v2127_v3, 16  ;;  %v8684_v35 = vrot.slane %v1918_v42, 9  ;;  %v2038_v33 = vrot.slane %v11236_v36, 5 }
 0x105   : >> { %v2357_v54 = vor.u32 %v2356_v63, %v2353_v21  ;;  %v2041_v52 = vrot.slane %v1518_v20, 5  ;;  %v2366_v19 = vrot.slane %v2364_v48, 4  ;;  %v2375_v10 = vshrl.u32 %v2106_v43, 16 }
 0x106   : >> { %v11347_v14 = vpop.permute.xlu0 %2978  ;;  %3238 = vrot.lane.b32.xlu0 %v8827_v30, %s10505_s6  ;;  %v2372_v62 = vrot.slane %v2370_v49, 5  ;;  %v2378_v13 = vshll.u32 %v2106_v43, 16  ;;  %v2039_v7 = vsel %vm11084_vm14, %v8684_v35, %v2038_v33  ;;  %v2040_v24 = vrot.slane %v2038_v33, 4  ;;  %v1919_v30 = vld [vmem:[#allocation2 + $0x84] sm:$0xe] }
 0x107   : >> { %v11341_v16 = vpop.permute.xlu1 %2808  ;;  %v2358_v29 = vrot.slane %v2357_v54, 4  ;;  %v2384_v3 = vshll.u32 %v2107_v23, 16  ;;  %v2367_v42 = vor.u32 %v2366_v19, %v2362_v41  ;;  %v2377_v36 = vrot.slane %v2375_v10, 4  ;;  %v10063_v19 = vld [vmem:[#allocation2 + $0x94] sm:$0xf] }
 0x108   : >> { %3094 = vrot.lane.b32.xlu1 %v8795_v6, %s10505_s6  ;;  %v2380_v20 = vrot.slane %v2378_v13, 5  ;;  %v2388_v2 = vshrl.u32 %v2107_v23, 16  ;;  %v2042_v43 = vsel %vm11084_vm14, %v2040_v24, %v2041_v52  ;;  %v2394_v63 = vshll.u32 %v2128_v12, 16  ;;  %v10064_v10 = vld [vmem:[#allocation2 + $0x98] sm:$0x1] }
 0x109   : >> { %v2363_v50 = vsel %vm10997_vm11, %v2358_v29, %v2362_v41  ;;  %v2386_v21 = vrot.slane %v2384_v3, 5  ;;  %v2368_v48 = vrot.slane %v2367_v42, 4  ;;  %v8796_v49 = vcombine.low %v2039_v7, %v2042_v43  ;;  %v1298_v29 = vld [vmem:[#allocation2] sm:$0xe] }
 0x10a   : >> { %v2381_v54 = vor.u32 %v2380_v20, %v2377_v36  ;;  %v2390_v6 = vrot.slane %v2388_v2, 4  ;;  %v2396_v35 = vrot.slane %v2394_v63, 5  ;;  %v8671_v33 = vrot.slane %v1310_v22, 9  ;;  %v11359_v38 = vpop.permute.xlu0 %2954  ;;  %v2108_v36 = vld [vmem:[#allocation2 + $0x9c] sm:$0xf] }
 0x10b   : >> { %v11353_v60 = vpop.permute.xlu1 %2834  ;;  %v1451_v23 = vrot.slane %v10063_v19, 5  ;;  %v1454_v13 = vrot.slane %v10064_v10, 5  ;;  %v2373_v41 = vsel %vm10997_vm11, %v2368_v48, %v2372_v62  ;;  %vm3302_vm15 = vcmask 523264   ;;  %v10065_v48 = vld [vmem:[#allocation2 + $0x4] sm:$0xf] }
 0x10c   : >> { %3096 = vrot.lane.b32.xlu1 %v8796_v49, %s10505_s6  ;;  %v2382_v12 = vrot.slane %v2381_v54, 4  ;;  %v2391_v52 = vor.u32 %v2390_v6, %v2386_v21  ;;  %v8828_v7 = vcombine.low %v2363_v50, %v2373_v41  ;;  %v8685_v42 = vrot.slane %v1919_v30, 9  ;;  %v10066_v54 = vld [vmem:[#allocation2 + $0x8] sm:$0x1]  ;;  %v2109_v6 = vld [vmem:[#allocation2 + $0xa0] sm:$0xf] }
 0x10d   : >> { %v1452_v24 = vsel %vm11084_vm14, %v8671_v33, %v1451_v23  ;;  %v1453_v3 = vrot.slane %v1451_v23, 4  ;;  %v2045_v22 = vrot.slane %v11265_v61, 5  ;;  %v2048_v62 = vrot.slane %v1519_v1, 5  ;;  %v2129_v23 = vld [vmem:[#allocation2 + $0xa4] sm:$0x1] }
 0x10e   : >> { %v2387_v20 = vsel %vm10997_vm11, %v2382_v12, %v2386_v21  ;;  %v2392_v2 = vrot.slane %v2391_v52, 4  ;;  %3240 = vrot.lane.b32.xlu0 %v8828_v7, %s10505_s6  ;;  %v8659_v63 = vrot.slane %v1298_v29, 9  ;;  %v1367_v49 = vrot.slane %v10065_v48, 5  ;;  %v10067_v12 = vld [vmem:[#allocation2] sm:$0xf]  ;;  %v11380_v7 = vpop.permute.xlu0 %2980 }
 0x10f   : >> { %v1455_v50 = vsel %vm11084_vm14, %v1453_v3, %v1454_v13  ;;  %v1370_v30 = vrot.slane %v10066_v54, 5  ;;  %v2046_v1 = vsel %vm11084_vm14, %v8685_v42, %v2045_v22  ;;  %v2047_v61 = vrot.slane %v2045_v22, 4  ;;  %v1520_v29 = vld [vmem:[#allocation2 + $0x98] sm:$0x1]  ;;  %v10068_v3 = vld [vmem:[#allocation2 + $0x90] sm:$0xf] }
 0x110   : >> { %v11369_v43 = vpop.permute.xlu1 %2810  ;;  %v2397_v21 = vsel %vm10997_vm11, %v2392_v2, %v2396_v35  ;;  %v8751_v33 = vcombine.low %v1452_v24, %v1455_v50  ;;  %v1368_v13 = vsel %vm11084_vm14, %v8659_v63, %v1367_v49  ;;  %v1369_v41 = vrot.slane %v1367_v49, 4  ;;  %v10014_v2 = vld [vmem:[%s10992_s10 + $0xb8] sm:$0xff]   ;;  %v1920_v22 = vld [vmem:[#allocation2 + $0x90] sm:$0xe] }
 0x111   : >> { %v8829_v10 = vcombine.low %v2387_v20, %v2397_v21  ;;  %v8707_v52 = vcombine.low %v10067_v12, %v10065_v48  ;;  %v2049_v24 = vsel %vm11084_vm14, %v2047_v61, %v2048_v62  ;;  %v8719_v42 = vcombine.low %v10068_v3, %v10063_v19  ;;  %v1311_v50 = vld [vmem:[#allocation2 + $0x9c] sm:$0xe]  ;;  %v10015_v54 = vld [vmem:[%s10992_s10 + $0xf0] sm:$0xff]  }
 0x112   : >> { %v3417_v35 = vsel %vm3302_vm15, %v8751_v33, %v11284_v28  ;;  %v2399_v20 = vshrl.u32 %v2108_v36, 16  ;;  %v8797_v63 = vcombine.low %v2046_v1, %v2049_v24  ;;  %v1371_v48 = vsel %vm11084_vm14, %v1369_v41, %v1370_v30 }
 0x113   : >> { %3242 = vrot.lane.b32.xlu0 %v8829_v10, %s10505_s6  ;;  %4034 = vmatprep.mubr.bf16.mxu1 %v3417_v35  ;;  %v3305_v28 = vsel %vm3302_vm15, %v8707_v52, %v11314_v4  ;;  %v2402_v49 = vshll.u32 %v2108_v36, 16  ;;  %v8739_v62 = vcombine.low %v1368_v13, %v1371_v48  ;;  %v3353_v19 = vsel %vm3302_vm15, %v8719_v42, %v11298_v55  ;;  %v10017_v4 = vld [vmem:[%s10992_s10 + $0xb0] sm:$0xff]   ;;  %v1299_v52 = vld [vmem:[#allocation2 + $0xc] sm:$0xe] }
 0x114   : >> { %v2401_v21 = vrot.slane %v2399_v20, 4  ;;  %v2408_v33 = vshll.u32 %v2109_v6, 16  ;;  %3098 = vrot.lane.b32.xlu1 %v8797_v63, %s10505_s6  ;;  %4035 = vmatmul.mubr.bf16.vlgmr.msra.gmra.mxu1 %v3353_v19  ;;  %v2412_v10 = vshrl.u32 %v2109_v6, 16  ;;  %v2418_v30 = vshll.u32 %v2129_v23, 16  ;;  %v10035_v35 = vld [vmem:[%s10992_s10 + $0x110] sm:$0xff]   ;;  %v10018_v42 = vld [vmem:[%s10992_s10 + $0xe8] sm:$0xff]   ;;  %v11406_v20 = vpop.permute.xlu0 %2956 }
 0x115   : >> { %v11395_v61 = vpop.permute.xlu1 %2836  ;;  %v2404_v1 = vrot.slane %v2402_v49, 5  ;;  %v8686_v41 = vrot.slane %v1920_v22, 9  ;;  %v3369_v36 = vsel %vm3302_vm15, %v8739_v62, %v11288_v9  ;;  %9440 = vmatpush3.bf16.msra.mxu1 %v10014_v2  ;;  %v2052_v55 = vrot.slane %v11293_v15, 5  ;;  %v10069_v22 = vld [vmem:[#allocation2 + $0xa0] sm:$0xf]  ;;  %v10071_v62 = vld [vmem:[%s10992_s10 + $0x118] sm:$0xff]  }
 0x116   : >> { %v11401_v13 = vrot.slane %v2408_v33, 5  ;;  %v2055_v12 = vrot.slane %v1520_v29, 5  ;;  %3938 = vmatprep.mubr.bf16.mxu0 %v3369_v36  ;;  %v2414_v3 = vrot.slane %v2412_v10, 4  ;;  %v2420_v6 = vrot.slane %v2418_v30, 5  ;;  %9441 = vmatprep.subr.bf16.mxu1 %v10015_v54  ;;  %v10070_v29 = vld [vmem:[#allocation2 + $0xa4] sm:$0x1] }
 0x117   : >> { %v2405_v24 = vor.u32 %v2404_v1, %v2401_v21  ;;  %v8672_v23 = vrot.slane %v1311_v50, 9  ;;  %3939 = vmatmul.mubr.bf16.vlgmr.msra.gmra.mxu0 %v3305_v28  ;;  %v2053_v9 = vsel %vm11084_vm14, %v8686_v41, %v2052_v55  ;;  %v2054_v2 = vrot.slane %v2052_v55, 4  ;;  %v10072_v50 = vld [vmem:[#allocation2 + $0x10] sm:$0xf]  ;;  %v10073_v1 = vld [vmem:[#allocation2 + $0x14] sm:$0x1] }
 0x118   : >> { %v1458_v15 = vrot.slane %v10069_v22, 5  ;;  %v1461_v63 = vrot.slane %v10070_v29, 5  ;;  %v2415_v49 = vor.u32 %v2414_v3, %v11401_v13  ;;  %9816 = vmatpush3.bf16.msra.mxu0 %v10071_v62  ;;  %v8660_v54 = vrot.slane %v1299_v52, 9  ;;  %v10020_v30 = vld [vmem:[%s10992_s10 + $0xa8] sm:$0xff]  }
 0x119   : >> { %v2406_v48 = vrot.slane %v2405_v24, 4  ;;  %v1374_v19 = vrot.slane %v10072_v50, 5  ;;  %v2056_v28 = vsel %vm11084_vm14, %v2054_v2, %v2055_v12  ;;  %9442 = vmatpush3.bf16.msra.mxu1 %v10017_v4  ;;  %v1377_v10 = vrot.slane %v10073_v1, 5  ;;  %v2110_v41 = vld [vmem:[#allocation2 + $0xa8] sm:$0xf]  ;;  %9817 = vmatprep.subr.bf16.mxu0 %v10035_v35  ;;  %v10022_v24 = vld [vmem:[%s10992_s10 + $0xe0] sm:$0xff]  }
 0x11a   : >> { %v1459_v21 = vsel %vm11084_vm14, %v8672_v23, %v1458_v15  ;;  %v1460_v33 = vrot.slane %v1458_v15, 4  ;;  %v11417_v36 = vpop.permute.xlu1 %2812  ;;  %v2416_v52 = vrot.slane %v2415_v49, 4  ;;  %v8798_v12 = vcombine.low %v2053_v9, %v2056_v28  ;;  %9443 = vmatprep.subr.bf16.mxu1 %v10018_v42  ;;  %v10043_v3 = vld [vmem:[%s10992_s10 + $0x108] sm:$0xff]   ;;  %v10074_v15 = vld [vmem:[#allocation2 + $0x9c] sm:$0xf] }
 0x11b   : >> { %v2411_v55 = vsel %vm10997_vm11, %v2406_v48, %v11401_v13  ;;  %v1375_v4 = vsel %vm11084_vm14, %v8660_v54, %v1374_v19  ;;  %v1376_v2 = vrot.slane %v1374_v19, 4  ;;  %v8720_v29 = vcombine.low %v10074_v15, %v10069_v22  ;;  %v10075_v62 = vld [vmem:[#allocation2 + $0xc] sm:$0xf]  ;;  %v10023_v13 = vld [vmem:[%s10992_s10 + $0xa0] sm:$0xff]   ;;  %v1921_v54 = vld [vmem:[#allocation2 + $0x9c] sm:$0xe] }
 0x11c   : >> { %v1462_v23 = vsel %vm11084_vm14, %v1460_v33, %v1461_v63  ;;  %v8708_v1 = vcombine.low %v10075_v62, %v10072_v50  ;;  %v2421_v42 = vsel %vm10997_vm11, %v2416_v52, %v2420_v6  ;;  %3100 = vrot.lane.b32.xlu1 %v8798_v12, %s10505_s6  ;;  %v2423_v48 = vshrl.u32 %v2110_v41, 16  ;;  %v10024_v28 = vld [vmem:[%s10992_s10 + $0xd8] sm:$0xff]   ;;  %9818 = vmatpush3.bf16.msra.mxu0 %v10035_v35  ;;  %v1521_v33 = vld [vmem:[#allocation2 + $0xa4] sm:$0x1]  ;;  %v1312_v35 = vld [vmem:[#allocation2 + $0xa8] sm:$0xe] }
 0x11d   : >> { %v8752_v9 = vcombine.low %v1459_v21, %v1462_v23  ;;  %v2426_v49 = vshll.u32 %v2110_v41, 16  ;;  %v8830_v22 = vcombine.low %v2411_v55, %v2421_v42  ;;  %v1378_v50 = vsel %vm11084_vm14, %v1376_v2, %v1377_v10  ;;  %9444 = vmatpush3.bf16.msra.mxu1 %v10020_v30  ;;  %v10050_v21 = vld [vmem:[%s10992_s10 + $0x100] sm:$0xff]   ;;  %9819 = vmatprep.subr.bf16.mxu0 %v10043_v3  ;;  %v10026_v42 = vld [vmem:[%s10992_s10 + $0x98] sm:$0xff]  }
 0x11e   : >> { %v3357_v19 = vsel %vm3302_vm15, %v8720_v29, %v11325_v18  ;;  %v3309_v6 = vsel %vm3302_vm15, %v8708_v1, %v11341_v16  ;;  %v8740_v52 = vcombine.low %v1375_v4, %v1378_v50  ;;  %v2425_v12 = vrot.slane %v2423_v48, 4  ;;  %9445 = vmatprep.subr.bf16.mxu1 %v10022_v24  ;;  %v11445_v16 = vpop.permute.xlu1 %3078  ;;  %v10076_v4 = vld [vmem:[#allocation2 + $0xa0] sm:$0xf]  ;;  %v1300_v29 = vld [vmem:[#allocation2 + $0x18] sm:$0xe] }
 0x11f   : >> { %v11433_v63 = vpop.permute.xlu0 %3222  ;;  %v3421_v41 = vsel %vm3302_vm15, %v8752_v9, %v11321_v25  ;;  %v2428_v23 = vrot.slane %v2426_v49, 5  ;;  %3244 = vrot.lane.b32.xlu0 %v8830_v22, %s10505_s6  ;;  %v2432_v10 = vshll.u32 %v2111_v32, 16  ;;  %v2436_v18 = vshrl.u32 %v2111_v32, 16 }
 0x120   : >> { %4042 = vmatprep.mubr.bf16.mxu1 %v3421_v41  ;;  %v2442_v30 = vshll.u32 %v2130_v40, 16  ;;  %v8687_v55 = vrot.slane %v1921_v54, 9  ;;  %v3373_v2 = vsel %vm3302_vm15, %v8740_v52, %v11329_v5  ;;  %v2059_v15 = vrot.slane %v10076_v4, 5  ;;  %9820 = vmatpush3.bf16.msra.mxu0 %v10043_v3  ;;  %v10077_v54 = vld [vmem:[#allocation2 + $0xac] sm:$0xf]  ;;  %v10028_v3 = vld [vmem:[%s10992_s10 + $0xd0] sm:$0xff]  }
 0x121   : >> { %4043 = vmatmul.mubr.bf16.gmra.mxu1 %v3357_v19  ;;  %v2429_v25 = vor.u32 %v2428_v23, %v2425_v12  ;;  %v2062_v24 = vrot.slane %v1521_v33, 5  ;;  %3946 = vmatprep.mubr.bf16.mxu0 %v3373_v2  ;;  %v2434_v62 = vrot.slane %v2432_v10, 5  ;;  %v2438_v1 = vrot.slane %v2436_v18, 4  ;;  %v10078_v19 = vld [vmem:[#allocation2 + $0xb0] sm:$0x1] }
 0x122   : >> { %v2444_v32 = vrot.slane %v2442_v30, 5  ;;  %9446 = vmatpush3.bf16.msra.mxu1 %v10023_v13  ;;  %v8673_v40 = vrot.slane %v1312_v35, 9  ;;  %3947 = vmatmul.mubr.bf16.gmra.mxu0 %v3309_v6  ;;  %v2060_v5 = vsel %vm11084_vm14, %v8687_v55, %v2059_v15  ;;  %v2061_v49 = vrot.slane %v2059_v15, 4  ;;  %v10079_v13 = vld [vmem:[#allocation2 + $0x1c] sm:$0xf]  ;;  %v10029_v2 = vld [vmem:[%s10992_s10 + $0x90] sm:$0xff]  }
 0x123   : >> { %v11450_v9 = vpop.permute.xlu0 %2958  ;;  %v2430_v48 = vrot.slane %v2429_v25, 4  ;;  %v1465_v22 = vrot.slane %v10077_v54, 5  ;;  %9447 = vmatprep.subr.bf16.mxu1 %v10024_v28  ;;  %v2439_v50 = vor.u32 %v2438_v1, %v2434_v62  ;;  %v1468_v33 = vrot.slane %v10078_v19, 5  ;;  %9821 = vmatprep.subr.bf16.mxu0 %v10050_v21  ;;  %v2112_v28 = vld [vmem:[#allocation2 + $0xb4] sm:$0xf] }
 0x124   : >> { %v8661_v41 = vrot.slane %v1300_v29, 9  ;;  %v1381_v52 = vrot.slane %v10079_v13, 5  ;;  %v2063_v12 = vsel %vm11084_vm14, %v2061_v49, %v2062_v24  ;;  %9822 = vmatpush3.bf16.msra.mxu0 %v10050_v21  ;;  %v10080_v15 = vld [vmem:[#allocation2 + $0x20] sm:$0x1]  ;;  %v10081_v29 = vld [vmem:[#allocation2 + $0xa8] sm:$0xf] }
 0x125   : >> { %v2435_v6 = vsel %vm10997_vm11, %v2430_v48, %v2434_v62  ;;  %v1466_v23 = vsel %vm11084_vm14, %v8673_v40, %v1465_v22  ;;  %v1467_v35 = vrot.slane %v1465_v22, 4  ;;  %v2440_v10 = vrot.slane %v2439_v50, 4  ;;  %v10082_v1 = vld [vmem:[#allocation2 + $0x18] sm:$0xf]  ;;  %v10030_v48 = vld [vmem:[%s10992_s10 + $0xc8] sm:$0xff]  }
 0x126   : >> { %v8799_v18 = vcombine.low %v2060_v5, %v2063_v12  ;;  %v1382_v30 = vsel %vm11084_vm14, %v8661_v41, %v1381_v52  ;;  %v1383_v55 = vrot.slane %v1381_v52, 4  ;;  %9448 = vmatpush3.bf16.msra.mxu1 %v10026_v42  ;;  %v11464_v25 = vpop.permute.xlu1 %2814  ;;  %v1384_v24 = vrot.slane %v10080_v15, 5  ;;  %v2113_v40 = vld [vmem:[#allocation2 + $0xb8] sm:$0xf]  ;;  %v2131_v49 = vld [vmem:[#allocation2 + $0xbc] sm:$0x1] }
 0x127   : >> { %v1469_v4 = vsel %vm11084_vm14, %v1467_v35, %v1468_v33  ;;  %v8721_v62 = vcombine.low %v10081_v29, %v10077_v54  ;;  %v8709_v21 = vcombine.low %v10082_v1, %v10079_v13  ;;  %9449 = vmatprep.subr.bf16.mxu1 %v10028_v3  ;;  %v2445_v5 = vsel %vm10997_vm11, %v2440_v10, %v2444_v32  ;;  %v1922_v19 = vld [vmem:[#allocation2 + $0xa8] sm:$0xe]  ;;  %v1522_v13 = vld [vmem:[#allocation2 + $0xb0] sm:$0x1] }
 0x128   : >> { %3102 = vrot.lane.b32.xlu1 %v8799_v18, %s10505_s6  ;;  %v8753_v42 = vcombine.low %v1466_v23, %v1469_v4  ;;  %v2447_v22 = vshrl.u32 %v2112_v28, 16  ;;  %v2450_v50 = vshll.u32 %v2112_v28, 16  ;;  %v8831_v41 = vcombine.low %v2435_v6, %v2445_v5  ;;  %v1313_v28 = vld [vmem:[#allocation2 + $0xb4] sm:$0xe]  ;;  %v10032_v6 = vld [vmem:[%s10992_s10 + $0x88] sm:$0xff]   ;;  %v10034_v4 = vld [vmem:[%s10992_s10 + $0xc0] sm:$0xff]  }
 0x129   : >> { %v1385_v54 = vsel %vm11084_vm14, %v1383_v55, %v1384_v24  ;;  %v3361_v3 = vsel %vm3302_vm15, %v8721_v62, %v11353_v60  ;;  %v3313_v32 = vsel %vm3302_vm15, %v8709_v21, %v11369_v43  ;;  %v2456_v10 = vshll.u32 %v2113_v40, 16 }
 0x12a   : >> { %v11472_v33 = vpop.permute.xlu0 %3224  ;;  %v3425_v52 = vsel %vm3302_vm15, %v8753_v42, %v11347_v14  ;;  %v8741_v12 = vcombine.low %v1382_v30, %v1385_v54  ;;  %v2449_v23 = vrot.slane %v2447_v22, 4  ;;  %v2452_v35 = vrot.slane %v2450_v50, 5  ;;  %9450 = vmatpush3.bf16.msra.mxu1 %v10029_v2  ;;  %3246 = vrot.lane.b32.xlu0 %v8831_v41, %s10505_s6  ;;  %v10083_v14 = vld [vmem:[#allocation2 + $0xac] sm:$0xf]  ;;  %v1301_v2 = vld [vmem:[#allocation2 + $0x24] sm:$0xe]  ;;  %v11487_v29 = vpop.permute.xlu1 %3080 }
 0x12b   : >> { %4050 = vmatprep.mubr.bf16.mxu1 %v3425_v52  ;;  %v2460_v18 = vshrl.u32 %v2113_v40, 16  ;;  %v2466_v60 = vshll.u32 %v2131_v49, 16  ;;  %v8688_v55 = vrot.slane %v1922_v19, 9  ;;  %v2066_v30 = vrot.slane %v10083_v14, 5  ;;  %9451 = vmatprep.subr.bf16.mxu1 %v10030_v48  ;;  %v10084_v22 = vld [vmem:[#allocation2 + $0xb8] sm:$0xf] }
 0x12c   : >> { %v3377_v43 = vsel %vm3302_vm15, %v8741_v12, %v11359_v38  ;;  %4051 = vmatmul.mubr.bf16.gmra.mxu1 %v3361_v3  ;;  %v2453_v15 = vor.u32 %v2452_v35, %v2449_v23  ;;  %v2069_v24 = vrot.slane %v1522_v13, 5  ;;  %v2458_v62 = vrot.slane %v2456_v10, 5  ;;  %v10036_v48 = vld [vmem:[%s10992_s10 + $0x80] sm:$0xff]   ;;  %v10085_v41 = vld [vmem:[#allocation2 + $0xbc] sm:$0x1] }
 0x12d   : >> { %3954 = vmatprep.mubr.bf16.mxu0 %v3377_v43  ;;  %v2462_v1 = vrot.slane %v2460_v18, 4  ;;  %v2468_v21 = vrot.slane %v2466_v60, 5  ;;  %v8674_v40 = vrot.slane %v1313_v28, 9  ;;  %v2067_v38 = vsel %vm11084_vm14, %v8688_v55, %v2066_v30  ;;  %v10086_v13 = vld [vmem:[#allocation2 + $0x28] sm:$0xf] }
 0x12e   : >> { %v11489_v5 = vpop.permute.xlu0 %2960  ;;  %3955 = vmatmul.mubr.bf16.gmra.mxu0 %v3313_v32  ;;  %v2454_v42 = vrot.slane %v2453_v15, 4  ;;  %v2068_v49 = vrot.slane %v2066_v30, 4  ;;  %v1472_v50 = vrot.slane %v10084_v22, 5  ;;  %9452 = vmatpush3.bf16.msra.mxu1 %v10032_v6  ;;  %v1475_v54 = vrot.slane %v10085_v41, 5  ;;  %v2114_v28 = vld [vmem:[#allocation2 + $0xc0] sm:$0xf] }
 0x12f   : >> { %v2463_v19 = vor.u32 %v2462_v1, %v2458_v62  ;;  %v8662_v3 = vrot.slane %v1301_v2, 9  ;;  %v1388_v52 = vrot.slane %v10086_v13, 5  ;;  %9453 = vmatprep.subr.bf16.mxu1 %v10034_v4  ;;  %v10087_v4 = vld [vmem:[#allocation2 + $0x2c] sm:$0x1]  ;;  %v10088_v15 = vld [vmem:[#allocation2 + $0xb4] sm:$0xf] }
 0x130   : >> { %v2459_v12 = vsel %vm10997_vm11, %v2454_v42, %v2458_v62  ;;  %v2070_v32 = vsel %vm11084_vm14, %v2068_v49, %v2069_v24  ;;  %v1473_v23 = vsel %vm11084_vm14, %v8674_v40, %v1472_v50  ;;  %v1474_v35 = vrot.slane %v1472_v50, 4  ;;  %v10089_v30 = vld [vmem:[#allocation2 + $0x24] sm:$0xf]  ;;  %v2132_v42 = vld [vmem:[#allocation2 + $0xc8] sm:$0x1] }
 0x131   : >> { %v2464_v6 = vrot.slane %v2463_v19, 4  ;;  %v8800_v10 = vcombine.low %v2067_v38, %v2070_v32  ;;  %v1389_v18 = vsel %vm11084_vm14, %v8662_v3, %v1388_v52  ;;  %v1390_v60 = vrot.slane %v1388_v52, 4  ;;  %v2115_v40 = vld [vmem:[#allocation2 + $0xc4] sm:$0xf] }
 0x132   : >> { %v1476_v55 = vsel %vm11084_vm14, %v1474_v35, %v1475_v54  ;;  %v1391_v43 = vrot.slane %v10087_v4, 5  ;;  %v8722_v14 = vcombine.low %v10088_v15, %v10084_v22  ;;  %v8710_v24 = vcombine.low %v10089_v30, %v10086_v13  ;;  %9454 = vmatpush3.bf16.msra.mxu1 %v10036_v48 }
 0x133   : >> { %v2469_v62 = vsel %vm10997_vm11, %v2464_v6, %v2468_v21  ;;  %3104 = vrot.lane.b32.xlu1 %v8800_v10, %s10505_s6  ;;  %v8754_v1 = vcombine.low %v1473_v23, %v1476_v55  ;;  %v2471_v38 = vshrl.u32 %v2114_v28, 16  ;;  %v2474_v49 = vshll.u32 %v2114_v28, 16  ;;  %v10090_v6 = vld [vmem:[#allocation2 + $0x10] sm:$0xf] }
 0x134   : >> { %v11504_v2 = vpop.permute.xlu1 %2816  ;;  %v8832_v19 = vcombine.low %v2459_v12, %v2469_v62  ;;  %v1392_v22 = vsel %vm11084_vm14, %v1390_v60, %v1391_v43  ;;  %v3365_v48 = vsel %vm3302_vm15, %v8722_v14, %v11395_v61  ;;  %v3317_v41 = vsel %vm3302_vm15, %v8710_v24, %v11417_v36  ;;  %v1923_v60 = vld [vmem:[#allocation2 + $0xb4] sm:$0xe] }
 0x135   : >> { %v11509_v50 = vpop.permute.xlu0 %3226  ;;  %v3429_v21 = vsel %vm3302_vm15, %v8754_v1, %v11380_v7  ;;  %v8742_v54 = vcombine.low %v1389_v18, %v1392_v22  ;;  %v2473_v3 = vrot.slane %v2471_v38, 4  ;;  %v2476_v13 = vrot.slane %v2474_v49, 5  ;;  %v1523_v18 = vld [vmem:[#allocation2 + $0xbc] sm:$0x1]  ;;  %v10091_v1 = vld [vmem:[#allocation2 + $0x14] sm:$0x1] }
 0x136   : >> { %3248 = vrot.lane.b32.xlu0 %v8832_v19, %s10505_s6  ;;  %4058 = vmatprep.mubr.bf16.mxu1 %v3429_v21  ;;  %v2480_v52 = vshll.u32 %v2115_v40, 16  ;;  %v2484_v12 = vshrl.u32 %v2115_v40, 16  ;;  %v2490_v32 = vshll.u32 %v2132_v42, 16  ;;  %v13957_v23 = vshrl.u32 %v10980_v45, 16  ;;  %v10092_v49 = vld [vmem:[#allocation2 + $0xb8] sm:$0xf] }
 0x137   : >> { %v3381_v61 = vsel %vm3302_vm15, %v8742_v54, %v11406_v20  ;;  %4059 = vmatmul.mubr.bf16.gmra.mxu1 %v3365_v48  ;;  %v2477_v36 = vor.u32 %v2476_v13, %v2473_v3  ;;  %v13958_v28 = vshll.u32 %v10980_v45, 16  ;;  %v1535_v10 = vshll.u32 %v10090_v6, 16  ;;  %v1302_v48 = vld [vmem:[#allocation2 + $0x30] sm:$0xe]  ;;  %v2116_v6 = vld [vmem:[#allocation2 + $0xcc] sm:$0xf] }
 0x138   : >> { %v1528_v35 = vrot.slane %v13957_v23, 4  ;;  %3962 = vmatprep.mubr.bf16.mxu0 %v3381_v61  ;;  %v2482_v55 = vrot.slane %v2480_v52, 5  ;;  %v2486_v4 = vrot.slane %v2484_v12, 4  ;;  %v2492_v43 = vrot.slane %v2490_v32, 5  ;;  %v11528_v30 = vpop.permute.xlu1 %3082  ;;  %v10093_v12 = vld [vmem:[#allocation2 + $0x18] sm:$0xf] }
 0x139   : >> { %v1531_v7 = vrot.slane %v13958_v28, 5  ;;  %v13959_v15 = vshrl.u32 %v10982_v46, 16  ;;  %3963 = vmatmul.mubr.bf16.gmra.mxu0 %v3317_v41  ;;  %v2478_v20 = vrot.slane %v2477_v36, 4  ;;  %v1537_v62 = vrot.slane %v1535_v10, 5  ;;  %v11530_v40 = vpop.permute.xlu0 %2962  ;;  %v11536_v32 = vld [vmem:[#allocation2 + $0x1c] sm:$0xf] }
 0x13a   : >> { %v1545_v45 = vshll.u32 %v10091_v1, 16  ;;  %v2487_v42 = vor.u32 %v2486_v4, %v2482_v55  ;;  %v8689_v38 = vrot.slane %v1923_v60, 9  ;;  %v2073_v19 = vrot.slane %v10092_v49, 5  ;;  %v10095_v28 = vld [vmem:[#allocation2 + $0x34] sm:$0xf] }
 0x13b   : >> { %v1541_v14 = vrot.slane %v13959_v15, 4  ;;  %v1532_v24 = vor.u32 %v1531_v7, %v1528_v35  ;;  %v2076_v22 = vrot.slane %v1523_v18, 5  ;;  %v2483_v46 = vsel %vm10997_vm11, %v2478_v20, %v2482_v55  ;;  %v10096_v55 = vld [vmem:[#allocation2 + $0x38] sm:$0x1]  ;;  %v2117_v15 = vld [vmem:[#allocation2 + $0xd0] sm:$0xf] }
 0x13c   : >> { %v1547_v3 = vrot.slane %v1545_v45, 5  ;;  %v2488_v41 = vrot.slane %v2487_v42, 4  ;;  %v2074_v13 = vsel %vm11084_vm14, %v8689_v38, %v2073_v19  ;;  %v2075_v52 = vrot.slane %v2073_v19, 4 }
 0x13d   : >> { %v1533_v21 = vrot.slane %v1532_v24, 4  ;;  %v1542_v54 = vor.u32 %v1541_v14, %v1537_v62  ;;  %v8803_v23 = vcombine.low %v10093_v12, %v11536_v32  ;;  %v8663_v36 = vrot.slane %v1302_v48, 9  ;;  %v2133_v14 = vld [vmem:[#allocation2 + $0xd4] sm:$0x1] }
 0x13e   : >> { %v1395_v7 = vrot.slane %v10095_v28, 5  ;;  %v2493_v10 = vsel %vm10997_vm11, %v2488_v41, %v2492_v43  ;;  %v2077_v18 = vsel %vm11084_vm14, %v2075_v52, %v2076_v22  ;;  %v1398_v4 = vrot.slane %v10096_v55, 5 }
 0x13f   : >> { %v1538_v35 = vsel %vm10997_vm11, %v1533_v21, %v1537_v62  ;;  %v1543_v61 = vrot.slane %v1542_v54, 4  ;;  %v3497_v60 = vsel %vm3302_vm15, %v8803_v23, %v11433_v63  ;;  %v11547_v20 = vpop.permute.xlu1 %2818  ;;  %v8833_v24 = vcombine.low %v2483_v46, %v2493_v10  ;;  %v10097_v63 = vld [vmem:[#allocation2 + $0x30] sm:$0xf]  ;;  %v1924_v54 = vld [vmem:[#allocation2 + $0xc0] sm:$0xe] }
 0x140   : >> { %v8801_v1 = vcombine.low %v2074_v13, %v2077_v18  ;;  %4099 = vmatprep.mubr.bf16.mxu1 %v3497_v60  ;;  %v1396_v43 = vsel %vm11084_vm14, %v8663_v36, %v1395_v7  ;;  %v11553_v45 = vpop.permute.xlu0 %3228  ;;  %v1397_v38 = vrot.slane %v1395_v7, 4  ;;  %v8711_v49 = vcombine.low %v10097_v63, %v10095_v28  ;;  %v1524_v23 = vld [vmem:[#allocation2 + $0xc8] sm:$0x1]  ;;  %v1303_v7 = vld [vmem:[#allocation2 + $0x3c] sm:$0xe] }
 0x141   : >> { %v1548_v62 = vsel %vm10997_vm11, %v1543_v61, %v1547_v3  ;;  %v2495_v19 = vshrl.u32 %v2116_v6, 16  ;;  %3250 = vrot.lane.b32.xlu0 %v8833_v24, %s10505_s6  ;;  %v2498_v22 = vshll.u32 %v2116_v6, 16  ;;  %v2504_v48 = vshll.u32 %v2117_v15, 16  ;;  %v11557_v3 = vld [vmem:[#allocation2 + $0x60] sm:$0xf] }
 0x142   : >> { %v8771_v42 = vcombine.low %v1538_v35, %v1548_v62  ;;  %3106 = vrot.lane.b32.xlu1 %v8801_v1, %s10505_s6  ;;  %v2508_v46 = vshrl.u32 %v2117_v15, 16  ;;  %v2514_v21 = vshll.u32 %v2133_v14, 16  ;;  %v1694_v41 = vshrl.u32 %v11557_v3, 16  ;;  %v10099_v60 = vld [vmem:[#allocation2 + $0xc4] sm:$0xf] }
 0x143   : >> { %v1399_v52 = vsel %vm11084_vm14, %v1397_v38, %v1398_v4  ;;  %v2497_v12 = vrot.slane %v2495_v19, 4  ;;  %v2500_v61 = vrot.slane %v2498_v22, 5  ;;  %v2506_v36 = vrot.slane %v2504_v48, 5  ;;  %v11566_v15 = vpop.permute.xlu1 %3084  ;;  %v10102_v22 = vld [vmem:[#allocation2 + $0x40] sm:$0xf] }
 0x144   : >> { %v3433_v13 = vsel %vm3302_vm15, %v8771_v42, %v11445_v16  ;;  %v8743_v35 = vcombine.low %v1396_v43, %v1399_v52  ;;  %v2510_v28 = vrot.slane %v2508_v46, 4  ;;  %v3321_v6 = vsel %vm3302_vm15, %v8711_v49, %v11464_v25  ;;  %v11570_v62 = vpop.permute.xlu0 %2964  ;;  %v10100_v25 = vld [vmem:[#allocation2 + $0x24] sm:$0xf]  ;;  %v10101_v42 = vld [vmem:[#allocation2 + $0x28] sm:$0xf] }
 0x145   : >> { %4100 = vmatmul.mubr.bf16.vlgmr.msra.gmra.mxu1 %v3433_v13  ;;  %v2516_v10 = vrot.slane %v2514_v21, 5  ;;  %v8690_v18 = vrot.slane %v1924_v54, 9  ;;  %v2080_v55 = vrot.slane %v10099_v60, 5  ;;  %v2501_v4 = vor.u32 %v2500_v61, %v2497_v12  ;;  %v10104_v52 = vld [vmem:[#allocation2 + $0x1c] sm:$0xf] }
 0x146   : >> { %v3385_v16 = vsel %vm3302_vm15, %v8743_v35, %v11450_v9  ;;  %v2511_v14 = vor.u32 %v2510_v28, %v2506_v36  ;;  %v2083_v24 = vrot.slane %v1524_v23, 5  ;;  %v8804_v38 = vcombine.low %v10100_v25, %v10101_v42  ;;  %v10103_v9 = vld [vmem:[#allocation2 + $0x44] sm:$0x1] }
 0x147   : >> { %3970 = vmatprep.mubr.bf16.mxu0 %v3385_v16  ;;  %v2081_v1 = vsel %vm11084_vm14, %v8690_v18, %v2080_v55  ;;  %v2082_v43 = vrot.slane %v2080_v55, 4  ;;  %v8664_v63 = vrot.slane %v1303_v7, 9  ;;  %v2502_v49 = vrot.slane %v2501_v4, 4  ;;  %v1304_v7 = vld [vmem:[#allocation2 + $0x48] sm:$0xe] }
 0x148   : >> { %3971 = vmatmul.mubr.bf16.gmra.mxu0 %v3321_v6  ;;  %v2512_v19 = vrot.slane %v2511_v14, 4  ;;  %v1402_v48 = vrot.slane %v10102_v22, 5  ;;  %v1405_v46 = vrot.slane %v10103_v9, 5  ;;  %v3501_v54 = vsel %vm3302_vm15, %v8804_v38, %v11472_v33  ;;  %v10105_v16 = vld [vmem:[#allocation2 + $0x20] sm:$0x1] }
 0x149   : >> { %v2084_v21 = vsel %vm11084_vm14, %v2082_v43, %v2083_v24  ;;  %v1556_v13 = vor.u32 %v11098_v11, %v11092_v58  ;;  %v1559_v12 = vshll.u32 %v10104_v52, 16  ;;  %v1697_v23 = vshll.u32 %v11557_v3, 16  ;;  %4107 = vmatprep.mubr.bf16.mxu1 %v3501_v54  ;;  %v10106_v4 = vld [vmem:[#allocation2 + $0x3c] sm:$0xf]  ;;  %v11595_v43 = vld [vmem:[#allocation2 + $0x34] sm:$0xf] }
 0x14a   : >> { %v2507_v35 = vsel %vm10997_vm11, %v2502_v49, %v2506_v36  ;;  %v2517_v61 = vsel %vm10997_vm11, %v2512_v19, %v2516_v10  ;;  %v8802_v28 = vcombine.low %v2081_v1, %v2084_v21  ;;  %v1403_v33 = vsel %vm11084_vm14, %v8664_v63, %v1402_v48  ;;  %v11587_v58 = vpop.permute.xlu1 %2820  ;;  %v10107_v1 = vld [vmem:[#allocation2 + $0x30] sm:$0xf]  ;;  %v10109_v38 = vld [vmem:[#allocation2 + $0x4c] sm:$0xf] }
 0x14b   : >> { %v8834_v6 = vcombine.low %v2507_v35, %v2517_v61  ;;  %v1404_v18 = vrot.slane %v1402_v48, 4  ;;  %v1557_v60 = vrot.slane %v1556_v13, 4  ;;  %v1561_v11 = vrot.slane %v1559_v12, 5  ;;  %v10110_v54 = vld [vmem:[#allocation2 + $0x50] sm:$0x1] }
 0x14c   : >> { %3108 = vrot.lane.b32.xlu1 %v8802_v28, %s10505_s6  ;;  %v1563_v55 = vshrl.u32 %v10104_v52, 16  ;;  %v1569_v36 = vshll.u32 %v10105_v16, 16  ;;  %v8712_v14 = vcombine.low %v10106_v4, %v10102_v22  ;;  %v8805_v25 = vcombine.low %v10107_v1, %v11595_v43  ;;  %v10111_v61 = vld [vmem:[#allocation2 + $0x28] sm:$0xf] }
 0x14d   : >> { %v11590_v10 = vpop.permute.xlu0 %3230  ;;  %3252 = vrot.lane.b32.xlu0 %v8834_v6, %s10505_s6  ;;  %v1406_v24 = vsel %vm11084_vm14, %v1404_v18, %v1405_v46  ;;  %v8665_v42 = vrot.slane %v1304_v7, 9  ;;  %v1409_v63 = vrot.slane %v10109_v38, 5  ;;  %v1562_v19 = vsel %vm10997_vm11, %v1557_v60, %v1561_v11  ;;  %v10112_v6 = vld [vmem:[#allocation2 + $0x2c] sm:$0x1]  ;;  %v10113_v18 = vld [vmem:[#allocation2 + $0x48] sm:$0xf] }
 0x14e   : >> { %v8744_v49 = vcombine.low %v1403_v33, %v1406_v24  ;;  %v1565_v22 = vrot.slane %v1563_v55, 4  ;;  %v1571_v48 = vrot.slane %v1569_v36, 5  ;;  %v3325_v9 = vsel %vm3302_vm15, %v8712_v14, %v11504_v2  ;;  %v1305_v55 = vld [vmem:[#allocation2 + $0x54] sm:$0xe]  ;;  %v11610_v16 = vpop.permute.xlu1 %3086  ;;  %s10438_s6 = sshll.u32 (%p859_p11), %s10507_s5, 4  ;;  %s10439_s6 = int_to_ptr.vmem [resolvable:$false] %s10438_s6 }
 0x14f   : >> { %v1410_v46 = vsel %vm11084_vm14, %v8665_v42, %v1409_v63  ;;  %v1411_v21 = vrot.slane %v1409_v63, 4  ;;  %v1412_v13 = vrot.slane %v10110_v54, 5  ;;  %v1580_v35 = vor.u32 %v11143_v17, %v11141_v0  ;;  %v10114_v63 = vld [vmem:[#allocation2 + $0x3c] sm:$0xf]  ;;  %s10440_s7 = scalar_lea.vmem (%p859_p11), %s10439_s6, 8192  ;;  %p10441_p1 = scmp.lt.s32.totalorder (%p859_p11), %s13809_s25, %s10439_s6 }
 0x150   : >> { %v3389_v52 = vsel %vm3302_vm15, %v8744_v49, %v11489_v5  ;;  %v1566_v12 = vor.u32 %v1565_v22, %v1561_v11  ;;  %v1583_v28 = vshll.u32 %v10111_v61, 16  ;;  %v1587_v2 = vshrl.u32 %v10111_v61, 16  ;;  %v11622_v49 = vld [vmem:[#allocation2 + $0x40] sm:$0xf]  ;;  %v10117_v54 = vld [vmem:[#allocation2 + $0x5c] sm:$0x1]  ;;  %p10442_p2 = scmp.lt.s32.totalorder (%p859_p11), %s10440_s7, %s10434_s30 }
 0x151   : >> { %3978 = vmatprep.mubr.bf16.mxu0 %v3389_v52  ;;  %v1413_v7 = vsel %vm11084_vm14, %v1411_v21, %v1412_v13  ;;  %v1593_v33 = vshll.u32 %v10112_v6, 16  ;;  %v8713_v60 = vcombine.low %v10113_v18, %v10109_v38  ;;  %v11612_v36 = vpop.permute.xlu0 %2966  ;;  %v1581_v0 = vrot.slane %v1580_v35, 4  ;;  %v10116_v21 = vld [vmem:[#allocation2 + $0x58] sm:$0xf] }
 0x152   : >> { %v1567_v5 = vrot.slane %v1566_v12, 4  ;;  %3979 = vmatmul.mubr.bf16.gmra.mxu0 %v3325_v9  ;;  %v8745_v11 = vcombine.low %v1410_v46, %v1413_v7  ;;  %v1585_v17 = vrot.slane %v1583_v28, 5  ;;  %v3505_v4 = vsel %vm3302_vm15, %v8805_v25, %v11509_v50  ;;  %p10443_p3 = por (%p859_p11), %p10442_p2, %p10441_p1 }
 0x153   : >> { %v1589_v14 = vrot.slane %v1587_v2, 4  ;;  %v1595_v24 = vrot.slane %v1593_v33, 5  ;;  %v3329_v1 = vsel %vm3302_vm15, %v8713_v60, %v11547_v20  ;;  %v8806_v22 = vcombine.low %v10114_v63, %v11622_v49  ;;  %v1306_v60 = vld [vmem:[#allocation2 + $0x60] sm:$0xe] }
 0x154   : >> { %v1572_v42 = vsel %vm10997_vm11, %v1567_v5, %v1571_v48  ;;  %v3393_v38 = vsel %vm3302_vm15, %v8745_v11, %v11530_v40  ;;  %v8666_v9 = vrot.slane %v1305_v55, 9  ;;  %v1586_v50 = vsel %vm10997_vm11, %v1581_v0, %v1585_v17  ;;  %v10118_v40 = vld [vmem:[#allocation2 + $0x34] sm:$0xf]  ;;  %v11633_v7 = vpop.permute.xlu1 %2822  ;;  %p10444_p4 = pnand (%p859_p11), %p10443_p3, %p10437_p0 }
 0x155   : >> { %v8772_v46 = vcombine.low %v1562_v19, %v1572_v42  ;;  %3986 = vmatprep.mubr.bf16.mxu0 %v3393_v38  ;;  %v1590_v25 = vor.u32 %v1589_v14, %v1585_v17  ;;  %v1416_v20 = vrot.slane %v10116_v21, 5  ;;  %v1419_v13 = vrot.slane %v10117_v54, 5 }
 0x156   : >> { %v1604_v48 = vor.u32 %v11168_v8, %v11145_v57  ;;  %v1607_v52 = vshll.u32 %v10118_v40, 16  ;;  %v1611_v12 = vshrl.u32 %v10118_v40, 16  ;;  %v10119_v57 = vld [vmem:[#allocation2 + $0x38] sm:$0x1]  ;;  %v11639_v55 = vrot.slane %v1694_v41, 4 }
 0x157   : >> { %v3437_v35 = vsel %vm3302_vm15, %v8772_v46, %v11487_v29  ;;  %v1591_v61 = vrot.slane %v1590_v25, 4  ;;  %v1417_v19 = vsel %vm11084_vm14, %v8666_v9, %v1416_v20  ;;  %v1418_v28 = vrot.slane %v1416_v20, 4  ;;  %v11635_v2 = vpop.permute.xlu0 %3232  ;;  %v11641_v29 = vld [vmem:[#allocation2 + $0x6c] sm:$0xf]  ;;  %v10121_v9 = vld [vmem:[#allocation2 + $0x54] sm:$0xf] }
 0x158   : >> { %4108 = vmatmul.mubr.bf16.gmra.mxu1 %v3437_v35  ;;  %v1605_v6 = vrot.slane %v1604_v48, 4  ;;  %v1609_v33 = vrot.slane %v1607_v52, 5  ;;  %v1613_v18 = vrot.slane %v1611_v12, 4  ;;  %v1617_v8 = vshll.u32 %v10119_v57, 16  ;;  %v11661_v40 = vpop.permute.xlu1 %3088  ;;  %v10125_v35 = vld [vmem:[#allocation2 + $0x44] sm:$0x1] }
 0x159   : >> { %v1718_v5 = vshrl.u32 %v11641_v29, 16  ;;  %4115 = vmatprep.mubr.bf16.mxu1 %v3505_v4  ;;  %v1596_v11 = vsel %vm10997_vm11, %v1591_v61, %v1595_v24  ;;  %v1420_v0 = vsel %vm11084_vm14, %v1418_v28, %v1419_v13  ;;  %v3509_v14 = vsel %vm3302_vm15, %v8806_v22, %v11553_v45  ;;  %v10123_v22 = vld [vmem:[#allocation2 + $0x68] sm:$0x1]  ;;  %v10124_v13 = vld [vmem:[#allocation2 + $0x40] sm:$0xf] }
 0x15a   : >> { %v8773_v17 = vcombine.low %v1586_v50, %v1596_v11  ;;  %3987 = vmatmul.mubr.bf16.gmra.mxu0 %v3329_v1  ;;  %v8746_v42 = vcombine.low %v1417_v19, %v1420_v0  ;;  %v1614_v38 = vor.u32 %v1613_v18, %v1609_v33  ;;  %v1610_v41 = vsel %vm10997_vm11, %v1605_v6, %v1609_v33  ;;  %v11656_v1 = vld [vmem:[#allocation2 + $0x64] sm:$0xf]  ;;  %v1307_v6 = vld [vmem:[#allocation2 + $0x6c] sm:$0xe]  ;;  %v10126_v0 = vld [vmem:[#allocation2 + $0x48] sm:$0xf] }
 0x15b   : >> { %v1619_v63 = vrot.slane %v1617_v8, 5  ;;  %v8714_v46 = vcombine.low %v10121_v9, %v10116_v21  ;;  %v8667_v4 = vrot.slane %v1306_v60, 9  ;;  %v1423_v45 = vrot.slane %v11656_v1, 5 }
 0x15c   : >> { %v3441_v24 = vsel %vm3302_vm15, %v8773_v17, %v11528_v30  ;;  %v3397_v25 = vsel %vm3302_vm15, %v8746_v42, %v11570_v62  ;;  %v1615_v50 = vrot.slane %v1614_v38, 4  ;;  %v1426_v20 = vrot.slane %v10123_v22, 5  ;;  %v11663_v30 = vpop.permute.xlu0 %2968  ;;  %v11684_v38 = vld [vmem:[#allocation2 + $0x70] sm:$0xf] }
 0x15d   : >> { %3994 = vmatprep.mubr.bf16.mxu0 %v3397_v25  ;;  %v1628_v54 = vor.u32 %v11197_v47, %v11191_v27  ;;  %v1631_v21 = vshll.u32 %v10124_v13, 16  ;;  %v1635_v48 = vshrl.u32 %v10124_v13, 16  ;;  %v1424_v52 = vsel %vm11084_vm14, %v8667_v4, %v1423_v45 }
 0x15e   : >> { %v1620_v62 = vsel %vm10997_vm11, %v1615_v50, %v1619_v63  ;;  %v1425_v12 = vrot.slane %v1423_v45, 4  ;;  %v1641_v61 = vshll.u32 %v10125_v35, 16  ;;  %v11671_v19 = vrot.slane %v1697_v23, 5  ;;  %v10131_v45 = vld [vmem:[#allocation2 + $0x4c] sm:$0xf] }
 0x15f   : >> { %v3333_v27 = vsel %vm3302_vm15, %v8714_v46, %v11587_v58  ;;  %v1633_v47 = vrot.slane %v1631_v21, 5  ;;  %v1637_v28 = vrot.slane %v1635_v48, 4  ;;  %v11675_v33 = vrot.slane %v1718_v5, 4  ;;  %v11680_v58 = vld [vmem:[#allocation2 + $0x4c] sm:$0xf]  ;;  %v11689_v9 = vpop.permute.xlu1 %2824 }
 0x160   : >> { %v1721_v18 = vshll.u32 %v11641_v29, 16  ;;  %4116 = vmatmul.mubr.bf16.gmra.mxu1 %v3441_v24  ;;  %v8774_v57 = vcombine.low %v1610_v41, %v1620_v62  ;;  %v1427_v8 = vsel %vm11084_vm14, %v1425_v12, %v1426_v20  ;;  %v1629_v3 = vrot.slane %v1628_v54, 4  ;;  %v10128_v5 = vld [vmem:[#allocation2 + $0x60] sm:$0xf]  ;;  %v10130_v46 = vld [vmem:[#allocation2 + $0x74] sm:$0x1] }
 0x161   : >> { %4123 = vmatprep.mubr.bf16.mxu1 %v3509_v14  ;;  %v8747_v60 = vcombine.low %v1424_v52, %v1427_v8  ;;  %v1638_v23 = vor.u32 %v1637_v28, %v1633_v47  ;;  %v1643_v11 = vrot.slane %v1641_v61, 5  ;;  %v8807_v17 = vcombine.low %v10126_v0, %v11680_v58  ;;  %v1308_v21 = vld [vmem:[#allocation2 + $0x78] sm:$0xe]  ;;  %v10133_v61 = vld [vmem:[#allocation2 + $0x54] sm:$0xf] }
 0x162   : >> { %3995 = vmatmul.mubr.bf16.gmra.mxu0 %v3333_v27  ;;  %v8715_v42 = vcombine.low %v10128_v5, %v11656_v1  ;;  %v8668_v29 = vrot.slane %v1307_v6, 9  ;;  %v1430_v41 = vrot.slane %v11684_v38, 5  ;;  %v1433_v4 = vrot.slane %v10130_v46, 5  ;;  %v11693_v25 = vpop.permute.xlu0 %3234  ;;  %v11711_v27 = vld [vmem:[#allocation2 + $0x58] sm:$0xf] }
 0x163   : >> { %v3401_v14 = vsel %vm3302_vm15, %v8747_v60, %v11612_v36  ;;  %v1639_v63 = vrot.slane %v1638_v23, 4  ;;  %v1652_v24 = vor.u32 %v11249_v37, %v11243_v56  ;;  %v1655_v22 = vshll.u32 %v10131_v45, 16  ;;  %v10132_v56 = vld [vmem:[#allocation2 + $0x50] sm:$0x1]  ;;  %v11716_v23 = vpop.permute.xlu1 %3090  ;;  %v10136_v0 = vld [vmem:[#allocation2 + $0x80] sm:$0x1] }
 0x164   : >> { %4002 = vmatprep.mubr.bf16.mxu0 %v3401_v14  ;;  %v1431_v50 = vsel %vm11084_vm14, %v8668_v29, %v1430_v41  ;;  %v1432_v1 = vrot.slane %v1430_v41, 4  ;;  %v1659_v20 = vshrl.u32 %v10131_v45, 16  ;;  %v3445_v36 = vsel %vm3302_vm15, %v8774_v57, %v11566_v15  ;;  %v10138_v41 = vld [vmem:[#allocation2 + $0x58] sm:$0xf] }
 0x165   : >> { %v1634_v54 = vsel %vm10997_vm11, %v1629_v3, %v1633_v47  ;;  %v1644_v13 = vsel %vm10997_vm11, %v1639_v63, %v1643_v11  ;;  %v1665_v37 = vshll.u32 %v10132_v56, 16  ;;  %v3513_v48 = vsel %vm3302_vm15, %v8807_v17, %v11590_v10  ;;  %v11722_v46 = vld [vmem:[#allocation2 + $0x78] sm:$0xf] }
 0x166   : >> { %v1434_v62 = vsel %vm11084_vm14, %v1432_v1, %v1433_v4  ;;  %v1657_v52 = vrot.slane %v1655_v22, 5  ;;  %v1661_v12 = vrot.slane %v1659_v20, 4  ;;  %v11707_v35 = vrot.slane %v1721_v18, 5  ;;  %v2971_v8 = vpop.permute.xlu0 %2970  ;;  %v1309_v20 = vld [vmem:[#allocation2 + $0x84] sm:$0xe] }
 0x167   : >> { %v3337_v15 = vsel %vm3302_vm15, %v8715_v42, %v11633_v7  ;;  %v8808_v47 = vcombine.low %v10133_v61, %v11711_v27  ;;  %v8748_v28 = vcombine.low %v1431_v50, %v1434_v62  ;;  %v8775_v6 = vcombine.low %v1634_v54, %v1644_v13  ;;  %v11718_v7 = vld [vmem:[#allocation2 + $0x7c] sm:$0xf]  ;;  %v10137_v42 = vld [vmem:[#allocation2 + $0x6c] sm:$0xf]  ;;  %v10141_v62 = vld [vmem:[#allocation2 + $0x60] sm:$0xf] }
 0x168   : >> { %4124 = vmatmul.mubr.bf16.gmra.mxu1 %v3445_v36  ;;  %v1653_v57 = vrot.slane %v1652_v24, 4  ;;  %v1662_v10 = vor.u32 %v1661_v12, %v1657_v52  ;;  %v8669_v60 = vrot.slane %v1308_v21, 9  ;;  %v1667_v3 = vrot.slane %v1665_v37, 5  ;;  %v10140_v37 = vld [vmem:[#allocation2 + $0x5c] sm:$0x1] }
 0x169   : >> { %4131 = vmatprep.mubr.bf16.mxu1 %v3513_v48  ;;  %v3405_v18 = vsel %vm3302_vm15, %v8748_v28, %v11663_v30  ;;  %v1437_v11 = vrot.slane %v11718_v7, 5  ;;  %v1440_v17 = vrot.slane %v10136_v0, 5  ;;  %v8716_v29 = vcombine.low %v10137_v42, %v11684_v38  ;;  %v11747_v12 = vld [vmem:[#allocation2 + $0x64] sm:$0xf]  ;;  %v11750_v61 = vld [vmem:[#allocation2 + $0x88] sm:$0xf] }
 0x16a   : >> { %4003 = vmatmul.mubr.bf16.gmra.mxu0 %v3337_v15  ;;  %v1663_v5 = vrot.slane %v1662_v10, 4  ;;  %v1679_v14 = vshll.u32 %v10138_v41, 16  ;;  %v1683_v63 = vshrl.u32 %v10138_v41, 16  ;;  %v1742_v30 = vshrl.u32 %v11722_v46, 16  ;;  %v10144_v28 = vld [vmem:[#allocation2 + $0x8c] sm:$0x1] }
 0x16b   : >> { %v1745_v4 = vshll.u32 %v11722_v46, 16  ;;  %4010 = vmatprep.mubr.bf16.mxu0 %v3405_v18  ;;  %v1438_v24 = vsel %vm11084_vm14, %v8669_v60, %v1437_v11  ;;  %v1439_v50 = vrot.slane %v1437_v11, 4  ;;  %v3517_v1 = vsel %vm3302_vm15, %v8808_v47, %v11635_v2  ;;  %v10145_v60 = vld [vmem:[#allocation2 + $0x78] sm:$0xf]  ;;  %v10146_v0 = vld [vmem:[#allocation2 + $0x64] sm:$0xf] }
 0x16c   : >> { %v1676_v38 = vor.u32 %v11308_v51, %v11306_v31  ;;  %v11732_v45 = vrot.slane %v1679_v14, 5  ;;  %v1685_v22 = vrot.slane %v1683_v63, 4  ;;  %v3449_v36 = vsel %vm3302_vm15, %v8775_v6, %v11610_v16  ;;  %v2827_v16 = vpop.permute.xlu1 %2826 }
 0x16d   : >> { %v1658_v54 = vsel %vm10997_vm11, %v1653_v57, %v1657_v52  ;;  %v1668_v13 = vsel %vm10997_vm11, %v1663_v5, %v1667_v3  ;;  %v1441_v56 = vsel %vm11084_vm14, %v1439_v50, %v1440_v17  ;;  %v3341_v2 = vsel %vm3302_vm15, %v8716_v29, %v11689_v9  ;;  %v11745_v48 = vpop.permute.xlu0 %3236 }
 0x16e   : >> { %v8749_v31 = vcombine.low %v1438_v24, %v1441_v56  ;;  %v1686_v51 = vor.u32 %v1685_v22, %v11732_v45  ;;  %v1689_v21 = vshll.u32 %v10140_v37, 16  ;;  %v8809_v52 = vcombine.low %v10141_v62, %v11747_v12  ;;  %v10147_v24 = vld [vmem:[#allocation2 + $0x68] sm:$0x1]  ;;  %v10149_v56 = vld [vmem:[#allocation2 + $0x70] sm:$0xf] }
 0x16f   : >> { %v8670_v15 = vrot.slane %v1309_v20, 9  ;;  %v1444_v47 = vrot.slane %v11750_v61, 5  ;;  %v1447_v9 = vrot.slane %v10144_v28, 5  ;;  %v8776_v6 = vcombine.low %v1658_v54, %v1668_v13  ;;  %v11781_v37 = vld [vmem:[#allocation2 + $0x70] sm:$0xf] }
 0x170   : >> { %4132 = vmatmul.mubr.bf16.gmra.mxu1 %v3449_v36  ;;  %v3409_v57 = vsel %vm3302_vm15, %v8749_v31, %v2971_v8  ;;  %v1677_v10 = vrot.slane %v1676_v38, 4  ;;  %v8717_v18 = vcombine.low %v10145_v60, %v11718_v7  ;;  %v1703_v17 = vshll.u32 %v10146_v0, 16  ;;  %v11776_v54 = vpop.permute.xlu1 %3092  ;;  %v2518_v31 = vld [vmem:[#allocation2 + $0x18] sm:$0xe] }
 0x171   : >> { %4139 = vmatprep.mubr.bf16.mxu1 %v3517_v1  ;;  %v1445_v3 = vsel %vm11084_vm14, %v8670_v15, %v1444_v47  ;;  %v1446_v11 = vrot.slane %v1444_v47, 4  ;;  %v1707_v5 = vshrl.u32 %v10146_v0, 16  ;;  %v11757_v42 = vrot.slane %v1742_v30, 4  ;;  %v11765_v1 = vld [vmem:[#allocation2 + $0x84] sm:$0xf]  ;;  %v2973_v20 = vpop.permute.xlu0 %2972 }
 0x172   : >> { %4011 = vmatmul.mubr.bf16.gmra.mxu0 %v3341_v2  ;;  %v1687_v29 = vrot.slane %v1686_v51, 4  ;;  %v1691_v41 = vrot.slane %v1689_v21, 5  ;;  %v1700_v8 = vor.u32 %v11671_v19, %v11639_v55  ;;  %v11763_v14 = vrot.slane %v1703_v17, 5  ;;  %v10150_v51 = vld [vmem:[#allocation2 + $0x6c] sm:$0xf] }
 0x173   : >> { %4018 = vmatprep.mubr.bf16.mxu0 %v3409_v57  ;;  %v1448_v7 = vsel %vm11084_vm14, %v1446_v11, %v1447_v9  ;;  %v1709_v63 = vrot.slane %v1707_v5, 4  ;;  %v1713_v50 = vshll.u32 %v10147_v24, 16  ;;  %v1766_v30 = vshrl.u32 %v11765_v1, 16  ;;  %v10153_v0 = vld [vmem:[#allocation2 + $0x84] sm:$0xf] }
 0x174   : >> { %v3521_v38 = vsel %vm3302_vm15, %v8809_v52, %v11693_v25  ;;  %v3345_v22 = vsel %vm3302_vm15, %v8717_v18, %v2827_v16  ;;  %v8750_v55 = vcombine.low %v1445_v3, %v1448_v7  ;;  %v3453_v19 = vsel %vm3302_vm15, %v8776_v6, %v11661_v40  ;;  %v10152_v6 = vld [vmem:[#allocation2 + $0x20] sm:$0x1]  ;;  %v10154_v5 = vld [vmem:[#allocation2 + $0x74] sm:$0x1]  ;;  %v2519_v24 = vld [vmem:[#allocation2 + $0x24] sm:$0xe] }
 0x175   : >> { %v1682_v36 = vsel %vm10997_vm11, %v1677_v10, %v11732_v45  ;;  %v1710_v13 = vor.u32 %v1709_v63, %v11763_v14  ;;  %v1727_v2 = vshll.u32 %v10149_v56, 16  ;;  %v1692_v25 = vsel %vm10997_vm11, %v1687_v29, %v1691_v41  ;;  %v11798_v41 = vld [vmem:[#allocation2 + $0x90] sm:$0xf] }
 0x176   : >> { %v8810_v21 = vcombine.low %v10150_v51, %v11781_v37  ;;  %v1701_v40 = vrot.slane %v1700_v8, 4  ;;  %v1731_v16 = vshrl.u32 %v10149_v56, 16  ;;  %v3413_v62 = vsel %vm3302_vm15, %v8750_v55, %v2973_v20 }
 0x177   : >> { %v1715_v45 = vrot.slane %v1713_v50, 5  ;;  %v11785_v52 = vrot.slane %v1727_v2, 5  ;;  %v2584_v15 = vrot.slane %v11536_v32, 5  ;;  %v1711_v47 = vrot.slane %v1710_v13, 4 }
 0x178   : >> { %4140 = vmatmul.mubr.bf16.gmra.mxu1 %v3453_v19  ;;  %v1733_v28 = vrot.slane %v1731_v16, 4  ;;  %v8691_v9 = vrot.slane %v2518_v31, 9  ;;  %v2587_v57 = vrot.slane %v10152_v6, 5  ;;  %v11790_v10 = vrot.slane %v1745_v4, 5  ;;  %v2829_v4 = vpop.permute.xlu1 %2828  ;;  %v2520_v19 = vld [vmem:[#allocation2 + $0x30] sm:$0xe]  ;;  %v3239_v16 = vpop.permute.xlu0 %3238 }
 0x179   : >> { %4147 = vmatprep.mubr.bf16.mxu1 %v3521_v38  ;;  %v8777_v60 = vcombine.low %v1682_v36, %v1692_v25  ;;  %v1724_v18 = vor.u32 %v11707_v35, %v11675_v33  ;;  %v2586_v3 = vrot.slane %v2584_v15, 4  ;;  %v11794_v11 = vrot.slane %v1766_v30, 4  ;;  %v10156_v33 = vld [vmem:[#allocation2 + $0x78] sm:$0xf]  ;;  %v11803_v35 = vld [vmem:[#allocation2 + $0x7c] sm:$0xf] }
 0x17a   : >> { %v1769_v32 = vshll.u32 %v11765_v1, 16  ;;  %4019 = vmatmul.mubr.bf16.gmra.mxu0 %v3345_v22  ;;  %v8718_v17 = vcombine.low %v10153_v0, %v11750_v61  ;;  %v1737_v29 = vshll.u32 %v10154_v5, 16  ;;  %v1790_v46 = vshrl.u32 %v11798_v41, 16  ;;  %v10158_v22 = vld [vmem:[#allocation2 + $0x7c] sm:$0xf] }
 0x17b   : >> { %v3525_v8 = vsel %vm3302_vm15, %v8810_v21, %v11745_v48  ;;  %4026 = vmatprep.mubr.bf16.mxu0 %v3413_v62  ;;  %v8811_v7 = vcombine.low %v10156_v33, %v11803_v35  ;;  %v1734_v63 = vor.u32 %v1733_v28, %v11785_v52  ;;  %v1706_v61 = vsel %vm10997_vm11, %v1701_v40, %v11763_v14 }
 0x17c   : >> { %v1716_v50 = vsel %vm10997_vm11, %v1711_v47, %v1715_v45  ;;  %v2585_v1 = vsel %vm11084_vm14, %v8691_v9, %v2584_v15  ;;  %v2588_v48 = vsel %vm11084_vm14, %v2586_v3, %v2587_v57  ;;  %v3457_v30 = vsel %vm3302_vm15, %v8777_v60, %v11716_v23  ;;  %v10159_v45 = vld [vmem:[#allocation2 + $0x38] sm:$0x1] }
 0x17d   : >> { %v1725_v38 = vrot.slane %v1724_v18, 4  ;;  %v1751_v20 = vshll.u32 %v10158_v22, 16  ;;  %v1755_v55 = vshrl.u32 %v10158_v22, 16  ;;  %v3349_v36 = vsel %vm3302_vm15, %v8718_v17, %v2829_v4 }
 0x17e   : >> { %v1739_v14 = vrot.slane %v1737_v29, 5  ;;  %v8692_v13 = vrot.slane %v2519_v24, 9  ;;  %v13960_v56 = vrot.slane %v11111_v59, 5  ;;  %v8778_v31 = vcombine.low %v1706_v61, %v1716_v50  ;;  %v10162_v61 = vld [vmem:[#allocation2 + $0x44] sm:$0x1] }
 0x17f   : >> { %v1735_v25 = vrot.slane %v1734_v63, 4  ;;  %v8835_v51 = vcombine.low %v2585_v1, %v2588_v48  ;;  %v2598_v21 = vrot.slane %v11595_v43, 5  ;;  %v11822_v40 = vrot.slane %v1769_v32, 5  ;;  %v2521_v32 = vld [vmem:[#allocation2 + $0x3c] sm:$0xe] }
 0x180   : >> { %v2593_v2 = vrot.slane %v13960_v56, 4  ;;  %v11824_v23 = vrot.slane %v1790_v46, 4  ;;  %4148 = vmatmul.mubr.bf16.gmra.mxu1 %v3457_v30  ;;  %v8693_v62 = vrot.slane %v2520_v19, 9  ;;  %v2601_v15 = vrot.slane %v10159_v45, 5  ;;  %v2522_v63 = vld [vmem:[#allocation2 + $0x48] sm:$0xe] }
 0x181   : >> { %v1793_v47 = vshll.u32 %v11798_v41, 16  ;;  %4155 = vmatprep.mubr.bf16.mxu1 %v3525_v8  ;;  %v1730_v28 = vsel %vm10997_vm11, %v1725_v38, %v11785_v52  ;;  %v11830_v9 = vrot.slane %v1751_v20, 5  ;;  %v1757_v6 = vrot.slane %v1755_v55, 4  ;;  %v10161_v8 = vld [vmem:[#allocation2 + $0x80] sm:$0x1]  ;;  %v3095_v20 = vpop.permute.xlu1 %3094 }
 0x182   : >> { %4027 = vmatmul.mubr.bf16.gmra.mxu0 %v3349_v36  ;;  %v13961_v43 = vmov %v13960_v56  ;;  %v13962_v60 = vrot.slane %v11116_v53, 5  ;;  %v2600_v3 = vrot.slane %v2598_v21, 4  ;;  %v2605_v0 = vrot.slane %v11622_v49, 5  ;;  %v10160_v49 = vld [vmem:[#allocation2 + $0x88] sm:$0xf] }
 0x183   : >> { %v2592_v57 = vsel %vm11084_vm14, %v8692_v13, %v13961_v43  ;;  %v3461_v52 = vsel %vm3302_vm15, %v8778_v31, %v11776_v54  ;;  %v3529_v17 = vsel %vm3302_vm15, %v8811_v7, %v3239_v16  ;;  %v1740_v59 = vsel %vm10997_vm11, %v1735_v25, %v1739_v14  ;;  %9823 = vmatprep.mubr.msk.bf16.mxu0 %vm3302_vm15, %v8835_v51  ;;  %v10163_v55 = vld [vmem:[#allocation2 + $0x84] sm:$0xf]  ;;  %v11859_v19 = vld [vmem:[#allocation2 + $0x88] sm:$0xf]  ;;  %v10165_v13 = vld [vmem:[#allocation2 + $0x50] sm:$0x1] }
 0x184   : >> { %v2595_v18 = vsel %vm11084_vm14, %v2593_v2, %v13962_v60  ;;  %v1748_v53 = vor.u32 %v11790_v10, %v11757_v42  ;;  %v2599_v5 = vsel %vm11084_vm14, %v8693_v62, %v2598_v21  ;;  %v2602_v29 = vsel %vm11084_vm14, %v2600_v3, %v2601_v15  ;;  %v3241_v2 = vpop.permute.xlu0 %3240  ;;  %v10166_v45 = vld [vmem:[#allocation2 + $0x8c] sm:$0x1] }
 0x185   : >> { %v1775_v41 = vshll.u32 %v10160_v49, 16  ;;  %v1779_v46 = vshrl.u32 %v10160_v49, 16  ;;  %v8836_v54 = vcombine.low %v2592_v57, %v2595_v18  ;;  %v1758_v4 = vor.u32 %v1757_v6, %v11830_v9  ;;  %v10167_v6 = vld [vmem:[#allocation2 + $0x94] sm:$0xf] }
 0x186   : >> { %v1761_v33 = vshll.u32 %v10161_v8, 16  ;;  %v8694_v7 = vrot.slane %v2521_v32, 9  ;;  %v2607_v24 = vrot.slane %v2605_v0, 4  ;;  %v2608_v50 = vrot.slane %v10162_v61, 5 }
 0x187   : >> { %v11854_v42 = vrot.slane %v1775_v41, 5  ;;  %v1781_v10 = vrot.slane %v1779_v46, 4  ;;  %v8779_v1 = vcombine.low %v1730_v28, %v1740_v59  ;;  %v1749_v48 = vrot.slane %v1748_v53, 4  ;;  %v2524_v59 = vld [vmem:[#allocation2 + $0x60] sm:$0xe] }
 0x188   : >> { %v8837_v30 = vcombine.low %v2599_v5, %v2602_v29  ;;  %v2612_v38 = vrot.slane %v11680_v58, 5  ;;  %v11857_v22 = vrot.slane %v1793_v47, 5  ;;  %4156 = vmatmul.mubr.bf16.gmra.mxu1 %v3461_v52  ;;  %v8812_v36 = vcombine.low %v10163_v55, %v11859_v19  ;;  %v11883_v52 = vld [vmem:[#allocation2 + $0x94] sm:$0xf]  ;;  %v3097_v55 = vpop.permute.xlu1 %3096 }
 0x189   : >> { %v8695_v14 = vrot.slane %v2522_v63, 9  ;;  %v2615_v56 = vrot.slane %v10165_v13, 5  ;;  %4163 = vmatprep.mubr.bf16.mxu1 %v3529_v17  ;;  %v1759_v31 = vrot.slane %v1758_v4, 4  ;;  %v1763_v25 = vrot.slane %v1761_v33, 5 }
 0x18a   : >> { %v1772_v51 = vor.u32 %v11822_v40, %v11794_v11  ;;  %v2614_v58 = vrot.slane %v2612_v38, 4  ;;  %9824 = vmatmul.mubr.msk.bf16.vlgmr.msra.gmra.mxu0 %vm3302_vm15, %v8836_v54  ;;  %v2606_v21 = vsel %vm11084_vm14, %v8694_v7, %v2605_v0  ;;  %v2609_v16 = vsel %vm11084_vm14, %v2607_v24, %v2608_v50  ;;  %v2523_v11 = vld [vmem:[#allocation2 + $0x54] sm:$0xe]  ;;  %v10168_v0 = vld [vmem:[#allocation2 + $0x90] sm:$0xf] }
 0x18b   : >> { %v1782_v62 = vor.u32 %v1781_v10, %v11854_v42  ;;  %v1785_v15 = vshll.u32 %v10166_v45, 16  ;;  %v3465_v47 = vsel %vm3302_vm15, %v8779_v1, %v3095_v20  ;;  %v1754_v28 = vsel %vm10997_vm11, %v1749_v48, %v11830_v9  ;;  %9827 = vmatprep.mubr.msk.bf16.mxu0 %vm3302_vm15, %v8837_v30  ;;  %v10170_v54 = vld [vmem:[#allocation2 + $0x5c] sm:$0x1]  ;;  %v10171_v24 = vld [vmem:[#allocation2 + $0x68] sm:$0x1]  ;;  %v3243_v30 = vpop.permute.xlu0 %3242 }
 0x18c   : >> { %v2619_v40 = vrot.slane %v11711_v27, 5  ;;  %v1799_v43 = vshll.u32 %v10167_v6, 16  ;;  %v3533_v57 = vsel %vm3302_vm15, %v8812_v36, %v3241_v2  ;;  %v2613_v60 = vsel %vm11084_vm14, %v8695_v14, %v2612_v38  ;;  %v10172_v1 = vld [vmem:[#allocation2 + $0xa8] sm:$0xf]  ;;  %v10173_v14 = vld [vmem:[#allocation2 + $0x98] sm:$0x1] }
 0x18d   : >> { %v2616_v18 = vsel %vm11084_vm14, %v2614_v58, %v2615_v56  ;;  %v1803_v3 = vshrl.u32 %v10167_v6, 16  ;;  %v1764_v32 = vsel %vm10997_vm11, %v1759_v31, %v1763_v25  ;;  %v8838_v9 = vcombine.low %v2606_v21, %v2609_v16  ;;  %v10174_v31 = vld [vmem:[#allocation2 + $0xa0] sm:$0xf] }
 0x18e   : >> { %v8813_v27 = vcombine.low %v10168_v0, %v11883_v52  ;;  %v1773_v17 = vrot.slane %v1772_v51, 4  ;;  %v1783_v53 = vrot.slane %v1782_v62, 4  ;;  %v1787_v5 = vrot.slane %v1785_v15, 5  ;;  %v2526_v15 = vld [vmem:[#allocation2 + $0x78] sm:$0xe] }
 0x18f   : >> { %v8696_v29 = vrot.slane %v2523_v11, 9  ;;  %v2626_v49 = vrot.slane %v11747_v12, 5  ;;  %v8839_v41 = vcombine.low %v2613_v60, %v2616_v18  ;;  %v2621_v46 = vrot.slane %v2619_v40, 4 }
 0x190   : >> { %v2622_v4 = vrot.slane %v10170_v54, 5  ;;  %v11887_v8 = vrot.slane %v1799_v43, 5  ;;  %4164 = vmatmul.mubr.bf16.gmra.mxu1 %v3465_v47  ;;  %v1805_v33 = vrot.slane %v1803_v3, 4  ;;  %v8697_v7 = vrot.slane %v2524_v59, 9  ;;  %v3099_v43 = vpop.permute.xlu1 %3098 }
 0x191   : >> { %v2628_v63 = vrot.slane %v2626_v49, 4  ;;  %v2629_v61 = vrot.slane %v10171_v24, 5  ;;  %v13963_v50 = vshll.u32 %v10974_v34, 16  ;;  %v1838_v48 = vshrl.u32 %v10172_v1, 16  ;;  %4171 = vmatprep.mubr.bf16.mxu1 %v3533_v57  ;;  %v3245_v54 = vpop.permute.xlu0 %3244 }
 0x192   : >> { %v8780_v12 = vcombine.low %v1754_v28, %v1764_v32  ;;  %v1796_v38 = vor.u32 %v11857_v22, %v11824_v23  ;;  %v1841_v20 = vshll.u32 %v10172_v1, 16  ;;  %9828 = vmatmul.mubr.msk.bf16.gmra.mxu0 %vm3302_vm15, %v8838_v9  ;;  %v1778_v36 = vsel %vm10997_vm11, %v1773_v17, %v11854_v42  ;;  %v2525_v22 = vld [vmem:[#allocation2 + $0x6c] sm:$0xe]  ;;  %v10176_v17 = vld [vmem:[#allocation2 + $0x80] sm:$0x1] }
 0x193   : >> { %v11891_v10 = vrot.slane %v13963_v50, 5  ;;  %v1788_v34 = vsel %vm10997_vm11, %v1783_v53, %v1787_v5  ;;  %v1809_v13 = vshll.u32 %v10173_v14, 16  ;;  %9831 = vmatprep.mubr.msk.bf16.mxu0 %vm3302_vm15, %v8839_v41  ;;  %v2620_v56 = vsel %vm11084_vm14, %v8696_v29, %v2619_v40  ;;  %v10175_v40 = vld [vmem:[#allocation2 + $0x74] sm:$0x1]  ;;  %v10177_v29 = vld [vmem:[#allocation2 + $0x9c] sm:$0xf] }
 0x194   : >> { %v2623_v23 = vsel %vm11084_vm14, %v2621_v46, %v2622_v4  ;;  %v2633_v2 = vrot.slane %v11781_v37, 5  ;;  %v1823_v25 = vshll.u32 %v10174_v31, 16  ;;  %v3537_v42 = vsel %vm3302_vm15, %v8813_v27, %v3243_v30 }
 0x195   : >> { %v1806_v51 = vor.u32 %v1805_v33, %v11887_v8  ;;  %v2627_v58 = vsel %vm11084_vm14, %v8697_v7, %v2626_v49  ;;  %v2630_v21 = vsel %vm11084_vm14, %v2628_v63, %v2629_v61  ;;  %v3469_v16 = vsel %vm3302_vm15, %v8780_v12, %v3097_v55  ;;  %v11923_v49 = vld [vmem:[#allocation2 + $0xa0] sm:$0xf]  ;;  %v10179_v61 = vld [vmem:[#allocation2 + $0xa4] sm:$0x1] }
 0x196   : >> { %v8781_v62 = vcombine.low %v1778_v36, %v1788_v34  ;;  %v1797_v45 = vrot.slane %v1796_v38, 4  ;;  %v2640_v47 = vrot.slane %v11803_v35, 5  ;;  %v8840_v37 = vcombine.low %v2620_v56, %v2623_v23  ;;  %v13965_v35 = vld [vmem:[#allocation42_spill] sm:$0xff]  ;;  %v2528_v36 = vld [vmem:[#allocation2 + $0x90] sm:$0xe] }
 0x197   : >> { %v1811_v28 = vrot.slane %v1809_v13, 5  ;;  %v8698_v11 = vrot.slane %v2525_v22, 9  ;;  %v2636_v6 = vrot.slane %v10175_v40, 5  ;;  %v8841_v57 = vcombine.low %v2627_v58, %v2630_v21  ;;  %v10180_v38 = vld [vmem:[#allocation2 + $0xac] sm:$0xf] }
 0x198   : >> { %v2635_v60 = vrot.slane %v2633_v2, 4  ;;  %v11915_v18 = vrot.slane %v1823_v25, 5  ;;  %v13964_v3 = vshrl.u32 %v10976_v39, 16  ;;  %4172 = vmatmul.mubr.bf16.gmra.mxu1 %v3469_v16  ;;  %v1807_v9 = vrot.slane %v1806_v51, 4  ;;  %v10181_v56 = vld [vmem:[#allocation2 + $0x8c] sm:$0x1] }
 0x199   : >> { %v8699_v0 = vrot.slane %v2526_v15, 9  ;;  %v2642_v27 = vrot.slane %v2640_v47, 4  ;;  %v2643_v59 = vrot.slane %v10176_v17, 5  ;;  %v1820_v53 = vor.u32 %v11891_v10, %v13965_v35  ;;  %4179 = vmatprep.mubr.bf16.mxu1 %v3537_v42  ;;  %v2527_v10 = vld [vmem:[#allocation2 + $0x84] sm:$0xe]  ;;  %v3101_v42 = vpop.permute.xlu1 %3100 }
 0x19a   : >> { %v1829_v32 = vrot.slane %v13964_v3, 4  ;;  %v11921_v5 = vrot.slane %v1838_v48, 4  ;;  %v8814_v41 = vcombine.low %v10177_v29, %v11923_v49  ;;  %v11926_v46 = vrot.slane %v1841_v20, 5  ;;  %9832 = vmatmul.mubr.msk.bf16.gmra.mxu0 %vm3302_vm15, %v8840_v37  ;;  %v10182_v58 = vld [vmem:[#allocation2 + $0x98] sm:$0x1] }
 0x19b   : >> { %v3473_v39 = vsel %vm3302_vm15, %v8781_v62, %v3099_v43  ;;  %v1802_v4 = vsel %vm10997_vm11, %v1797_v45, %v11887_v8  ;;  %v2647_v33 = vrot.slane %v11859_v19, 5  ;;  %9835 = vmatprep.mubr.msk.bf16.mxu0 %vm3302_vm15, %v8841_v57  ;;  %v2634_v7 = vsel %vm11084_vm14, %v8698_v11, %v2633_v2  ;;  %v10183_v16 = vld [vmem:[#allocation2 + $0xb4] sm:$0xf]  ;;  %v10184_v45 = vld [vmem:[#allocation2 + $0xa8] sm:$0xf] }
 0x19c   : >> { %v2637_v63 = vsel %vm11084_vm14, %v2635_v60, %v2636_v6  ;;  %v1830_v24 = vor.u32 %v1829_v32, %v11915_v18  ;;  %v1833_v50 = vshll.u32 %v10179_v61, 16  ;;  %v1812_v1 = vsel %vm10997_vm11, %v1807_v9, %v1811_v28  ;;  %v11948_v15 = vld [vmem:[#allocation2 + $0xac] sm:$0xf]  ;;  %v3247_v40 = vpop.permute.xlu0 %3246  ;;  %v2529_v57 = vld [vmem:[#allocation2 + $0x9c] sm:$0xe] }
 0x19d   : >> { %v2641_v8 = vsel %vm11084_vm14, %v8699_v0, %v2640_v47  ;;  %v2644_v19 = vsel %vm11084_vm14, %v2642_v27, %v2643_v59  ;;  %v2654_v48 = vrot.slane %v11883_v52, 5  ;;  %v3541_v12 = vsel %vm3302_vm15, %v8814_v41, %v3245_v54  ;;  %v10186_v27 = vld [vmem:[#allocation2 + $0xb0] sm:$0x1] }
 0x19e   : >> { %v1821_v30 = vrot.slane %v1820_v53, 4  ;;  %v1847_v20 = vshll.u32 %v10180_v38, 16  ;;  %v1851_v55 = vshrl.u32 %v10180_v38, 16  ;;  %v8842_v34 = vcombine.low %v2634_v7, %v2637_v63  ;;  %v10191_v38 = vld [vmem:[#allocation2 + $0xb8] sm:$0xf] }
 0x19f   : >> { %v8700_v14 = vrot.slane %v2527_v10, 9  ;;  %v2649_v13 = vrot.slane %v2647_v33, 4  ;;  %v2650_v23 = vrot.slane %v10181_v56, 5  ;;  %v8782_v22 = vcombine.low %v1802_v4, %v1812_v1  ;;  %v10187_v4 = vld [vmem:[#allocation2 + $0xa4] sm:$0x1] }
 0x1a0   : >> { %v1831_v2 = vrot.slane %v1830_v24, 4  ;;  %v1835_v31 = vrot.slane %v1833_v50, 5  ;;  %v8843_v25 = vcombine.low %v2641_v8, %v2644_v19  ;;  %4180 = vmatmul.mubr.bf16.gmra.mxu1 %v3473_v39  ;;  %v8701_v51 = vrot.slane %v2528_v36, 9  ;;  %v2530_v39 = vld [vmem:[#allocation2 + $0xa8] sm:$0xe]  ;;  %v3103_v50 = vpop.permute.xlu1 %3102 }
 0x1a1   : >> { %v2656_v52 = vrot.slane %v2654_v48, 4  ;;  %v2657_v21 = vrot.slane %v10182_v58, 5  ;;  %v1862_v62 = vshrl.u32 %v10183_v16, 16  ;;  %4187 = vmatprep.mubr.bf16.mxu1 %v3541_v12  ;;  %v8815_v47 = vcombine.low %v10184_v45, %v11948_v15  ;;  %v10189_v19 = vld [vmem:[#allocation2 + $0xb0] sm:$0x1] }
 0x1a2   : >> { %v11951_v37 = vrot.slane %v1847_v20, 5  ;;  %v1853_v28 = vrot.slane %v1851_v55, 4  ;;  %v1865_v11 = vshll.u32 %v10183_v16, 16  ;;  %9836 = vmatmul.mubr.msk.bf16.gmra.mxu0 %vm3302_vm15, %v8842_v34  ;;  %v2648_v6 = vsel %vm11084_vm14, %v8700_v14, %v2647_v33  ;;  %v10193_v16 = vld [vmem:[#allocation2 + $0xc4] sm:$0xf] }
 0x1a3   : >> { %v2651_v43 = vsel %vm11084_vm14, %v2649_v13, %v2650_v23  ;;  %v2661_v60 = vrot.slane %v11923_v49, 5  ;;  %v3477_v3 = vsel %vm3302_vm15, %v8782_v22, %v3101_v42  ;;  %v1826_v32 = vsel %vm10997_vm11, %v1821_v30, %v11915_v18  ;;  %9839 = vmatprep.mubr.msk.bf16.mxu0 %vm3302_vm15, %v8843_v25  ;;  %v10190_v30 = vld [vmem:[#allocation2 + $0xb4] sm:$0xf]  ;;  %v10192_v23 = vld [vmem:[#allocation2 + $0xc0] sm:$0xf] }
 0x1a4   : >> { %v1836_v9 = vsel %vm10997_vm11, %v1831_v2, %v1835_v31  ;;  %v1844_v0 = vor.u32 %v11926_v46, %v11921_v5  ;;  %v1857_v17 = vshll.u32 %v10186_v27, 16  ;;  %v2655_v59 = vsel %vm11084_vm14, %v8701_v51, %v2654_v48  ;;  %v10188_v46 = vld [vmem:[#allocation2 + $0xb8] sm:$0xf] }
 0x1a5   : >> { %v2658_v35 = vsel %vm11084_vm14, %v2656_v52, %v2657_v21  ;;  %v2668_v53 = vrot.slane %v11948_v15, 5  ;;  %v3545_v18 = vsel %vm3302_vm15, %v8815_v47, %v3247_v40  ;;  %v8844_v29 = vcombine.low %v2648_v6, %v2651_v43  ;;  %v2531_v21 = vld [vmem:[#allocation2 + $0xb4] sm:$0xe]  ;;  %v2532_v40 = vld [vmem:[#allocation2 + $0xc0] sm:$0xe] }
 0x1a6   : >> { %v1854_v49 = vor.u32 %v1853_v28, %v11951_v37  ;;  %v8702_v41 = vrot.slane %v2529_v57, 9  ;;  %v2663_v54 = vrot.slane %v2661_v60, 4  ;;  %v2664_v5 = vrot.slane %v10187_v4, 5  ;;  %v10194_v28 = vld [vmem:[#allocation2 + $0xbc] sm:$0x1]  ;;  %v3105_v4 = vpop.permute.xlu1 %3104 }
 0x1a7   : >> { %v1871_v33 = vshll.u32 %v10188_v46, 16  ;;  %v1875_v7 = vshrl.u32 %v10188_v46, 16  ;;  %v1864_v63 = vrot.slane %v1862_v62, 4  ;;  %v8783_v24 = vcombine.low %v1826_v32, %v1836_v9  ;;  %v10195_v43 = vld [vmem:[#allocation2 + $0xc4] sm:$0xf] }
 0x1a8   : >> { %v8845_v61 = vcombine.low %v2655_v59, %v2658_v35  ;;  %4188 = vmatmul.mubr.bf16.gmra.mxu1 %v3477_v3  ;;  %v1845_v10 = vrot.slane %v1844_v0, 4  ;;  %v8703_v1 = vrot.slane %v2530_v39, 9  ;;  %v2670_v8 = vrot.slane %v2668_v53, 4  ;;  %v3249_v25 = vpop.permute.xlu0 %3248  ;;  %v10196_v0 = vld [vmem:[#allocation2 + $0xbc] sm:$0x1] }
 0x1a9   : >> { %v2671_v48 = vrot.slane %v10189_v19, 5  ;;  %v1867_v12 = vrot.slane %v1865_v11, 5  ;;  %4195 = vmatprep.mubr.bf16.mxu1 %v3545_v18  ;;  %v8816_v20 = vcombine.low %v10190_v30, %v10191_v38  ;;  %v1855_v55 = vrot.slane %v1854_v49, 4  ;;  %v2533_v19 = vld [vmem:[#allocation2 + $0xcc] sm:$0xe] }
 0x1aa   : >> { %v1859_v36 = vrot.slane %v1857_v17, 5  ;;  %9840 = vmatmul.mubr.msk.bf16.gmra.mxu0 %vm3302_vm15, %v8844_v29  ;;  %v2662_v34 = vsel %vm11084_vm14, %v8702_v41, %v2661_v60  ;;  %v2665_v14 = vsel %vm11084_vm14, %v2663_v54, %v2664_v5  ;;  %v11980_v13 = vrot.slane %v1871_v33, 5  ;;  %v10198_v41 = vld [vmem:[#allocation2 + $0xc0] sm:$0xf] }
 0x1ab   : >> { %v1877_v56 = vrot.slane %v1875_v7, 4  ;;  %v1886_v22 = vshrl.u32 %v10192_v23, 16  ;;  %v1889_v2 = vshll.u32 %v10192_v23, 16  ;;  %v3481_v31 = vsel %vm3302_vm15, %v8783_v24, %v3103_v50  ;;  %9843 = vmatprep.mubr.msk.bf16.mxu0 %vm3302_vm15, %v8845_v61  ;;  %v10199_v61 = vld [vmem:[#allocation2 + $0xd0] sm:$0xf] }
 0x1ac   : >> { %v2675_v42 = vrot.slane %v10191_v38, 5  ;;  %v1850_v51 = vsel %vm10997_vm11, %v1845_v10, %v11951_v37  ;;  %v2669_v52 = vsel %vm11084_vm14, %v8703_v1, %v2668_v53  ;;  %v2672_v58 = vsel %vm11084_vm14, %v2670_v8, %v2671_v48  ;;  %v10197_v53 = vld [vmem:[#allocation2 + $0xc8] sm:$0x1] }
 0x1ad   : >> { %v2682_v62 = vrot.slane %v10193_v16, 5  ;;  %v1860_v45 = vsel %vm10997_vm11, %v1855_v55, %v1859_v36  ;;  %v8846_v15 = vcombine.low %v2662_v34, %v2665_v14  ;;  %v1868_v47 = vor.u32 %v1867_v12, %v1864_v63  ;;  %v10200_v38 = vld [vmem:[#allocation2 + $0xc8] sm:$0x1] }
 0x1ae   : >> { %v1881_v11 = vshll.u32 %v10194_v28, 16  ;;  %v3549_v6 = vsel %vm3302_vm15, %v8816_v20, %v3249_v25  ;;  %v1878_v37 = vor.u32 %v1877_v56, %v11980_v13  ;;  %v1895_v57 = vshll.u32 %v10195_v43, 16  ;;  %v10201_v56 = vld [vmem:[#allocation2 + $0xd4] sm:$0x1] }
 0x1af   : >> { %v1899_v60 = vshrl.u32 %v10195_v43, 16  ;;  %v8847_v3 = vcombine.low %v2669_v52, %v2672_v58  ;;  %v8704_v32 = vrot.slane %v2531_v21, 9  ;;  %v2677_v9 = vrot.slane %v2675_v42, 4 }
 0x1b0   : >> { %v2678_v27 = vrot.slane %v10196_v0, 5  ;;  %v1888_v17 = vrot.slane %v1886_v22, 4  ;;  %4196 = vmatmul.mubr.bf16.gmra.mxu1 %v3481_v31  ;;  %v8705_v59 = vrot.slane %v2532_v40, 9  ;;  %v2684_v35 = vrot.slane %v2682_v62, 4 }
 0x1b1   : >> { %v2685_v18 = vrot.slane %v10197_v53, 5  ;;  %v1891_v29 = vrot.slane %v1889_v2, 5  ;;  %4203 = vmatprep.mubr.bf16.mxu1 %v3549_v6  ;;  %v8784_v49 = vcombine.low %v1850_v51, %v1860_v45  ;;  %v8817_v39 = vcombine.low %v10198_v41, %v10193_v16  ;;  %v10202_v16 = vld [vmem:[#allocation2 + $0xcc] sm:$0xf] }
 0x1b2   : >> { %v1869_v54 = vrot.slane %v1868_v47, 4  ;;  %9844 = vmatmul.mubr.msk.bf16.gmra.mxu0 %vm3302_vm15, %v8846_v15  ;;  %v1879_v5 = vrot.slane %v1878_v37, 4  ;;  %v1883_v46 = vrot.slane %v1881_v11, 5  ;;  %v1897_v33 = vrot.slane %v1895_v57, 5 }
 0x1b3   : >> { %v1901_v7 = vrot.slane %v1899_v60, 4  ;;  %9847 = vmatprep.mubr.msk.bf16.mxu0 %vm3302_vm15, %v8847_v3  ;;  %v2676_v63 = vsel %vm11084_vm14, %v8704_v32, %v2675_v42  ;;  %v2679_v24 = vsel %vm11084_vm14, %v2677_v9, %v2678_v27  ;;  %v2689_v50 = vrot.slane %v10199_v61, 5  ;;  %v3251_v10 = vpop.permute.xlu0 %3250 }
 0x1b4   : >> { %v2683_v1 = vsel %vm11084_vm14, %v8705_v59, %v2682_v62  ;;  %v2686_v8 = vsel %vm11084_vm14, %v2684_v35, %v2685_v18  ;;  %v3485_v48 = vsel %vm3302_vm15, %v8784_v49, %v3105_v4  ;;  %v1874_v12 = vsel %vm10997_vm11, %v1869_v54, %v11980_v13  ;;  %v3107_v42 = vpop.permute.xlu1 %3106 }
 0x1b5   : >> { %v1892_v30 = vor.u32 %v1891_v29, %v1888_v17  ;;  %v1905_v20 = vshll.u32 %v10200_v38, 16  ;;  %v3553_v55 = vsel %vm3302_vm15, %v8817_v39, %v3251_v10  ;;  %v1884_v36 = vsel %vm10997_vm11, %v1879_v5, %v1883_v46 }
 0x1b6   : >> { %v8848_v34 = vcombine.low %v2676_v63, %v2679_v24  ;;  %v1902_v14 = vor.u32 %v1901_v7, %v1897_v33  ;;  %v2692_v23 = vrot.slane %v10201_v56, 5  ;;  %v8849_v22 = vcombine.low %v2683_v1, %v2686_v8 }
 0x1b7   : >> { %v8706_v2 = vrot.slane %v2533_v19, 9  ;;  %v2691_v31 = vrot.slane %v2689_v50, 4  ;;  %v8785_v25 = vcombine.low %v1874_v12, %v1884_v36  ;;  %v1893_v13 = vrot.slane %v1892_v30, 4 }
 0x1b8   : >> { %4204 = vmatmul.mubr.bf16.gmra.mxu1 %v3485_v48  ;;  %v1903_v51 = vrot.slane %v1902_v14, 4  ;;  %v1907_v52 = vrot.slane %v1905_v20, 5  ;;  %v8818_v62 = vcombine.low %v10202_v16, %v10199_v61 }
 0x1b9   : >> { %4211 = vmatprep.mubr.bf16.mxu1 %v3553_v55  ;;  %v2690_v58 = vsel %vm11084_vm14, %v8706_v2, %v2689_v50  ;;  %v2693_v21 = vsel %vm11084_vm14, %v2691_v31, %v2692_v23  ;;  %v3489_v45 = vsel %vm3302_vm15, %v8785_v25, %v3107_v42  ;;  %v1898_v15 = vsel %vm10997_vm11, %v1893_v13, %v1897_v33 }
 0x1ba   : >> { %9848 = vmatmul.mubr.msk.bf16.gmra.mxu0 %vm3302_vm15, %v8848_v34  ;;  %v1908_v47 = vsel %vm10997_vm11, %v1903_v51, %v1907_v52  ;;  %v8850_v28 = vcombine.low %v2690_v58, %v2693_v21 }
 0x1bb   : >> { %9851 = vmatprep.mubr.msk.bf16.mxu0 %vm3302_vm15, %v8849_v22  ;;  %v8786_v6 = vcombine.low %v1898_v15, %v1908_v47 }
 0x1be   : >> { %v3109_v37 = vpop.permute.xlu1 %3108 }
 0x1bf   : >> { %v3253_v11 = vpop.permute.xlu0 %3252  ;;  %v3493_v43 = vsel %vm3302_vm15, %v8786_v6, %v3109_v37 }
 0x1c0   : >> { %4212 = vmatmul.mubr.bf16.gmra.mxu1 %v3489_v45  ;;  %v3557_v40 = vsel %vm3302_vm15, %v8818_v62, %v3253_v11 }
 0x1c1   : >> { %4219 = vmatprep.mubr.bf16.mxu1 %v3557_v40 }
 0x1c2   : >> { %9852 = vmatmul.mubr.msk.bf16.gmra.mxu0 %vm3302_vm15, %v8850_v28 }
 0x1c8   : >> { %4220 = vmatmul.mubr.bf16.gmra.mxu1 %v3493_v43 }
 0x1d4   : >> { %v9415_v57 = vpop.f32.mrf.mxu1 }
 0x1d6   : >> { %v9416_v60 = vpop.f32.mrf.mxu1 }
 0x1d7   : >> { %v9343_v3 = vpop.f32.mrf.mxu0  ;;  %v12026_v32 = vadd.f32 %v9416_v60, %v9415_v57 }
 0x1d8   : >> { %v9418_v9 = vpop.f32.mrf.mxu1 }
 0x1d9   : >> { %v9344_v0 = vpop.f32.mrf.mxu0 }
 0x1da   : >> { %v12028_v27 = vadd.f32 %v9344_v0, %v9343_v3  ;;  %v9419_v17 = vpop.f32.mrf.mxu1 }
 0x1db   : >> { %v9346_v59 = vpop.f32.mrf.mxu0  ;;  %v12030_v35 = vadd.f32 %v9419_v17, %v9418_v9 }
 0x1dd   : >> { %v9347_v53 = vpop.f32.mrf.mxu0 }
 0x1de   : >> { %v12032_v18 = vadd.f32 %v9347_v53, %v9346_v59 }
 0x1e1   : >> { %v9421_v29 = vpop.f32.mrf.mxu1 }
 0x1e2   : >> { %v9349_v49 = vpop.f32.mrf.mxu0 }
 0x1e3   : >> { %v9422_v41 = vpop.f32.mrf.mxu1 }
 0x1e4   : >> { %v12034_v39 = vadd.f32 %v9422_v41, %v9421_v29  ;;  %v9350_v54 = vpop.f32.mrf.mxu0 }
 0x1e5   : >> { %v9424_v4 = vpop.f32.mrf.mxu1  ;;  %v12036_v5 = vadd.f32 %v9350_v54, %v9349_v49 }
 0x1e6   : >> { %v9352_v46 = vpop.f32.mrf.mxu0 }
 0x1e7   : >> { %v9425_v33 = vpop.f32.mrf.mxu1 }
 0x1e8   : >> { %v12038_v7 = vadd.f32 %v9425_v33, %v9424_v4  ;;  %v9353_v63 = vpop.f32.mrf.mxu0 }
 0x1e9   : >> { %v12040_v24 = vadd.f32 %v9353_v63, %v9352_v46 }
 0x1ec   : >> { %v9427_v61 = vpop.f32.mrf.mxu1 }
 0x1ee   : >> { %v9355_v50 = vpop.f32.mrf.mxu0  ;;  %v9428_v10 = vpop.f32.mrf.mxu1 }
 0x1ef   : >> { %v12042_v1 = vadd.f32 %v9428_v10, %v9427_v61 }
 0x1f0   : >> { %v9356_v8 = vpop.f32.mrf.mxu0  ;;  %v9430_v19 = vpop.f32.mrf.mxu1 }
 0x1f1   : >> { %v12044_v48 = vadd.f32 %v9356_v8, %v9355_v50 }
 0x1f2   : >> { %v9358_v12 = vpop.f32.mrf.mxu0  ;;  %v9431_v30 = vpop.f32.mrf.mxu1 }
 0x1f3   : >> { %v12046_v38 = vadd.f32 %v9431_v30, %v9430_v19 }
 0x1f4   : >> { %v9359_v20 = vpop.f32.mrf.mxu0 }
 0x1f5   : >> { %v12048_v55 = vadd.f32 %v9359_v20, %v9358_v12 }
 0x1f7   : >> { %v9433_v36 = vpop.f32.mrf.mxu1 }
 0x1f9   : >> { %v9361_v34 = vpop.f32.mrf.mxu0  ;;  %v9434_v14 = vpop.f32.mrf.mxu1 }
 0x1fa   : >> { %v12050_v56 = vadd.f32 %v9434_v14, %v9433_v36 }
 0x1fb   : >> { %v9362_v23 = vpop.f32.mrf.mxu0  ;;  %v9436_v22 = vpop.f32.mrf.mxu1 }
 0x1fc   : >> { %v12052_v2 = vadd.f32 %v9362_v23, %v9361_v34 }
 0x1fd   : >> { %v9364_v31 = vpop.f32.mrf.mxu0  ;;  %v9437_v25 = vpop.f32.mrf.mxu1 }
 0x1fe   : >> { %v12054_v42 = vadd.f32 %v9437_v25, %v9436_v22 }
 0x1ff   : >> { %v9365_v13 = vpop.f32.mrf.mxu0 }
 0x200   : >> { %v12056_v51 = vadd.f32 %v9365_v13, %v9364_v31 }
 0x205   : >> { %v12058_v52 = vpop.f32.mrf.mxu1 }
 0x207   : >> { %v9456_v62 = vpop.f32.mrf.mxu1 }
 0x208   : >> { %v9367_v58 = vpop.f32.mrf.mxu0 }
 0x209   : >> { %v9458_v28 = vpop.f32.mrf.mxu1 }
 0x20a   : >> { %v9368_v21 = vpop.f32.mrf.mxu0 }
 0x20b   : >> { %v12060_v16 = vadd.f32 %v9368_v21, %v9367_v58  ;;  %v9459_v40 = vpop.f32.mrf.mxu1 }
 0x20c   : >> { %v9370_v45 = vpop.f32.mrf.mxu0 }
 0x20e   : >> { %v9371_v15 = vpop.f32.mrf.mxu0 }
 0x20f   : >> { %v12062_v47 = vadd.f32 %v9371_v15, %v9370_v45 }
 0x212   : >> { %v9373_v11 = vpop.f32.mrf.mxu0 }
 0x214   : >> { %v9374_v6 = vpop.f32.mrf.mxu0 }
 0x215   : >> { %v12064_v37 = vadd.f32 %v9374_v6, %v9373_v11 }
 0x216   : >> { %v9376_v43 = vpop.f32.mrf.mxu0 }
 0x218   : >> { %v12066_v57 = vpop.f32.mrf.mxu1  ;;  %v9377_v60 = vpop.f32.mrf.mxu0 }
 0x219   : >> { %v12068_v3 = vadd.f32 %v9377_v60, %v9376_v43 }
 0x21a   : >> { %v12070_v9 = vpop.f32.mrf.mxu1  ;;  %v9379_v0 = vpop.f32.mrf.mxu0 }
 0x21c   : >> { %v12072_v17 = vpop.f32.mrf.mxu1  ;;  %v9380_v59 = vpop.f32.mrf.mxu0 }
 0x21d   : >> { %v12074_v53 = vadd.f32 %v9380_v59, %v9379_v0  ;;  %v12110_v59 = vld [vmem:[%s3634_s19] ss:$0 sm:$0xff] }
 0x21e   : >> { %v12076_v29 = vpop.f32.mrf.mxu1  ;;  %v9382_v49 = vpop.f32.mrf.mxu0  ;;  %v3944_v26 = vadd.f32 %v12032_v18, %v12110_v59  ;;  %v12128_v44 = vadd.f32 %v12030_v35, %v12110_v59  ;;  %v3952_v35 = vadd.f32 %v12040_v24, %v12110_v59  ;;  %v3965_v24 = vadd.f32 %v12052_v2, %v12110_v59 }
 0x220   : >> { %v12078_v41 = vpop.f32.mrf.mxu1  ;;  %v9383_v54 = vpop.f32.mrf.mxu0 }
 0x221   : >> { %v12080_v4 = vadd.f32 %v9383_v54, %v9382_v49 }
 0x222   : >> { %v9468_v46 = vpop.f32.mrf.mxu1  ;;  %v12082_v33 = vpop.f32.mrf.mxu0 }
 0x223   : >> { %v9469_v2 = vadd.f32 %v9468_v46, %v12078_v41 }
 0x224   : >> { %v12084_v63 = vpop.f32.mrf.mxu1  ;;  %v12086_v61 = vpop.f32.mrf.mxu0 }
 0x226   : >> { %v9471_v50 = vpop.f32.mrf.mxu1  ;;  %v12088_v10 = vpop.f32.mrf.mxu0 }
 0x228   : >> { %v12090_v8 = vpop.f32.mrf.mxu1  ;;  %v9389_v19 = vpop.f32.mrf.mxu0 }
 0x22a   : >> { %v12092_v12 = vpop.f32.mrf.mxu1  ;;  %v9391_v30 = vpop.f32.mrf.mxu0 }
 0x22c   : >> { %v9476_v20 = vpop.f32.mrf.mxu1  ;;  %v9392_v36 = vpop.f32.mrf.mxu0 }
 0x22d   : >> { %v12094_v34 = vadd.f32 %v9392_v36, %v9391_v30  ;;  %v12118_v30 = vadd.f32 %v12026_v32, %v12110_v59  ;;  %v3949_v32 = vadd.f32 %v12036_v5, %v12110_v59  ;;  %v12153_v5 = vadd.f32 %v12046_v38, %v12110_v59 }
 0x22e   : >> { %v9477_v14 = vpop.f32.mrf.mxu1  ;;  %v9394_v23 = vpop.f32.mrf.mxu0  ;;  %v3968_v38 = vadd.f32 %v12056_v51, %v12110_v59  ;;  %v9472_v51 = vadd.f32 %v9471_v50, %v12084_v63 }
 0x22f   : >> { %13968 = vst [vmem:[#allocation45_spill] sm:$0xff] %v12118_v30  ;;  %v12139_v30 = vadd.f32 %v12038_v7, %v12110_v59  ;;  %13971 = vst [vmem:[#allocation48_spill] sm:$0xff] %v12153_v5  ;;  %v3960_v7 = vadd.f32 %v12048_v55, %v12110_v59 }
 0x230   : >> { %v9479_v22 = vpop.f32.mrf.mxu1  ;;  %v9395_v31 = vpop.f32.mrf.mxu0 }
 0x231   : >> { %v12096_v25 = vadd.f32 %v9395_v31, %v9394_v23  ;;  %v3941_v31 = vadd.f32 %v12028_v27, %v12110_v59  ;;  %v9460_v27 = vadd.f32 %v9459_v40, %v9458_v28  ;;  %v12159_v28 = vadd.f32 %v12050_v56, %v12110_v59 }
 0x232   : >> { %v9480_v13 = vpop.f32.mrf.mxu1  ;;  %v9397_v58 = vpop.f32.mrf.mxu0  ;;  %v3973_v56 = vadd.f32 %v12060_v16, %v12110_v59  ;;  %v3981_v16 = vadd.f32 %v12064_v37, %v12110_v59 }
 0x233   : >> { %13972 = vst [vmem:[#allocation49_spill] sm:$0xff] %v12159_v28  ;;  %v12176_v28 = vadd.f32 %v9460_v27, %v3944_v26  ;;  %v9475_v26 = vadd.f32 %v12092_v12, %v12090_v8  ;;  %v9481_v63 = vadd.f32 %v9480_v13, %v9479_v22 }
 0x234   : >> { %v9482_v21 = vpop.f32.mrf.mxu1  ;;  %v9398_v45 = vpop.f32.mrf.mxu0 }
 0x235   : >> { %v9399_v50 = vadd.f32 %v9398_v45, %v9397_v58  ;;  %v4126_v58 = vadd.f32 %v9475_v26, %v3965_v24  ;;  %v12211_v45 = vadd.f32 %v12096_v25, %v12110_v59 }
 0x236   : >> { %v9483_v15 = vpop.f32.mrf.mxu1  ;;  %v12098_v11 = vpop.f32.mrf.mxu0 }
 0x238   : >> { %v12104_v6 = vpop.f32.mrf.mxu1  ;;  %v9401_v43 = vpop.f32.mrf.mxu0 }
 0x23a   : >> { %v12106_v60 = vpop.f32.mrf.mxu1  ;;  %v12108_v0 = vpop.f32.mrf.mxu0 }
 0x23b   : >> { %13966 = vst [vmem:[#allocation42_spill] sm:$0xff] %v12108_v0  ;;  %v9457_v0 = vadd.f32 %v9456_v62, %v12058_v52  ;;  %v12145_v52 = vadd.f32 %v12042_v1, %v12110_v59 }
 0x23c   : >> { %v12112_v49 = vpop.f32.mrf.mxu1  ;;  %v12114_v54 = vpop.f32.mrf.mxu0 }
 0x23d   : >> { %13967 = vst [vmem:[#allocation44_spill] sm:$0xff] %v12114_v54  ;;  %v12133_v54 = vadd.f32 %v12034_v39, %v12110_v59  ;;  %13970 = vst [vmem:[#allocation47_spill] sm:$0xff] %v12145_v52  ;;  %v3957_v39 = vadd.f32 %v12044_v48, %v12110_v59  ;;  %v12165_v48 = vadd.f32 %v12054_v42, %v12110_v59 }
 0x23e   : >> { %v12120_v36 = vpop.f32.mrf.mxu1  ;;  %v9406_v23 = vpop.f32.mrf.mxu0  ;;  %v4102_v55 = vadd.f32 %v9457_v0, %v3941_v31  ;;  %v3976_v42 = vadd.f32 %v12062_v47, %v12110_v59  ;;  %v3989_v47 = vadd.f32 %v12074_v53, %v12110_v59  ;;  %v12203_v53 = vadd.f32 %v12094_v34, %v12110_v59 }
 0x23f   : >> { %13969 = vst [vmem:[#allocation46_spill] sm:$0xff] %v12120_v36 }
 0x240   : >> { %v9491_v36 = vpop.f32.mrf.mxu1  ;;  %v9407_v18 = vpop.f32.mrf.mxu0 }
 0x241   : >> { %v12149_v62 = vadd.f32 %v9407_v18, %v9406_v23  ;;  %v9463_v23 = vadd.f32 %v12070_v9, %v12066_v57  ;;  %v9466_v18 = vadd.f32 %v12076_v29, %v12072_v17  ;;  %v9387_v57 = vadd.f32 %v12086_v61, %v12082_v33 }
 0x242   : >> { %v9492_v1 = vpop.f32.mrf.mxu1  ;;  %v9409_v40 = vpop.f32.mrf.mxu0  ;;  %v9390_v9 = vadd.f32 %v9389_v19, %v12088_v10  ;;  %v3984_v17 = vadd.f32 %v12068_v3, %v12110_v59  ;;  %v9478_v29 = vadd.f32 %v9477_v14, %v9476_v20  ;;  %v3992_v61 = vadd.f32 %v12080_v4, %v12110_v59 }
 0x243   : >> { %v4110_v33 = vadd.f32 %v9463_v23, %v3949_v32  ;;  %v9484_v10 = vadd.f32 %v9483_v15, %v9482_v21  ;;  %v4113_v0 = vadd.f32 %v9466_v18, %v3952_v35  ;;  %v12194_v3 = vadd.f32 %v9469_v2, %v3957_v39 }
 0x244   : >> { %v9494_v5 = vpop.f32.mrf.mxu1  ;;  %v9410_v52 = vpop.f32.mrf.mxu0  ;;  %v3997_v8 = vadd.f32 %v9387_v57, %v12110_v59  ;;  %v4000_v12 = vadd.f32 %v9390_v9, %v12110_v59  ;;  %v9402_v20 = vadd.f32 %v9401_v43, %v12098_v11  ;;  %v12199_v14 = vadd.f32 %v9472_v51, %v3960_v7 }
 0x245   : >> { %v9487_v4 = vadd.f32 %v12106_v60, %v12104_v6  ;;  %v12207_v21 = vadd.f32 %v9478_v29, %v3968_v38  ;;  %v12214_v15 = vadd.f32 %v9399_v50, %v12110_v59  ;;  %v12216_v43 = vadd.f32 %v9481_v63, %v3973_v56  ;;  %v13974_v6 = vld [vmem:[#allocation42_spill] sm:$0xff]  ;;  %v13975_v60 = vld [vmem:[#allocation44_spill] sm:$0xff] }
 0x246   : >> { %v9495_v41 = vpop.f32.mrf.mxu1  ;;  %v9412_v46 = vpop.f32.mrf.mxu0  ;;  %v13973_v34 = vld [vmem:[#allocation46_spill] sm:$0xff]  ;;  %v9493_v32 = vadd.f32 %v9492_v1, %v9491_v36  ;;  %v9405_v27 = vadd.f32 %v13975_v60, %v13974_v6  ;;  %v12222_v7 = vadd.f32 %v9484_v10, %v3976_v42  ;;  %v12225_v25 = vadd.f32 %v9402_v20, %v12110_v59 }
 0x247   : >> { %v9490_v31 = vadd.f32 %v13973_v34, %v12112_v49  ;;  %v9411_v24 = vadd.f32 %v9410_v52, %v9409_v40  ;;  %v9496_v18 = vadd.f32 %v9495_v41, %v9494_v5  ;;  %v12227_v49 = vadd.f32 %v9487_v4, %v3981_v16  ;;  %v4843_v4 = vld [vmem:[#allocation2 + $0x18] sm:$0xf] }
 0x248   : >> { %v9497_v37 = vpop.f32.mrf.mxu1  ;;  %v9413_v19 = vpop.f32.mrf.mxu0  ;;  %v12230_v42 = vadd.f32 %v9405_v27, %v12110_v59  ;;  %v12234_v29 = vadd.f32 %v12149_v62, %v12110_v59 }
 0x249   : >> { %v9414_v51 = vadd.f32 %v9413_v19, %v9412_v46  ;;  %v12236_v5 = vadd.f32 %v9490_v31, %v3984_v17  ;;  %v12241_v16 = vadd.f32 %v9411_v24, %v12110_v59  ;;  %v12249_v19 = vadd.f32 %v9496_v18, %v3992_v61 }
 0x24a   : >> { %v9498_v22 = vpop.f32.mrf.mxu1  ;;  %v9825_v13 = vpop.f32.mrf.mxu0 }
 0x24b   : >> { %v4271_v11 = vadd.f32 %v9825_v13, %v4110_v33  ;;  %v9499_v56 = vadd.f32 %v9498_v22, %v9497_v37  ;;  %v12244_v50 = vadd.f32 %v9414_v51, %v12110_v59 }
 0x24c   : >> { %v9500_v35 = vpop.f32.mrf.mxu1  ;;  %v4262_v39 = vpop.f32.mrf.mxu0 }
 0x24d   : >> { %v4391_v38 = vmax.f32 %v4271_v11, 0.0  ;;  %v4263_v23 = vadd.f32 %v4262_v39, %v4102_v55  ;;  %v12238_v55 = vadd.f32 %v9493_v32, %v3989_v47  ;;  %v12247_v37 = vadd.f32 %v9499_v56, %v3997_v8 }
 0x24e   : >> { %v9501_v2 = vpop.f32.mrf.mxu1  ;;  %v9826_v57 = vpop.f32.mrf.mxu0 }
 0x24f   : >> { %v9502_v36 = vadd.f32 %v9501_v2, %v9500_v35  ;;  %v9296_v1 = vpack.c.bf16 %v4391_v38, %v4391_v38  ;;  %v4389_v9 = vmax.f32 %v4263_v23, 0.0  ;;  %v4274_v26 = vadd.f32 %v9826_v57, %v4113_v0 }
 0x250   : >> { %v9503_v52 = vpop.f32.mrf.mxu1  ;;  %v4265_v40 = vpop.f32.mrf.mxu0 }
 0x251   : >> { %v4535_v41 = vshrl.u32 %v9296_v1, 16  ;;  %v9294_v46 = vpack.c.bf16 %v4389_v9, %v4389_v9  ;;  %v4392_v63 = vmax.f32 %v4274_v26, 0.0  ;;  %v4266_v10 = vadd.f32 %v4265_v40, %v12176_v28  ;;  %v4847_v26 = vld [vmem:[#allocation2 + $0x20] sm:$0x1] }
 0x252   : >> { %v9504_v33 = vpop.f32.mrf.mxu1  ;;  %v9829_v62 = vpop.f32.mrf.mxu0  ;;  %v4538_v47 = vshll.u32 %v9296_v1, 16  ;;  %v12251_v20 = vadd.f32 %v9502_v36, %v4000_v12 }
 0x253   : >> { %v4537_v17 = vrot.slane %v4535_v41, 7  ;;  %v4518_v0 = vshrl.u32 %v9294_v46, 16  ;;  %v12253_v22 = vadd.f32 %v9504_v33, %v9503_v52  ;;  %v9297_v11 = vpack.c.bf16 %v4392_v63, %v4392_v63 }
 0x254   : >> { %v9506_v13 = vpop.f32.mrf.mxu1  ;;  %v4390_v59 = vmax.f32 %v4266_v10, 0.0  ;;  %v4287_v34 = vadd.f32 %v9829_v62, %v4126_v58  ;;  %v4278_v31 = vpop.f32.mrf.mxu0  ;;  %v4521_v6 = vshll.u32 %v9294_v46, 16 }
 0x255   : >> { %v4540_v32 = vor.u32 %v4538_v47, %v4537_v17  ;;  %v4520_v28 = vrot.slane %v4518_v0, 7  ;;  %v4279_v8 = vadd.f32 %v4278_v31, %v12194_v3  ;;  %v4541_v61 = vrot.slane %v4537_v17, 4  ;;  %v10203_v3 = vld [vmem:[#allocation2 + $0xc] sm:$0xf]  ;;  %v4840_v0 = vld [vmem:[#allocation2 + $0x14] sm:$0x1] }
 0x256   : >> { %v4543_v60 = vshrl.u32 %v9297_v11, 16  ;;  %v9507_v27 = vpop.f32.mrf.mxu1  ;;  %v9295_v35 = vpack.c.bf16 %v4390_v59, %v4390_v59  ;;  %v4395_v39 = vmax.f32 %v4287_v34, 0.0  ;;  %v9830_v12 = vpop.f32.mrf.mxu0  ;;  %v4546_v56 = vshll.u32 %v9297_v11, 16 }
 0x257   : >> { %v4844_v38 = vsel %vm10714_vm7, %v4540_v32, %v4843_v4  ;;  %v4523_v23 = vor.u32 %v4521_v6, %v4520_v28  ;;  %v4524_v18 = vrot.slane %v4520_v28, 4  ;;  %v4393_v52 = vmax.f32 %v4279_v8, 0.0 }
 0x258   : >> { %4845 = vst [vmem:[#allocation2 + $0x18] sm:$0xf] %v4844_v38  ;;  %v4545_v58 = vrot.slane %v4543_v60, 7  ;;  %v4526_v2 = vshrl.u32 %v9295_v35, 16  ;;  %v4529_v51 = vshll.u32 %v9295_v35, 16  ;;  %v9509_v57 = vpop.f32.mrf.mxu1  ;;  %v9300_v36 = vpack.c.bf16 %v4395_v39, %v4395_v39  ;;  %v4281_v1 = vpop.f32.mrf.mxu0 }
 0x259   : >> { %v4837_v9 = vsel %vm10714_vm7, %v4523_v23, %v10203_v3  ;;  %v4290_v40 = vadd.f32 %v9830_v12, %v12207_v21  ;;  %v4282_v41 = vadd.f32 %v4281_v1, %v12199_v14  ;;  %v12262_v47 = vadd.f32 %v9507_v27, %v9506_v13  ;;  %v4857_v12 = vld [vmem:[#allocation2 + $0x30] sm:$0xf]  ;;  %v4850_v3 = vld [vmem:[#allocation2 + $0x24] sm:$0xf] }
 0x25a   : >> { %4838 = vst [vmem:[#allocation2 + $0xc] sm:$0xf] %v4837_v9  ;;  %v4548_v46 = vor.u32 %v4546_v56, %v4545_v58  ;;  %v4550_v63 = vrot.slane %v4545_v58, 4  ;;  %v4528_v33 = vrot.slane %v4526_v2, 7  ;;  %v4569_v10 = vshrl.u32 %v9300_v36, 16  ;;  %v9510_v62 = vpop.f32.mrf.mxu1  ;;  %v9833_v17 = vpop.f32.mrf.mxu0 }
 0x25b   : >> { %v4572_v4 = vshll.u32 %v9300_v36, 16  ;;  %v9298_v11 = vpack.c.bf16 %v4393_v52, %v4393_v52  ;;  %v4396_v59 = vmax.f32 %v4290_v40, 0.0  ;;  %v12269_v13 = vadd.f32 %v9510_v62, %v9509_v57 }
 0x25c   : >> { %v4549_v31 = vsel %vm10720_vm8, %v4541_v61, %v4548_v46  ;;  %v4848_v21 = vsel %vm10590_vm3, %v4550_v63, %v4847_v26  ;;  %v4531_v14 = vor.u32 %v4529_v51, %v4528_v33  ;;  %v4533_v28 = vrot.slane %v4528_v33, 4  ;;  %v9512_v6 = vpop.f32.mrf.mxu1  ;;  %v4294_v8 = vpop.f32.mrf.mxu0 }
 0x25d   : >> { %4846 = vst.msk [vmem:[#allocation2 + $0x1c] sm:$0xf] %vm170_vm0, %v4549_v31  ;;  %4849 = vst [vmem:[#allocation2 + $0x20] sm:$0x1] %v4848_v21  ;;  %v4571_v60 = vrot.slane %v4569_v10, 7  ;;  %v4552_v27 = vshrl.u32 %v9298_v11, 16  ;;  %v9301_v35 = vpack.c.bf16 %v4396_v59, %v4396_v59  ;;  %v4303_v56 = vadd.f32 %v9833_v17, %v12227_v49 }
 0x25e   : >> { %v4532_v39 = vsel %vm10720_vm8, %v4524_v18, %v4531_v14  ;;  %v4841_v61 = vsel %vm10590_vm3, %v4533_v28, %v4840_v0  ;;  %v9513_v38 = vpop.f32.mrf.mxu1  ;;  %v4394_v23 = vmax.f32 %v4282_v41, 0.0  ;;  %v9834_v58 = vpop.f32.mrf.mxu0  ;;  %v4555_v57 = vshll.u32 %v9298_v11, 16  ;;  %v4861_v10 = vld [vmem:[#allocation2 + $0x38] sm:$0x1] }
 0x25f   : >> { %4839 = vst.msk [vmem:[#allocation2 + $0x10] sm:$0xf] %vm170_vm0, %v4532_v39  ;;  %4842 = vst [vmem:[#allocation2 + $0x14] sm:$0x1] %v4841_v61  ;;  %v4574_v2 = vor.u32 %v4572_v4, %v4571_v60  ;;  %v4554_v51 = vrot.slane %v4552_v27, 7  ;;  %v4577_v36 = vshrl.u32 %v9301_v35, 16  ;;  %v12279_v63 = vadd.f32 %v9513_v38, %v9512_v6 }
 0x260   : >> { %v4575_v1 = vrot.slane %v4571_v60, 4  ;;  %v4580_v9 = vshll.u32 %v9301_v35, 16  ;;  %v9299_v18 = vpack.c.bf16 %v4394_v23, %v4394_v23  ;;  %v9515_v26 = vpop.f32.mrf.mxu1  ;;  %v4399_v52 = vmax.f32 %v4303_v56, 0.0  ;;  %v4297_v40 = vpop.f32.mrf.mxu0 }
 0x261   : >> { %v4858_v41 = vsel %vm10714_vm7, %v4574_v2, %v4857_v12  ;;  %v4557_v46 = vor.u32 %v4555_v57, %v4554_v51  ;;  %v4579_v49 = vrot.slane %v4577_v36, 7  ;;  %v4558_v33 = vrot.slane %v4554_v51, 4 }
 0x262   : >> { %4859 = vst [vmem:[#allocation2 + $0x30] sm:$0xf] %v4858_v41  ;;  %v4560_v62 = vshrl.u32 %v9299_v18, 16  ;;  %v9304_v17 = vpack.c.bf16 %v4399_v52, %v4399_v52  ;;  %v9516_v0 = vpop.f32.mrf.mxu1  ;;  %v4295_v4 = vadd.f32 %v4294_v8, %v12216_v43  ;;  %v9837_v11 = vpop.f32.mrf.mxu0  ;;  %v4563_v14 = vshll.u32 %v9299_v18, 16  ;;  %v4854_v8 = vld [vmem:[#allocation2 + $0x2c] sm:$0x1] }
 0x263   : >> { %v4851_v59 = vsel %vm10714_vm7, %v4557_v46, %v4850_v3  ;;  %v4582_v31 = vor.u32 %v4580_v9, %v4579_v49  ;;  %v4584_v21 = vrot.slane %v4579_v49, 4  ;;  %v4306_v12 = vadd.f32 %v9834_v58, %v12236_v5  ;;  %v4871_v3 = vld [vmem:[#allocation2 + $0x48] sm:$0xf] }
 0x264   : >> { %4852 = vst [vmem:[#allocation2 + $0x24] sm:$0xf] %v4851_v59  ;;  %v4562_v28 = vrot.slane %v4560_v62, 7  ;;  %v4603_v60 = vshrl.u32 %v9304_v17, 16  ;;  %v4606_v6 = vshll.u32 %v9304_v17, 16  ;;  %v4397_v27 = vmax.f32 %v4295_v4, 0.0  ;;  %v9518_v35 = vpop.f32.mrf.mxu1  ;;  %v4310_v39 = vpop.f32.mrf.mxu0 }
 0x265   : >> { %v4583_v61 = vsel %vm10720_vm8, %v4575_v1, %v4582_v31  ;;  %v4862_v43 = vsel %vm10590_vm3, %v4584_v21, %v4861_v10  ;;  %v4298_v38 = vadd.f32 %v4297_v40, %v12222_v7  ;;  %v12293_v1 = vadd.f32 %v9516_v0, %v9515_v26 }
 0x266   : >> { %4860 = vst.msk [vmem:[#allocation2 + $0x34] sm:$0xf] %vm170_vm0, %v4583_v61  ;;  %4863 = vst [vmem:[#allocation2 + $0x38] sm:$0x1] %v4862_v43  ;;  %v4565_v23 = vor.u32 %v4563_v14, %v4562_v28  ;;  %v4567_v56 = vrot.slane %v4562_v28, 4  ;;  %v12291_v2 = vrot.slane %v4603_v60, 7  ;;  %v9302_v51 = vpack.c.bf16 %v4397_v27, %v4397_v27  ;;  %v9519_v57 = vpop.f32.mrf.mxu1  ;;  %v9838_v36 = vpop.f32.mrf.mxu0 }
 0x267   : >> { %v4400_v9 = vmax.f32 %v4306_v12, 0.0  ;;  %v4398_v18 = vmax.f32 %v4298_v38, 0.0  ;;  %v4319_v52 = vadd.f32 %v9837_v11, %v12247_v37  ;;  %v12301_v40 = vadd.f32 %v9519_v57, %v9518_v35  ;;  %v4864_v28 = vld [vmem:[#allocation2 + $0x3c] sm:$0xf]  ;;  %v4875_v38 = vld [vmem:[#allocation2 + $0x50] sm:$0x1] }
 0x268   : >> { %v4566_v7 = vsel %vm10720_vm8, %v4558_v33, %v4565_v23  ;;  %v4855_v5 = vsel %vm10590_vm3, %v4567_v56, %v4854_v8  ;;  %v4608_v58 = vor.u32 %v4606_v6, %v12291_v2  ;;  %v9521_v41 = vpop.f32.mrf.mxu1  ;;  %v12303_v46 = vpop.f32.mrf.mxu0  ;;  %v4609_v26 = vrot.slane %v12291_v2, 4 }
 0x269   : >> { %4853 = vst.msk [vmem:[#allocation2 + $0x28] sm:$0xf] %vm170_vm0, %v4566_v7  ;;  %4856 = vst [vmem:[#allocation2 + $0x2c] sm:$0x1] %v4855_v5  ;;  %v4586_v49 = vshrl.u32 %v9302_v51, 16  ;;  %v9305_v37 = vpack.c.bf16 %v4400_v9, %v4400_v9  ;;  %v9303_v10 = vpack.c.bf16 %v4398_v18, %v4398_v18  ;;  %v4403_v62 = vmax.f32 %v4319_v52, 0.0 }
 0x26a   : >> { %v4872_v33 = vsel %vm10714_vm7, %v4608_v58, %v4871_v3  ;;  %v9522_v17 = vpop.f32.mrf.mxu1  ;;  %v4311_v0 = vadd.f32 %v4310_v39, %v12238_v55  ;;  %v4322_v4 = vadd.f32 %v9838_v36, %v12251_v20  ;;  %v12311_v11 = vpop.f32.mrf.mxu0  ;;  %v4589_v31 = vshll.u32 %v9302_v51, 16  ;;  %v4868_v52 = vld [vmem:[#allocation2 + $0x44] sm:$0x1] }
 0x26b   : >> { %4873 = vst [vmem:[#allocation2 + $0x48] sm:$0xf] %v4872_v33  ;;  %v4588_v59 = vrot.slane %v4586_v49, 7  ;;  %v4611_v21 = vshrl.u32 %v9305_v37, 16  ;;  %v4594_v14 = vshrl.u32 %v9303_v10, 16  ;;  %v4614_v60 = vshll.u32 %v9305_v37, 16 }
 0x26c   : >> { %v4597_v6 = vshll.u32 %v9303_v10, 16  ;;  %v9308_v27 = vpack.c.bf16 %v4403_v62, %v4403_v62  ;;  %v4401_v35 = vmax.f32 %v4311_v0, 0.0  ;;  %v9524_v61 = vpop.f32.mrf.mxu1  ;;  %v12313_v43 = vpop.f32.mrf.mxu0  ;;  %v12315_v39 = vadd.f32 %v9522_v17, %v9521_v41  ;;  %v4885_v17 = vld [vmem:[#allocation2 + $0x60] sm:$0xf] }
 0x26d   : >> { %v4591_v8 = vor.u32 %v4589_v31, %v4588_v59  ;;  %v4613_v12 = vrot.slane %v4611_v21, 7  ;;  %v4596_v55 = vrot.slane %v4594_v14, 7  ;;  %v4592_v20 = vrot.slane %v4588_v59, 4 }
 0x26e   : >> { %v4637_v23 = vshrl.u32 %v9308_v27, 16  ;;  %v9306_v56 = vpack.c.bf16 %v4401_v35, %v4401_v35  ;;  %v4404_v2 = vmax.f32 %v4322_v4, 0.0  ;;  %v9525_v51 = vpop.f32.mrf.mxu1  ;;  %v9842_v57 = vpop.f32.mrf.mxu0  ;;  %v4640_v58 = vshll.u32 %v9308_v27, 16 }
 0x26f   : >> { %v4865_v36 = vsel %vm10714_vm7, %v4591_v8, %v4864_v28  ;;  %v4616_v3 = vor.u32 %v4614_v60, %v4613_v12  ;;  %v4618_v9 = vrot.slane %v4613_v12, 4  ;;  %v4599_v18 = vor.u32 %v4597_v6, %v4596_v55  ;;  %v4878_v60 = vld [vmem:[#allocation2 + $0x54] sm:$0xf] }
 0x270   : >> { %4866 = vst [vmem:[#allocation2 + $0x3c] sm:$0xf] %v4865_v36  ;;  %v4601_v7 = vrot.slane %v4596_v55, 4  ;;  %v4639_v5 = vrot.slane %v4637_v23, 7  ;;  %v4620_v41 = vshrl.u32 %v9306_v56, 16  ;;  %v9527_v49 = vpop.f32.mrf.mxu1  ;;  %v4329_v37 = vpop.f32.mrf.mxu0  ;;  %v9309_v0 = vpack.c.bf16 %v4404_v2, %v4404_v2 }
 0x271   : >> { %v4617_v10 = vsel %vm10720_vm8, %v4609_v26, %v4616_v3  ;;  %v4876_v33 = vsel %vm10590_vm3, %v4618_v9, %v4875_v38  ;;  %v4600_v62 = vsel %vm10720_vm8, %v4592_v20, %v4599_v18  ;;  %v4623_v26 = vshll.u32 %v9306_v56, 16 }
 0x272   : >> { %4874 = vst.msk [vmem:[#allocation2 + $0x4c] sm:$0xf] %vm170_vm0, %v4617_v10  ;;  %4877 = vst [vmem:[#allocation2 + $0x50] sm:$0x1] %v4876_v33  ;;  %v4869_v4 = vsel %vm10590_vm3, %v4601_v7, %v4868_v52  ;;  %v4642_v59 = vor.u32 %v4640_v58, %v4639_v5  ;;  %v12329_v31 = vrot.slane %v4620_v41, 7  ;;  %v9528_v21 = vpop.f32.mrf.mxu1  ;;  %v9845_v14 = vpop.f32.mrf.mxu0  ;;  %v4643_v28 = vrot.slane %v4639_v5, 4 }
 0x273   : >> { %4867 = vst.msk [vmem:[#allocation2 + $0x40] sm:$0xf] %vm170_vm0, %v4600_v62  ;;  %4870 = vst [vmem:[#allocation2 + $0x44] sm:$0x1] %v4869_v4  ;;  %v4645_v6 = vshrl.u32 %v9309_v0, 16  ;;  %v4648_v27 = vshll.u32 %v9309_v0, 16  ;;  %v4314_v35 = vadd.f32 %v12303_v46, %v12249_v19  ;;  %v12336_v55 = vadd.f32 %v9525_v51, %v9524_v61 }
 0x274   : >> { %v4886_v8 = vsel %vm10714_vm7, %v4642_v59, %v4885_v17  ;;  %v4625_v12 = vor.u32 %v4623_v26, %v12329_v31  ;;  %v4174_v20 = vadd.f32 %v12269_v13, %v12214_v15  ;;  %v12340_v38 = vpop.f32.mrf.mxu1  ;;  %v12342_v23 = vpop.f32.mrf.mxu0  ;;  %v4626_v56 = vrot.slane %v12329_v31, 4  ;;  %v4889_v61 = vld [vmem:[#allocation2 + $0x68] sm:$0x1]  ;;  %v4882_v31 = vld [vmem:[#allocation2 + $0x5c] sm:$0x1] }
 0x275   : >> { %4887 = vst [vmem:[#allocation2 + $0x60] sm:$0xf] %v4886_v8  ;;  %v4647_v2 = vrot.slane %v4645_v6, 7  ;;  %v4402_v36 = vmax.f32 %v4314_v35, 0.0  ;;  %v4166_v19 = vadd.f32 %v12253_v22, %v12203_v53  ;;  %v4177_v15 = vadd.f32 %v12279_v63, %v12225_v25 }
 0x276   : >> { %v4879_v46 = vsel %vm10714_vm7, %v4625_v12, %v4878_v60  ;;  %v4335_v51 = vadd.f32 %v12311_v11, %v4174_v20  ;;  %v12352_v13 = vpop.f32.mrf.mxu1  ;;  %v4169_v3 = vadd.f32 %v12262_v47, %v12211_v45  ;;  %v12356_v9 = vpop.f32.mrf.mxu0  ;;  %v12359_v5 = vadd.f32 %v9528_v21, %v9527_v49 }
 0x277   : >> { %4880 = vst [vmem:[#allocation2 + $0x54] sm:$0xf] %v4879_v46  ;;  %v4650_v18 = vor.u32 %v4648_v27, %v4647_v2  ;;  %v4652_v52 = vrot.slane %v4647_v2, 4  ;;  %v9307_v53 = vpack.c.bf16 %v4402_v36, %v4402_v36  ;;  %v4327_v22 = vadd.f32 %v12313_v43, %v4166_v19  ;;  %v4899_v19 = vld [vmem:[#allocation2 + $0x78] sm:$0xf] }
 0x278   : >> { %v4407_v7 = vmax.f32 %v4335_v51, 0.0  ;;  %v4338_v11 = vadd.f32 %v9842_v57, %v4177_v15  ;;  %v4330_v58 = vadd.f32 %v4329_v37, %v4169_v3  ;;  %v9533_v41 = vpop.f32.mrf.mxu1  ;;  %v12361_v25 = vpop.f32.mrf.mxu0  ;;  %v4190_v17 = vadd.f32 %v12315_v39, %v12241_v16 }
 0x279   : >> { %v4651_v63 = vsel %vm10720_vm8, %v4643_v28, %v4650_v18  ;;  %v4890_v45 = vsel %vm10590_vm3, %v4652_v52, %v4889_v61  ;;  %v4628_v47 = vshrl.u32 %v9307_v53, 16  ;;  %v4631_v10 = vshll.u32 %v9307_v53, 16  ;;  %v4892_v53 = vld [vmem:[#allocation2 + $0x6c] sm:$0xf] }
 0x27a   : >> { %4888 = vst.msk [vmem:[#allocation2 + $0x64] sm:$0xf] %vm170_vm0, %v4651_v63  ;;  %4891 = vst [vmem:[#allocation2 + $0x68] sm:$0x1] %v4890_v45  ;;  %v9312_v43 = vpack.c.bf16 %v4407_v7, %v4407_v7  ;;  %v4405_v33 = vmax.f32 %v4327_v22, 0.0  ;;  %v4408_v49 = vmax.f32 %v4338_v11, 0.0  ;;  %v9534_v57 = vpop.f32.mrf.mxu1  ;;  %v4182_v4 = vadd.f32 %v12293_v1, %v12230_v42  ;;  %v12374_v59 = vpop.f32.mrf.mxu0 }
 0x27b   : >> { %v4406_v62 = vmax.f32 %v4330_v58, 0.0  ;;  %v4630_v37 = vrot.slane %v4628_v47, 7  ;;  %v12370_v0 = vadd.f32 %v9534_v57, %v9533_v41  ;;  %v4351_v12 = vadd.f32 %v9845_v14, %v4190_v17  ;;  %v4903_v47 = vld [vmem:[#allocation2 + $0x80] sm:$0x1] }
 0x27c   : >> { %v4671_v26 = vshrl.u32 %v9312_v43, 16  ;;  %v4674_v21 = vshll.u32 %v9312_v43, 16  ;;  %v9310_v28 = vpack.c.bf16 %v4405_v33, %v4405_v33  ;;  %v9313_v60 = vpack.c.bf16 %v4408_v49, %v4408_v49  ;;  %v9536_v6 = vpop.f32.mrf.mxu1  ;;  %v12380_v51 = vpop.f32.mrf.mxu0 }
 0x27d   : >> { %v4633_v27 = vor.u32 %v4631_v10, %v4630_v37  ;;  %v4635_v35 = vrot.slane %v4630_v37, 4  ;;  %v9311_v8 = vpack.c.bf16 %v4406_v62, %v4406_v62  ;;  %v4343_v11 = vadd.f32 %v12342_v23, %v4182_v4  ;;  %v4896_v10 = vld [vmem:[#allocation2 + $0x74] sm:$0x1] }
 0x27e   : >> { %v4673_v20 = vrot.slane %v4671_v26, 7  ;;  %v4654_v2 = vshrl.u32 %v9310_v28, 16  ;;  %v4657_v16 = vshll.u32 %v9310_v28, 16  ;;  %v4679_v39 = vshrl.u32 %v9313_v60, 16  ;;  %v9537_v36 = vpop.f32.mrf.mxu1  ;;  %v9850_v37 = vpop.f32.mrf.mxu0 }
 0x27f   : >> { %v4634_v42 = vsel %vm10720_vm8, %v4626_v56, %v4633_v27  ;;  %v4883_v1 = vsel %vm10590_vm3, %v4635_v35, %v4882_v31  ;;  %v4682_v46 = vshll.u32 %v9313_v60, 16  ;;  %v4662_v61 = vshrl.u32 %v9311_v8, 16 }
 0x280   : >> { %4881 = vst.msk [vmem:[#allocation2 + $0x58] sm:$0xf] %vm170_vm0, %v4634_v42  ;;  %4884 = vst [vmem:[#allocation2 + $0x5c] sm:$0x1] %v4883_v1  ;;  %v4676_v14 = vor.u32 %v4674_v21, %v4673_v20  ;;  %v4677_v15 = vrot.slane %v4673_v20, 4  ;;  %v4656_v3 = vrot.slane %v4654_v2, 7  ;;  %v9539_v52 = vpop.f32.mrf.mxu1  ;;  %v4193_v31 = vadd.f32 %v12336_v55, %v12244_v50  ;;  %v4361_v42 = vpop.f32.mrf.mxu0 }
 0x281   : >> { %v4681_v18 = vrot.slane %v4679_v39, 7  ;;  %v4664_v22 = vrot.slane %v4662_v61, 7  ;;  %v4665_v7 = vshll.u32 %v9311_v8, 16  ;;  %v4411_v56 = vmax.f32 %v4351_v12, 0.0  ;;  %v4913_v1 = vld [vmem:[#allocation2 + $0x90] sm:$0xf] }
 0x282   : >> { %v4900_v58 = vsel %vm10714_vm7, %v4676_v14, %v4899_v19  ;;  %v4659_v41 = vor.u32 %v4657_v16, %v4656_v3  ;;  %v4660_v63 = vrot.slane %v4656_v3, 4  ;;  %v9540_v43 = vpop.f32.mrf.mxu1  ;;  %v4409_v4 = vmax.f32 %v4343_v11, 0.0 }
 0x283   : >> { %v4684_v45 = vor.u32 %v4682_v46, %v4681_v18  ;;  %4901 = vst [vmem:[#allocation2 + $0x78] sm:$0xf] %v4900_v58  ;;  %v4686_v33 = vrot.slane %v4681_v18, 4  ;;  %v4667_v49 = vor.u32 %v4665_v7, %v4664_v22  ;;  %v4669_v62 = vrot.slane %v4664_v22, 4  ;;  %v13979_v46 = vld [vmem:[#allocation45_spill] sm:$0xff]  ;;  %v9853_v22 = vpop.f32.mrf.mxu0 }
 0x284   : >> { %v9316_v57 = vpack.c.bf16 %v4411_v56, %v4411_v56  ;;  %v4893_v17 = vsel %vm10714_vm7, %v4659_v41, %v4892_v53  ;;  %v9542_v26 = vpop.f32.mrf.mxu1  ;;  %v9532_v35 = vadd.f32 %v12352_v13, %v12340_v38  ;;  %v9314_v55 = vpack.c.bf16 %v4409_v4, %v4409_v4  ;;  %v4906_v18 = vld [vmem:[#allocation2 + $0x84] sm:$0xf] }
 0x285   : >> { %v4685_v23 = vsel %vm10720_vm8, %v4677_v15, %v4684_v45  ;;  %4894 = vst [vmem:[#allocation2 + $0x6c] sm:$0xf] %v4893_v17  ;;  %v4904_v21 = vsel %vm10590_vm3, %v4686_v33, %v4903_v47  ;;  %v4668_v28 = vsel %vm10720_vm8, %v4660_v63, %v4667_v49  ;;  %v4897_v60 = vsel %vm10590_vm3, %v4669_v62, %v4896_v10  ;;  %v4374_v17 = vpop.f32.mrf.mxu0 }
 0x286   : >> { %4902 = vst.msk [vmem:[#allocation2 + $0x7c] sm:$0xf] %vm170_vm0, %v4685_v23  ;;  %v4705_v27 = vshrl.u32 %v9316_v57, 16  ;;  %4905 = vst [vmem:[#allocation2 + $0x80] sm:$0x1] %v4904_v21  ;;  %v4708_v50 = vshll.u32 %v9316_v57, 16  ;;  %v4354_v8 = vadd.f32 %v12356_v9, %v4193_v31  ;;  %v9543_v12 = vpop.f32.mrf.mxu1  ;;  %v9538_v2 = vadd.f32 %v9537_v36, %v9536_v6 }
 0x287   : >> { %4895 = vst.msk [vmem:[#allocation2 + $0x70] sm:$0xf] %vm170_vm0, %v4668_v28  ;;  %4898 = vst [vmem:[#allocation2 + $0x74] sm:$0x1] %v4897_v60  ;;  %v4185_v16 = vadd.f32 %v12301_v40, %v12234_v29  ;;  %v4206_v39 = vadd.f32 %v12370_v0, %v12133_v54  ;;  %v4688_v19 = vshrl.u32 %v9314_v55, 16  ;;  %v12407_v13 = vadd.f32 %v9540_v43, %v9539_v52 }
 0x288   : >> { %v4707_v20 = vrot.slane %v4705_v27, 7  ;;  %v4412_v38 = vmax.f32 %v4354_v8, 0.0  ;;  %v4198_v61 = vadd.f32 %v12359_v5, %v13979_v46  ;;  %v9545_v14 = vpop.f32.mrf.mxu1  ;;  %v4691_v15 = vshll.u32 %v9314_v55, 16  ;;  %v13980_v27 = vld [vmem:[#allocation49_spill] sm:$0xff]  ;;  %v4910_v8 = vld [vmem:[#allocation2 + $0x8c] sm:$0x1] }
 0x289   : >> { %v4346_v6 = vadd.f32 %v12361_v25, %v4185_v16  ;;  %v4367_v36 = vadd.f32 %v12374_v59, %v4206_v39  ;;  %v4690_v40 = vrot.slane %v4688_v19, 7  ;;  %v4209_v5 = vadd.f32 %v9538_v2, %v12139_v30  ;;  %v4917_v30 = vld [vmem:[#allocation2 + $0x98] sm:$0x1] }
 0x28a   : >> { %v4710_v9 = vor.u32 %v4708_v50, %v4707_v20  ;;  %v4711_v29 = vrot.slane %v4707_v20, 4  ;;  %v9317_v3 = vpack.c.bf16 %v4412_v38, %v4412_v38  ;;  %v4359_v54 = vadd.f32 %v12380_v51, %v4198_v61  ;;  %v9546_v7 = vpop.f32.mrf.mxu1 }
 0x28b   : >> { %v4410_v52 = vmax.f32 %v4346_v6, 0.0  ;;  %v4415_v53 = vmax.f32 %v4367_v36, 0.0  ;;  %v4693_v56 = vor.u32 %v4691_v15, %v4690_v40  ;;  %v12417_v59 = vadd.f32 %v9543_v12, %v9542_v26  ;;  %v4927_v12 = vld [vmem:[#allocation2 + $0xa8] sm:$0xf]  ;;  %v4920_v36 = vld [vmem:[#allocation2 + $0x9c] sm:$0xf] }
 0x28c   : >> { %v4914_v0 = vsel %vm10714_vm7, %v4710_v9, %v4913_v1  ;;  %v4713_v25 = vshrl.u32 %v9317_v3, 16  ;;  %v4716_v11 = vshll.u32 %v9317_v3, 16  ;;  %v4413_v63 = vmax.f32 %v4359_v54, 0.0  ;;  %v9548_v21 = vpop.f32.mrf.mxu1 }
 0x28d   : >> { %4915 = vst [vmem:[#allocation2 + $0x90] sm:$0xf] %v4914_v0  ;;  %v9315_v58 = vpack.c.bf16 %v4410_v52, %v4410_v52  ;;  %v9320_v41 = vpack.c.bf16 %v4415_v53, %v4415_v53  ;;  %v4370_v51 = vadd.f32 %v9850_v37, %v4209_v5  ;;  %v4907_v45 = vsel %vm10714_vm7, %v4693_v56, %v4906_v18 }
 0x28e   : >> { %v4715_v47 = vrot.slane %v4713_v25, 7  ;;  %v4201_v10 = vadd.f32 %v9532_v35, %v12128_v44  ;;  %v9547_v43 = vadd.f32 %v9546_v7, %v9545_v14  ;;  %4908 = vst [vmem:[#allocation2 + $0x84] sm:$0xf] %v4907_v45  ;;  %v9318_v31 = vpack.c.bf16 %v4413_v63, %v4413_v63  ;;  %v9549_v14 = vpop.f32.mrf.mxu1 }
 0x28f   : >> { %v4696_v33 = vshrl.u32 %v9315_v58, 16  ;;  %v4699_v49 = vshll.u32 %v9315_v58, 16  ;;  %v4739_v62 = vshrl.u32 %v9320_v41, 16  ;;  %v4742_v57 = vshll.u32 %v9320_v41, 16  ;;  %v13982_v58 = vld [vmem:[#allocation48_spill] sm:$0xff] }
 0x290   : >> { %v4718_v23 = vor.u32 %v4716_v11, %v4715_v47  ;;  %v4720_v4 = vrot.slane %v4715_v47, 4  ;;  %v4416_v26 = vmax.f32 %v4370_v51, 0.0  ;;  %v4362_v60 = vadd.f32 %v4361_v42, %v4201_v10  ;;  %v9854_v42 = vpop.f32.mrf.mxu0  ;;  %v4931_v41 = vld [vmem:[#allocation2 + $0xb0] sm:$0x1] }
 0x291   : >> { %v4698_v37 = vrot.slane %v4696_v33, 7  ;;  %v4741_v28 = vrot.slane %v4739_v62, 7  ;;  %v4222_v50 = vadd.f32 %v9547_v43, %v13980_v27  ;;  %v4694_v55 = vrot.slane %v4690_v40, 4 }
 0x292   : >> { %v4719_v44 = vsel %vm10720_vm8, %v4711_v29, %v4718_v23  ;;  %v4918_v35 = vsel %vm10590_vm3, %v4720_v4, %v4917_v30  ;;  %v4722_v20 = vshrl.u32 %v9318_v31, 16  ;;  %v4725_v1 = vshll.u32 %v9318_v31, 16  ;;  %v13981_v29 = vld [vmem:[#allocation47_spill] sm:$0xff]  ;;  %v4377_v7 = vpop.f32.mrf.mxu0  ;;  %v4924_v4 = vld [vmem:[#allocation2 + $0xa4] sm:$0x1] }
 0x293   : >> { %4916 = vst.msk [vmem:[#allocation2 + $0x94] sm:$0xf] %vm170_vm0, %v4719_v44  ;;  %4919 = vst [vmem:[#allocation2 + $0x98] sm:$0x1] %v4918_v35  ;;  %v4701_v2 = vor.u32 %v4699_v49, %v4698_v37  ;;  %v4703_v16 = vrot.slane %v4698_v37, 4  ;;  %v4744_v39 = vor.u32 %v4742_v57, %v4741_v28  ;;  %v9321_v38 = vpack.c.bf16 %v4416_v26, %v4416_v26 }
 0x294   : >> { %v4724_v19 = vrot.slane %v4722_v20, 7  ;;  %v4414_v46 = vmax.f32 %v4362_v60, 0.0  ;;  %v4383_v61 = vadd.f32 %v9853_v22, %v4222_v50  ;;  %v4214_v40 = vadd.f32 %v12407_v13, %v13981_v29  ;;  %v4941_v60 = vld [vmem:[#allocation2 + $0xc0] sm:$0xf] }
 0x295   : >> { %v4702_v9 = vsel %vm10720_vm8, %v4694_v55, %v4701_v2  ;;  %v4911_v15 = vsel %vm10590_vm3, %v4703_v16, %v4910_v8  ;;  %v4928_v6 = vsel %vm10714_vm7, %v4744_v39, %v4927_v12  ;;  %v4745_v3 = vrot.slane %v4741_v28, 4  ;;  %v4934_v39 = vld [vmem:[#allocation2 + $0xb4] sm:$0xf] }
 0x296   : >> { %4909 = vst.msk [vmem:[#allocation2 + $0x88] sm:$0xf] %vm170_vm0, %v4702_v9  ;;  %4912 = vst [vmem:[#allocation2 + $0x8c] sm:$0x1] %v4911_v15  ;;  %v4727_v54 = vor.u32 %v4725_v1, %v4724_v19  ;;  %v4728_v0 = vrot.slane %v4724_v19, 4  ;;  %v4747_v18 = vshrl.u32 %v9321_v38, 16  ;;  %v9319_v52 = vpack.c.bf16 %v4414_v46, %v4414_v46 }
 0x297   : >> { %4929 = vst [vmem:[#allocation2 + $0xa8] sm:$0xf] %v4928_v6  ;;  %v4419_v53 = vmax.f32 %v4383_v61, 0.0  ;;  %v4375_v5 = vadd.f32 %v4374_v17, %v4214_v40  ;;  %v9550_v22 = vadd.f32 %v9549_v14, %v9548_v21  ;;  %v4750_v11 = vshll.u32 %v9321_v38, 16  ;;  %v4938_v9 = vld [vmem:[#allocation2 + $0xbc] sm:$0x1] }
 0x298   : >> { %v4921_v56 = vsel %vm10714_vm7, %v4727_v54, %v4920_v36  ;;  %v4749_v25 = vrot.slane %v4747_v18, 7  ;;  %v4217_v13 = vadd.f32 %v12417_v59, %v13982_v58  ;;  %v4730_v63 = vshrl.u32 %v9319_v52, 16  ;;  %v4945_v6 = vld [vmem:[#allocation2 + $0xc8] sm:$0x1]  ;;  %v5562_v58 = vld [vmem:[#allocation2 + $0xc] sm:$0xf] (%p859_p11) }
 0x299   : >> { %4922 = vst [vmem:[#allocation2 + $0x9c] sm:$0xf] %v4921_v56  ;;  %v4733_v51 = vshll.u32 %v9319_v52, 16  ;;  %v9324_v45 = vpack.c.bf16 %v4419_v53, %v4419_v53  ;;  %v4417_v47 = vmax.f32 %v4375_v5, 0.0  ;;  %v4225_v30 = vadd.f32 %v9550_v22, %v12165_v48 }
 0x29a   : >> { %v4752_v10 = vor.u32 %v4750_v11, %v4749_v25  ;;  %v4754_v43 = vrot.slane %v4749_v25, 4  ;;  %v4378_v33 = vadd.f32 %v4377_v7, %v4217_v13  ;;  %v4732_v49 = vrot.slane %v4730_v63, 7  ;;  %v10219_v7 = vld [vmem:[%s13857_s1 + $0x4f8] sm:$0xff] (%p859_p11)   ;;  %v12472_v13 = vld [vmem:[#allocation2 + $0x10] sm:$0xf] (%p859_p11) }
 0x29b   : >> { %v4773_v62 = vshrl.u32 %v9324_v45, 16  ;;  %v4776_v57 = vshll.u32 %v9324_v45, 16  ;;  %v9322_v17 = vpack.c.bf16 %v4417_v47, %v4417_v47  ;;  %v4386_v31 = vadd.f32 %v9854_v42, %v4225_v30  ;;  %v4972_v45 = vld [vmem:[#allocation2 + $0x90] sm:$0xf] (%p859_p11)  ;;  %v4973_v47 = vld [vmem:[#allocation2 + $0x94] sm:$0xf] (%p859_p11)  ;;  %9911 = vmatprep.subr.bf16.mxu1 (%p859_p11), %v10219_v7  ;;  %9571 = vmatprep.subr.bf16.mxu0 (%p859_p11), %v10219_v7 }
 0x29c   : >> { %v4753_v23 = vsel %vm10720_vm8, %v4745_v3, %v4752_v10  ;;  %v4932_v59 = vsel %vm10590_vm3, %v4754_v43, %v4931_v41  ;;  %v4418_v26 = vmax.f32 %v4378_v33, 0.0  ;;  %v4735_v21 = vor.u32 %v4733_v51, %v4732_v49  ;;  %v4992_v32 = vld [vmem:[#allocation2 + $0x98] sm:$0x1] (%p859_p11) }
 0x29d   : >> { %4930 = vst.msk [vmem:[#allocation2 + $0xac] sm:$0xf] %vm170_vm0, %v4753_v23  ;;  %4933 = vst [vmem:[#allocation2 + $0xb0] sm:$0x1] %v4932_v59  ;;  %v4737_v37 = vrot.slane %v4732_v49, 4  ;;  %v4775_v48 = vrot.slane %v4773_v62, 7  ;;  %v9033_v41 = vcombine.low (%p859_p11), %v5562_v58, %v12472_v13 }
 0x29e   : >> { %v4756_v28 = vshrl.u32 %v9322_v17, 16  ;;  %v4420_v27 = vmax.f32 %v4386_v31, 0.0  ;;  %v9323_v50 = vpack.c.bf16 %v4418_v26, %v4418_v26  ;;  %v4736_v55 = vsel %vm10720_vm8, %v4728_v0, %v4735_v21 }
 0x29f   : >> { %v4925_v44 = vsel %vm10590_vm3, %v4737_v37, %v4924_v4  ;;  %v4778_v35 = vor.u32 %v4776_v57, %v4775_v48  ;;  %4923 = vst.msk [vmem:[#allocation2 + $0xa0] sm:$0xf] %vm170_vm0, %v4736_v55  ;;  %v4759_v12 = vshll.u32 %v9322_v17, 16  ;;  %v4779_v40 = vrot.slane %v4775_v48, 4  ;;  %7035 = vrot.lane.b32.xlu1 (%p859_p11), %v9033_v41, %s10506_s26  ;;  %v4948_v57 = vld [vmem:[#allocation2] sm:$0xf] (%p859_p11) }
 0x2a0   : >> { %4926 = vst [vmem:[#allocation2 + $0xa4] sm:$0x1] %v4925_v44  ;;  %v4758_v8 = vrot.slane %v4756_v28, 7  ;;  %v9325_v20 = vpack.c.bf16 %v4420_v27, %v4420_v27  ;;  %v4764_v2 = vshrl.u32 %v9323_v50, 16  ;;  %v4767_v38 = vshll.u32 %v9323_v50, 16 }
 0x2a1   : >> { %v4942_v16 = vsel %vm10714_vm7, %v4778_v35, %v4941_v60  ;;  %v5586_v5 = vld [vmem:[#allocation2 + $0x9c] sm:$0xf] (%p859_p11)  ;;  %v5611_v63 = vshrl.u32 (%p859_p11), %v5562_v58, 16  ;;  %v5614_v51 = vshll.u32 (%p859_p11), %v5562_v58, 16  ;;  %v5288_v10 = vshrl.u32 (%p859_p11), %v4972_v45, 16 }
 0x2a2   : >> { %4943 = vst [vmem:[#allocation2 + $0xc0] sm:$0xf] %v4942_v16  ;;  %v4761_v1 = vor.u32 %v4759_v12, %v4758_v8  ;;  %v4781_v42 = vshrl.u32 %v9325_v20, 16  ;;  %v4766_v19 = vrot.slane %v4764_v2, 7  ;;  %v4784_v14 = vshll.u32 %v9325_v20, 16  ;;  %v10220_v35 = vld [vmem:[%s13857_s1 + $0x4b8] sm:$0xff] (%p859_p11)  }
 0x2a3   : >> { %v4762_v15 = vrot.slane %v4758_v8, 4  ;;  %v5899_v25 = vshrl.u32 (%p859_p11), %v5586_v5, 16  ;;  %v5902_v11 = vshll.u32 (%p859_p11), %v5586_v5, 16  ;;  %v5291_v43 = vshll.u32 (%p859_p11), %v4972_v45, 16  ;;  %v4949_v4 = vld [vmem:[#allocation2 + $0x4] sm:$0xf] (%p859_p11)  ;;  %9919 = vmatpush3.bf16.msra.mxu1 (%p859_p11), %v10220_v35  ;;  %9572 = vmatpush3.bf16.msra.mxu0 (%p859_p11), %v10220_v35 }
 0x2a4   : >> { %v4935_v46 = vsel %vm10714_vm7, %v4761_v1, %v4934_v39  ;;  %v4783_v61 = vrot.slane %v4781_v42, 7  ;;  %v4769_v36 = vor.u32 %v4767_v38, %v4766_v19  ;;  %v4771_v29 = vrot.slane %v4766_v19, 4  ;;  %v4980_v37 = vld [vmem:[#allocation2 + $0x8] sm:$0x1] (%p859_p11)  ;;  %v12490_v16 = vld [vmem:[#allocation2 + $0xac] sm:$0xf] (%p859_p11) }
 0x2a5   : >> { %4936 = vst [vmem:[#allocation2 + $0xb4] sm:$0xf] %v4935_v46  ;;  %861 = sbr.rel (!%p859_p11) target bundleno = 121 (0x79), region = 82  ;;  %v12476_v24 = vrot.slane (%p859_p11), %v5899_v25, 4  ;;  %v12478_v34 = vrot.slane (%p859_p11), %v5902_v11, 5  ;;  %v12481_v30 = vrot.slane (%p859_p11), %v5611_v63, 4 }
 0x2a6   : >> { %v4786_v3 = vor.u32 %v4784_v14, %v4783_v61  ;;  %v4788_v54 = vrot.slane %v4783_v61, 4  ;;  %v4770_v0 = vsel %vm10720_vm8, %v4762_v15, %v4769_v36  ;;  %v4939_v18 = vsel %vm10590_vm3, %v4771_v29, %v4938_v9  ;;  %v5587_v22 = vld [vmem:[#allocation2 + $0xa0] sm:$0xf] (%p859_p11)  ;;  %v12485_v44 = vld [vmem:[#allocation2 + $0xa8] sm:$0xf] (%p859_p11)  ;;  %v10221_v39 = vld [vmem:[%s13857_s1 + $0x4f0] sm:$0xff] (%p859_p11)  }
 0x2a7   : >> { %4937 = vst.msk [vmem:[#allocation2 + $0xb8] sm:$0xf] %vm170_vm0, %v4770_v0  ;;  %4940 = vst [vmem:[#allocation2 + $0xbc] sm:$0x1] %v4939_v18  ;;  %v9045_v56 = vcombine.low (%p859_p11), %v5586_v5, %v5587_v22  ;;  %v12483_v33 = vrot.slane (%p859_p11), %v5614_v51, 5  ;;  %v5297_v49 = vshll.u32 (%p859_p11), %v4973_v47, 16  ;;  %v9046_v19 = vcombine.low (%p859_p11), %v12485_v44, %v12490_v16  ;;  %9912 = vmatprep.subr.bf16.mxu1 (%p859_p11), %v10221_v39 }
 0x2a8   : >> { %v4787_v52 = vsel %vm10720_vm8, %v4779_v40, %v4786_v3  ;;  %v4946_v53 = vsel %vm10590_vm3, %v4788_v54, %v4945_v6  ;;  %v5301_v62 = vshrl.u32 (%p859_p11), %v4973_v47, 16  ;;  %v5290_v17 = vrot.slane (%p859_p11), %v5288_v10, 4  ;;  %v4974_v38 = vld [vmem:[#allocation2 + $0x9c] sm:$0xf] (%p859_p11)  ;;  %v4975_v46 = vld [vmem:[#allocation2 + $0xa0] sm:$0xf] (%p859_p11)  ;;  %9573 = vmatprep.subr.bf16.mxu0 (%p859_p11), %v10221_v39 }
 0x2a9   : >> { %4944 = vst.msk [vmem:[#allocation2 + $0xc4] sm:$0xf] %vm170_vm0, %v4787_v52  ;;  %4947 = vst [vmem:[#allocation2 + $0xc8] sm:$0x1] %v4946_v53  ;;  %7059 = vrot.lane.b32.xlu0 (%p859_p11), %v9045_v56, %s10506_s26  ;;  %v5293_v23 = vrot.slane (%p859_p11), %v5291_v43, 5  ;;  %v5307_v59 = vshll.u32 (%p859_p11), %v4992_v32, 16 }
 0x2aa   : > { %v5000_v31 = vshrl.u32 %v4948_v57, 16  ;;  %v5299_v26 = vrot.slane %v5297_v49, 5  ;;  %v5303_v21 = vrot.slane %v5301_v62, 4  ;;  %v5003_v48 = vshll.u32 %v4948_v57, 16  ;;  %v4993_v15 = vld [vmem:[#allocation2 + $0xa4] sm:$0x1] }
 0x2ab   : > { %v5009_v28 = vshll.u32 %v4949_v4, 16  ;;  %v5294_v60 = vor.u32 %v5293_v23, %v5290_v17  ;;  %v5309_v27 = vrot.slane %v5307_v59, 5  ;;  %v5013_v55 = vshrl.u32 %v4949_v4, 16  ;;  %v10222_v36 = vld [vmem:[%s13857_s1 + $0x4b0] sm:$0xff]   ;;  %v12502_v18 = vld [vmem:[#allocation2 + $0x18] sm:$0xf] }
 0x2ac   : > { %v5002_v50 = vrot.slane %v5000_v31, 4  ;;  %v5304_v8 = vor.u32 %v5303_v21, %v5299_v26  ;;  %v5005_v12 = vrot.slane %v5003_v48, 5  ;;  %v5019_v2 = vshll.u32 %v4980_v37, 16  ;;  %v12504_v52 = vld [vmem:[#allocation2 + $0x1c] sm:$0xf]  ;;  %v10224_v25 = vld [vmem:[%s13857_s1 + $0x4e8] sm:$0xff]   ;;  %9920 = vmatpush3.bf16.msra.mxu1 %v10222_v36  ;;  %9574 = vmatpush3.bf16.msra.mxu0 %v10222_v36 }
 0x2ad   : > { %v5011_v20 = vrot.slane %v5009_v28, 5  ;;  %v5295_v1 = vrot.slane %v5294_v60, 4  ;;  %v5015_v42 = vrot.slane %v5013_v55, 4  ;;  %v5312_v6 = vshrl.u32 %v4974_v38, 16  ;;  %v4950_v56 = vld [vmem:[#allocation2 + $0xc] sm:$0xf]  ;;  %9913 = vmatprep.subr.bf16.mxu1 %v10224_v25  ;;  %9575 = vmatprep.subr.bf16.mxu0 %v10224_v25 }
 0x2ae   : > { %v5305_v61 = vrot.slane %v5304_v8, 4  ;;  %v5006_v14 = vor.u32 %v5005_v12, %v5002_v50  ;;  %v5021_v9 = vrot.slane %v5019_v2, 5  ;;  %v5315_v54 = vshll.u32 %v4974_v38, 16  ;;  %v4951_v51 = vld [vmem:[#allocation2 + $0x10] sm:$0xf]  ;;  %v10225_v45 = vld [vmem:[%s13857_s1 + $0x4a8] sm:$0xff]  }
 0x2af   : > { %v5300_v40 = vsel %vm10997_vm11, %v5295_v1, %v5299_v26  ;;  %v5016_v3 = vor.u32 %v5015_v42, %v5011_v20  ;;  %v5321_v0 = vshll.u32 %v4975_v46, 16  ;;  %v5314_v22 = vrot.slane %v5312_v6, 4  ;;  %v4981_v49 = vld [vmem:[#allocation2 + $0x14] sm:$0x1]  ;;  %v12523_v4 = vld [vmem:[#allocation2 + $0xb8] sm:$0xf] }
 0x2b0   : > { %v5310_v53 = vsel %vm10997_vm11, %v5305_v61, %v5309_v27  ;;  %v5007_v5 = vrot.slane %v5006_v14, 4  ;;  %v5325_v7 = vshrl.u32 %v4975_v46, 16  ;;  %v5317_v41 = vrot.slane %v5315_v54, 5  ;;  %v12521_v59 = vld [vmem:[#allocation2 + $0xb4] sm:$0xf]  ;;  %9921 = vmatpush3.bf16.msra.mxu1 %v10225_v45  ;;  %9576 = vmatpush3.bf16.msra.mxu0 %v10225_v45  ;;  %v10226_v39 = vld [vmem:[%s13857_s1 + $0x4e0] sm:$0xff]  }
 0x2b1   : > { %v9013_v11 = vcombine.low %v5300_v40, %v5310_v53  ;;  %v5017_v58 = vrot.slane %v5016_v3, 4  ;;  %v5323_v63 = vrot.slane %v5321_v0, 5  ;;  %v5331_v10 = vshll.u32 %v4993_v15, 16  ;;  %v4976_v48 = vld [vmem:[#allocation2 + $0xa8] sm:$0xf]  ;;  %9914 = vmatprep.subr.bf16.mxu1 %v10226_v39  ;;  %9577 = vmatprep.subr.bf16.mxu0 %v10226_v39  ;;  %v10227_v44 = vld [vmem:[%s13857_s1 + $0x4a0] sm:$0xff]  }
 0x2b2   : > { %v5012_v47 = vsel %vm10997_vm11, %v5007_v5, %v5011_v20  ;;  %v5327_v32 = vrot.slane %v5325_v7, 4  ;;  %v9034_v43 = vcombine.low %v12502_v18, %v12504_v52  ;;  %v5318_v57 = vor.u32 %v5317_v41, %v5314_v22  ;;  %v4977_v55 = vld [vmem:[#allocation2 + $0xac] sm:$0xf]  ;;  %v4994_v2 = vld [vmem:[#allocation2 + $0xb0] sm:$0x1] }
 0x2b3   : > { %6915 = vrot.lane.b32.xlu0 %v9013_v11, %s10506_s26  ;;  %v5022_v62 = vsel %vm10997_vm11, %v5017_v58, %v5021_v9  ;;  %v5024_v17 = vshrl.u32 %v4950_v56, 16  ;;  %v5027_v23 = vshll.u32 %v4950_v56, 16  ;;  %v5333_v21 = vrot.slane %v5331_v10, 5  ;;  %v12537_v61 = vld [vmem:[#allocation2 + $0x24] sm:$0xf]  ;;  %v10228_v10 = vld [vmem:[%s13857_s1 + $0x4d8] sm:$0xff]  }
 0x2b4   : > { %v9001_v31 = vcombine.low %v5012_v47, %v5022_v62  ;;  %v5328_v26 = vor.u32 %v5327_v32, %v5323_v63  ;;  %v5033_v37 = vshll.u32 %v4951_v51, 16  ;;  %v5319_v28 = vrot.slane %v5318_v57, 4  ;;  %v12539_v14 = vld [vmem:[#allocation2 + $0x28] sm:$0xf]  ;;  %v4952_v40 = vld [vmem:[#allocation2 + $0x18] sm:$0xf]  ;;  %9922 = vmatpush3.bf16.msra.mxu1 %v10227_v44  ;;  %9578 = vmatpush3.bf16.msra.mxu0 %v10227_v44 }
 0x2b5   : > { %v5026_v60 = vrot.slane %v5024_v17, 4  ;;  %v5029_v27 = vrot.slane %v5027_v23, 5  ;;  %v5037_v50 = vshrl.u32 %v4951_v51, 16  ;;  %v5043_v12 = vshll.u32 %v4981_v49, 16  ;;  %v4953_v22 = vld [vmem:[#allocation2 + $0x1c] sm:$0xf]  ;;  %9915 = vmatprep.subr.bf16.mxu1 %v10228_v10  ;;  %9579 = vmatprep.subr.bf16.mxu0 %v10228_v10 }
 0x2b6   : > { %6891 = vrot.lane.b32.xlu1 %v9001_v31, %s10506_s26  ;;  %v5329_v35 = vrot.slane %v5328_v26, 4  ;;  %v5035_v8 = vrot.slane %v5033_v37, 5  ;;  %v9047_v20 = vcombine.low %v12521_v59, %v12523_v4  ;;  %v5324_v1 = vsel %vm10997_vm11, %v5319_v28, %v5323_v63  ;;  %v4982_v11 = vld [vmem:[#allocation2 + $0x20] sm:$0x1]  ;;  %v12556_v32 = vld [vmem:[#allocation2 + $0xc4] sm:$0xf] }
 0x2b7   : > { %7061 = vrot.lane.b32.xlu0 %v9046_v19, %s10506_s26  ;;  %v5030_v42 = vor.u32 %v5029_v27, %v5026_v60  ;;  %v5039_v38 = vrot.slane %v5037_v50, 4  ;;  %v5336_v46 = vshrl.u32 %v4976_v48, 16  ;;  %v5045_v15 = vrot.slane %v5043_v12, 5  ;;  %v12554_v41 = vld [vmem:[#allocation2 + $0xc0] sm:$0xf]  ;;  %v10229_v23 = vld [vmem:[%s13857_s1 + $0x498] sm:$0xff]  }
 0x2b8   : > { %v5334_v9 = vsel %vm10997_vm11, %v5329_v35, %v5333_v21  ;;  %v5339_v6 = vshll.u32 %v4976_v48, 16  ;;  %v5345_v36 = vshll.u32 %v4977_v55, 16  ;;  %v5349_v53 = vshrl.u32 %v4977_v55, 16  ;;  %v4978_v17 = vld [vmem:[#allocation2 + $0xb4] sm:$0xf]  ;;  %9923 = vmatpush3.bf16.msra.mxu1 %v10229_v23  ;;  %9580 = vmatpush3.bf16.msra.mxu0 %v10229_v23 }
 0x2b9   : > { %v9014_v16 = vcombine.low %v5324_v1, %v5334_v9  ;;  %v5031_v19 = vrot.slane %v5030_v42, 4  ;;  %v5040_v3 = vor.u32 %v5039_v38, %v5035_v8  ;;  %v5338_v54 = vrot.slane %v5336_v46, 4  ;;  %v4979_v21 = vld [vmem:[#allocation2 + $0xb8] sm:$0xf]  ;;  %v10230_v27 = vld [vmem:[%s13857_s1 + $0x4d0] sm:$0xff]  }
 0x2ba   : > { %v5341_v0 = vrot.slane %v5339_v6, 5  ;;  %v12546_v18 = vrot.slane %v5345_v36, 5  ;;  %v5355_v5 = vshll.u32 %v4994_v2, 16  ;;  %v9035_v25 = vcombine.low %v12537_v61, %v12539_v14  ;;  %v12579_v38 = vld [vmem:[#allocation2 + $0x34] sm:$0xf]  ;;  %9916 = vmatprep.subr.bf16.mxu1 %v10230_v27  ;;  %9581 = vmatprep.subr.bf16.mxu0 %v10230_v27 }
 0x2bb   : > { %6917 = vrot.lane.b32.xlu1 %v9014_v16, %s10506_s26  ;;  %7037 = vrot.lane.b32.xlu0 %v9034_v43, %s10506_s26  ;;  %v5036_v7 = vsel %vm10997_vm11, %v5031_v19, %v5035_v8  ;;  %v5041_v56 = vrot.slane %v5040_v3, 4  ;;  %v5048_v58 = vshrl.u32 %v4952_v40, 16  ;;  %v5351_v51 = vrot.slane %v5349_v53, 4  ;;  %v4995_v8 = vld [vmem:[#allocation2 + $0xbc] sm:$0x1]  ;;  %v10231_v46 = vld [vmem:[%s13857_s1 + $0x490] sm:$0xff]  }
 0x2bc   : > { %v5342_v63 = vor.u32 %v5341_v0, %v5338_v54  ;;  %v5357_v45 = vrot.slane %v5355_v5, 5  ;;  %v5051_v47 = vshll.u32 %v4952_v40, 16  ;;  %v5057_v62 = vshll.u32 %v4953_v22, 16  ;;  %v4954_v36 = vld [vmem:[#allocation2 + $0x24] sm:$0xf]  ;;  %v10232_v40 = vld [vmem:[%s13857_s1 + $0x4c8] sm:$0xff]   ;;  %9924 = vmatpush3.bf16.msra.mxu1 %v10231_v46  ;;  %9582 = vmatpush3.bf16.msra.mxu0 %v10231_v46 }
 0x2bd   : > { %v5046_v43 = vsel %vm10997_vm11, %v5041_v56, %v5045_v15  ;;  %v5050_v49 = vrot.slane %v5048_v58, 4  ;;  %v5061_v57 = vshrl.u32 %v4953_v22, 16  ;;  %v5352_v31 = vor.u32 %v5351_v51, %v12546_v18  ;;  %v4955_v54 = vld [vmem:[#allocation2 + $0x28] sm:$0xf]  ;;  %9917 = vmatprep.subr.bf16.mxu1 %v10232_v40  ;;  %9583 = vmatprep.subr.bf16.mxu0 %v10232_v40 }
 0x2be   : > { %v9002_v59 = vcombine.low %v5036_v7, %v5046_v43  ;;  %v5343_v4 = vrot.slane %v5342_v63, 4  ;;  %v5053_v26 = vrot.slane %v5051_v47, 5  ;;  %v5059_v37 = vrot.slane %v5057_v62, 5  ;;  %v10233_v0 = vld [vmem:[%s13857_s1 + $0x488] sm:$0xff]   ;;  %v6172_v62 = vld [vmem:[#allocation2 + $0x1c] sm:$0xf] }
 0x2bf   : > { %7063 = vrot.lane.b32.xlu0 %v9047_v20, %s10506_s26  ;;  %v5063_v48 = vrot.slane %v5061_v57, 4  ;;  %v5067_v28 = vshll.u32 %v4982_v11, 16  ;;  %v9048_v60 = vcombine.low %v12554_v41, %v12556_v32  ;;  %v5353_v55 = vrot.slane %v5352_v31, 4  ;;  %v12577_v20 = vld [vmem:[#allocation2 + $0x30] sm:$0xf] }
 0x2c0   : > { %6893 = vrot.lane.b32.xlu1 %v9002_v59, %s10506_s26  ;;  %v5348_v50 = vsel %vm10997_vm11, %v5343_v4, %v12546_v18  ;;  %v5054_v35 = vor.u32 %v5053_v26, %v5050_v49  ;;  %v5360_v12 = vshrl.u32 %v4978_v17, 16  ;;  %v5363_v1 = vshll.u32 %v4978_v17, 16  ;;  %v6171_v41 = vld [vmem:[#allocation2 + $0x18] sm:$0xf]  ;;  %9925 = vmatpush3.bf16.msra.mxu1 %v10233_v0 }
 0x2c1   : > { %v5064_v2 = vor.u32 %v5063_v48, %v5059_v37  ;;  %v5069_v39 = vrot.slane %v5067_v28, 5  ;;  %v5369_v42 = vshll.u32 %v4979_v21, 16  ;;  %v5358_v61 = vsel %vm10997_vm11, %v5353_v55, %v5357_v45  ;;  %9584 = vmatpush3.bf16.msra.mxu0 %v10233_v0  ;;  %v5994_v48 = vld [vmem:[#allocation2 + $0xc] sm:$0xe]  ;;  %v5594_v55 = vld [vmem:[#allocation2 + $0x14] sm:$0x1] }
 0x2c2   : > { %v5055_v9 = vrot.slane %v5054_v35, 4  ;;  %v5362_v15 = vrot.slane %v5360_v12, 4  ;;  %v5373_v6 = vshrl.u32 %v4979_v21, 16  ;;  %v9015_v44 = vcombine.low %v5348_v50, %v5358_v61  ;;  %v6203_v21 = vld [vmem:[#allocation2 + $0x20] sm:$0x1] }
 0x2c3   : > { %7039 = vrot.lane.b32.xlu0 %v9035_v25, %s10506_s26  ;;  %v5065_v16 = vrot.slane %v5064_v2, 4  ;;  %v5365_v19 = vrot.slane %v5363_v1, 5  ;;  %v5371_v3 = vrot.slane %v5369_v42, 5  ;;  %v5379_v5 = vshll.u32 %v4995_v8, 16  ;;  %v4983_v25 = vld [vmem:[#allocation2 + $0x2c] sm:$0x1] }
 0x2c4   : > { %v5060_v18 = vsel %vm10997_vm11, %v5055_v9, %v5059_v37  ;;  %v5375_v53 = vrot.slane %v5373_v6, 4  ;;  %v9036_v22 = vcombine.low %v12577_v20, %v12579_v38  ;;  %6919 = vrot.lane.b32.xlu1 %v9015_v44, %s10506_s26  ;;  %v5072_v11 = vshrl.u32 %v4954_v36, 16  ;;  %v10234_v35 = vld [vmem:[%s13857_s1 + $0x4c0] sm:$0xff]   ;;  %v4956_v44 = vld [vmem:[#allocation2 + $0x30] sm:$0xf] }
 0x2c5   : > { %v5070_v7 = vsel %vm10997_vm11, %v5065_v16, %v5069_v39  ;;  %v5366_v56 = vor.u32 %v5365_v19, %v5362_v15  ;;  %v5075_v58 = vshll.u32 %v4954_v36, 16  ;;  %v5381_v45 = vrot.slane %v5379_v5, 5  ;;  %v12610_v39 = vld [vmem:[#allocation2 + $0x3c] sm:$0xf]  ;;  %v12612_v1 = vld [vmem:[#allocation2 + $0x40] sm:$0xf]  ;;  %9918 = vmatprep.subr.bf16.mxu1 %v10234_v35  ;;  %9585 = vmatprep.subr.bf16.mxu0 %v10234_v35 }
 0x2c6   : > { %v9003_v63 = vcombine.low %v5060_v18, %v5070_v7  ;;  %v5376_v51 = vor.u32 %v5375_v53, %v5371_v3  ;;  %v5081_v47 = vshll.u32 %v4955_v54, 16  ;;  %v5074_v10 = vrot.slane %v5072_v11, 4  ;;  %v4957_v0 = vld [vmem:[#allocation2 + $0x34] sm:$0xf]  ;;  %v10235_v18 = vld [vmem:[%s13857_s1 + $0x480] sm:$0xff]  }
 0x2c7   : > { %7065 = vrot.lane.b32.xlu0 %v9048_v60, %s10506_s26  ;;  %v5367_v32 = vrot.slane %v5366_v56, 4  ;;  %v5077_v43 = vrot.slane %v5075_v58, 5  ;;  %v5085_v49 = vshrl.u32 %v4955_v54, 16  ;;  %v5091_v23 = vshll.u32 %v4983_v25, 16  ;;  %v4984_v11 = vld [vmem:[#allocation2 + $0x38] sm:$0x1]  ;;  %9926 = vmatpush3.bf16.msra.mxu1 %v10235_v18 }
 0x2c8   : > { %v5377_v57 = vrot.slane %v5376_v51, 4  ;;  %v5083_v17 = vrot.slane %v5081_v47, 5  ;;  %v6220_v59 = vshrl.u32 %v6171_v41, 16  ;;  %6895 = vrot.lane.b32.xlu1 %v9003_v63, %s10506_s26  ;;  %v6223_v37 = vshll.u32 %v6171_v41, 16  ;;  %v6173_v63 = vld [vmem:[#allocation2 + $0x24] sm:$0xf]  ;;  %9586 = vmatpush3.bf16.msra.mxu0 %v10235_v18 }
 0x2c9   : > { %v5372_v4 = vsel %vm10997_vm11, %v5367_v32, %v5371_v3  ;;  %v5078_v31 = vor.u32 %v5077_v43, %v5074_v10  ;;  %v5087_v26 = vrot.slane %v5085_v49, 4  ;;  %v5093_v60 = vrot.slane %v5091_v23, 5  ;;  %v12631_v10 = vld [vmem:[#allocation2 + $0x28] sm:$0xf]  ;;  %v5995_v35 = vld [vmem:[#allocation2 + $0x18] sm:$0xe] }
 0x2ca   : > { %v5382_v28 = vsel %vm10997_vm11, %v5377_v57, %v5381_v45  ;;  %v6222_v27 = vrot.slane %v6220_v59, 4  ;;  %v6229_v50 = vshll.u32 %v6172_v62, 16  ;;  %v6225_v2 = vrot.slane %v6223_v37, 5  ;;  %v6204_v37 = vld [vmem:[#allocation2 + $0x2c] sm:$0x1] }
 0x2cb   : > { %v9016_v8 = vcombine.low %v5372_v4, %v5382_v28  ;;  %7041 = vrot.lane.b32.xlu0 %v9036_v22, %s10506_s26  ;;  %v5079_v12 = vrot.slane %v5078_v31, 4  ;;  %v5088_v20 = vor.u32 %v5087_v26, %v5083_v17  ;;  %v6233_v46 = vshrl.u32 %v6172_v62, 16 }
 0x2cc   : > { %v6231_v42 = vrot.slane %v6229_v50, 5  ;;  %v6239_v61 = vshll.u32 %v6203_v21, 16  ;;  %v8953_v9 = vrot.slane %v5994_v48, 9  ;;  %v6226_v36 = vor.u32 %v6225_v2, %v6222_v27 }
 0x2cd   : > { %6921 = vrot.lane.b32.xlu1 %v9016_v8, %s10506_s26  ;;  %v5084_v15 = vsel %vm10997_vm11, %v5079_v12, %v5083_v17  ;;  %v5089_v6 = vrot.slane %v5088_v20, 4  ;;  %v6060_v40 = vrot.slane %v12472_v13, 5  ;;  %v6235_v16 = vrot.slane %v6233_v46, 4  ;;  %v10238_v17 = vld [vmem:[%s13857_s1 + $0x578] sm:$0xff]  }
 0x2ce   : > { %v6241_v19 = vrot.slane %v6239_v61, 5  ;;  %v6063_v3 = vrot.slane %v5594_v55, 5  ;;  %v9037_v54 = vcombine.low %v12610_v39, %v12612_v1  ;;  %v6227_v5 = vrot.slane %v6226_v36, 4  ;;  %9683 = vmatprep.subr.bf16.mxu1 %v10238_v17 }
 0x2cf   : > { %v5094_v53 = vsel %vm10997_vm11, %v5089_v6, %v5093_v60  ;;  %v6061_v7 = vsel %vm11084_vm14, %v8953_v9, %v6060_v40  ;;  %v6062_v13 = vrot.slane %v6060_v40, 4  ;;  %v6236_v25 = vor.u32 %v6235_v16, %v6231_v42  ;;  %v12646_v16 = vld [vmem:[#allocation2 + $0x48] sm:$0xf] }
 0x2d0   : > { %v9004_v56 = vcombine.low %v5084_v15, %v5094_v53  ;;  %v5096_v58 = vshrl.u32 %v4956_v44, 16  ;;  %v5099_v41 = vshll.u32 %v4956_v44, 16  ;;  %v6232_v51 = vsel %vm10997_vm11, %v6227_v5, %v6231_v42  ;;  %v5595_v15 = vld [vmem:[#allocation2 + $0x20] sm:$0x1]  ;;  %v4958_v5 = vld [vmem:[#allocation2 + $0x3c] sm:$0xf] }
 0x2d1   : > { %v6064_v45 = vsel %vm11084_vm14, %v6062_v13, %v6063_v3  ;;  %v5105_v47 = vshll.u32 %v4957_v0, 16  ;;  %v5109_v32 = vshrl.u32 %v4957_v0, 16  ;;  %v6237_v43 = vrot.slane %v6236_v25, 4 }
 0x2d2   : > { %6897 = vrot.lane.b32.xlu1 %v9004_v56, %s10506_s26  ;;  %v9065_v49 = vcombine.low %v6061_v7, %v6064_v45  ;;  %v5098_v62 = vrot.slane %v5096_v58, 4  ;;  %v5101_v57 = vrot.slane %v5099_v41, 5  ;;  %v5115_v4 = vshll.u32 %v4984_v11, 16  ;;  %v4959_v11 = vld [vmem:[#allocation2 + $0x40] sm:$0xf]  ;;  %v10240_v45 = vld [vmem:[%s13857_s1 + $0x598] sm:$0xff]  }
 0x2d3   : > { %v5107_v23 = vrot.slane %v5105_v47, 5  ;;  %v5111_v59 = vrot.slane %v5109_v32, 4  ;;  %v6244_v31 = vshrl.u32 %v6173_v63, 16  ;;  %v6242_v26 = vsel %vm10997_vm11, %v6237_v43, %v6241_v19  ;;  %v12648_v19 = vld [vmem:[#allocation2 + $0x4c] sm:$0xf]  ;;  %9855 = vmatprep.subr.bf16.mxu0 %v10240_v45 }
 0x2d4   : > { %v5102_v21 = vor.u32 %v5101_v57, %v5098_v62  ;;  %v6247_v48 = vshll.u32 %v6173_v63, 16  ;;  %v6253_v28 = vshll.u32 %v12631_v10, 16  ;;  %v9097_v60 = vcombine.low %v6232_v51, %v6242_v26  ;;  %v4985_v58 = vld [vmem:[#allocation2 + $0x44] sm:$0x1]  ;;  %v6175_v43 = vld [vmem:[#allocation2 + $0x30] sm:$0xf] }
 0x2d5   : > { %v5112_v27 = vor.u32 %v5111_v59, %v5107_v23  ;;  %v5117_v50 = vrot.slane %v5115_v4, 5  ;;  %v6246_v55 = vrot.slane %v6244_v31, 4  ;;  %v6257_v2 = vshrl.u32 %v12631_v10, 16 }
 0x2d6   : > { %7163 = vrot.lane.b32.xlu1 %v9065_v49, %s10506_s26  ;;  %v5103_v8 = vrot.slane %v5102_v21, 4  ;;  %v6249_v12 = vrot.slane %v6247_v48, 5  ;;  %v6255_v20 = vrot.slane %v6253_v28, 5  ;;  %7307 = vrot.lane.b32.xlu0 %v9097_v60, %s10506_s26  ;;  %v6263_v46 = vshll.u32 %v6204_v37, 16  ;;  %v6205_v21 = vld [vmem:[#allocation2 + $0x38] sm:$0x1] }
 0x2d7   : > { %v5113_v42 = vrot.slane %v5112_v27, 4  ;;  %v6676_v61 = vrot.slane %v12631_v10, 5  ;;  %v6679_v9 = vrot.slane %v6204_v37, 5  ;;  %v6259_v40 = vrot.slane %v6257_v2, 4  ;;  %v5996_v37 = vld [vmem:[#allocation2 + $0x24] sm:$0xe] }
 0x2d8   : > { %v5108_v6 = vsel %vm10997_vm11, %v5103_v8, %v5107_v23  ;;  %v6250_v36 = vor.u32 %v6249_v12, %v6246_v55  ;;  %v8954_v44 = vrot.slane %v5995_v35, 9  ;;  %v6265_v0 = vrot.slane %v6263_v46, 5  ;;  %v6176_v23 = vld [vmem:[#allocation2 + $0x34] sm:$0xf] }
 0x2d9   : > { %v5118_v3 = vsel %vm10997_vm11, %v5113_v42, %v5117_v50  ;;  %v6678_v18 = vrot.slane %v6676_v61, 4  ;;  %v6067_v53 = vrot.slane %v12504_v52, 5  ;;  %v6260_v56 = vor.u32 %v6259_v40, %v6255_v20  ;;  %v5596_v50 = vld [vmem:[#allocation2 + $0x2c] sm:$0x1] }
 0x2da   : > { %v9005_v7 = vcombine.low %v5108_v6, %v5118_v3  ;;  %v6251_v13 = vrot.slane %v6250_v36, 4  ;;  %v6070_v25 = vrot.slane %v5595_v15, 5  ;;  %7043 = vrot.lane.b32.xlu0 %v9037_v54, %s10506_s26  ;;  %v9038_v51 = vcombine.low %v12646_v16, %v12648_v19  ;;  %v12681_v15 = vld [vmem:[#allocation2 + $0x58] sm:$0xf] }
 0x2db   : > { %v12661_v41 = vsel %vm11084_vm14, %v6678_v18, %v6679_v9  ;;  %v6068_v63 = vsel %vm11084_vm14, %v8954_v44, %v6067_v53  ;;  %v6069_v52 = vrot.slane %v6067_v53, 4  ;;  %v6261_v54 = vrot.slane %v6260_v56, 4  ;;  %v4960_v53 = vld [vmem:[#allocation2 + $0x48] sm:$0xf] }
 0x2dc   : > { %6899 = vrot.lane.b32.xlu1 %v9005_v7, %s10506_s26  ;;  %v6256_v39 = vsel %vm10997_vm11, %v6251_v13, %v6255_v20  ;;  %v5120_v47 = vshrl.u32 %v4958_v5, 16  ;;  %v5123_v32 = vshll.u32 %v4958_v5, 16  ;;  %v5129_v62 = vshll.u32 %v4959_v11, 16  ;;  %v12678_v20 = vld [vmem:[#allocation2 + $0x54] sm:$0xf] }
 0x2dd   : > { %v6071_v49 = vsel %vm11084_vm14, %v6069_v52, %v6070_v25  ;;  %v5133_v57 = vshrl.u32 %v4959_v11, 16  ;;  %v5139_v17 = vshll.u32 %v4985_v58, 16  ;;  %v6266_v59 = vsel %vm10997_vm11, %v6261_v54, %v6265_v0  ;;  %v4961_v25 = vld [vmem:[#allocation2 + $0x4c] sm:$0xf] }
 0x2de   : > { %v9066_v4 = vcombine.low %v6068_v63, %v6071_v49  ;;  %v5122_v31 = vrot.slane %v5120_v47, 4  ;;  %v5125_v26 = vrot.slane %v5123_v32, 5  ;;  %v9098_v48 = vcombine.low %v6256_v39, %v6266_v59  ;;  %v4986_v39 = vld [vmem:[#allocation2 + $0x50] sm:$0x1] }
 0x2df   : > { %v5131_v28 = vrot.slane %v5129_v62, 5  ;;  %v5135_v60 = vrot.slane %v5133_v57, 4  ;;  %v5141_v27 = vrot.slane %v5139_v17, 5  ;;  %v6268_v35 = vshrl.u32 %v6175_v43, 16 }
 0x2e0   : > { %7165 = vrot.lane.b32.xlu1 %v9066_v4, %s10506_s26  ;;  %v5126_v55 = vor.u32 %v5125_v26, %v5122_v31  ;;  %v6271_v8 = vshll.u32 %v6175_v43, 16  ;;  %v6277_v12 = vshll.u32 %v6176_v23, 16  ;;  %7309 = vrot.lane.b32.xlu0 %v9098_v48, %s10506_s26  ;;  %v6281_v42 = vshrl.u32 %v6176_v23, 16  ;;  %v6178_v4 = vld [vmem:[#allocation2 + $0x40] sm:$0xf] }
 0x2e1   : > { %v5136_v2 = vor.u32 %v5135_v60, %v5131_v28  ;;  %v6287_v46 = vshll.u32 %v6205_v21, 16  ;;  %v8955_v9 = vrot.slane %v5996_v37, 9  ;;  %v6270_v36 = vrot.slane %v6268_v35, 4  ;;  %v6206_v48 = vld [vmem:[#allocation2 + $0x44] sm:$0x1] }
 0x2e2   : > { %v5127_v6 = vrot.slane %v5126_v55, 4  ;;  %v6273_v40 = vrot.slane %v6271_v8, 5  ;;  %v6279_v44 = vrot.slane %v6277_v12, 5  ;;  %v6283_v3 = vrot.slane %v6281_v42, 4  ;;  %v5597_v55 = vld [vmem:[#allocation2 + $0x38] sm:$0x1] }
 0x2e3   : > { %v5137_v16 = vrot.slane %v5136_v2, 4  ;;  %v6289_v0 = vrot.slane %v6287_v46, 5  ;;  %v6074_v18 = vrot.slane %v12539_v14, 5  ;;  %v6077_v13 = vrot.slane %v5596_v50, 5  ;;  %v5997_v35 = vld [vmem:[#allocation2 + $0x30] sm:$0xe] }
 0x2e4   : > { %v5132_v5 = vsel %vm10997_vm11, %v5127_v6, %v5131_v28  ;;  %v6274_v7 = vor.u32 %v6273_v40, %v6270_v36  ;;  %v9039_v56 = vcombine.low %v12678_v20, %v12681_v15  ;;  %7045 = vrot.lane.b32.xlu0 %v9038_v51, %s10506_s26  ;;  %v6284_v58 = vor.u32 %v6283_v3, %v6279_v44  ;;  %v6177_v51 = vld [vmem:[#allocation2 + $0x3c] sm:$0xf]  ;;  %v12700_v42 = vld [vmem:[#allocation2 + $0x60] sm:$0xf]  ;;  %v12704_v40 = vld [vmem:[#allocation2 + $0x64] sm:$0xf] }
 0x2e5   : > { %v5142_v11 = vsel %vm10997_vm11, %v5137_v16, %v5141_v27  ;;  %v6075_v63 = vsel %vm11084_vm14, %v8955_v9, %v6074_v18  ;;  %v6076_v14 = vrot.slane %v6074_v18, 4  ;;  %v5144_v54 = vshrl.u32 %v4960_v53, 16 }
 0x2e6   : > { %v9006_v52 = vcombine.low %v5132_v5, %v5142_v11  ;;  %v6275_v45 = vrot.slane %v6274_v7, 4  ;;  %v5147_v47 = vshll.u32 %v4960_v53, 16  ;;  %v6285_v32 = vrot.slane %v6284_v58, 4 }
 0x2e7   : > { %v6078_v43 = vsel %vm11084_vm14, %v6076_v14, %v6077_v13  ;;  %v5153_v49 = vshll.u32 %v4961_v25, 16  ;;  %v5157_v62 = vshrl.u32 %v4961_v25, 16  ;;  %v5146_v23 = vrot.slane %v5144_v54, 4  ;;  %v4962_v13 = vld [vmem:[#allocation2 + $0x54] sm:$0xf] }
 0x2e8   : > { %6901 = vrot.lane.b32.xlu1 %v9006_v52, %s10506_s26  ;;  %v6280_v57 = vsel %vm10997_vm11, %v6275_v45, %v6279_v44  ;;  %v9067_v17 = vcombine.low %v6075_v63, %v6078_v43  ;;  %v5149_v59 = vrot.slane %v5147_v47, 5  ;;  %v6290_v31 = vsel %vm10997_vm11, %v6285_v32, %v6289_v0  ;;  %v4963_v25 = vld [vmem:[#allocation2 + $0x58] sm:$0xf]  ;;  %v4987_v52 = vld [vmem:[#allocation2 + $0x5c] sm:$0x1] }
 0x2e9   : > { %v5155_v26 = vrot.slane %v5153_v49, 5  ;;  %v5159_v21 = vrot.slane %v5157_v62, 4  ;;  %v5163_v37 = vshll.u32 %v4986_v39, 16  ;;  %v9099_v28 = vcombine.low %v6280_v57, %v6290_v31 }
 0x2ea   : > { %v5150_v60 = vor.u32 %v5149_v59, %v5146_v23  ;;  %v6292_v27 = vshrl.u32 %v6177_v51, 16  ;;  %v6295_v50 = vshll.u32 %v6177_v51, 16  ;;  %v6301_v20 = vshll.u32 %v6178_v4, 16  ;;  %v6180_v23 = vld [vmem:[#allocation2 + $0x4c] sm:$0xf] }
 0x2eb   : > { %v5160_v8 = vor.u32 %v5159_v21, %v5155_v26  ;;  %v5165_v12 = vrot.slane %v5163_v37, 5  ;;  %v6305_v2 = vshrl.u32 %v6178_v4, 16  ;;  %7311 = vrot.lane.b32.xlu0 %v9099_v28, %s10506_s26  ;;  %v6311_v36 = vshll.u32 %v6206_v48, 16  ;;  %v6207_v21 = vld [vmem:[#allocation2 + $0x50] sm:$0x1] }
 0x2ec   : > { %7167 = vrot.lane.b32.xlu1 %v9067_v17, %s10506_s26  ;;  %v5151_v46 = vrot.slane %v5150_v60, 4  ;;  %v6294_v9 = vrot.slane %v6292_v27, 4  ;;  %v6297_v6 = vrot.slane %v6295_v50, 5  ;;  %v6303_v16 = vrot.slane %v6301_v20, 5  ;;  %v5998_v37 = vld [vmem:[#allocation2 + $0x3c] sm:$0xe] }
 0x2ed   : > { %v5161_v44 = vrot.slane %v5160_v8, 4  ;;  %v6307_v3 = vrot.slane %v6305_v2, 4  ;;  %v8956_v0 = vrot.slane %v5997_v35, 9  ;;  %v6313_v5 = vrot.slane %v6311_v36, 5  ;;  %v5598_v50 = vld [vmem:[#allocation2 + $0x44] sm:$0x1] }
 0x2ee   : > { %v5156_v18 = vsel %vm10997_vm11, %v5151_v46, %v5155_v26  ;;  %v6298_v53 = vor.u32 %v6297_v6, %v6294_v9  ;;  %v6081_v7 = vrot.slane %v12579_v38, 5  ;;  %v6084_v63 = vrot.slane %v5597_v55, 5  ;;  %v6179_v38 = vld [vmem:[#allocation2 + $0x48] sm:$0xf]  ;;  %v12723_v55 = vld [vmem:[#allocation2 + $0x6c] sm:$0xf] }
 0x2ef   : > { %v5166_v11 = vsel %vm10997_vm11, %v5161_v44, %v5165_v12  ;;  %v6308_v58 = vor.u32 %v6307_v3, %v6303_v16  ;;  %v9040_v14 = vcombine.low %v12700_v42, %v12704_v40  ;;  %7047 = vrot.lane.b32.xlu0 %v9039_v56, %s10506_s26  ;;  %v5168_v43 = vshrl.u32 %v4962_v13, 16  ;;  %v12725_v2 = vld [vmem:[#allocation2 + $0x70] sm:$0xf]  ;;  %v4964_v36 = vld [vmem:[#allocation2 + $0x60] sm:$0xf] }
 0x2f0   : > { %v9007_v45 = vcombine.low %v5156_v18, %v5166_v11  ;;  %v6299_v39 = vrot.slane %v6298_v53, 4  ;;  %v6082_v54 = vsel %vm11084_vm14, %v8956_v0, %v6081_v7  ;;  %v6083_v47 = vrot.slane %v6081_v7, 4 }
 0x2f1   : > { %v6309_v32 = vrot.slane %v6308_v58, 4  ;;  %v5171_v49 = vshll.u32 %v4962_v13, 16  ;;  %v5177_v62 = vshll.u32 %v4963_v25, 16  ;;  %v5181_v56 = vshrl.u32 %v4963_v25, 16 }
 0x2f2   : > { %6903 = vrot.lane.b32.xlu1 %v9007_v45, %s10506_s26  ;;  %v6304_v51 = vsel %vm10997_vm11, %v6299_v39, %v6303_v16  ;;  %v6085_v57 = vsel %vm11084_vm14, %v6083_v47, %v6084_v63  ;;  %v5187_v17 = vshll.u32 %v4987_v52, 16  ;;  %v5170_v31 = vrot.slane %v5168_v43, 4  ;;  %v4965_v63 = vld [vmem:[#allocation2 + $0x64] sm:$0xf]  ;;  %v6181_v47 = vld [vmem:[#allocation2 + $0x54] sm:$0xf] }
 0x2f3   : > { %v6314_v59 = vsel %vm10997_vm11, %v6309_v32, %v6313_v5  ;;  %v9068_v4 = vcombine.low %v6082_v54, %v6085_v57  ;;  %v5173_v26 = vrot.slane %v5171_v49, 5  ;;  %v5179_v28 = vrot.slane %v5177_v62, 5  ;;  %v6182_v62 = vld [vmem:[#allocation2 + $0x58] sm:$0xf] }
 0x2f4   : > { %v9100_v48 = vcombine.low %v6304_v51, %v6314_v59  ;;  %v5183_v60 = vrot.slane %v5181_v56, 4  ;;  %v5189_v27 = vrot.slane %v5187_v17, 5  ;;  %v6316_v8 = vshrl.u32 %v6179_v38, 16  ;;  %v6208_v17 = vld [vmem:[#allocation2 + $0x5c] sm:$0x1] }
 0x2f5   : > { %v5174_v35 = vor.u32 %v5173_v26, %v5170_v31  ;;  %v6319_v12 = vshll.u32 %v6179_v38, 16  ;;  %v6325_v20 = vshll.u32 %v6180_v23, 16  ;;  %v6329_v46 = vshrl.u32 %v6180_v23, 16  ;;  %v5999_v26 = vld [vmem:[#allocation2 + $0x48] sm:$0xe] }
 0x2f6   : > { %7313 = vrot.lane.b32.xlu0 %v9100_v48, %s10506_s26  ;;  %7169 = vrot.lane.b32.xlu1 %v9068_v4, %s10506_s26  ;;  %v5184_v42 = vor.u32 %v5183_v60, %v5179_v28  ;;  %v6335_v9 = vshll.u32 %v6207_v21, 16  ;;  %v8957_v6 = vrot.slane %v5998_v37, 9  ;;  %v6318_v16 = vrot.slane %v6316_v8, 4  ;;  %v12746_v8 = vld [vmem:[#allocation2 + $0x78] sm:$0xf] }
 0x2f7   : > { %v5175_v44 = vrot.slane %v5174_v35, 4  ;;  %v6321_v3 = vrot.slane %v6319_v12, 5  ;;  %v6327_v0 = vrot.slane %v6325_v20, 5  ;;  %v6331_v53 = vrot.slane %v6329_v46, 4  ;;  %v5599_v35 = vld [vmem:[#allocation2 + $0x50] sm:$0x1] }
 0x2f8   : > { %v5185_v18 = vrot.slane %v5184_v42, 4  ;;  %v6337_v5 = vrot.slane %v6335_v9, 5  ;;  %v6088_v7 = vrot.slane %v12612_v1, 5  ;;  %v6091_v11 = vrot.slane %v5598_v50, 5  ;;  %v4988_v1 = vld [vmem:[#allocation2 + $0x68] sm:$0x1] }
 0x2f9   : > { %v5180_v13 = vsel %vm10997_vm11, %v5175_v44, %v5179_v28  ;;  %v6322_v25 = vor.u32 %v6321_v3, %v6318_v16  ;;  %v9041_v58 = vcombine.low %v12723_v55, %v12725_v2  ;;  %v6332_v45 = vor.u32 %v6331_v53, %v6327_v0  ;;  %v12750_v16 = vld [vmem:[#allocation2 + $0x7c] sm:$0xf] }
 0x2fa   : > { %7049 = vrot.lane.b32.xlu0 %v9040_v14, %s10506_s26  ;;  %v5190_v52 = vsel %vm10997_vm11, %v5185_v18, %v5189_v27  ;;  %v6089_v39 = vsel %vm11084_vm14, %v8957_v6, %v6088_v7  ;;  %v6090_v54 = vrot.slane %v6088_v7, 4  ;;  %v5192_v43 = vshrl.u32 %v4964_v36, 16 }
 0x2fb   : > { %v9008_v38 = vcombine.low %v5180_v13, %v5190_v52  ;;  %v6323_v32 = vrot.slane %v6322_v25, 4  ;;  %v5195_v49 = vshll.u32 %v4964_v36, 16  ;;  %v6333_v51 = vrot.slane %v6332_v45, 4 }
 0x2fc   : > { %v6092_v57 = vsel %vm11084_vm14, %v6090_v54, %v6091_v11  ;;  %v5201_v14 = vshll.u32 %v4965_v63, 16  ;;  %v5205_v56 = vshrl.u32 %v4965_v63, 16  ;;  %v5194_v4 = vrot.slane %v5192_v43, 4  ;;  %v4967_v63 = vld [vmem:[#allocation2 + $0x70] sm:$0xf] }
 0x2fd   : > { %6905 = vrot.lane.b32.xlu1 %v9008_v38, %s10506_s26  ;;  %v6328_v23 = vsel %vm10997_vm11, %v6323_v32, %v6327_v0  ;;  %v9069_v59 = vcombine.low %v6089_v39, %v6092_v57  ;;  %v5197_v31 = vrot.slane %v5195_v49, 5  ;;  %v6338_v21 = vsel %vm10997_vm11, %v6333_v51, %v6337_v5  ;;  %v4966_v5 = vld [vmem:[#allocation2 + $0x6c] sm:$0xf]  ;;  %v6183_v49 = vld [vmem:[#allocation2 + $0x60] sm:$0xf] }
 0x2fe   : > { %v5203_v37 = vrot.slane %v5201_v14, 5  ;;  %v5207_v48 = vrot.slane %v5205_v56, 4  ;;  %v5211_v28 = vshll.u32 %v4988_v1, 16  ;;  %v9101_v60 = vcombine.low %v6328_v23, %v6338_v21  ;;  %v4989_v1 = vld [vmem:[#allocation2 + $0x74] sm:$0x1] }
 0x2ff   : > { %v5198_v27 = vor.u32 %v5197_v31, %v5194_v4  ;;  %v6340_v50 = vshrl.u32 %v6181_v47, 16  ;;  %v6343_v55 = vshll.u32 %v6181_v47, 16  ;;  %v6349_v42 = vshll.u32 %v6182_v62, 16  ;;  %v6209_v56 = vld [vmem:[#allocation2 + $0x68] sm:$0x1] }
 0x300   : > { %v5208_v12 = vor.u32 %v5207_v48, %v5203_v37  ;;  %v5213_v20 = vrot.slane %v5211_v28, 5  ;;  %v6353_v46 = vshrl.u32 %v6182_v62, 16  ;;  %7315 = vrot.lane.b32.xlu0 %v9101_v60, %s10506_s26  ;;  %v6359_v44 = vshll.u32 %v6208_v17, 16  ;;  %v6000_v17 = vld [vmem:[#allocation2 + $0x54] sm:$0xe] }
 0x301   : > { %7171 = vrot.lane.b32.xlu1 %v9069_v59, %s10506_s26  ;;  %v5199_v9 = vrot.slane %v5198_v27, 4  ;;  %v6342_v6 = vrot.slane %v6340_v50, 4  ;;  %v6345_v36 = vrot.slane %v6343_v55, 5  ;;  %v6351_v0 = vrot.slane %v6349_v42, 5  ;;  %v5600_v50 = vld [vmem:[#allocation2 + $0x5c] sm:$0x1] }
 0x302   : > { %v5209_v3 = vrot.slane %v5208_v12, 4  ;;  %v6355_v18 = vrot.slane %v6353_v46, 4  ;;  %v8958_v53 = vrot.slane %v5999_v26, 9  ;;  %v6361_v25 = vrot.slane %v6359_v44, 5  ;;  %v12769_v55 = vld [vmem:[#allocation2 + $0x84] sm:$0xf] }
 0x303   : > { %v5204_v7 = vsel %vm10997_vm11, %v5199_v9, %v5203_v37  ;;  %v6346_v13 = vor.u32 %v6345_v36, %v6342_v6  ;;  %v6095_v11 = vrot.slane %v12648_v19, 5  ;;  %v6098_v39 = vrot.slane %v5599_v35, 5  ;;  %v6184_v19 = vld [vmem:[#allocation2 + $0x64] sm:$0xf]  ;;  %v12771_v42 = vld [vmem:[#allocation2 + $0x88] sm:$0xf] }
 0x304   : > { %v5214_v52 = vsel %vm10997_vm11, %v5209_v3, %v5213_v20  ;;  %v6356_v45 = vor.u32 %v6355_v18, %v6351_v0  ;;  %v9042_v54 = vcombine.low %v12746_v8, %v12750_v16  ;;  %7051 = vrot.lane.b32.xlu0 %v9041_v58, %s10506_s26  ;;  %v5216_v51 = vshrl.u32 %v4966_v5, 16  ;;  %v4968_v44 = vld [vmem:[#allocation2 + $0x78] sm:$0xf] }
 0x305   : > { %v9009_v47 = vcombine.low %v5204_v7, %v5214_v52  ;;  %v6347_v38 = vrot.slane %v6346_v13, 4  ;;  %v6096_v32 = vsel %vm11084_vm14, %v8958_v53, %v6095_v11  ;;  %v6097_v43 = vrot.slane %v6095_v11, 4 }
 0x306   : > { %v6357_v62 = vrot.slane %v6356_v45, 4  ;;  %v5219_v57 = vshll.u32 %v4966_v5, 16  ;;  %v5225_v14 = vshll.u32 %v4967_v63, 16  ;;  %v5229_v59 = vshrl.u32 %v4967_v63, 16 }
 0x307   : > { %6907 = vrot.lane.b32.xlu1 %v9009_v47, %s10506_s26  ;;  %v6352_v23 = vsel %vm10997_vm11, %v6347_v38, %v6351_v0  ;;  %v6099_v58 = vsel %vm11084_vm14, %v6097_v43, %v6098_v39  ;;  %v5235_v4 = vshll.u32 %v4989_v1, 16  ;;  %v5218_v21 = vrot.slane %v5216_v51, 4  ;;  %v4969_v39 = vld [vmem:[#allocation2 + $0x7c] sm:$0xf]  ;;  %v4990_v1 = vld [vmem:[#allocation2 + $0x80] sm:$0x1] }
 0x308   : > { %v6362_v31 = vsel %vm10997_vm11, %v6357_v62, %v6361_v25  ;;  %v9070_v26 = vcombine.low %v6096_v32, %v6099_v58  ;;  %v5221_v37 = vrot.slane %v5219_v57, 5  ;;  %v5227_v28 = vrot.slane %v5225_v14, 5  ;;  %v6185_v43 = vld [vmem:[#allocation2 + $0x6c] sm:$0xf]  ;;  %v6186_v57 = vld [vmem:[#allocation2 + $0x70] sm:$0xf] }
 0x309   : > { %v9102_v48 = vcombine.low %v6352_v23, %v6362_v31  ;;  %v5231_v60 = vrot.slane %v5229_v59, 4  ;;  %v5237_v27 = vrot.slane %v5235_v4, 5  ;;  %v6364_v8 = vshrl.u32 %v6183_v49, 16  ;;  %v6210_v23 = vld [vmem:[#allocation2 + $0x74] sm:$0x1] }
 0x30a   : > { %v5222_v35 = vor.u32 %v5221_v37, %v5218_v21  ;;  %v6367_v12 = vshll.u32 %v6183_v49, 16  ;;  %v6373_v20 = vshll.u32 %v6184_v19, 16  ;;  %v6377_v9 = vshrl.u32 %v6184_v19, 16 }
 0x30b   : > { %7317 = vrot.lane.b32.xlu0 %v9102_v48, %s10506_s26  ;;  %7173 = vrot.lane.b32.xlu1 %v9070_v26, %s10506_s26  ;;  %v5232_v46 = vor.u32 %v5231_v60, %v5227_v28  ;;  %v6383_v6 = vshll.u32 %v6209_v56, 16  ;;  %v8959_v36 = vrot.slane %v6000_v17, 9  ;;  %v6366_v0 = vrot.slane %v6364_v8, 4  ;;  %v12792_v8 = vld [vmem:[#allocation2 + $0x90] sm:$0xf] }
 0x30c   : > { %v5223_v3 = vrot.slane %v5222_v35, 4  ;;  %v6369_v18 = vrot.slane %v6367_v12, 5  ;;  %v6375_v53 = vrot.slane %v6373_v20, 5  ;;  %v6379_v7 = vrot.slane %v6377_v9, 4  ;;  %v5601_v35 = vld [vmem:[#allocation2 + $0x68] sm:$0x1] }
 0x30d   : > { %v5233_v5 = vrot.slane %v5232_v46, 4  ;;  %v6385_v13 = vrot.slane %v6383_v6, 5  ;;  %v6102_v25 = vrot.slane %v12681_v15, 5  ;;  %v6105_v52 = vrot.slane %v5600_v50, 5  ;;  %v12794_v12 = vld [vmem:[#allocation2 + $0x94] sm:$0xf] }
 0x30e   : > { %v5228_v11 = vsel %vm10997_vm11, %v5223_v3, %v5227_v28  ;;  %v6370_v63 = vor.u32 %v6369_v18, %v6366_v0  ;;  %v9043_v45 = vcombine.low %v12769_v55, %v12771_v42  ;;  %v6380_v38 = vor.u32 %v6379_v7, %v6375_v53  ;;  %v6001_v28 = vld [vmem:[#allocation2 + $0x60] sm:$0xe] }
 0x30f   : > { %7053 = vrot.lane.b32.xlu0 %v9042_v54, %s10506_s26  ;;  %v5238_v47 = vsel %vm10997_vm11, %v5233_v5, %v5237_v27  ;;  %v6103_v32 = vsel %vm11084_vm14, %v8959_v36, %v6102_v25  ;;  %v6104_v15 = vrot.slane %v6102_v25, 4  ;;  %v5240_v62 = vshrl.u32 %v4968_v44, 16 }
 0x310   : > { %v9010_v49 = vcombine.low %v5228_v11, %v5238_v47  ;;  %v6371_v19 = vrot.slane %v6370_v63, 4  ;;  %v5243_v51 = vshll.u32 %v4968_v44, 16  ;;  %v6381_v14 = vrot.slane %v6380_v38, 4 }
 0x311   : > { %v6106_v56 = vsel %vm11084_vm14, %v6104_v15, %v6105_v52  ;;  %v5249_v17 = vshll.u32 %v4969_v39, 16  ;;  %v5253_v54 = vshrl.u32 %v4969_v39, 16  ;;  %v5242_v4 = vrot.slane %v5240_v62, 4  ;;  %v4970_v52 = vld [vmem:[#allocation2 + $0x84] sm:$0xf] }
 0x312   : > { %6909 = vrot.lane.b32.xlu1 %v9010_v49, %s10506_s26  ;;  %v6376_v58 = vsel %vm10997_vm11, %v6371_v19, %v6375_v53  ;;  %v9071_v59 = vcombine.low %v6103_v32, %v6106_v56  ;;  %v5245_v31 = vrot.slane %v5243_v51, 5  ;;  %v6386_v26 = vsel %vm10997_vm11, %v6381_v14, %v6385_v13  ;;  %v4971_v39 = vld [vmem:[#allocation2 + $0x88] sm:$0xf]  ;;  %v4991_v15 = vld [vmem:[#allocation2 + $0x8c] sm:$0x1] }
 0x313   : > { %v5251_v21 = vrot.slane %v5249_v17, 5  ;;  %v5255_v37 = vrot.slane %v5253_v54, 4  ;;  %v5259_v48 = vshll.u32 %v4990_v1, 16  ;;  %v9103_v60 = vcombine.low %v6376_v58, %v6386_v26  ;;  %v6188_v51 = vld [vmem:[#allocation2 + $0x7c] sm:$0xf] }
 0x314   : > { %v5246_v27 = vor.u32 %v5245_v31, %v5242_v4  ;;  %v6388_v50 = vshrl.u32 %v6185_v43, 16  ;;  %v6391_v55 = vshll.u32 %v6185_v43, 16  ;;  %v6397_v9 = vshll.u32 %v6186_v57, 16 }
 0x315   : > { %v5256_v20 = vor.u32 %v5255_v37, %v5251_v21  ;;  %v5261_v46 = vrot.slane %v5259_v48, 5  ;;  %v6401_v6 = vshrl.u32 %v6186_v57, 16  ;;  %7319 = vrot.lane.b32.xlu0 %v9103_v60, %s10506_s26  ;;  %v6407_v0 = vshll.u32 %v6210_v23, 16  ;;  %v6002_v37 = vld [vmem:[#allocation2 + $0x6c] sm:$0xe] }
 0x316   : > { %7175 = vrot.lane.b32.xlu1 %v9071_v59, %s10506_s26  ;;  %v5247_v36 = vrot.slane %v5246_v27, 4  ;;  %v6390_v44 = vrot.slane %v6388_v50, 4  ;;  %v6393_v3 = vrot.slane %v6391_v55, 5  ;;  %v6399_v53 = vrot.slane %v6397_v9, 5  ;;  %v6211_v59 = vld [vmem:[#allocation2 + $0x80] sm:$0x1] }
 0x317   : > { %v5257_v18 = vrot.slane %v5256_v20, 4  ;;  %v6403_v5 = vrot.slane %v6401_v6, 4  ;;  %v8960_v7 = vrot.slane %v6001_v28, 9  ;;  %v6409_v11 = vrot.slane %v6407_v0, 5  ;;  %v5602_v50 = vld [vmem:[#allocation2 + $0x74] sm:$0x1] }
 0x318   : > { %v5252_v13 = vsel %vm10997_vm11, %v5247_v36, %v5251_v21  ;;  %v6394_v25 = vor.u32 %v6393_v3, %v6390_v44  ;;  %v6109_v63 = vrot.slane %v12704_v40, 5  ;;  %v6112_v38 = vrot.slane %v5601_v35, 5  ;;  %v6187_v40 = vld [vmem:[#allocation2 + $0x78] sm:$0xf] }
 0x319   : > { %v5262_v1 = vsel %vm10997_vm11, %v5257_v18, %v5261_v46  ;;  %v6404_v47 = vor.u32 %v6403_v5, %v6399_v53  ;;  %v9044_v32 = vcombine.low %v12792_v8, %v12794_v12  ;;  %7055 = vrot.lane.b32.xlu0 %v9043_v45, %s10506_s26  ;;  %v5264_v14 = vshrl.u32 %v4970_v52, 16  ;;  %v6189_v46 = vld [vmem:[#allocation2 + $0x84] sm:$0xf] }
 0x31a   : > { %v9011_v43 = vcombine.low %v5252_v13, %v5262_v1  ;;  %v6395_v49 = vrot.slane %v6394_v25, 4  ;;  %v6110_v19 = vsel %vm11084_vm14, %v8960_v7, %v6109_v63  ;;  %v6111_v62 = vrot.slane %v6109_v63, 4  ;;  %v12820_v63 = vpop.permute.xlu1 %7035 }
 0x31b   : > { %v6405_v57 = vrot.slane %v6404_v47, 4  ;;  %v5267_v56 = vshll.u32 %v4970_v52, 16  ;;  %v5273_v17 = vshll.u32 %v4971_v39, 16  ;;  %v5277_v23 = vshrl.u32 %v4971_v39, 16  ;;  %v12815_v9 = vpop.permute.xlu0 %7059  ;;  %v6190_v47 = vld [vmem:[#allocation2 + $0x88] sm:$0xf] }
 0x31c   : > { %6911 = vrot.lane.b32.xlu1 %v9011_v43, %s10506_s26  ;;  %v6400_v54 = vsel %vm10997_vm11, %v6395_v49, %v6399_v53  ;;  %v6113_v45 = vsel %vm11084_vm14, %v6111_v62, %v6112_v38  ;;  %v5283_v58 = vshll.u32 %v4991_v15, 16  ;;  %v5266_v26 = vrot.slane %v5264_v14, 4  ;;  %v6003_v62 = vld [vmem:[#allocation2 + $0x78] sm:$0xe] }
 0x31d   : > { %v6410_v4 = vsel %vm10997_vm11, %v6405_v57, %v6409_v11  ;;  %v9072_v31 = vcombine.low %v6110_v19, %v6113_v45  ;;  %v5269_v21 = vrot.slane %v5267_v56, 5  ;;  %v5275_v28 = vrot.slane %v5273_v17, 5  ;;  %v5603_v56 = vld [vmem:[#allocation2 + $0x80] sm:$0x1]  ;;  %v6191_v17 = vld [vmem:[#allocation2 + $0x90] sm:$0xf] }
 0x31e   : > { %v9104_v48 = vcombine.low %v6400_v54, %v6410_v4  ;;  %v5279_v60 = vrot.slane %v5277_v23, 4  ;;  %v5285_v27 = vrot.slane %v5283_v58, 5  ;;  %v6412_v35 = vshrl.u32 %v6187_v40, 16 }
 0x31f   : > { %v5270_v55 = vor.u32 %v5269_v21, %v5266_v26  ;;  %v6415_v8 = vshll.u32 %v6187_v40, 16  ;;  %v6421_v20 = vshll.u32 %v6188_v51, 16  ;;  %v6425_v36 = vshrl.u32 %v6188_v51, 16 }
 0x320   : > { %7321 = vrot.lane.b32.xlu0 %v9104_v48, %s10506_s26  ;;  %7177 = vrot.lane.b32.xlu1 %v9072_v31, %s10506_s26  ;;  %v5280_v6 = vor.u32 %v5279_v60, %v5275_v28  ;;  %v6431_v44 = vshll.u32 %v6211_v59, 16  ;;  %v8961_v3 = vrot.slane %v6002_v37, 9  ;;  %v6414_v18 = vrot.slane %v6412_v35, 4  ;;  %v6192_v60 = vld [vmem:[#allocation2 + $0x94] sm:$0xf] }
 0x321   : > { %v5271_v0 = vrot.slane %v5270_v55, 4  ;;  %v6417_v53 = vrot.slane %v6415_v8, 5  ;;  %v6423_v5 = vrot.slane %v6421_v20, 5  ;;  %v6427_v13 = vrot.slane %v6425_v36, 4  ;;  %v6213_v20 = vld [vmem:[#allocation2 + $0x98] sm:$0x1] }
 0x322   : > { %v5281_v7 = vrot.slane %v5280_v6, 4  ;;  %v6433_v25 = vrot.slane %v6431_v44, 5  ;;  %v6116_v11 = vrot.slane %v12725_v2, 5  ;;  %v6119_v1 = vrot.slane %v5602_v50, 5  ;;  %v6212_v2 = vld [vmem:[#allocation2 + $0x8c] sm:$0x1] }
 0x323   : > { %v5276_v52 = vsel %vm10997_vm11, %v5271_v0, %v5275_v28  ;;  %v6418_v39 = vor.u32 %v6417_v53, %v6414_v18  ;;  %v6436_v38 = vshrl.u32 %v6189_v46, 16  ;;  %v6428_v43 = vor.u32 %v6427_v13, %v6423_v5  ;;  %v5395_v0 = vld [vmem:[#allocation2 + $0x90] sm:$0xe]  ;;  %v6004_v13 = vld [vmem:[#allocation2 + $0x84] sm:$0xe] }
 0x324   : > { %7057 = vrot.lane.b32.xlu0 %v9044_v32, %s10506_s26  ;;  %v5286_v15 = vsel %vm10997_vm11, %v5281_v7, %v5285_v27  ;;  %v6117_v49 = vsel %vm11084_vm14, %v8961_v3, %v6116_v11  ;;  %v6118_v19 = vrot.slane %v6116_v11, 4  ;;  %v6439_v14 = vshll.u32 %v6189_v46, 16 }
 0x325   : > { %v9012_v40 = vcombine.low %v5276_v52, %v5286_v15  ;;  %v6419_v51 = vrot.slane %v6418_v39, 4  ;;  %v6438_v57 = vrot.slane %v6436_v38, 4  ;;  %v12829_v54 = vpop.permute.xlu0 %6915  ;;  %v6429_v45 = vrot.slane %v6428_v43, 4 }
 0x326   : > { %v6120_v32 = vsel %vm11084_vm14, %v6118_v19, %v6119_v1  ;;  %v6445_v23 = vshll.u32 %v6190_v47, 16  ;;  %v6449_v58 = vshrl.u32 %v6190_v47, 16  ;;  %v6441_v31 = vrot.slane %v6439_v14, 5 }
 0x327   : > { %6913 = vrot.lane.b32.xlu1 %v9012_v40, %s10506_s26  ;;  %v6424_v59 = vsel %vm10997_vm11, %v6419_v51, %v6423_v5  ;;  %v9073_v4 = vcombine.low %v6117_v49, %v6120_v32  ;;  %v6455_v26 = vshll.u32 %v6212_v2, 16  ;;  %v6434_v21 = vsel %vm10997_vm11, %v6429_v45, %v6433_v25  ;;  %v5604_v40 = vld [vmem:[#allocation2 + $0x8c] sm:$0x1]  ;;  %v5383_v45 = vld [vmem:[#allocation2] sm:$0xe] }
 0x328   : > { %v6447_v37 = vrot.slane %v6445_v23, 5  ;;  %v6451_v48 = vrot.slane %v6449_v58, 4  ;;  %v8962_v28 = vrot.slane %v6003_v62, 9  ;;  %v12838_v27 = vpop.permute.xlu1 %6891  ;;  %v9105_v50 = vcombine.low %v6424_v59, %v6434_v21  ;;  %v10289_v58 = vld [vmem:[#allocation2 + $0x98] sm:$0x1] }
 0x329   : > { %v6442_v55 = vor.u32 %v6441_v31, %v6438_v57  ;;  %v6457_v35 = vrot.slane %v6455_v26, 5  ;;  %v6123_v8 = vrot.slane %v12750_v16, 5  ;;  %v12841_v46 = vpop.permute.xlu0 %7061  ;;  %v6126_v36 = vrot.slane %v5603_v56, 5  ;;  %v10288_v56 = vld [vmem:[#allocation2 + $0x94] sm:$0xf] }
 0x32a   : > { %v6452_v6 = vor.u32 %v6451_v48, %v6447_v37  ;;  %v6460_v44 = vshrl.u32 %v6191_v17, 16  ;;  %v6463_v3 = vshll.u32 %v6191_v17, 16  ;;  %7323 = vrot.lane.b32.xlu0 %v9105_v50, %s10506_s26  ;;  %v6469_v7 = vshll.u32 %v6192_v60, 16  ;;  %v10290_v50 = vld [vmem:[#allocation2 + $0x90] sm:$0xf] }
 0x32b   : > { %7179 = vrot.lane.b32.xlu1 %v9073_v4, %s10506_s26  ;;  %v6443_v18 = vrot.slane %v6442_v55, 4  ;;  %v6124_v53 = vsel %vm11084_vm14, %v8962_v28, %v6123_v8  ;;  %v6125_v5 = vrot.slane %v6123_v8, 4  ;;  %v6473_v52 = vshrl.u32 %v6192_v60, 16  ;;  %v10292_v8 = vld [vmem:[#allocation2 + $0x4] sm:$0xf] }
 0x32c   : > { %v6453_v16 = vrot.slane %v6452_v6, 4  ;;  %v6462_v25 = vrot.slane %v6460_v44, 4  ;;  %v6465_v11 = vrot.slane %v6463_v3, 5  ;;  %v6471_v47 = vrot.slane %v6469_v7, 5 }
 0x32d   : > { %v6448_v39 = vsel %vm10997_vm11, %v6443_v18, %v6447_v37  ;;  %v6127_v1 = vsel %vm11084_vm14, %v6125_v5, %v6126_v36  ;;  %v6479_v38 = vshll.u32 %v6213_v20, 16  ;;  %v12851_v15 = vpop.permute.xlu1 %6917  ;;  %v12853_v43 = vpop.permute.xlu0 %7037  ;;  %v6475_v62 = vrot.slane %v6473_v52, 4  ;;  %v5396_v18 = vld [vmem:[#allocation2 + $0x9c] sm:$0xe] }
 0x32e   : > { %v6458_v49 = vsel %vm10997_vm11, %v6453_v16, %v6457_v35  ;;  %v9074_v19 = vcombine.low %v6124_v53, %v6127_v1  ;;  %v6466_v2 = vor.u32 %v6465_v11, %v6462_v25  ;;  %v8949_v14 = vrot.slane %v5395_v0, 9  ;;  %v10291_v35 = vld [vmem:[#allocation2] sm:$0xf]  ;;  %v10239_v0 = vld [vmem:[%s13857_s1 + $0x538] sm:$0xff]   ;;  %v10241_v11 = vld [vmem:[%s13857_s1 + $0x570] sm:$0xff]  }
 0x32f   : > { %v9106_v51 = vcombine.low %v6448_v39, %v6458_v49  ;;  %v6481_v57 = vrot.slane %v6479_v38, 5  ;;  %v5536_v17 = vrot.slane %v10288_v56, 5  ;;  %v6476_v23 = vor.u32 %v6475_v62, %v6471_v47  ;;  %v6193_v16 = vld [vmem:[#allocation2 + $0x9c] sm:$0xf]  ;;  %v6194_v25 = vld [vmem:[#allocation2 + $0xa0] sm:$0xf] }
 0x330   : > { %7181 = vrot.lane.b32.xlu1 %v9074_v19, %s10506_s26  ;;  %v6467_v32 = vrot.slane %v6466_v2, 4  ;;  %v5539_v59 = vrot.slane %v10289_v58, 5  ;;  %v8963_v4 = vrot.slane %v6004_v13, 9  ;;  %v6130_v21 = vrot.slane %v12771_v42, 5  ;;  %v6214_v62 = vld [vmem:[#allocation2 + $0xa4] sm:$0x1] }
 0x331   : > { %7325 = vrot.lane.b32.xlu0 %v9106_v51, %s10506_s26  ;;  %v5537_v31 = vsel %vm11084_vm14, %v8949_v14, %v5536_v17  ;;  %v5538_v26 = vrot.slane %v5536_v17, 4  ;;  %v6133_v37 = vrot.slane %v5604_v40, 5  ;;  %v12862_v48 = vpop.permute.xlu0 %7063  ;;  %v6477_v60 = vrot.slane %v6476_v23, 4 }
 0x332   : > { %v6472_v28 = vsel %vm10997_vm11, %v6467_v32, %v6471_v47  ;;  %v8997_v55 = vcombine.low %v10290_v50, %v10288_v56  ;;  %v8985_v20 = vcombine.low %v10291_v35, %v10292_v8  ;;  %v12866_v6 = vpop.permute.xlu1 %6893  ;;  %v6131_v42 = vsel %vm11084_vm14, %v8963_v4, %v6130_v21  ;;  %v10293_v47 = vld [vmem:[#allocation2 + $0x8] sm:$0x1]  ;;  %v5605_v4 = vld [vmem:[#allocation2 + $0x98] sm:$0x1] }
 0x333   : > { %v5540_v36 = vsel %vm11084_vm14, %v5538_v26, %v5539_v59  ;;  %v6132_v44 = vrot.slane %v6130_v21, 4  ;;  %v8937_v3 = vrot.slane %v5383_v45, 9  ;;  %v6482_v53 = vsel %vm10997_vm11, %v6477_v60, %v6481_v57  ;;  %v10295_v57 = vld [vmem:[#allocation2 + $0xa4] sm:$0x1]  ;;  %v10243_v59 = vld [vmem:[%s13857_s1 + $0x530] sm:$0xff]   ;;  %v10244_v60 = vld [vmem:[%s13857_s1 + $0x568] sm:$0xff]  }
 0x334   : > { %v9029_v5 = vcombine.low %v5537_v31, %v5540_v36  ;;  %v7438_v7 = vsel %vm3302_vm15, %v8997_v55, %v12829_v54  ;;  %v12881_v13 = vsel %vm3302_vm15, %v8985_v20, %v12838_v27  ;;  %v9107_v52 = vcombine.low %v6472_v28, %v6482_v53  ;;  %v10294_v27 = vld [vmem:[#allocation2 + $0xa0] sm:$0xf]  ;;  %v6005_v31 = vld [vmem:[#allocation2 + $0x90] sm:$0xe] }
 0x335   : > { %v6134_v39 = vsel %vm11084_vm14, %v6132_v44, %v6133_v37  ;;  %v5452_v1 = vrot.slane %v10292_v8, 5  ;;  %v5455_v38 = vrot.slane %v10293_v47, 5  ;;  %v8950_v19 = vrot.slane %v5396_v18, 9  ;;  %v12895_v45 = vpop.permute.xlu0 %7039  ;;  %v10296_v44 = vld [vmem:[#allocation2 + $0x9c] sm:$0xf] }
 0x336   : > { %v7502_v54 = vsel %vm3302_vm15, %v9029_v5, %v12815_v9  ;;  %v9075_v49 = vcombine.low %v6131_v42, %v6134_v39  ;;  %v5543_v2 = vrot.slane %v10294_v27, 5  ;;  %7327 = vrot.lane.b32.xlu0 %v9107_v52, %s10506_s26  ;;  %v5546_v14 = vrot.slane %v10295_v57, 5  ;;  %v12893_v17 = vpop.permute.xlu1 %6919  ;;  %v10300_v57 = vld [vmem:[#allocation2 + $0xc] sm:$0xf] }
 0x337   : > { %8117 = vmatprep.mubr.bf16.mxu1 %v7502_v54  ;;  %v5453_v40 = vsel %vm11084_vm14, %v8937_v3, %v5452_v1  ;;  %v5454_v51 = vrot.slane %v5452_v1, 4  ;;  %v6484_v56 = vshrl.u32 %v6193_v16, 16  ;;  %v6487_v23 = vshll.u32 %v6193_v16, 16 }
 0x338   : > { %7183 = vrot.lane.b32.xlu1 %v9075_v49, %s10506_s26  ;;  %8118 = vmatmul.mubr.bf16.vlgmr.msra.gmra.mxu1 %v7438_v7  ;;  %v5544_v9 = vsel %vm11084_vm14, %v8950_v19, %v5543_v2  ;;  %v5545_v32 = vrot.slane %v5543_v2, 4  ;;  %v6493_v58 = vshll.u32 %v6194_v25, 16  ;;  %v6497_v37 = vshrl.u32 %v6194_v25, 16  ;;  %v5397_v25 = vld [vmem:[#allocation2 + $0xa8] sm:$0xe]  ;;  %v10297_v2 = vld [vmem:[%s13857_s1 + $0x598] sm:$0xff]  }
 0x339   : > { %v5456_v26 = vsel %vm11084_vm14, %v5454_v51, %v5455_v38  ;;  %9684 = vmatpush3.bf16.msra.mxu1 %v10239_v0  ;;  %v6486_v21 = vrot.slane %v6484_v56, 4  ;;  %v6503_v28 = vshll.u32 %v6214_v62, 16  ;;  %v6489_v35 = vrot.slane %v6487_v23, 5  ;;  %v5384_v0 = vld [vmem:[#allocation2 + $0xc] sm:$0xe] }
 0x33a   : > { %v9017_v50 = vcombine.low %v5453_v40, %v5456_v26  ;;  %v5547_v55 = vsel %vm11084_vm14, %v5545_v32, %v5546_v14  ;;  %v6495_v8 = vrot.slane %v6493_v58, 5  ;;  %9685 = vmatprep.subr.bf16.mxu1 %v10241_v11  ;;  %v6499_v36 = vrot.slane %v6497_v37, 4  ;;  %v12910_v18 = vpop.permute.xlu1 %6895  ;;  %v10261_v11 = vld [vmem:[%s13857_s1 + $0x590] sm:$0xff]   ;;  %v6195_v19 = vld [vmem:[#allocation2 + $0xa8] sm:$0xf] }
 0x33b   : > { %v9030_v20 = vcombine.low %v5544_v9, %v5547_v55  ;;  %v6505_v42 = vrot.slane %v6503_v28, 5  ;;  %v8998_v3 = vcombine.low %v10296_v44, %v10294_v27  ;;  %v6490_v5 = vor.u32 %v6489_v35, %v6486_v21  ;;  %v10298_v62 = vld [vmem:[#allocation2 + $0x14] sm:$0x1]  ;;  %v10299_v40 = vld [vmem:[#allocation2 + $0x10] sm:$0xf]  ;;  %v10269_v9 = vld [vmem:[%s13857_s1 + $0x588] sm:$0xff]  }
 0x33c   : > { %v7454_v53 = vsel %vm3302_vm15, %v9017_v50, %v12820_v63  ;;  %v8964_v7 = vrot.slane %v6005_v31, 9  ;;  %v6137_v16 = vrot.slane %v12794_v12, 5  ;;  %v6500_v39 = vor.u32 %v6499_v36, %v6495_v8  ;;  %v10246_v63 = vld [vmem:[%s13857_s1 + $0x528] sm:$0xff]   ;;  %v12925_v12 = vpop.permute.xlu0 %7065  ;;  %v10249_v50 = vld [vmem:[%s13857_s1 + $0x520] sm:$0xff]   ;;  %v10250_v36 = vld [vmem:[%s13857_s1 + $0x558] sm:$0xff]  }
 0x33d   : > { %8021 = vmatprep.mubr.bf16.mxu0 %v7454_v53  ;;  %v7506_v52 = vsel %vm3302_vm15, %v9030_v20, %v12841_v46  ;;  %v7442_v1 = vsel %vm3302_vm15, %v8998_v3, %v12851_v15  ;;  %9686 = vmatpush3.bf16.msra.mxu1 %v10243_v59  ;;  %v6140_v47 = vrot.slane %v5605_v4, 5  ;;  %v6491_v38 = vrot.slane %v6490_v5, 4  ;;  %v10247_v15 = vld [vmem:[%s13857_s1 + $0x560] sm:$0xff]   ;;  %v10301_v59 = vld [vmem:[#allocation2 + $0xac] sm:$0xf] }
 0x33e   : > { %8022 = vmatmul.mubr.bf16.vlgmr.msra.gmra.mxu0 %v12881_v13  ;;  %v6138_v54 = vsel %vm11084_vm14, %v8964_v7, %v6137_v16  ;;  %v6139_v49 = vrot.slane %v6137_v16, 4  ;;  %v8938_v46 = vrot.slane %v5384_v0, 9  ;;  %8125 = vmatprep.mubr.bf16.mxu1 %v7506_v52  ;;  %v6501_v27 = vrot.slane %v6500_v39, 4  ;;  %v6196_v28 = vld [vmem:[#allocation2 + $0xac] sm:$0xf] }
 0x33f   : > { %9856 = vmatpush3.bf16.msra.mxu0 %v10297_v2  ;;  %v5462_v13 = vrot.slane %v10298_v62, 5  ;;  %v5459_v51 = vrot.slane %v10299_v40, 5  ;;  %9687 = vmatprep.subr.bf16.mxu1 %v10244_v60  ;;  %v8986_v14 = vcombine.low %v10300_v57, %v10299_v40  ;;  %v12936_v56 = vpop.permute.xlu1 %6921  ;;  %v6496_v32 = vsel %vm10997_vm11, %v6491_v38, %v6495_v8  ;;  %v6215_v60 = vld [vmem:[#allocation2 + $0xb0] sm:$0x1]  ;;  %v6006_v52 = vld [vmem:[#allocation2 + $0x9c] sm:$0xe] }
 0x340   : > { %v6141_v23 = vsel %vm11084_vm14, %v6139_v49, %v6140_v47  ;;  %8126 = vmatmul.mubr.bf16.gmra.mxu1 %v7442_v1  ;;  %v8951_v58 = vrot.slane %v5397_v25, 9  ;;  %v5550_v4 = vrot.slane %v10301_v59, 5  ;;  %9857 = vmatprep.subr.bf16.mxu0 %v10261_v11  ;;  %v6506_v31 = vsel %vm10997_vm11, %v6501_v27, %v6505_v42  ;;  %v10302_v44 = vld [vmem:[#allocation2 + $0xb0] sm:$0x1]  ;;  %v12962_v5 = vpop.permute.xlu0 %7041  ;;  %v10276_v1 = vld [vmem:[%s13857_s1 + $0x580] sm:$0xff]  }
 0x341   : > { %v9076_v26 = vcombine.low %v6138_v54, %v6141_v23  ;;  %v5460_v21 = vsel %vm11084_vm14, %v8938_v46, %v5459_v51  ;;  %v5461_v37 = vrot.slane %v5459_v51, 4  ;;  %9688 = vmatpush3.bf16.msra.mxu1 %v10246_v63  ;;  %v9108_v55 = vcombine.low %v6496_v32, %v6506_v31  ;;  %v5606_v49 = vld [vmem:[#allocation2 + $0xa4] sm:$0x1]  ;;  %v10252_v46 = vld [vmem:[%s13857_s1 + $0x518] sm:$0xff]   ;;  %v10304_v23 = vld [vmem:[#allocation2 + $0xa0] sm:$0xf] }
 0x342   : > { %v7394_v35 = vsel %vm3302_vm15, %v8986_v14, %v12866_v6  ;;  %v5551_v8 = vsel %vm11084_vm14, %v8951_v58, %v5550_v4  ;;  %v5552_v20 = vrot.slane %v5550_v4, 4  ;;  %9689 = vmatprep.subr.bf16.mxu1 %v10247_v15  ;;  %v5553_v3 = vrot.slane %v10302_v44, 5  ;;  %v5385_v62 = vld [vmem:[#allocation2 + $0x18] sm:$0xe]  ;;  %v5398_v4 = vld [vmem:[#allocation2 + $0xb4] sm:$0xe] }
 0x343   : > { %7185 = vrot.lane.b32.xlu1 %v9076_v26, %s10506_s26  ;;  %v5463_v42 = vsel %vm11084_vm14, %v5461_v37, %v5462_v13  ;;  %v6508_v0 = vshrl.u32 %v6195_v19, 16  ;;  %v6511_v53 = vshll.u32 %v6195_v19, 16  ;;  %9858 = vmatpush3.bf16.msra.mxu0 %v10261_v11  ;;  %v6517_v7 = vshll.u32 %v6196_v28, 16  ;;  %v10303_v11 = vld [vmem:[#allocation2 + $0xa8] sm:$0xf]  ;;  %v10253_v13 = vld [vmem:[%s13857_s1 + $0x550] sm:$0xff]  }
 0x344   : > { %7329 = vrot.lane.b32.xlu0 %v9108_v55, %s10506_s26  ;;  %v9018_v6 = vcombine.low %v5460_v21, %v5463_v42  ;;  %v6521_v16 = vshrl.u32 %v6196_v28, 16  ;;  %v6527_v25 = vshll.u32 %v6215_v60, 16  ;;  %v12965_v39 = vpop.permute.xlu1 %6897  ;;  %9859 = vmatprep.subr.bf16.mxu0 %v10269_v9  ;;  %v5554_v47 = vsel %vm11084_vm14, %v5552_v20, %v5553_v3  ;;  %v10305_v37 = vld [vmem:[#allocation2 + $0x20] sm:$0x1]  ;;  %v10306_v60 = vld [vmem:[#allocation2 + $0x1c] sm:$0xf] }
 0x345   : > { %v6510_v63 = vrot.slane %v6508_v0, 4  ;;  %v6513_v38 = vrot.slane %v6511_v53, 5  ;;  %v8999_v54 = vcombine.low %v10303_v11, %v10301_v59  ;;  %9690 = vmatpush3.bf16.msra.mxu1 %v10249_v50  ;;  %v9031_v15 = vcombine.low %v5551_v8, %v5554_v47  ;;  %v10307_v20 = vld [vmem:[#allocation2 + $0x18] sm:$0xf]  ;;  %v6197_v53 = vld [vmem:[#allocation2 + $0xb4] sm:$0xf] }
 0x346   : > { %v7458_v19 = vsel %vm3302_vm15, %v9018_v6, %v12853_v43  ;;  %v6519_v27 = vrot.slane %v6517_v7, 5  ;;  %v6523_v2 = vrot.slane %v6521_v16, 4  ;;  %9691 = vmatprep.subr.bf16.mxu1 %v10250_v36  ;;  %v6529_v51 = vrot.slane %v6527_v25, 5  ;;  %v10308_v25 = vld [vmem:[#allocation2 + $0xb8] sm:$0xf] }
 0x347   : > { %8029 = vmatprep.mubr.bf16.mxu0 %v7458_v19  ;;  %v6514_v40 = vor.u32 %v6513_v38, %v6510_v63  ;;  %v7446_v57 = vsel %vm3302_vm15, %v8999_v54, %v12893_v17  ;;  %v8965_v14 = vrot.slane %v6006_v52, 9  ;;  %9860 = vmatpush3.bf16.msra.mxu0 %v10269_v9  ;;  %v7510_v43 = vsel %vm3302_vm15, %v9031_v15, %v12862_v48  ;;  %v10255_v48 = vld [vmem:[%s13857_s1 + $0x510] sm:$0xff]   ;;  %v10256_v9 = vld [vmem:[%s13857_s1 + $0x548] sm:$0xff]   ;;  %v6198_v47 = vld [vmem:[#allocation2 + $0xb8] sm:$0xf] }
 0x348   : > { %8030 = vmatmul.mubr.bf16.gmra.mxu0 %v7394_v35  ;;  %v6524_v32 = vor.u32 %v6523_v2, %v6519_v27  ;;  %v6144_v58 = vrot.slane %v10304_v23, 5  ;;  %v6147_v59 = vrot.slane %v5606_v49, 5  ;;  %v12984_v31 = vpop.permute.xlu1 %7163  ;;  %9861 = vmatprep.subr.bf16.mxu0 %v10276_v1  ;;  %v8939_v21 = vrot.slane %v5385_v62, 9  ;;  %v12992_v50 = vpop.permute.xlu0 %7307  ;;  %v6216_v63 = vld [vmem:[#allocation2 + $0xbc] sm:$0x1]  ;;  %v10260_v62 = vld [vmem:[%s13857_s1 + $0x540] sm:$0xff]  }
 0x349   : > { %v6515_v26 = vrot.slane %v6514_v40, 4  ;;  %v5469_v28 = vrot.slane %v10305_v37, 5  ;;  %v5466_v17 = vrot.slane %v10306_v60, 5  ;;  %8133 = vmatprep.mubr.bf16.mxu1 %v7510_v43  ;;  %9692 = vmatpush3.bf16.msra.mxu1 %v10252_v46  ;;  %v8987_v36 = vcombine.low %v10307_v20, %v10306_v60  ;;  %v10309_v49 = vld [vmem:[#allocation2 + $0xbc] sm:$0x1]  ;;  %v10258_v46 = vld [vmem:[%s13857_s1 + $0x508] sm:$0xff]  }
 0x34a   : > { %v6525_v55 = vrot.slane %v6524_v32, 4  ;;  %v6145_v35 = vsel %vm11084_vm14, %v8965_v14, %v6144_v58  ;;  %v6146_v8 = vrot.slane %v6144_v58, 4  ;;  %8134 = vmatmul.mubr.bf16.gmra.mxu1 %v7446_v57  ;;  %9693 = vmatprep.subr.bf16.mxu1 %v10253_v13  ;;  %v8952_v0 = vrot.slane %v5398_v4, 9  ;;  %v6007_v43 = vld [vmem:[#allocation2 + $0xa8] sm:$0xe] }
 0x34b   : > { %v6520_v42 = vsel %vm10997_vm11, %v6515_v26, %v6519_v27  ;;  %v5467_v44 = vsel %vm11084_vm14, %v8939_v21, %v5466_v17  ;;  %v5468_v3 = vrot.slane %v5466_v17, 4  ;;  %9862 = vmatpush3.bf16.msra.mxu0 %v10276_v1  ;;  %v7398_v16 = vsel %vm3302_vm15, %v8987_v36, %v12910_v18  ;;  %v5607_v26 = vld [vmem:[#allocation2 + $0xb0] sm:$0x1]  ;;  %v5386_v17 = vld [vmem:[#allocation2 + $0x24] sm:$0xe] }
 0x34c   : > { %v6530_v6 = vsel %vm10997_vm11, %v6525_v55, %v6529_v51  ;;  %v6148_v7 = vsel %vm11084_vm14, %v6146_v8, %v6147_v59  ;;  %v5557_v52 = vrot.slane %v10308_v25, 5  ;;  %v5560_v1 = vrot.slane %v10309_v49, 5  ;;  %v13011_v19 = vpop.permute.xlu0 %7043  ;;  %v10310_v59 = vld [vmem:[#allocation2 + $0xb4] sm:$0xf]  ;;  %v10311_v55 = vld [vmem:[#allocation2 + $0xac] sm:$0xf] }
 0x34d   : > { %v9109_v38 = vcombine.low %v6520_v42, %v6530_v6  ;;  %v9077_v11 = vcombine.low %v6145_v35, %v6148_v7  ;;  %v5470_v54 = vsel %vm11084_vm14, %v5468_v3, %v5469_v28  ;;  %9694 = vmatpush3.bf16.msra.mxu1 %v10255_v48  ;;  %v6532_v2 = vshrl.u32 %v6197_v53, 16  ;;  %v10262_v8 = vld [vmem:[%s13857_s1 + $0x500] sm:$0xff]   ;;  %v10312_v7 = vld [vmem:[#allocation2 + $0x2c] sm:$0x1]  ;;  %v10315_v49 = vld [vmem:[#allocation2 + $0x18] sm:$0xf] }
 0x34e   : > { %v9019_v15 = vcombine.low %v5467_v44, %v5470_v54  ;;  %v5558_v18 = vsel %vm11084_vm14, %v8952_v0, %v5557_v52  ;;  %v5559_v27 = vrot.slane %v5557_v52, 4  ;;  %9695 = vmatprep.subr.bf16.mxu1 %v10256_v9  ;;  %v13018_v13 = vpop.permute.xlu1 %6899  ;;  %v6535_v40 = vshll.u32 %v6197_v53, 16  ;;  %v6199_v3 = vld [vmem:[#allocation2 + $0xc0] sm:$0xf] }
 0x34f   : > { %7331 = vrot.lane.b32.xlu0 %v9109_v38, %s10506_s26  ;;  %7187 = vrot.lane.b32.xlu1 %v9077_v11, %s10506_s26  ;;  %v6541_v51 = vshll.u32 %v6198_v47, 16  ;;  %v6545_v57 = vshrl.u32 %v6198_v47, 16  ;;  %v6551_v14 = vshll.u32 %v6216_v63, 16  ;;  %v6534_v58 = vrot.slane %v6532_v2, 4  ;;  %v10313_v63 = vld [vmem:[#allocation2 + $0x28] sm:$0xf] }
 0x350   : > { %v7462_v32 = vsel %vm3302_vm15, %v9019_v15, %v12895_v45  ;;  %v5561_v23 = vsel %vm11084_vm14, %v5559_v27, %v5560_v1  ;;  %v9000_v4 = vcombine.low %v10310_v59, %v10308_v25  ;;  %v6537_v37 = vrot.slane %v6535_v40, 5  ;;  %v10314_v38 = vld [vmem:[#allocation2 + $0x24] sm:$0xf]  ;;  %v13041_v1 = vld [vmem:[#allocation2 + $0x1c] sm:$0xf] }
 0x351   : > { %8037 = vmatprep.mubr.bf16.mxu0 %v7462_v32  ;;  %v9032_v21 = vcombine.low %v5558_v18, %v5561_v23  ;;  %v6543_v28 = vrot.slane %v6541_v51, 5  ;;  %v6547_v60 = vrot.slane %v6545_v57, 4  ;;  %9696 = vmatpush3.bf16.msra.mxu1 %v10258_v46  ;;  %v6553_v48 = vrot.slane %v6551_v14, 5  ;;  %v6200_v15 = vld [vmem:[#allocation2 + $0xc4] sm:$0xf] }
 0x352   : > { %8038 = vmatmul.mubr.bf16.gmra.mxu0 %v7398_v16  ;;  %v7450_v9 = vsel %vm3302_vm15, %v9000_v4, %v12936_v56  ;;  %v8966_v45 = vrot.slane %v6007_v43, 9  ;;  %v6151_v35 = vrot.slane %v10311_v55, 5  ;;  %9697 = vmatprep.subr.bf16.mxu1 %v10260_v62  ;;  %v6538_v36 = vor.u32 %v6537_v37, %v6534_v58  ;;  %v13033_v0 = vpop.permute.xlu0 %7309  ;;  %v13037_v25 = vpop.permute.xlu1 %7165  ;;  %v6217_v57 = vld [vmem:[#allocation2 + $0xc8] sm:$0x1] }
 0x353   : > { %v7514_v20 = vsel %vm3302_vm15, %v9032_v21, %v12925_v12  ;;  %v6548_v42 = vor.u32 %v6547_v60, %v6543_v28  ;;  %v6154_v44 = vrot.slane %v5607_v26, 5  ;;  %v8940_v6 = vrot.slane %v5386_v17, 9  ;;  %v10317_v60 = vld [vmem:[#allocation2 + $0x10] sm:$0xf] }
 0x354   : > { %v6152_v56 = vsel %vm11084_vm14, %v8966_v45, %v6151_v35  ;;  %v6153_v53 = vrot.slane %v6151_v35, 4  ;;  %v5476_v16 = vrot.slane %v10312_v7, 5  ;;  %8141 = vmatprep.mubr.bf16.mxu1 %v7514_v20  ;;  %v6539_v52 = vrot.slane %v6538_v36, 4  ;;  %v6008_v35 = vld [vmem:[#allocation2 + $0xb4] sm:$0xe] }
 0x355   : > { %v6549_v47 = vrot.slane %v6548_v42, 4  ;;  %v5473_v12 = vrot.slane %v10313_v63, 5  ;;  %v8988_v11 = vcombine.low %v10314_v38, %v10313_v63  ;;  %8142 = vmatmul.mubr.bf16.gmra.mxu1 %v7450_v9  ;;  %v9081_v46 = vcombine.low %v10315_v49, %v13041_v1 }
 0x356   : > { %v6155_v54 = vsel %vm11084_vm14, %v6153_v53, %v6154_v44  ;;  %v6556_v18 = vshrl.u32 %v6199_v3, 16  ;;  %v6559_v27 = vshll.u32 %v6199_v3, 16  ;;  %9698 = vmatpush3.bf16.msra.mxu1 %v10262_v8  ;;  %v6544_v2 = vsel %vm10997_vm11, %v6539_v52, %v6543_v28  ;;  %v13054_v58 = vpop.permute.xlu0 %7045  ;;  %v5608_v44 = vld [vmem:[#allocation2 + $0xbc] sm:$0x1] }
 0x357   : > { %v6554_v62 = vsel %vm10997_vm11, %v6549_v47, %v6553_v48  ;;  %v9078_v40 = vcombine.low %v6152_v56, %v6155_v54  ;;  %v5474_v51 = vsel %vm11084_vm14, %v8940_v6, %v5473_v12  ;;  %v5475_v43 = vrot.slane %v5473_v12, 4  ;;  %v5387_v6 = vld [vmem:[#allocation2 + $0x30] sm:$0xe]  ;;  %v10319_v47 = vld [vmem:[#allocation2 + $0xb8] sm:$0xf] }
 0x358   : > { %v9110_v14 = vcombine.low %v6544_v2, %v6554_v62  ;;  %v7402_v32 = vsel %vm3302_vm15, %v8988_v11, %v12965_v39  ;;  %v7582_v23 = vsel %vm3302_vm15, %v9081_v46, %v12992_v50  ;;  %v6558_v59 = vrot.slane %v6556_v18, 4  ;;  %v10320_v62 = vld [vmem:[#allocation2 + $0x38] sm:$0x1] }
 0x359   : > { %7189 = vrot.lane.b32.xlu1 %v9078_v40, %s10506_s26  ;;  %v6561_v4 = vrot.slane %v6559_v27, 5  ;;  %v6565_v26 = vshll.u32 %v6200_v15, 16  ;;  %v6569_v21 = vshrl.u32 %v6200_v15, 16  ;;  %8182 = vmatprep.mubr.bf16.mxu1 %v7582_v23  ;;  %v5477_v37 = vsel %vm11084_vm14, %v5475_v43, %v5476_v16 }
 0x35a   : > { %7333 = vrot.lane.b32.xlu0 %v9110_v14, %s10506_s26  ;;  %v6575_v28 = vshll.u32 %v6217_v57, 16  ;;  %v5617_v39 = vor.u32 %v12483_v33, %v12481_v30  ;;  %v5620_v50 = vshll.u32 %v10317_v60, 16  ;;  %v13062_v17 = vpop.permute.xlu1 %6901  ;;  %v9020_v48 = vcombine.low %v5474_v51, %v5477_v37  ;;  %v10318_v30 = vld [vmem:[#allocation2 + $0x14] sm:$0x1]  ;;  %v10322_v14 = vld [vmem:[#allocation2 + $0x30] sm:$0xf] }
 0x35b   : > { %v6562_v9 = vor.u32 %v6561_v4, %v6558_v59  ;;  %v6567_v45 = vrot.slane %v6565_v26, 5  ;;  %v6571_v55 = vrot.slane %v6569_v21, 4  ;;  %v5624_v42 = vshrl.u32 %v10317_v60, 16  ;;  %v10321_v51 = vld [vmem:[#allocation2 + $0x34] sm:$0xf] }
 0x35c   : > { %v6577_v8 = vrot.slane %v6575_v28, 5  ;;  %v5618_v20 = vrot.slane %v5617_v39, 4  ;;  %v5622_v36 = vrot.slane %v5620_v50, 5  ;;  %v7466_v3 = vsel %vm3302_vm15, %v9020_v48, %v12962_v5  ;;  %v10323_v26 = vld [vmem:[#allocation2 + $0x24] sm:$0xf] }
 0x35d   : > { %v6563_v56 = vrot.slane %v6562_v9, 4  ;;  %v6572_v53 = vor.u32 %v6571_v55, %v6567_v45  ;;  %v5630_v33 = vshll.u32 %v10318_v30, 16  ;;  %8045 = vmatprep.mubr.bf16.mxu0 %v7466_v3  ;;  %v5626_v16 = vrot.slane %v5624_v42, 4  ;;  %v13068_v12 = vpop.permute.xlu0 %7311  ;;  %v10324_v21 = vld [vmem:[#allocation2 + $0x28] sm:$0xf] }
 0x35e   : > { %v5623_v7 = vsel %vm10997_vm11, %v5618_v20, %v5622_v36  ;;  %v8967_v52 = vrot.slane %v6008_v35, 9  ;;  %v6158_v63 = vrot.slane %v10319_v47, 5  ;;  %v13070_v38 = vpop.permute.xlu1 %7167  ;;  %8046 = vmatmul.mubr.bf16.gmra.mxu0 %v7402_v32  ;;  %v6161_v49 = vrot.slane %v5608_v44, 5  ;;  %v6201_v32 = vld [vmem:[#allocation2 + $0xcc] sm:$0xf] }
 0x35f   : > { %v6568_v5 = vsel %vm10997_vm11, %v6563_v56, %v6567_v45  ;;  %v6573_v11 = vrot.slane %v6572_v53, 4  ;;  %v5632_v54 = vrot.slane %v5630_v33, 5  ;;  %v5627_v46 = vor.u32 %v5626_v16, %v5622_v36  ;;  %v6202_v28 = vld [vmem:[#allocation2 + $0xd0] sm:$0xf]  ;;  %v6218_v45 = vld [vmem:[#allocation2 + $0xd4] sm:$0x1] }
 0x360   : > { %v6159_v15 = vsel %vm11084_vm14, %v8967_v52, %v6158_v63  ;;  %v6160_v18 = vrot.slane %v6158_v63, 4  ;;  %v8941_v27 = vrot.slane %v5387_v6, 9  ;;  %v5483_v40 = vrot.slane %v10320_v62, 5  ;;  %v10325_v52 = vld [vmem:[#allocation2 + $0x18] sm:$0xf] }
 0x361   : > { %v6578_v2 = vsel %vm10997_vm11, %v6573_v11, %v6577_v8  ;;  %v5480_v57 = vrot.slane %v10321_v51, 5  ;;  %v8989_v43 = vcombine.low %v10322_v14, %v10321_v51  ;;  %v5628_v59 = vrot.slane %v5627_v46, 4  ;;  %v13080_v39 = vpop.permute.xlu0 %7047  ;;  %v6009_v63 = vld [vmem:[#allocation2 + $0xc0] sm:$0xe] }
 0x362   : > { %v9111_v23 = vcombine.low %v6568_v5, %v6578_v2  ;;  %v6162_v4 = vsel %vm11084_vm14, %v6160_v18, %v6161_v49  ;;  %v9082_v37 = vcombine.low %v10323_v26, %v10324_v21  ;;  %v6580_v8 = vshrl.u32 %v6201_v32, 16  ;;  %v10326_v18 = vld [vmem:[#allocation2 + $0x1c] sm:$0xf]  ;;  %v5609_v2 = vld [vmem:[#allocation2 + $0xc8] sm:$0x1] }
 0x363   : > { %v9079_v60 = vcombine.low %v6159_v15, %v6162_v4  ;;  %v5481_v50 = vsel %vm11084_vm14, %v8941_v27, %v5480_v57  ;;  %v5482_v48 = vrot.slane %v5480_v57, 4  ;;  %v7406_v9 = vsel %vm3302_vm15, %v8989_v43, %v13018_v13  ;;  %v5388_v26 = vld [vmem:[#allocation2 + $0x3c] sm:$0xe] }
 0x364   : > { %7335 = vrot.lane.b32.xlu0 %v9111_v23, %s10506_s26  ;;  %v5633_v55 = vsel %vm10997_vm11, %v5628_v59, %v5632_v54  ;;  %v7586_v35 = vsel %vm3302_vm15, %v9082_v37, %v13033_v0  ;;  %v6583_v20 = vshll.u32 %v6201_v32, 16  ;;  %v13091_v36 = vpop.permute.xlu1 %6903  ;;  %v6589_v13 = vshll.u32 %v6202_v28, 16  ;;  %v10328_v59 = vld [vmem:[#allocation2 + $0xc4] sm:$0xf] }
 0x365   : > { %v9049_v42 = vcombine.low %v5623_v7, %v5633_v55  ;;  %7191 = vrot.lane.b32.xlu1 %v9079_v60, %s10506_s26  ;;  %v5484_v44 = vsel %vm11084_vm14, %v5482_v48, %v5483_v40  ;;  %v6593_v3 = vshrl.u32 %v6202_v28, 16  ;;  %v6582_v53 = vrot.slane %v6580_v8, 4 }
 0x366   : > { %v9021_v56 = vcombine.low %v5481_v50, %v5484_v44  ;;  %v6585_v30 = vrot.slane %v6583_v20, 5  ;;  %v6599_v33 = vshll.u32 %v6218_v45, 16  ;;  %v6591_v0 = vrot.slane %v6589_v13, 5 }
 0x367   : > { %v7518_v6 = vsel %vm3302_vm15, %v9049_v42, %v12984_v31  ;;  %v6595_v16 = vrot.slane %v6593_v3, 4  ;;  %v5635_v47 = vshrl.u32 %v10325_v52, 16  ;;  %v5638_v54 = vshll.u32 %v10325_v52, 16  ;;  %v10329_v42 = vld [vmem:[#allocation2 + $0x44] sm:$0x1] }
 0x368   : > { %v7470_v7 = vsel %vm3302_vm15, %v9021_v56, %v13011_v19  ;;  %8183 = vmatmul.mubr.bf16.vlgmr.msra.gmra.mxu1 %v7518_v6  ;;  %v6586_v5 = vor.u32 %v6585_v30, %v6582_v53  ;;  %v6601_v11 = vrot.slane %v6599_v33, 5  ;;  %v13100_v49 = vpop.permute.xlu0 %7313  ;;  %v5644_v27 = vshll.u32 %v10326_v18, 16  ;;  %v13102_v62 = vpop.permute.xlu1 %7169  ;;  %v10327_v19 = vld [vmem:[#allocation2 + $0x20] sm:$0x1]  ;;  %v10331_v30 = vld [vmem:[#allocation2 + $0x3c] sm:$0xf] }
 0x369   : > { %8053 = vmatprep.mubr.bf16.mxu0 %v7470_v7  ;;  %v6596_v46 = vor.u32 %v6595_v16, %v6591_v0  ;;  %v5637_v15 = vrot.slane %v5635_v47, 4  ;;  %v5648_v31 = vshrl.u32 %v10326_v18, 16  ;;  %8190 = vmatprep.mubr.bf16.mxu1 %v7586_v35  ;;  %v5640_v51 = vrot.slane %v5638_v54, 5  ;;  %v10330_v56 = vld [vmem:[#allocation2 + $0x40] sm:$0xf] }
 0x36a   : > { %8054 = vmatmul.mubr.bf16.gmra.mxu0 %v7406_v9  ;;  %v6587_v40 = vrot.slane %v6586_v5, 4  ;;  %v5654_v57 = vshll.u32 %v10327_v19, 16  ;;  %v8968_v14 = vrot.slane %v6009_v63, 9  ;;  %v5646_v32 = vrot.slane %v5644_v27, 5  ;;  %v10332_v52 = vld [vmem:[#allocation2 + $0x30] sm:$0xf] }
 0x36b   : > { %v6597_v43 = vrot.slane %v6596_v46, 4  ;;  %v5650_v23 = vrot.slane %v5648_v31, 4  ;;  %v6165_v4 = vrot.slane %v10328_v59, 5  ;;  %v5641_v37 = vor.u32 %v5640_v51, %v5637_v15  ;;  %v13119_v47 = vld [vmem:[#allocation2 + $0x34] sm:$0xf] }
 0x36c   : > { %v6592_v21 = vsel %vm10997_vm11, %v6587_v40, %v6591_v0  ;;  %v5656_v28 = vrot.slane %v5654_v57, 5  ;;  %v6168_v60 = vrot.slane %v5609_v2, 5  ;;  %v13110_v55 = vpop.permute.xlu0 %7049  ;;  %v8942_v20 = vrot.slane %v5388_v26, 9  ;;  %v10334_v7 = vld [vmem:[#allocation2 + $0x24] sm:$0xf] }
 0x36d   : > { %v6602_v50 = vsel %vm10997_vm11, %v6597_v43, %v6601_v11  ;;  %v5651_v48 = vor.u32 %v5650_v23, %v5646_v32  ;;  %v6166_v9 = vsel %vm11084_vm14, %v8968_v14, %v6165_v4  ;;  %v6167_v45 = vrot.slane %v6165_v4, 4  ;;  %v5389_v18 = vld [vmem:[#allocation2 + $0x48] sm:$0xe]  ;;  %v10336_v43 = vld [vmem:[#allocation2 + $0x2c] sm:$0x1] }
 0x36e   : > { %v9112_v35 = vcombine.low %v6592_v21, %v6602_v50  ;;  %v5642_v8 = vrot.slane %v5641_v37, 4  ;;  %v5490_v44 = vrot.slane %v10329_v42, 5  ;;  %v5487_v53 = vrot.slane %v10330_v56, 5  ;;  %v10335_v19 = vld [vmem:[#allocation2 + $0x28] sm:$0xf] }
 0x36f   : > { %v5652_v13 = vrot.slane %v5651_v48, 4  ;;  %v6169_v3 = vsel %vm11084_vm14, %v6167_v45, %v6168_v60  ;;  %v8990_v33 = vcombine.low %v10331_v30, %v10330_v56  ;;  %v13114_v6 = vpop.permute.xlu1 %6905  ;;  %v9083_v63 = vcombine.low %v10332_v52, %v13119_v47  ;;  %v10337_v60 = vld [vmem:[#allocation2 + $0x50] sm:$0x1]  ;;  %v10338_v45 = vld [vmem:[#allocation2 + $0x4c] sm:$0xf] }
 0x370   : > { %7337 = vrot.lane.b32.xlu0 %v9112_v35, %s10506_s26  ;;  %v5647_v0 = vsel %vm10997_vm11, %v5642_v8, %v5646_v32  ;;  %v9080_v16 = vcombine.low %v6166_v9, %v6169_v3  ;;  %v5659_v5 = vshrl.u32 %v10334_v7, 16  ;;  %v5488_v54 = vsel %vm11084_vm14, %v8942_v20, %v5487_v53  ;;  %v10339_v8 = vld [vmem:[#allocation2 + $0x48] sm:$0xf]  ;;  %v10340_v42 = vld [vmem:[#allocation2 + $0x3c] sm:$0xf] }
 0x371   : > { %v5657_v11 = vsel %vm10997_vm11, %v5652_v13, %v5656_v28  ;;  %v5489_v46 = vrot.slane %v5487_v53, 4  ;;  %v7410_v15 = vsel %vm3302_vm15, %v8990_v33, %v13062_v17  ;;  %v7590_v31 = vsel %vm3302_vm15, %v9083_v63, %v13068_v12  ;;  %v10342_v3 = vld [vmem:[#allocation2 + $0x30] sm:$0xf] }
 0x372   : > { %v9050_v27 = vcombine.low %v5647_v0, %v5657_v11  ;;  %7193 = vrot.lane.b32.xlu1 %v9080_v16, %s10506_s26  ;;  %v5661_v2 = vrot.slane %v5659_v5, 4  ;;  %v5662_v40 = vshll.u32 %v10334_v7, 16  ;;  %v5668_v57 = vshll.u32 %v10335_v19, 16  ;;  %v13133_v23 = vpop.permute.xlu0 %7315  ;;  %v5390_v11 = vld [vmem:[#allocation2 + $0x54] sm:$0xe] }
 0x373   : > { %v5491_v51 = vsel %vm11084_vm14, %v5489_v46, %v5490_v44  ;;  %v5672_v14 = vshrl.u32 %v10335_v19, 16  ;;  %v5678_v32 = vshll.u32 %v10336_v43, 16  ;;  %v13135_v17 = vpop.permute.xlu1 %7171  ;;  %v8943_v12 = vrot.slane %v5389_v18, 9  ;;  %v13141_v44 = vld [vmem:[#allocation2 + $0x40] sm:$0xf] }
 0x374   : > { %v7522_v59 = vsel %vm3302_vm15, %v9050_v27, %v13037_v25  ;;  %v9022_v4 = vcombine.low %v5488_v54, %v5491_v51  ;;  %v5664_v26 = vrot.slane %v5662_v40, 5  ;;  %v5670_v21 = vrot.slane %v5668_v57, 5  ;;  %v10343_v18 = vld [vmem:[#allocation2 + $0x34] sm:$0xf] }
 0x375   : > { %8191 = vmatmul.mubr.bf16.gmra.mxu1 %v7522_v59  ;;  %v5674_v37 = vrot.slane %v5672_v14, 4  ;;  %v5680_v28 = vrot.slane %v5678_v32, 5  ;;  %v5497_v50 = vrot.slane %v10337_v60, 5  ;;  %v5494_v35 = vrot.slane %v10338_v45, 5  ;;  %v10346_v60 = vld [vmem:[#allocation2 + $0x58] sm:$0xf] }
 0x376   : > { %v7474_v48 = vsel %vm3302_vm15, %v9022_v4, %v13054_v58  ;;  %v5665_v9 = vor.u32 %v5664_v26, %v5661_v2  ;;  %8198 = vmatprep.mubr.bf16.mxu1 %v7590_v31  ;;  %v8991_v20 = vcombine.low %v10339_v8, %v10338_v45  ;;  %v9084_v13 = vcombine.low %v10340_v42, %v13141_v44  ;;  %v13144_v30 = vpop.permute.xlu0 %7051  ;;  %v10345_v26 = vld [vmem:[#allocation2 + $0x5c] sm:$0x1]  ;;  %v13170_v8 = vld [vmem:[#allocation2 + $0x4c] sm:$0xf] }
 0x377   : > { %8061 = vmatprep.mubr.bf16.mxu0 %v7474_v48  ;;  %v5675_v25 = vor.u32 %v5674_v37, %v5670_v21  ;;  %v5683_v56 = vshrl.u32 %v10342_v3, 16  ;;  %v5686_v53 = vshll.u32 %v10342_v3, 16  ;;  %v5495_v33 = vsel %vm11084_vm14, %v8943_v12, %v5494_v35  ;;  %v10347_v48 = vld [vmem:[#allocation2 + $0x54] sm:$0xf] }
 0x378   : > { %8062 = vmatmul.mubr.bf16.gmra.mxu0 %v7410_v15  ;;  %v5666_v58 = vrot.slane %v5665_v9, 4  ;;  %v5496_v0 = vrot.slane %v5494_v35, 4  ;;  %v7414_v16 = vsel %vm3302_vm15, %v8991_v20, %v13091_v36  ;;  %v7594_v63 = vsel %vm3302_vm15, %v9084_v13, %v13100_v49  ;;  %v10344_v49 = vld [vmem:[#allocation2 + $0x38] sm:$0x1]  ;;  %v10348_v35 = vld [vmem:[#allocation2 + $0x48] sm:$0xf] }
 0x379   : > { %v5676_v52 = vrot.slane %v5675_v25, 4  ;;  %v5685_v7 = vrot.slane %v5683_v56, 4  ;;  %v5688_v5 = vrot.slane %v5686_v53, 5  ;;  %v13152_v54 = vpop.permute.xlu1 %6907  ;;  %v5692_v27 = vshll.u32 %v10343_v18, 16  ;;  %v10350_v25 = vld [vmem:[#allocation2 + $0x3c] sm:$0xf] }
 0x37a   : > { %v5671_v46 = vsel %vm10997_vm11, %v5666_v58, %v5670_v21  ;;  %v5498_v15 = vsel %vm11084_vm14, %v5496_v0, %v5497_v50  ;;  %v5696_v31 = vshrl.u32 %v10343_v18, 16  ;;  %v5702_v51 = vshll.u32 %v10344_v49, 16  ;;  %v10353_v49 = vld [vmem:[#allocation2 + $0x68] sm:$0x1] }
 0x37b   : > { %v5681_v36 = vsel %vm10997_vm11, %v5676_v52, %v5680_v28  ;;  %v9023_v2 = vcombine.low %v5495_v33, %v5498_v15  ;;  %v5689_v40 = vor.u32 %v5688_v5, %v5685_v7  ;;  %v5694_v57 = vrot.slane %v5692_v27, 5  ;;  %v10351_v52 = vld [vmem:[#allocation2 + $0x40] sm:$0xf]  ;;  %v10352_v15 = vld [vmem:[#allocation2 + $0x44] sm:$0x1] }
 0x37c   : > { %v9051_v19 = vcombine.low %v5671_v46, %v5681_v36  ;;  %v5698_v14 = vrot.slane %v5696_v31, 4  ;;  %v8944_v43 = vrot.slane %v5390_v11, 9  ;;  %v5704_v4 = vrot.slane %v5702_v51, 5  ;;  %v5391_v5 = vld [vmem:[#allocation2 + $0x60] sm:$0xe] }
 0x37d   : > { %v7478_v32 = vsel %vm3302_vm15, %v9023_v2, %v13080_v39  ;;  %v5690_v59 = vrot.slane %v5689_v40, 4  ;;  %v5504_v12 = vrot.slane %v10345_v26, 5  ;;  %v13162_v21 = vpop.permute.xlu0 %7317  ;;  %v5501_v50 = vrot.slane %v10346_v60, 5  ;;  %v13166_v45 = vpop.permute.xlu1 %7173  ;;  %v10355_v26 = vld [vmem:[#allocation2 + $0x60] sm:$0xf] }
 0x37e   : > { %v7526_v37 = vsel %vm3302_vm15, %v9051_v19, %v13070_v38  ;;  %8069 = vmatprep.mubr.bf16.mxu0 %v7478_v32  ;;  %v5699_v28 = vor.u32 %v5698_v14, %v5694_v57  ;;  %v8992_v9 = vcombine.low %v10347_v48, %v10346_v60  ;;  %v9085_v20 = vcombine.low %v10348_v35, %v13170_v8  ;;  %v10354_v32 = vld [vmem:[#allocation2 + $0x64] sm:$0xf]  ;;  %v5392_v35 = vld [vmem:[#allocation2 + $0x6c] sm:$0xe] }
 0x37f   : > { %8199 = vmatmul.mubr.bf16.gmra.mxu1 %v7526_v37  ;;  %v5695_v39 = vsel %vm10997_vm11, %v5690_v59, %v5694_v57  ;;  %v5707_v42 = vshrl.u32 %v10350_v25, 16  ;;  %v5710_v38 = vshll.u32 %v10350_v25, 16  ;;  %v5502_v3 = vsel %vm11084_vm14, %v8944_v43, %v5501_v50  ;;  %v10356_v37 = vld [vmem:[#allocation2 + $0x54] sm:$0xf] }
 0x380   : > { %8070 = vmatmul.mubr.bf16.gmra.mxu0 %v7414_v16  ;;  %v5700_v13 = vrot.slane %v5699_v28, 4  ;;  %v5503_v56 = vrot.slane %v5501_v50, 4  ;;  %8206 = vmatprep.mubr.bf16.mxu1 %v7594_v63  ;;  %v7418_v53 = vsel %vm3302_vm15, %v8992_v9, %v13114_v6  ;;  %v7598_v58 = vsel %vm3302_vm15, %v9085_v20, %v13133_v23  ;;  %v13191_v28 = vld [vmem:[#allocation2 + $0x58] sm:$0xf]  ;;  %v10358_v50 = vld [vmem:[#allocation2 + $0x48] sm:$0xf] }
 0x381   : > { %v5709_v33 = vrot.slane %v5707_v42, 4  ;;  %v5712_v0 = vrot.slane %v5710_v38, 5  ;;  %v5716_v7 = vshll.u32 %v10351_v52, 16  ;;  %v5720_v46 = vshrl.u32 %v10351_v52, 16  ;;  %v13183_v18 = vpop.permute.xlu0 %7053 }
 0x382   : > { %v5705_v16 = vsel %vm10997_vm11, %v5700_v13, %v5704_v4  ;;  %v5505_v11 = vsel %vm11084_vm14, %v5503_v56, %v5504_v12  ;;  %v5726_v63 = vshll.u32 %v10352_v15, 16  ;;  %v8945_v40 = vrot.slane %v5391_v5, 9  ;;  %v10360_v5 = vld [vmem:[#allocation2 + $0x50] sm:$0x1] }
 0x383   : > { %v9052_v6 = vcombine.low %v5695_v39, %v5705_v16  ;;  %v9024_v27 = vcombine.low %v5502_v3, %v5505_v11  ;;  %v5713_v31 = vor.u32 %v5712_v0, %v5709_v33  ;;  %v5718_v23 = vrot.slane %v5716_v7, 5  ;;  %v10359_v33 = vld [vmem:[#allocation2 + $0x4c] sm:$0xf] }
 0x384   : > { %v5722_v36 = vrot.slane %v5720_v46, 4  ;;  %v5728_v2 = vrot.slane %v5726_v63, 5  ;;  %v5511_v51 = vrot.slane %v10353_v49, 5  ;;  %v13185_v19 = vpop.permute.xlu1 %6909  ;;  %v5508_v59 = vrot.slane %v10354_v32, 5 }
 0x385   : > { %v7530_v57 = vsel %vm3302_vm15, %v9052_v6, %v13102_v62  ;;  %v7482_v14 = vsel %vm3302_vm15, %v9024_v27, %v13110_v55  ;;  %v5714_v43 = vrot.slane %v5713_v31, 4  ;;  %v8993_v12 = vcombine.low %v10355_v26, %v10354_v32  ;;  %v10361_v27 = vld [vmem:[#allocation2 + $0x74] sm:$0x1] }
 0x386   : > { %8077 = vmatprep.mubr.bf16.mxu0 %v7482_v14  ;;  %v5723_v4 = vor.u32 %v5722_v36, %v5718_v23  ;;  %v9086_v60 = vcombine.low %v10356_v37, %v13191_v28  ;;  %v5731_v48 = vshrl.u32 %v10358_v50, 16  ;;  %v5509_v55 = vsel %vm11084_vm14, %v8945_v40, %v5508_v59  ;;  %v10366_v26 = vld [vmem:[#allocation2 + $0x54] sm:$0xf] }
 0x387   : > { %8207 = vmatmul.mubr.bf16.gmra.mxu1 %v7530_v57  ;;  %v5719_v62 = vsel %vm10997_vm11, %v5714_v43, %v5718_v23  ;;  %v5510_v9 = vrot.slane %v5508_v59, 4  ;;  %v5734_v39 = vshll.u32 %v10358_v50, 16  ;;  %v7422_v25 = vsel %vm3302_vm15, %v8993_v12, %v13152_v54  ;;  %v7320_v13 = vpop.permute.xlu0 %7319  ;;  %v10362_v23 = vld [vmem:[#allocation2 + $0x70] sm:$0xf]  ;;  %v13216_v59 = vld [vmem:[#allocation2 + $0x64] sm:$0xf] }
 0x388   : > { %8078 = vmatmul.mubr.bf16.gmra.mxu0 %v7418_v53  ;;  %v5724_v20 = vrot.slane %v5723_v4, 4  ;;  %8214 = vmatprep.mubr.bf16.mxu1 %v7598_v58  ;;  %v7602_v42 = vsel %vm3302_vm15, %v9086_v60, %v13162_v21  ;;  %v5733_v38 = vrot.slane %v5731_v48, 4  ;;  %v5740_v0 = vshll.u32 %v10359_v33, 16  ;;  %v13204_v7 = vpop.permute.xlu1 %7175  ;;  %v5393_v48 = vld [vmem:[#allocation2 + $0x78] sm:$0xe] }
 0x389   : > { %v5512_v3 = vsel %vm11084_vm14, %v5510_v9, %v5511_v51  ;;  %v5736_v56 = vrot.slane %v5734_v39, 5  ;;  %v5744_v52 = vshrl.u32 %v10359_v33, 16  ;;  %v5750_v54 = vshll.u32 %v10360_v5, 16  ;;  %v10363_v51 = vld [vmem:[#allocation2 + $0x6c] sm:$0xf] }
 0x38a   : > { %v5729_v53 = vsel %vm10997_vm11, %v5724_v20, %v5728_v2  ;;  %v9025_v58 = vcombine.low %v5509_v55, %v5512_v3  ;;  %v8946_v16 = vrot.slane %v5392_v35, 9  ;;  %v5742_v46 = vrot.slane %v5740_v0, 5  ;;  %v10367_v35 = vld [vmem:[#allocation2 + $0x58] sm:$0xf] }
 0x38b   : > { %v9053_v11 = vcombine.low %v5719_v62, %v5729_v53  ;;  %v5737_v21 = vor.u32 %v5736_v56, %v5733_v38  ;;  %v5746_v15 = vrot.slane %v5744_v52, 4  ;;  %v5752_v6 = vrot.slane %v5750_v54, 5  ;;  %v13212_v14 = vpop.permute.xlu0 %7055  ;;  %v10368_v52 = vld [vmem:[#allocation2 + $0x5c] sm:$0x1] }
 0x38c   : > { %v7486_v63 = vsel %vm3302_vm15, %v9025_v58, %v13144_v30  ;;  %v5518_v31 = vrot.slane %v10361_v27, 5  ;;  %v5515_v36 = vrot.slane %v10362_v23, 5  ;;  %v8994_v57 = vcombine.low %v10363_v51, %v10362_v23  ;;  %v10364_v30 = vld [vmem:[#allocation2 + $0x60] sm:$0xf]  ;;  %v10372_v23 = vld [vmem:[#allocation2 + $0x6c] sm:$0xf] }
 0x38d   : > { %v7534_v40 = vsel %vm3302_vm15, %v9053_v11, %v13135_v17  ;;  %8085 = vmatprep.mubr.bf16.mxu0 %v7486_v63  ;;  %v5738_v2 = vrot.slane %v5737_v21, 4  ;;  %v5747_v49 = vor.u32 %v5746_v15, %v5742_v46  ;;  %v9087_v4 = vcombine.low %v10364_v30, %v13216_v59  ;;  %v10371_v63 = vld [vmem:[#allocation2 + $0x78] sm:$0xf] }
 0x38e   : > { %v5516_v43 = vsel %vm11084_vm14, %v8946_v16, %v5515_v36  ;;  %v5517_v32 = vrot.slane %v5515_v36, 4  ;;  %v5755_v12 = vshrl.u32 %v10366_v26, 16  ;;  %v7426_v60 = vsel %vm3302_vm15, %v8994_v57, %v13185_v19  ;;  %v6912_v62 = vpop.permute.xlu1 %6911  ;;  %v13232_v36 = vld [vmem:[#allocation2 + $0x70] sm:$0xf] }
 0x38f   : > { %8215 = vmatmul.mubr.bf16.gmra.mxu1 %v7534_v40  ;;  %v5743_v17 = vsel %vm10997_vm11, %v5738_v2, %v5742_v46  ;;  %v5748_v37 = vrot.slane %v5747_v49, 4  ;;  %v5758_v50 = vshll.u32 %v10366_v26, 16  ;;  %v7606_v9 = vsel %vm3302_vm15, %v9087_v4, %v7320_v13  ;;  %v10369_v13 = vld [vmem:[#allocation2 + $0x80] sm:$0x1]  ;;  %v10370_v46 = vld [vmem:[#allocation2 + $0x7c] sm:$0xf] }
 0x390   : > { %8086 = vmatmul.mubr.bf16.gmra.mxu0 %v7422_v25  ;;  %v5519_v55 = vsel %vm11084_vm14, %v5517_v32, %v5518_v31  ;;  %8222 = vmatprep.mubr.bf16.mxu1 %v7602_v42  ;;  %v5757_v39 = vrot.slane %v5755_v12, 4  ;;  %v5764_v20 = vshll.u32 %v10367_v35, 16  ;;  %v5768_v33 = vshrl.u32 %v10367_v35, 16  ;;  %v10374_v40 = vld [vmem:[#allocation2 + $0x60] sm:$0xf] }
 0x391   : > { %v5753_v38 = vsel %vm10997_vm11, %v5748_v37, %v5752_v6  ;;  %v9026_v3 = vcombine.low %v5516_v43, %v5519_v55  ;;  %v5760_v56 = vrot.slane %v5758_v50, 5  ;;  %v5774_v53 = vshll.u32 %v10368_v52, 16  ;;  %v5394_v32 = vld [vmem:[#allocation2 + $0x84] sm:$0xe]  ;;  %v10376_v35 = vld [vmem:[#allocation2 + $0x68] sm:$0x1] }
 0x392   : > { %v9054_v19 = vcombine.low %v5743_v17, %v5753_v38  ;;  %v5766_v0 = vrot.slane %v5764_v20, 5  ;;  %v8947_v25 = vrot.slane %v5393_v48, 9  ;;  %v5770_v5 = vrot.slane %v5768_v33, 4  ;;  %v7322_v16 = vpop.permute.xlu0 %7321  ;;  %v13235_v49 = vpop.permute.xlu1 %7177  ;;  %v10375_v50 = vld [vmem:[#allocation2 + $0x64] sm:$0xf] }
 0x393   : > { %v7490_v58 = vsel %vm3302_vm15, %v9026_v3, %v13183_v18  ;;  %v5761_v42 = vor.u32 %v5760_v56, %v5757_v39  ;;  %v5525_v54 = vrot.slane %v10369_v13, 5  ;;  %v5776_v21 = vrot.slane %v5774_v53, 5  ;;  %v10377_v52 = vld [vmem:[#allocation2 + $0x8c] sm:$0x1] }
 0x394   : > { %v7538_v11 = vsel %vm3302_vm15, %v9054_v19, %v13166_v45  ;;  %8093 = vmatprep.mubr.bf16.mxu0 %v7490_v58  ;;  %v5522_v15 = vrot.slane %v10370_v46, 5  ;;  %v8995_v6 = vcombine.low %v10371_v63, %v10370_v46  ;;  %v5771_v31 = vor.u32 %v5770_v5, %v5766_v0 }
 0x395   : > { %v5762_v27 = vrot.slane %v5761_v42, 4  ;;  %v9088_v18 = vcombine.low %v10372_v23, %v13232_v36  ;;  %v5779_v2 = vshrl.u32 %v10374_v40, 16  ;;  %v5782_v43 = vshll.u32 %v10374_v40, 16 }
 0x396   : > { %v5523_v45 = vsel %vm11084_vm14, %v8947_v25, %v5522_v15  ;;  %v5524_v51 = vrot.slane %v5522_v15, 4  ;;  %v7430_v57 = vsel %vm3302_vm15, %v8995_v6, %v6912_v62  ;;  %v5772_v4 = vrot.slane %v5771_v31, 4  ;;  %v7058_v3 = vpop.permute.xlu0 %7057  ;;  %v10378_v25 = vld [vmem:[#allocation2 + $0x88] sm:$0xf]  ;;  %v10380_v15 = vld [vmem:[#allocation2 + $0x78] sm:$0xf] }
 0x397   : > { %8223 = vmatmul.mubr.bf16.gmra.mxu1 %v7538_v11  ;;  %v5767_v30 = vsel %vm10997_vm11, %v5762_v27, %v5766_v0  ;;  %v7610_v26 = vsel %vm3302_vm15, %v9088_v18, %v7322_v16  ;;  %v5781_v12 = vrot.slane %v5779_v2, 4  ;;  %v5784_v37 = vrot.slane %v5782_v43, 5  ;;  %v10379_v16 = vld [vmem:[#allocation2 + $0x84] sm:$0xf]  ;;  %v10382_v27 = vld [vmem:[#allocation2 + $0x6c] sm:$0xf] }
 0x398   : > { %8094 = vmatmul.mubr.bf16.gmra.mxu0 %v7426_v60  ;;  %v5526_v17 = vsel %vm11084_vm14, %v5524_v51, %v5525_v54  ;;  %8230 = vmatprep.mubr.bf16.mxu1 %v7606_v9  ;;  %v5788_v48 = vshll.u32 %v10375_v50, 16  ;;  %v5792_v55 = vshrl.u32 %v10375_v50, 16  ;;  %v5777_v62 = vsel %vm10997_vm11, %v5772_v4, %v5776_v21  ;;  %v6603_v2 = vld [vmem:[#allocation2 + $0x18] sm:$0xe]  ;;  %v6604_v50 = vld [vmem:[#allocation2 + $0x24] sm:$0xe] }
 0x399   : > { %v9027_v39 = vcombine.low %v5523_v45, %v5526_v17  ;;  %v5798_v20 = vshll.u32 %v10376_v35, 16  ;;  %v8948_v38 = vrot.slane %v5394_v32, 9  ;;  %v9055_v56 = vcombine.low %v5767_v30, %v5777_v62  ;;  %v6914_v42 = vpop.permute.xlu1 %6913  ;;  %v10383_v32 = vld [vmem:[#allocation2 + $0x70] sm:$0xf]  ;;  %v10384_v62 = vld [vmem:[#allocation2 + $0x74] sm:$0x1] }
 0x39a   : > { %v5785_v33 = vor.u32 %v5784_v37, %v5781_v12  ;;  %v5790_v19 = vrot.slane %v5788_v48, 5  ;;  %v5794_v60 = vrot.slane %v5792_v55, 4  ;;  %v5532_v53 = vrot.slane %v10377_v52, 5 }
 0x39b   : > { %v7494_v0 = vsel %vm3302_vm15, %v9027_v39, %v13212_v14  ;;  %v5800_v9 = vrot.slane %v5798_v20, 5  ;;  %v5529_v58 = vrot.slane %v10378_v25, 5  ;;  %v7542_v5 = vsel %vm3302_vm15, %v9055_v56, %v13204_v7  ;;  %v13253_v14 = vld [vmem:[#allocation2 + $0x7c] sm:$0xf] }
 0x39c   : > { %8101 = vmatprep.mubr.bf16.mxu0 %v7494_v0  ;;  %v5786_v13 = vrot.slane %v5785_v33, 4  ;;  %v5795_v54 = vor.u32 %v5794_v60, %v5790_v19  ;;  %v8996_v11 = vcombine.low %v10379_v16, %v10378_v25  ;;  %v9089_v63 = vcombine.low %v10380_v15, %v13253_v14  ;;  %v7324_v6 = vpop.permute.xlu0 %7323 }
 0x39d   : > { %v5530_v21 = vsel %vm11084_vm14, %v8948_v38, %v5529_v58  ;;  %v5531_v46 = vrot.slane %v5529_v58, 4  ;;  %v5803_v31 = vshrl.u32 %v10382_v27, 16  ;;  %v5806_v40 = vshll.u32 %v10382_v27, 16 }
 0x39e   : > { %v5791_v7 = vsel %vm10997_vm11, %v5786_v13, %v5790_v19  ;;  %v5796_v23 = vrot.slane %v5795_v54, 4  ;;  %v7434_v18 = vsel %vm3302_vm15, %v8996_v11, %v6914_v42  ;;  %v7614_v51 = vsel %vm3302_vm15, %v9089_v63, %v7324_v6 }
 0x39f   : > { %8231 = vmatmul.mubr.bf16.gmra.mxu1 %v7542_v5  ;;  %v5533_v45 = vsel %vm11084_vm14, %v5531_v46, %v5532_v53  ;;  %v5805_v43 = vrot.slane %v5803_v31, 4  ;;  %v5812_v30 = vshll.u32 %v10383_v32, 16  ;;  %v5808_v17 = vrot.slane %v5806_v40, 5  ;;  %v10388_v5 = vld [vmem:[#allocation2 + $0x78] sm:$0xf]  ;;  %v7180_v31 = vpop.permute.xlu1 %7179 }
 0x3a0   : > { %8102 = vmatmul.mubr.bf16.gmra.mxu0 %v7430_v57  ;;  %v5801_v4 = vsel %vm10997_vm11, %v5796_v23, %v5800_v9  ;;  %v9028_v12 = vcombine.low %v5530_v21, %v5533_v45  ;;  %8238 = vmatprep.mubr.bf16.mxu1 %v7610_v26  ;;  %v5816_v37 = vshrl.u32 %v10383_v32, 16  ;;  %v5822_v39 = vshll.u32 %v10384_v62, 16  ;;  %v10385_v26 = vld [vmem:[#allocation2 + $0x20] sm:$0x1] }
 0x3a1   : > { %v9056_v48 = vcombine.low %v5791_v7, %v5801_v4  ;;  %v5814_v55 = vrot.slane %v5812_v30, 5  ;;  %v8969_v35 = vrot.slane %v6603_v2, 9  ;;  %v5809_v38 = vor.u32 %v5808_v17, %v5805_v43  ;;  %v10389_v7 = vld [vmem:[#allocation2 + $0x7c] sm:$0xf]  ;;  %v10390_v2 = vld [vmem:[#allocation2 + $0x80] sm:$0x1] }
 0x3a2   : > { %v7498_v20 = vsel %vm3302_vm15, %v9028_v12, %v7058_v3  ;;  %v5818_v56 = vrot.slane %v5816_v37, 4  ;;  %v6669_v33 = vrot.slane %v13041_v1, 5  ;;  %v5824_v19 = vrot.slane %v5822_v39, 5  ;;  %v10386_v3 = vld [vmem:[#allocation2 + $0x84] sm:$0xf] }
 0x3a3   : > { %v7546_v57 = vsel %vm3302_vm15, %v9056_v48, %v13235_v49  ;;  %8109 = vmatprep.mubr.bf16.mxu0 %v7498_v20  ;;  %v6672_v60 = vrot.slane %v10385_v26, 5  ;;  %v8970_v0 = vrot.slane %v6604_v50, 9  ;;  %v5810_v9 = vrot.slane %v5809_v38, 4  ;;  %v7326_v58 = vpop.permute.xlu0 %7325  ;;  %v13276_v49 = vld [vmem:[#allocation2 + $0x88] sm:$0xf] }
 0x3a4   : > { %v5819_v52 = vor.u32 %v5818_v56, %v5814_v55  ;;  %v6670_v53 = vsel %vm11084_vm14, %v8969_v35, %v6669_v33  ;;  %v6671_v25 = vrot.slane %v6669_v33, 4  ;;  %v9090_v42 = vcombine.low %v10386_v3, %v13276_v49  ;;  %v6606_v4 = vld [vmem:[#allocation2 + $0x3c] sm:$0xe]  ;;  %v10391_v37 = vld [vmem:[#allocation2 + $0x38] sm:$0x1] }
 0x3a5   : > { %v13274_v1 = vsel %vm11084_vm14, %v8970_v0, %v6676_v61  ;;  %v5827_v13 = vshrl.u32 %v10388_v5, 16  ;;  %v5830_v54 = vshll.u32 %v10388_v5, 16  ;;  %v5815_v16 = vsel %vm10997_vm11, %v5810_v9, %v5814_v55  ;;  %v6605_v61 = vld [vmem:[#allocation2 + $0x30] sm:$0xe]  ;;  %v10392_v38 = vld [vmem:[#allocation2 + $0x44] sm:$0x1] }
 0x3a6   : > { %v5820_v11 = vrot.slane %v5819_v52, 4  ;;  %v6673_v21 = vsel %vm11084_vm14, %v6671_v25, %v6672_v60  ;;  %v9114_v10 = vcombine.low %v13274_v1, %v12661_v41  ;;  %v7618_v15 = vsel %vm3302_vm15, %v9090_v42, %v7326_v58  ;;  %v13298_v26 = vld [vmem:[#allocation2 + $0x94] sm:$0xf]  ;;  %v10395_v0 = vld [vmem:[#allocation2 + $0x84] sm:$0xf] }
 0x3a7   : > { %8239 = vmatmul.mubr.bf16.gmra.mxu1 %v7546_v57  ;;  %v9113_v46 = vcombine.low %v6670_v53, %v6673_v21  ;;  %v5829_v63 = vrot.slane %v5827_v13, 4  ;;  %v5832_v6 = vrot.slane %v5830_v54, 5  ;;  %v5836_v23 = vshll.u32 %v10389_v7, 16  ;;  %v10396_v42 = vld [vmem:[#allocation2 + $0x88] sm:$0xf] }
 0x3a8   : > { %8110 = vmatmul.mubr.bf16.gmra.mxu0 %v7434_v18  ;;  %v5825_v27 = vsel %vm10997_vm11, %v5820_v11, %v5824_v19  ;;  %8246 = vmatprep.mubr.bf16.mxu1 %v7614_v51  ;;  %v5840_v40 = vshrl.u32 %v10389_v7, 16  ;;  %v5846_v45 = vshll.u32 %v10390_v2, 16  ;;  %v8971_v32 = vrot.slane %v6605_v61, 9  ;;  %v10393_v19 = vld [vmem:[#allocation2 + $0x90] sm:$0xf] }
 0x3a9   : > { %v9057_v43 = vcombine.low %v5815_v16, %v5825_v27  ;;  %9863 = vmatprep.mubr.msk.bf16.mxu0 %vm3302_vm15, %v9113_v46  ;;  %v5833_v41 = vor.u32 %v5832_v6, %v5829_v63  ;;  %v6683_v30 = vrot.slane %v13119_v47, 5  ;;  %v5838_v12 = vrot.slane %v5836_v23, 5  ;;  %v7328_v47 = vpop.permute.xlu0 %7327  ;;  %v6607_v13 = vld [vmem:[#allocation2 + $0x48] sm:$0xe]  ;;  %v7182_v16 = vpop.permute.xlu1 %7181  ;;  %v10397_v61 = vld [vmem:[#allocation2 + $0x8c] sm:$0x1] }
 0x3aa   : > { %v5842_v18 = vrot.slane %v5840_v40, 4  ;;  %v5848_v17 = vrot.slane %v5846_v45, 5  ;;  %v6686_v50 = vrot.slane %v10391_v37, 5  ;;  %v8972_v35 = vrot.slane %v6606_v4, 9  ;;  %v6608_v63 = vld [vmem:[#allocation2 + $0x54] sm:$0xe] }
 0x3ab   : > { %v7550_v51 = vsel %vm3302_vm15, %v9057_v43, %v7180_v31  ;;  %v5834_v48 = vrot.slane %v5833_v41, 4  ;;  %v6684_v55 = vsel %vm11084_vm14, %v8971_v32, %v6683_v30  ;;  %v6685_v62 = vrot.slane %v6683_v30, 4  ;;  %v10398_v43 = vld [vmem:[#allocation2 + $0x50] sm:$0x1]  ;;  %v10399_v37 = vld [vmem:[#allocation2 + $0x5c] sm:$0x1] }
 0x3ac   : > { %v5843_v39 = vor.u32 %v5842_v18, %v5838_v12  ;;  %v6690_v20 = vrot.slane %v13141_v44, 5  ;;  %v6693_v56 = vrot.slane %v10392_v38, 5  ;;  %v9091_v60 = vcombine.low %v10393_v19, %v13298_v26  ;;  %v6609_v19 = vld [vmem:[#allocation2 + $0x60] sm:$0xe] }
 0x3ad   : > { %v5839_v33 = vsel %vm10997_vm11, %v5834_v48, %v5838_v12  ;;  %v6687_v57 = vsel %vm11084_vm14, %v6685_v62, %v6686_v50  ;;  %v5851_v9 = vshrl.u32 %v10395_v0, 16  ;;  %v5854_v3 = vshll.u32 %v10395_v0, 16  ;;  %v13315_v48 = vld [vmem:[#allocation2 + $0xa0] sm:$0xf]  ;;  %v7184_v0 = vpop.permute.xlu1 %7183 }
 0x3ae   : > { %v5844_v52 = vrot.slane %v5843_v39, 4  ;;  %v9115_v53 = vcombine.low %v6684_v55, %v6687_v57  ;;  %v6691_v44 = vsel %vm11084_vm14, %v8972_v35, %v6690_v20  ;;  %v6692_v25 = vrot.slane %v6690_v20, 4  ;;  %v10402_v55 = vld [vmem:[#allocation2 + $0x90] sm:$0xf] }
 0x3af   : > { %8247 = vmatmul.mubr.bf16.gmra.mxu1 %v7550_v51  ;;  %v7622_v58 = vsel %vm3302_vm15, %v9091_v60, %v7328_v47  ;;  %v5853_v1 = vrot.slane %v5851_v9, 4  ;;  %v5860_v5 = vshll.u32 %v10396_v42, 16  ;;  %v5864_v21 = vshrl.u32 %v10396_v42, 16  ;;  %v10400_v51 = vld [vmem:[#allocation2 + $0x9c] sm:$0xf] }
 0x3b0   : > { %9864 = vmatmul.mubr.msk.bf16.vlgmr.msra.gmra.mxu0 %vm3302_vm15, %v9114_v10  ;;  %v5849_v54 = vsel %vm10997_vm11, %v5844_v52, %v5848_v17  ;;  %8254 = vmatprep.mubr.bf16.mxu1 %v7618_v15  ;;  %v6694_v11 = vsel %vm11084_vm14, %v6692_v25, %v6693_v56  ;;  %v5870_v46 = vshll.u32 %v10397_v61, 16  ;;  %v5856_v31 = vrot.slane %v5854_v3, 5  ;;  %v10404_v42 = vld [vmem:[#allocation2 + $0x98] sm:$0x1] }
 0x3b1   : > { %v9058_v6 = vcombine.low %v5839_v33, %v5849_v54  ;;  %9867 = vmatprep.mubr.msk.bf16.mxu0 %vm3302_vm15, %v9115_v53  ;;  %v9116_v27 = vcombine.low %v6691_v44, %v6694_v11  ;;  %v5862_v7 = vrot.slane %v5860_v5, 5  ;;  %v5866_v23 = vrot.slane %v5864_v21, 4  ;;  %v10403_v53 = vld [vmem:[#allocation2 + $0x94] sm:$0xf] }
 0x3b2   : > { %v5872_v10 = vrot.slane %v5870_v46, 5  ;;  %v8973_v40 = vrot.slane %v6607_v13, 9  ;;  %v6697_v2 = vrot.slane %v13170_v8, 5  ;;  %v5857_v45 = vor.u32 %v5856_v31, %v5853_v1  ;;  %v6610_v13 = vld [vmem:[#allocation2 + $0x6c] sm:$0xe] }
 0x3b3   : > { %v7554_v15 = vsel %vm3302_vm15, %v9058_v6, %v7182_v16  ;;  %v6700_v41 = vrot.slane %v10398_v43, 5  ;;  %v8974_v32 = vrot.slane %v6608_v63, 9  ;;  %v5867_v30 = vor.u32 %v5866_v23, %v5862_v7  ;;  %v10405_v63 = vld [vmem:[#allocation2 + $0x68] sm:$0x1]  ;;  %v13336_v43 = vld [vmem:[#allocation2 + $0xac] sm:$0xf] }
 0x3b4   : > { %v6698_v4 = vsel %vm11084_vm14, %v8973_v40, %v6697_v2  ;;  %v6699_v12 = vrot.slane %v6697_v2, 4  ;;  %v6704_v18 = vrot.slane %v13191_v28, 5  ;;  %v5858_v17 = vrot.slane %v5857_v45, 4  ;;  %v10406_v2 = vld [vmem:[#allocation2 + $0x74] sm:$0x1] }
 0x3b5   : > { %v6707_v50 = vrot.slane %v10399_v37, 5  ;;  %v9092_v8 = vcombine.low %v10400_v51, %v13315_v48  ;;  %v5875_v62 = vshrl.u32 %v10402_v55, 16  ;;  %v5868_v39 = vrot.slane %v5867_v30, 4  ;;  %v10407_v45 = vld [vmem:[#allocation2 + $0xa8] sm:$0xf] }
 0x3b6   : > { %v6701_v35 = vsel %vm11084_vm14, %v6699_v12, %v6700_v41  ;;  %v6705_v20 = vsel %vm11084_vm14, %v8974_v32, %v6704_v18  ;;  %v6706_v38 = vrot.slane %v6704_v18, 4  ;;  %v7330_v56 = vpop.permute.xlu0 %7329  ;;  %v5863_v28 = vsel %vm10997_vm11, %v5858_v17, %v5862_v7  ;;  %v6611_v18 = vld [vmem:[#allocation2 + $0x78] sm:$0xe] }
 0x3b7   : > { %8255 = vmatmul.mubr.bf16.gmra.mxu1 %v7554_v15  ;;  %v9117_v47 = vcombine.low %v6698_v4, %v6701_v35  ;;  %v7626_v33 = vsel %vm3302_vm15, %v9092_v8, %v7330_v56  ;;  %v5877_v57 = vrot.slane %v5875_v62, 4  ;;  %v5873_v60 = vsel %vm10997_vm11, %v5868_v39, %v5872_v10  ;;  %v10409_v4 = vld [vmem:[#allocation2 + $0xa0] sm:$0xf] }
 0x3b8   : > { %9868 = vmatmul.mubr.msk.bf16.gmra.mxu0 %vm3302_vm15, %v9116_v27  ;;  %8262 = vmatprep.mubr.bf16.mxu1 %v7622_v58  ;;  %v6708_v9 = vsel %vm11084_vm14, %v6706_v38, %v6707_v50  ;;  %v5878_v52 = vshll.u32 %v10402_v55, 16  ;;  %v5884_v44 = vshll.u32 %v10403_v53, 16  ;;  %v9059_v25 = vcombine.low %v5863_v28, %v5873_v60  ;;  %v6612_v28 = vld [vmem:[#allocation2 + $0x84] sm:$0xe] }
 0x3b9   : > { %9871 = vmatprep.mubr.msk.bf16.mxu0 %vm3302_vm15, %v9117_v47  ;;  %v9118_v1 = vcombine.low %v6705_v20, %v6708_v9  ;;  %v5888_v3 = vshrl.u32 %v10403_v53, 16  ;;  %v5894_v5 = vshll.u32 %v10404_v42, 16  ;;  %v8975_v11 = vrot.slane %v6609_v19, 9  ;;  %v10410_v20 = vld [vmem:[#allocation2 + $0xa4] sm:$0x1] }
 0x3ba   : > { %v5880_v54 = vrot.slane %v5878_v52, 5  ;;  %v5886_v16 = vrot.slane %v5884_v44, 5  ;;  %v6711_v21 = vrot.slane %v13216_v59, 5  ;;  %v7558_v58 = vsel %vm3302_vm15, %v9059_v25, %v7184_v0  ;;  %v10411_v52 = vld [vmem:[#allocation2 + $0x80] sm:$0x1] }
 0x3bb   : > { %v5890_v61 = vrot.slane %v5888_v3, 4  ;;  %v5896_v46 = vrot.slane %v5894_v5, 5  ;;  %v6714_v6 = vrot.slane %v10405_v63, 5  ;;  %v8976_v23 = vrot.slane %v6610_v13, 9  ;;  %v10412_v3 = vld [vmem:[#allocation2 + $0x8c] sm:$0x1] }
 0x3bc   : > { %v5881_v27 = vor.u32 %v5880_v54, %v5877_v57  ;;  %v6712_v31 = vsel %vm11084_vm14, %v8975_v11, %v6711_v21  ;;  %v6713_v7 = vrot.slane %v6711_v21, 4  ;;  %v6718_v40 = vrot.slane %v13232_v36, 5  ;;  %v13361_v11 = vld [vmem:[#allocation2 + $0xb8] sm:$0xf] }
 0x3bd   : > { %v5891_v10 = vor.u32 %v5890_v61, %v5886_v16  ;;  %v6721_v15 = vrot.slane %v10406_v2, 5  ;;  %v9093_v59 = vcombine.low %v10407_v45, %v13336_v43  ;;  %v5905_v30 = vor.u32 %v12478_v34, %v12476_v24  ;;  %v7186_v34 = vpop.permute.xlu1 %7185  ;;  %v10415_v61 = vld [vmem:[#allocation2 + $0xa8] sm:$0xf]  ;;  %v6614_v45 = vld [vmem:[#allocation2 + $0x9c] sm:$0xe] }
 0x3be   : > { %v5882_v41 = vrot.slane %v5881_v27, 4  ;;  %v6715_v32 = vsel %vm11084_vm14, %v6713_v7, %v6714_v6  ;;  %v5908_v12 = vshll.u32 %v10409_v4, 16  ;;  %v6719_v37 = vsel %vm11084_vm14, %v8976_v23, %v6718_v40  ;;  %v10416_v27 = vld [vmem:[#allocation2 + $0xac] sm:$0xf]  ;;  %v6613_v23 = vld [vmem:[#allocation2 + $0x90] sm:$0xe] }
 0x3bf   : > { %8263 = vmatmul.mubr.bf16.gmra.mxu1 %v7558_v58  ;;  %v5892_v17 = vrot.slane %v5891_v10, 4  ;;  %v9119_v36 = vcombine.low %v6712_v31, %v6715_v32  ;;  %v6720_v50 = vrot.slane %v6718_v40, 4  ;;  %v5906_v8 = vrot.slane %v5905_v30, 4 }
 0x3c0   : > { %9872 = vmatmul.mubr.msk.bf16.gmra.mxu0 %vm3302_vm15, %v9118_v1  ;;  %v5887_v51 = vsel %vm10997_vm11, %v5882_v41, %v5886_v16  ;;  %8270 = vmatprep.mubr.bf16.mxu1 %v7626_v33  ;;  %v5910_v55 = vrot.slane %v5908_v12, 5  ;;  %v5912_v62 = vshrl.u32 %v10409_v4, 16  ;;  %v5918_v38 = vshll.u32 %v10410_v20, 16  ;;  %v10413_v16 = vld [vmem:[#allocation2 + $0xb4] sm:$0xf] }
 0x3c1   : > { %v5897_v24 = vsel %vm10997_vm11, %v5892_v17, %v5896_v46  ;;  %9875 = vmatprep.mubr.msk.bf16.mxu0 %vm3302_vm15, %v9119_v36  ;;  %v6722_v39 = vsel %vm11084_vm14, %v6720_v50, %v6721_v15  ;;  %v7332_v35 = vpop.permute.xlu0 %7331  ;;  %v8977_v56 = vrot.slane %v6611_v18, 9  ;;  %v6725_v9 = vrot.slane %v13253_v14, 5  ;;  %v7188_v41 = vpop.permute.xlu1 %7187  ;;  %v10417_v17 = vld [vmem:[#allocation2 + $0xb0] sm:$0x1] }
 0x3c2   : > { %v9060_v47 = vcombine.low %v5887_v51, %v5897_v24  ;;  %v9120_v57 = vcombine.low %v6719_v37, %v6722_v39  ;;  %v7630_v33 = vsel %vm3302_vm15, %v9093_v59, %v7332_v35  ;;  %v5911_v19 = vsel %vm10997_vm11, %v5906_v8, %v5910_v55  ;;  %v10418_v8 = vld [vmem:[#allocation2 + $0x98] sm:$0x1] }
 0x3c3   : > { %v5914_v60 = vrot.slane %v5912_v62, 4  ;;  %v5920_v0 = vrot.slane %v5918_v38, 5  ;;  %v6728_v53 = vrot.slane %v10411_v52, 5  ;;  %v8978_v25 = vrot.slane %v6612_v28, 9  ;;  %v10420_v52 = vld [vmem:[#allocation2 + $0xc0] sm:$0xf] }
 0x3c4   : > { %v7562_v44 = vsel %vm3302_vm15, %v9060_v47, %v7186_v34  ;;  %v6732_v1 = vrot.slane %v13276_v49, 5  ;;  %v6735_v42 = vrot.slane %v10412_v3, 5  ;;  %v6726_v13 = vsel %vm11084_vm14, %v8977_v56, %v6725_v9  ;;  %v6615_v3 = vld [vmem:[#allocation2 + $0xa8] sm:$0xe] }
 0x3c5   : > { %v5915_v5 = vor.u32 %v5914_v60, %v5910_v55  ;;  %v6727_v54 = vrot.slane %v6725_v9, 4  ;;  %v9094_v21 = vcombine.low %v10413_v16, %v13361_v11  ;;  %v5923_v46 = vshrl.u32 %v10415_v61, 16 }
 0x3c6   : > { %v6733_v14 = vsel %vm11084_vm14, %v8978_v25, %v6732_v1  ;;  %v6734_v58 = vrot.slane %v6732_v1, 4  ;;  %v5926_v63 = vshll.u32 %v10415_v61, 16  ;;  %v5932_v31 = vshll.u32 %v10416_v27, 16  ;;  %v10422_v25 = vld [vmem:[#allocation2 + $0xb4] sm:$0xf] }
 0x3c7   : > { %8271 = vmatmul.mubr.bf16.gmra.mxu1 %v7562_v44  ;;  %v5916_v49 = vrot.slane %v5915_v5, 4  ;;  %v6729_v6 = vsel %vm11084_vm14, %v6727_v54, %v6728_v53  ;;  %v5936_v7 = vshrl.u32 %v10416_v27, 16  ;;  %v5925_v2 = vrot.slane %v5923_v46, 4  ;;  %v13388_v53 = vld [vmem:[#allocation2 + $0xc4] sm:$0xf] }
 0x3c8   : > { %9876 = vmatmul.mubr.msk.bf16.gmra.mxu0 %vm3302_vm15, %v9120_v57  ;;  %8278 = vmatprep.mubr.bf16.mxu1 %v7630_v33  ;;  %v9121_v10 = vcombine.low %v6726_v13, %v6729_v6  ;;  %v6736_v40 = vsel %vm11084_vm14, %v6734_v58, %v6735_v42  ;;  %v5928_v15 = vrot.slane %v5926_v63, 5  ;;  %v5934_v30 = vrot.slane %v5932_v31, 5  ;;  %v6616_v46 = vld [vmem:[#allocation2 + $0xb4] sm:$0xe]  ;;  %v10424_v6 = vld [vmem:[#allocation2 + $0xbc] sm:$0x1] }
 0x3c9   : > { %v5921_v59 = vsel %vm10997_vm11, %v5916_v49, %v5920_v0  ;;  %v9122_v32 = vcombine.low %v6733_v14, %v6736_v40  ;;  %v5938_v4 = vrot.slane %v5936_v7, 4  ;;  %v5942_v36 = vshll.u32 %v10417_v17, 16  ;;  %v10423_v14 = vld [vmem:[#allocation2 + $0xb8] sm:$0xf]  ;;  %v10425_v40 = vld [vmem:[#allocation2 + $0xb0] sm:$0x1] }
 0x3ca   : > { %v9061_v12 = vcombine.low %v5911_v19, %v5921_v59  ;;  %9879 = vmatprep.mubr.msk.bf16.mxu0 %vm3302_vm15, %v9121_v10  ;;  %v5929_v18 = vor.u32 %v5928_v15, %v5925_v2  ;;  %v8979_v37 = vrot.slane %v6613_v23, 9  ;;  %v6739_v51 = vrot.slane %v13298_v26, 5  ;;  %v10419_v19 = vld [vmem:[#allocation2 + $0xa4] sm:$0x1] }
 0x3cb   : > { %v5939_v50 = vor.u32 %v5938_v4, %v5934_v30  ;;  %v6742_v55 = vrot.slane %v10418_v8, 5  ;;  %v8980_v62 = vrot.slane %v6614_v45, 9  ;;  %v5944_v35 = vrot.slane %v5942_v36, 5  ;;  %v7190_v0 = vpop.permute.xlu1 %7189  ;;  %v10427_v8 = vld [vmem:[#allocation2 + $0xc0] sm:$0xf] }
 0x3cc   : > { %v7566_v24 = vsel %vm3302_vm15, %v9061_v12, %v7188_v41  ;;  %v7334_v34 = vpop.permute.xlu0 %7333  ;;  %v5930_v39 = vrot.slane %v5929_v18, 4  ;;  %v6746_v20 = vrot.slane %v13315_v48, 5  ;;  %v6740_v28 = vsel %vm11084_vm14, %v8979_v37, %v6739_v51  ;;  %v10426_v12 = vld [vmem:[#allocation2 + $0xbc] sm:$0x1] }
 0x3cd   : > { %v7634_v38 = vsel %vm3302_vm15, %v9094_v21, %v7334_v34  ;;  %v5940_v56 = vrot.slane %v5939_v50, 4  ;;  %v6741_v47 = vrot.slane %v6739_v51, 4  ;;  %v6749_v60 = vrot.slane %v10419_v19, 5  ;;  %v10429_v19 = vld [vmem:[#allocation2 + $0xc8] sm:$0x1] }
 0x3ce   : > { %v5935_v26 = vsel %vm10997_vm11, %v5930_v39, %v5934_v30  ;;  %v6747_v57 = vsel %vm11084_vm14, %v8980_v62, %v6746_v20  ;;  %v6748_v33 = vrot.slane %v6746_v20, 4  ;;  %v9095_v44 = vcombine.low %v10420_v52, %v13388_v53  ;;  %v6617_v39 = vld [vmem:[#allocation2 + $0xc0] sm:$0xe] }
 0x3cf   : > { %8279 = vmatmul.mubr.bf16.gmra.mxu1 %v7566_v24  ;;  %v5945_v48 = vsel %vm10997_vm11, %v5940_v56, %v5944_v35  ;;  %v6743_v9 = vsel %vm11084_vm14, %v6741_v47, %v6742_v55  ;;  %v5947_v1 = vshrl.u32 %v10422_v25, 16  ;;  %v5950_v54 = vshll.u32 %v10422_v25, 16 }
 0x3d0   : > { %9880 = vmatmul.mubr.msk.bf16.gmra.mxu0 %vm3302_vm15, %v9122_v32  ;;  %v9062_v42 = vcombine.low %v5935_v26, %v5945_v48  ;;  %8286 = vmatprep.mubr.bf16.mxu1 %v7634_v38  ;;  %v9123_v5 = vcombine.low %v6740_v28, %v6743_v9  ;;  %v6750_v13 = vsel %vm11084_vm14, %v6748_v33, %v6749_v60  ;;  %v5956_v58 = vshll.u32 %v10423_v14, 16  ;;  %v10428_v28 = vld [vmem:[#allocation2 + $0xc4] sm:$0xf]  ;;  %v6618_v48 = vld [vmem:[#allocation2 + $0xcc] sm:$0xe] }
 0x3d1   : > { %v9124_v16 = vcombine.low %v6747_v57, %v6750_v13  ;;  %v5949_v21 = vrot.slane %v5947_v1, 4  ;;  %v5960_v61 = vshrl.u32 %v10423_v14, 16  ;;  %v5952_v49 = vrot.slane %v5950_v54, 5 }
 0x3d2   : > { %v7570_v63 = vsel %vm3302_vm15, %v9062_v42, %v7190_v0  ;;  %9883 = vmatprep.mubr.msk.bf16.mxu0 %vm3302_vm15, %v9123_v5  ;;  %v5966_v27 = vshll.u32 %v10424_v6, 16  ;;  %v8981_v31 = vrot.slane %v6615_v3, 9  ;;  %v5958_v7 = vrot.slane %v5956_v58, 5 }
 0x3d3   : > { %v5962_v23 = vrot.slane %v5960_v61, 4  ;;  %v6753_v10 = vrot.slane %v13336_v43, 5  ;;  %v6756_v2 = vrot.slane %v10425_v40, 5  ;;  %v5953_v15 = vor.u32 %v5952_v49, %v5949_v21  ;;  %v10431_v21 = vld [vmem:[#allocation2 + $0xd0] sm:$0xf] }
 0x3d4   : > { %v5968_v45 = vrot.slane %v5966_v27, 5  ;;  %v8982_v59 = vrot.slane %v6616_v46, 9  ;;  %v6760_v41 = vrot.slane %v13361_v11, 5  ;;  %v6763_v18 = vrot.slane %v10426_v12, 5 }
 0x3d5   : > { %v5963_v32 = vor.u32 %v5962_v23, %v5958_v7  ;;  %v6754_v30 = vsel %vm11084_vm14, %v8981_v31, %v6753_v10  ;;  %v6755_v4 = vrot.slane %v6753_v10, 4  ;;  %v5954_v36 = vrot.slane %v5953_v15, 4 }
 0x3d6   : > { %v7336_v17 = vpop.permute.xlu0 %7335  ;;  %v6762_v37 = vrot.slane %v6760_v41, 4  ;;  %v5971_v55 = vshrl.u32 %v10427_v8, 16  ;;  %v6761_v24 = vsel %vm11084_vm14, %v8982_v59, %v6760_v41  ;;  %v5974_v34 = vshll.u32 %v10427_v8, 16 }
 0x3d7   : > { %8287 = vmatmul.mubr.bf16.gmra.mxu1 %v7570_v63  ;;  %v7638_v43 = vsel %vm3302_vm15, %v9095_v44, %v7336_v17  ;;  %v5964_v50 = vrot.slane %v5963_v32, 4  ;;  %v6757_v51 = vsel %vm11084_vm14, %v6755_v4, %v6756_v2  ;;  %v5959_v11 = vsel %vm10997_vm11, %v5954_v36, %v5958_v7  ;;  %v7192_v20 = vpop.permute.xlu1 %7191  ;;  %v10430_v44 = vld [vmem:[#allocation2 + $0xc8] sm:$0x1]  ;;  %v10432_v63 = vld [vmem:[#allocation2 + $0xd4] sm:$0x1] }
 0x3d8   : > { %9884 = vmatmul.mubr.msk.bf16.gmra.mxu0 %vm3302_vm15, %v9124_v16  ;;  %8294 = vmatprep.mubr.bf16.mxu1 %v7638_v43  ;;  %v9125_v62 = vcombine.low %v6754_v30, %v6757_v51  ;;  %v6764_v38 = vsel %vm11084_vm14, %v6762_v37, %v6763_v18  ;;  %v5973_v56 = vrot.slane %v5971_v55, 4  ;;  %v5980_v47 = vshll.u32 %v10428_v28, 16 }
 0x3d9   : > { %v5969_v35 = vsel %vm10997_vm11, %v5964_v50, %v5968_v45  ;;  %v5976_v57 = vrot.slane %v5974_v34, 5  ;;  %v5984_v33 = vshrl.u32 %v10428_v28, 16  ;;  %v5990_v60 = vshll.u32 %v10429_v19, 16 }
 0x3da   : > { %v9063_v26 = vcombine.low %v5959_v11, %v5969_v35  ;;  %9887 = vmatprep.mubr.msk.bf16.mxu0 %vm3302_vm15, %v9125_v62  ;;  %v5982_v0 = vrot.slane %v5980_v47, 5  ;;  %v8983_v9 = vrot.slane %v6617_v39, 9  ;;  %v6767_v52 = vrot.slane %v13388_v53, 5  ;;  %v10433_v53 = vld [vmem:[#allocation2 + $0xcc] sm:$0xf] }
 0x3db   : > { %v6770_v25 = vrot.slane %v10430_v44, 5  ;;  %v9126_v3 = vcombine.low %v6761_v24, %v6764_v38  ;;  %v5977_v42 = vor.u32 %v5976_v57, %v5973_v56  ;;  %v5986_v5 = vrot.slane %v5984_v33, 4 }
 0x3dc   : > { %v7574_v1 = vsel %vm3302_vm15, %v9063_v26, %v7192_v20  ;;  %v6768_v13 = vsel %vm11084_vm14, %v8983_v9, %v6767_v52  ;;  %v6769_v54 = vrot.slane %v6767_v52, 4  ;;  %v8984_v16 = vrot.slane %v6618_v48, 9 }
 0x3dd   : > { %v6774_v14 = vrot.slane %v10431_v21, 5  ;;  %v5978_v58 = vrot.slane %v5977_v42, 4  ;;  %v5987_v61 = vor.u32 %v5986_v5, %v5982_v0  ;;  %v5992_v46 = vrot.slane %v5990_v60, 5 }
 0x3de   : > { %v6777_v49 = vrot.slane %v10432_v63, 5  ;;  %v9096_v6 = vcombine.low %v10433_v53, %v10431_v21  ;;  %v6771_v27 = vsel %vm11084_vm14, %v6769_v54, %v6770_v25 }
 0x3df   : > { %8295 = vmatmul.mubr.bf16.gmra.mxu1 %v7574_v1  ;;  %v6776_v31 = vrot.slane %v6774_v14, 4  ;;  %v5983_v7 = vsel %vm10997_vm11, %v5978_v58, %v5982_v0  ;;  %v5988_v23 = vrot.slane %v5987_v61, 4  ;;  %v9127_v10 = vcombine.low %v6768_v13, %v6771_v27 }
 0x3e0   : > { %9888 = vmatmul.mubr.msk.bf16.gmra.mxu0 %vm3302_vm15, %v9126_v3  ;;  %v6775_v40 = vsel %vm11084_vm14, %v8984_v16, %v6774_v14 }
 0x3e1   : > { %v6778_v2 = vsel %vm11084_vm14, %v6776_v31, %v6777_v49  ;;  %v5993_v45 = vsel %vm10997_vm11, %v5988_v23, %v5992_v46  ;;  %9891 = vmatprep.mubr.msk.bf16.mxu0 %vm3302_vm15, %v9127_v10 }
 0x3e2   : > { %v7338_v15 = vpop.permute.xlu0 %7337  ;;  %v9064_v41 = vcombine.low %v5983_v7, %v5993_v45  ;;  %v9128_v30 = vcombine.low %v6775_v40, %v6778_v2 }
 0x3e3   : > { %v7642_v59 = vsel %vm3302_vm15, %v9096_v6, %v7338_v15 }
 0x3e4   : > { %v7194_v32 = vpop.permute.xlu1 %7193  ;;  %8302 = vmatprep.mubr.bf16.mxu1 %v7642_v59 }
 0x3e5   : > { %v7578_v4 = vsel %vm3302_vm15, %v9064_v41, %v7194_v32 }
 0x3e7   : > { %8303 = vmatmul.mubr.bf16.gmra.mxu1 %v7578_v4 }
 0x3e8   : > { %9892 = vmatmul.mubr.msk.bf16.gmra.mxu0 %vm3302_vm15, %v9128_v30 }
 0x3f8   : > { %v9659_v12 = vpop.f32.mrf.mxu1 }
 0x3fa   : > { %v9660_v22 = vpop.f32.mrf.mxu1 }
 0x3fb   : > { %v13432_v18 = vadd.f32 %v9660_v22, %v9659_v12 }
 0x3fc   : > { %v9662_v17 = vpop.f32.mrf.mxu1 }
 0x3fd   : > { %13985 = vst [vmem:[#allocation6_spill] sm:$0xff] %v13432_v18 }
 0x3fe   : > { %v9587_v29 = vpop.f32.mrf.mxu0  ;;  %v9663_v36 = vpop.f32.mrf.mxu1 }
 0x3ff   : > { %v13434_v37 = vadd.f32 %v9663_v36, %v9662_v17 }
 0x400   : > { %v9588_v43 = vpop.f32.mrf.mxu0  ;;  %v9665_v50 = vpop.f32.mrf.mxu1 }
 0x401   : > { %13986 = vst [vmem:[#allocation13_spill] sm:$0xff] %v13434_v37  ;;  %v13436_v51 = vadd.f32 %v9588_v43, %v9587_v29 }
 0x402   : > { %v9590_v8 = vpop.f32.mrf.mxu0  ;;  %v9666_v55 = vpop.f32.mrf.mxu1 }
 0x403   : > { %v13438_v11 = vadd.f32 %v9666_v55, %v9665_v50 }
 0x404   : > { %v9591_v62 = vpop.f32.mrf.mxu0  ;;  %v9668_v24 = vpop.f32.mrf.mxu1 }
 0x405   : > { %13987 = vst [vmem:[#allocation14_spill] sm:$0xff] %v13438_v11  ;;  %v13440_v34 = vadd.f32 %v9591_v62, %v9590_v8 }
 0x406   : > { %v9669_v39 = vpop.f32.mrf.mxu1 }
 0x407   : > { %v13442_v35 = vadd.f32 %v9669_v39, %v9668_v24 }
 0x408   : > { %v9593_v20 = vpop.f32.mrf.mxu0 }
 0x409   : > { %13988 = vst [vmem:[#allocation41_spill] sm:$0xff] %v13442_v35 }
 0x40a   : > { %v9594_v38 = vpop.f32.mrf.mxu0  ;;  %v9671_v56 = vpop.f32.mrf.mxu1 }
 0x40b   : > { %v13444_v28 = vadd.f32 %v9594_v38, %v9593_v20 }
 0x40c   : > { %v9596_v47 = vpop.f32.mrf.mxu0  ;;  %v9672_v26 = vpop.f32.mrf.mxu1 }
 0x40d   : > { %v13446_v57 = vadd.f32 %v9672_v26, %v9671_v56 }
 0x40e   : > { %v9597_v33 = vpop.f32.mrf.mxu0  ;;  %v9674_v19 = vpop.f32.mrf.mxu1 }
 0x40f   : > { %13989 = vst [vmem:[#allocation43_spill] sm:$0xff] %v13446_v57  ;;  %v13448_v60 = vadd.f32 %v9597_v33, %v9596_v47 }
 0x410   : > { %v9675_v48 = vpop.f32.mrf.mxu1 }
 0x411   : > { %v13450_v0 = vadd.f32 %v9675_v48, %v9674_v19 }
 0x412   : > { %v9599_v9 = vpop.f32.mrf.mxu0 }
 0x413   : > { %13990 = vst [vmem:[#allocation50_spill] sm:$0xff] %v13450_v0 }
 0x414   : > { %v9600_v52 = vpop.f32.mrf.mxu0 }
 0x415   : > { %v13452_v44 = vadd.f32 %v9600_v52, %v9599_v9  ;;  %v9677_v25 = vpop.f32.mrf.mxu1 }
 0x416   : > { %v9602_v1 = vpop.f32.mrf.mxu0 }
 0x417   : > { %v9678_v3 = vpop.f32.mrf.mxu1 }
 0x418   : > { %v9603_v42 = vpop.f32.mrf.mxu0  ;;  %v13454_v5 = vadd.f32 %v9678_v3, %v9677_v25 }
 0x419   : > { %v13456_v13 = vadd.f32 %v9603_v42, %v9602_v1  ;;  %v9680_v54 = vpop.f32.mrf.mxu1 }
 0x41a   : > { %13991 = vst [vmem:[#allocation51_spill] sm:$0xff] %v13454_v5 }
 0x41b   : > { %v9681_v16 = vpop.f32.mrf.mxu1 }
 0x41c   : > { %v13458_v21 = vadd.f32 %v9681_v16, %v9680_v54 }
 0x41e   : > { %13992 = vst [vmem:[#allocation52_spill] sm:$0xff] %v13458_v21  ;;  %v9605_v14 = vpop.f32.mrf.mxu0 }
 0x420   : > { %v9606_v58 = vpop.f32.mrf.mxu0 }
 0x421   : > { %v13460_v61 = vadd.f32 %v9606_v58, %v9605_v14 }
 0x422   : > { %v9608_v46 = vpop.f32.mrf.mxu0 }
 0x424   : > { %v9609_v63 = vpop.f32.mrf.mxu0 }
 0x425   : > { %v13462_v49 = vadd.f32 %v9609_v63, %v9608_v46 }
 0x428   : > { %v13464_v53 = vpop.f32.mrf.mxu1 }
 0x42a   : > { %v9611_v6 = vpop.f32.mrf.mxu0  ;;  %v13466_v27 = vpop.f32.mrf.mxu1 }
 0x42c   : > { %v9612_v31 = vpop.f32.mrf.mxu0  ;;  %v13470_v23 = vpop.f32.mrf.mxu1 }
 0x42d   : > { %v13468_v7 = vadd.f32 %v9612_v31, %v9611_v6 }
 0x42e   : > { %v9614_v10 = vpop.f32.mrf.mxu0  ;;  %v13472_v2 = vpop.f32.mrf.mxu1 }
 0x430   : > { %v9615_v40 = vpop.f32.mrf.mxu0 }
 0x431   : > { %v13474_v15 = vadd.f32 %v9615_v40, %v9614_v10 }
 0x435   : > { %v9705_v45 = vpop.f32.mrf.mxu1 }
 0x437   : > { %v9706_v59 = vpop.f32.mrf.mxu1 }
 0x438   : > { %v9617_v41 = vpop.f32.mrf.mxu0  ;;  %v9707_v18 = vadd.f32 %v9706_v59, %v9705_v45 }
 0x439   : > { %v9708_v32 = vpop.f32.mrf.mxu1 }
 0x43a   : > { %v9618_v30 = vpop.f32.mrf.mxu0 }
 0x43b   : > { %v13476_v4 = vadd.f32 %v9618_v30, %v9617_v41  ;;  %v9709_v12 = vpop.f32.mrf.mxu1 }
 0x43c   : > { %v9620_v22 = vpop.f32.mrf.mxu0  ;;  %v9710_v59 = vadd.f32 %v9709_v12, %v9708_v32  ;;  %v14007_v12 = vld [vmem:[#allocation9_spill] sm:$0xff] }
 0x43e   : > { %v9621_v17 = vpop.f32.mrf.mxu0 }
 0x43f   : > { %v13478_v29 = vadd.f32 %v9621_v17, %v9620_v22  ;;  %v13480_v36 = vpop.f32.mrf.mxu1 }
 0x440   : > { %v9623_v43 = vpop.f32.mrf.mxu0 }
 0x441   : > { %v13482_v50 = vpop.f32.mrf.mxu1 }
 0x442   : > { %v9624_v8 = vpop.f32.mrf.mxu0 }
 0x443   : > { %v13484_v55 = vadd.f32 %v9624_v8, %v9623_v43  ;;  %v13486_v62 = vpop.f32.mrf.mxu1 }
 0x444   : > { %v9626_v24 = vpop.f32.mrf.mxu0 }
 0x445   : > { %v13488_v39 = vpop.f32.mrf.mxu1 }
 0x446   : > { %v9627_v20 = vpop.f32.mrf.mxu0 }
 0x447   : > { %v13490_v38 = vadd.f32 %v9627_v20, %v9626_v24  ;;  %v9717_v56 = vpop.f32.mrf.mxu1 }
 0x448   : > { %v13492_v47 = vpop.f32.mrf.mxu0 }
 0x449   : > { %v9718_v26 = vpop.f32.mrf.mxu1 }
 0x44a   : > { %v13494_v33 = vpop.f32.mrf.mxu0  ;;  %v9719_v32 = vadd.f32 %v9718_v26, %v9717_v56 }
 0x44b   : > { %v13496_v19 = vpop.f32.mrf.mxu1 }
 0x44c   : > { %v13498_v48 = vpop.f32.mrf.mxu0 }
 0x44d   : > { %v13500_v9 = vpop.f32.mrf.mxu1 }
 0x44e   : > { %v13502_v52 = vpop.f32.mrf.mxu0 }
 0x44f   : > { %v13504_v25 = vpop.f32.mrf.mxu1 }
 0x450   : > { %v13506_v1 = vpop.f32.mrf.mxu0 }
 0x451   : > { %v13508_v3 = vpop.f32.mrf.mxu1 }
 0x452   : > { %v13510_v42 = vpop.f32.mrf.mxu0 }
 0x453   : > { %13993 = vst [vmem:[#allocation53_spill] sm:$0xff] %v13510_v42  ;;  %v13512_v54 = vpop.f32.mrf.mxu1 }
 0x454   : > { %v13514_v16 = vpop.f32.mrf.mxu0 }
 0x455   : > { %13994 = vst [vmem:[#allocation54_spill] sm:$0xff] %v13514_v16  ;;  %v13516_v14 = vpop.f32.mrf.mxu1 }
 0x456   : > { %v13518_v58 = vpop.f32.mrf.mxu0 }
 0x457   : > { %13995 = vst [vmem:[#allocation55_spill] sm:$0xff] %v13518_v58  ;;  %v13520_v46 = vpop.f32.mrf.mxu1 }
 0x458   : > { %v13522_v63 = vpop.f32.mrf.mxu0 }
 0x459   : > { %v13524_v6 = vpop.f32.mrf.mxu1 }
 0x45a   : > { %v13526_v31 = vpop.f32.mrf.mxu0 }
 0x45b   : > { %v13528_v10 = vpop.f32.mrf.mxu1 }
 0x45c   : > { %v13530_v40 = vpop.f32.mrf.mxu0 }
 0x45d   : > { %13996 = vst [vmem:[#allocation56_spill] sm:$0xff] %v13530_v40  ;;  %v13532_v41 = vpop.f32.mrf.mxu1 }
 0x45e   : > { %v13534_v30 = vpop.f32.mrf.mxu0 }
 0x45f   : > { %13997 = vst [vmem:[#allocation57_spill] sm:$0xff] %v13534_v30  ;;  %v13536_v22 = vpop.f32.mrf.mxu1 }
 0x460   : > { %v13538_v17 = vpop.f32.mrf.mxu0 }
 0x461   : > { %13998 = vst [vmem:[#allocation58_spill] sm:$0xff] %v13538_v17  ;;  %v13540_v43 = vpop.f32.mrf.mxu1  ;;  %v9701_v17 = vadd.f32 %v13466_v27, %v13464_v53 }
 0x462   : > { %v13542_v8 = vpop.f32.mrf.mxu0 }
 0x463   : > { %13999 = vst [vmem:[#allocation59_spill] sm:$0xff] %v13542_v8  ;;  %v13544_v24 = vpop.f32.mrf.mxu1  ;;  %v13565_v8 = vld [vmem:[%s13858_s2 + $0x4] ss:$0 sm:$0xff] }
 0x464   : > { %v13546_v20 = vpop.f32.mrf.mxu0  ;;  %v8024_v45 = vadd.f32 %v13436_v51, %v13565_v8 }
 0x465   : > { %14000 = vst [vmem:[#allocation60_spill] sm:$0xff] %v13546_v20  ;;  %v13548_v21 = vpop.f32.mrf.mxu1 }
 0x466   : > { %v13550_v0 = vpop.f32.mrf.mxu0  ;;  %v8185_v40 = vadd.f32 %v9701_v17, %v8024_v45 }
 0x467   : > { %14001 = vst [vmem:[#allocation61_spill] sm:$0xff] %v13550_v0  ;;  %v13552_v5 = vpop.f32.mrf.mxu1  ;;  %v8032_v0 = vadd.f32 %v13444_v28, %v13565_v8  ;;  %v9704_v28 = vadd.f32 %v13472_v2, %v13470_v23  ;;  %v9713_v2 = vadd.f32 %v13482_v50, %v13480_v36 }
 0x468   : > { %v13554_v57 = vpop.f32.mrf.mxu0 }
 0x469   : > { %14002 = vst [vmem:[#allocation62_spill] sm:$0xff] %v13554_v57  ;;  %v13556_v37 = vpop.f32.mrf.mxu1  ;;  %v8193_v16 = vadd.f32 %v9707_v18, %v8032_v0 }
 0x46a   : > { %v13558_v35 = vpop.f32.mrf.mxu0 }
 0x46b   : > { %14003 = vst [vmem:[#allocation63_spill] sm:$0xff] %v13558_v35  ;;  %v13560_v11 = vpop.f32.mrf.mxu1 }
 0x46c   : > { %v13567_v20 = vpop.f32.mrf.mxu0 }
 0x46d   : > { %14004 = vst [vmem:[#allocation64_spill] sm:$0xff] %v13567_v20  ;;  %v13573_v57 = vpop.f32.mrf.mxu1  ;;  %v8035_v20 = vadd.f32 %v13448_v60, %v13565_v8  ;;  %v8048_v60 = vadd.f32 %v13460_v61, %v13565_v8  ;;  %v9722_v61 = vadd.f32 %v13500_v9, %v13496_v19 }
 0x46e   : > { %v13575_v58 = vpop.f32.mrf.mxu0 }
 0x46f   : > { %14005 = vst [vmem:[#allocation65_spill] sm:$0xff] %v13575_v58  ;;  %v13579_v35 = vpop.f32.mrf.mxu1  ;;  %v8027_v58 = vadd.f32 %v13440_v34, %v13565_v8  ;;  %v8196_v42 = vadd.f32 %v9710_v59, %v8035_v20  ;;  %v14009_v20 = vld [vmem:[#allocation10_spill] sm:$0xff]  ;;  %v8209_v59 = vadd.f32 %v9719_v32, %v8048_v60 }
 0x470   : > { %14006 = vst [vmem:[#allocation66_spill] sm:$0xff] %v13579_v35  ;;  %v9865_v30 = vpop.f32.mrf.mxu0 }
 0x471   : > { %v8354_v53 = vadd.f32 %v9865_v30, %v8193_v16  ;;  %v13585_v27 = vpop.f32.mrf.mxu1  ;;  %v14008_v16 = vld [vmem:[#allocation7_spill] sm:$0xff]  ;;  %v8188_v30 = vadd.f32 %v9704_v28, %v8027_v58  ;;  %v14010_v28 = vld [vmem:[#allocation8_spill] sm:$0xff] }
 0x472   : > { %v8345_v51 = vpop.f32.mrf.mxu0 }
 0x473   : > { %v8474_v18 = vsub.f32 %v14007_v12, %v8354_v53  ;;  %v8346_v0 = vadd.f32 %v8345_v51, %v8185_v40  ;;  %v13590_v35 = vpop.f32.mrf.mxu1  ;;  %v8040_v40 = vadd.f32 %v13452_v44, %v13565_v8  ;;  %v9716_v44 = vadd.f32 %v13488_v39, %v13486_v62 }
 0x474   : > { %v9866_v23 = vpop.f32.mrf.mxu0  ;;  %v8043_v12 = vadd.f32 %v13456_v13, %v13565_v8  ;;  %v9725_v13 = vadd.f32 %v13508_v3, %v13504_v25 }
 0x475   : > { %8506 = vst.msk [vmem:[%s10967_s4 + $0x10] sm:$0xff] %vm3302_vm15, %v8474_v18  ;;  %v8472_v34 = vsub.f32 %v14008_v16, %v8346_v0  ;;  %v8357_v56 = vadd.f32 %v9866_v23, %v8196_v42  ;;  %v13599_v26 = vpop.f32.mrf.mxu1  ;;  %v8051_v42 = vadd.f32 %v13462_v49, %v13565_v8  ;;  %v8201_v51 = vadd.f32 %v9713_v2, %v8040_v40  ;;  %v14011_v18 = vld [vmem:[#allocation15_spill] sm:$0xff] }
 0x476   : > { %v8348_v17 = vpop.f32.mrf.mxu0  ;;  %v9731_v49 = vadd.f32 %v13524_v6, %v13520_v46  ;;  %v8064_v23 = vadd.f32 %v13476_v4, %v13565_v8  ;;  %v14012_v16 = vld [vmem:[#allocation11_spill] sm:$0xff]  ;;  %v9734_v4 = vadd.f32 %v13532_v41, %v13528_v10  ;;  %v14014_v10 = vld [vmem:[#allocation12_spill] sm:$0xff] }
 0x477   : > { %8504 = vst.msk [vmem:[%s10967_s4] sm:$0xff] %vm3302_vm15, %v8472_v34  ;;  %v8475_v36 = vsub.f32 %v14009_v20, %v8357_v56  ;;  %v8349_v50 = vadd.f32 %v8348_v17, %v8188_v30  ;;  %v13608_v45 = vpop.f32.mrf.mxu1  ;;  %v8212_v60 = vadd.f32 %v9722_v61, %v8051_v42  ;;  %v8204_v56 = vadd.f32 %v9716_v44, %v8043_v12  ;;  %v14013_v17 = vld [vmem:[#allocation16_spill] sm:$0xff] }
 0x478   : > { %v9869_v58 = vpop.f32.mrf.mxu0  ;;  %v8056_v30 = vadd.f32 %v13468_v7, %v13565_v8  ;;  %v8225_v20 = vadd.f32 %v9731_v49, %v8064_v23  ;;  %v9634_v12 = vadd.f32 %v13502_v52, %v13498_v48  ;;  %v9746_v48 = vadd.f32 %v13573_v57, %v13560_v11  ;;  %v14017_v52 = vld [vmem:[#allocation20_spill] sm:$0xff]  ;;  %v14018_v11 = vld [vmem:[#allocation18_spill] sm:$0xff] }
 0x479   : > { %8507 = vst.msk [vmem:[%s10967_s4 + $0x18] sm:$0xff] %vm3302_vm15, %v8475_v36  ;;  %v8473_v19 = vsub.f32 %v14010_v28, %v8349_v50  ;;  %v8370_v9 = vadd.f32 %v9869_v58, %v8209_v59  ;;  %v13617_v53 = vpop.f32.mrf.mxu1  ;;  %v8067_v36 = vadd.f32 %v13478_v29, %v13565_v8  ;;  %v9631_v50 = vadd.f32 %v13494_v33, %v13492_v47  ;;  %v14015_v33 = vld [vmem:[#allocation19_spill] sm:$0xff] }
 0x47a   : > { %v8361_v32 = vpop.f32.mrf.mxu0  ;;  %v9728_v59 = vadd.f32 %v13516_v14, %v13512_v54  ;;  %v8217_v44 = vadd.f32 %v9725_v13, %v8056_v30  ;;  %v8059_v28 = vadd.f32 %v13474_v15, %v13565_v8  ;;  %v9743_v47 = vadd.f32 %v13556_v37, %v13552_v5  ;;  %v14016_v37 = vld [vmem:[#allocation17_spill] sm:$0xff] }
 0x47b   : > { %8505 = vst.msk [vmem:[%s10967_s4 + $0x8] sm:$0xff] %vm3302_vm15, %v8473_v19  ;;  %v8478_v62 = vsub.f32 %v14011_v18, %v8370_v9  ;;  %v8362_v39 = vadd.f32 %v8361_v32, %v8201_v51  ;;  %v13626_v0 = vpop.f32.mrf.mxu1  ;;  %v8228_v9 = vadd.f32 %v9734_v4, %v8067_v36  ;;  %v8080_v51 = vadd.f32 %v9631_v50, %v13565_v8  ;;  %v14019_v4 = vld [vmem:[#allocation53_spill] sm:$0xff]  ;;  %v14021_v50 = vld [vmem:[#allocation56_spill] sm:$0xff] }
 0x47c   : > { %v9870_v2 = vpop.f32.mrf.mxu0  ;;  %v9737_v15 = vadd.f32 %v13540_v43, %v13536_v22  ;;  %v8083_v13 = vadd.f32 %v9634_v12, %v13565_v8 }
 0x47d   : > { %8510 = vst.msk [vmem:[%s10967_s4 + $0x30] sm:$0xff] %vm3302_vm15, %v8478_v62  ;;  %v8476_v46 = vsub.f32 %v14012_v16, %v8362_v39  ;;  %v8373_v6 = vadd.f32 %v9870_v2, %v8212_v60  ;;  %v13635_v34 = vpop.f32.mrf.mxu1  ;;  %v8220_v62 = vadd.f32 %v9728_v59, %v8059_v28  ;;  %v8072_v39 = vadd.f32 %v13484_v55, %v13565_v8 }
 0x47e   : > { %v8364_v40 = vpop.f32.mrf.mxu0  ;;  %v8241_v2 = vadd.f32 %v9743_v47, %v8080_v51  ;;  %v9643_v16 = vadd.f32 %v13526_v31, %v13522_v63  ;;  %v9740_v55 = vadd.f32 %v13548_v21, %v13544_v24  ;;  %v9755_v63 = vadd.f32 %v13617_v53, %v13608_v45  ;;  %v14020_v21 = vld [vmem:[#allocation23_spill] sm:$0xff]  ;;  %v14024_v45 = vld [vmem:[#allocation21_spill] sm:$0xff]  ;;  %v14026_v47 = vld [vmem:[#allocation55_spill] sm:$0xff] }
 0x47f   : > { %8508 = vst.msk [vmem:[%s10967_s4 + $0x20] sm:$0xff] %vm3302_vm15, %v8476_v46  ;;  %v8479_v25 = vsub.f32 %v14013_v17, %v8373_v6  ;;  %v8365_v3 = vadd.f32 %v8364_v40, %v8204_v56  ;;  %v13644_v61 = vpop.f32.mrf.mxu1  ;;  %v8233_v30 = vadd.f32 %v9737_v15, %v8072_v39  ;;  %v8075_v40 = vadd.f32 %v13490_v38, %v13565_v8 }
 0x480   : > { %v9873_v7 = vpop.f32.mrf.mxu0  ;;  %v9637_v17 = vadd.f32 %v14019_v4, %v13506_v1  ;;  %v8096_v36 = vadd.f32 %v9643_v16, %v13565_v8  ;;  %v9752_v39 = vadd.f32 %v13599_v26, %v13590_v35 }
 0x481   : > { %8511 = vst.msk [vmem:[%s10967_s4 + $0x38] sm:$0xff] %vm3302_vm15, %v8479_v25  ;;  %v8477_v41 = vsub.f32 %v14014_v10, %v8365_v3  ;;  %v8386_v42 = vadd.f32 %v9873_v7, %v8225_v20  ;;  %v13655_v58 = vpop.f32.mrf.mxu1  ;;  %v8244_v20 = vadd.f32 %v9746_v48, %v8083_v13  ;;  %v14022_v7 = vld [vmem:[#allocation57_spill] sm:$0xff]  ;;  %v14023_v10 = vld [vmem:[#allocation66_spill] sm:$0xff] }
 0x482   : > { %v8377_v29 = vpop.f32.mrf.mxu0  ;;  %v9646_v38 = vadd.f32 %v14022_v7, %v14021_v50  ;;  %v9749_v1 = vadd.f32 %v13585_v27, %v14023_v10  ;;  %v8088_v28 = vadd.f32 %v9637_v17, %v13565_v8  ;;  %v14027_v27 = vld [vmem:[#allocation24_spill] sm:$0xff] }
 0x483   : > { %8509 = vst.msk [vmem:[%s10967_s4 + $0x28] sm:$0xff] %vm3302_vm15, %v8477_v41  ;;  %v8482_v54 = vsub.f32 %v14015_v33, %v8386_v42  ;;  %v8378_v14 = vadd.f32 %v8377_v29, %v8217_v44  ;;  %v13664_v19 = vpop.f32.mrf.mxu1  ;;  %v8236_v44 = vadd.f32 %v9740_v55, %v8075_v40  ;;  %v14025_v29 = vld [vmem:[#allocation54_spill] sm:$0xff]  ;;  %v14035_v40 = vld [vmem:[#allocation65_spill] sm:$0xff] }
 0x484   : > { %v9874_v32 = vpop.f32.mrf.mxu0  ;;  %v9640_v33 = vadd.f32 %v14026_v47, %v14025_v29  ;;  %v8099_v15 = vadd.f32 %v9646_v38, %v13565_v8  ;;  %v14033_v55 = vld [vmem:[#allocation27_spill] sm:$0xff] }
 0x485   : > { %8514 = vst.msk [vmem:[%s10967_s4 + $0x50] sm:$0xff] %vm3302_vm15, %v8482_v54  ;;  %v8480_v5 = vsub.f32 %v14016_v37, %v8378_v14  ;;  %v8389_v49 = vadd.f32 %v9874_v32, %v8228_v9  ;;  %v13674_v18 = vpop.f32.mrf.mxu1  ;;  %v9758_v14 = vadd.f32 %v13635_v34, %v13626_v0  ;;  %v8257_v32 = vadd.f32 %v9755_v63, %v8096_v36  ;;  %v14028_v37 = vld [vmem:[#allocation62_spill] sm:$0xff]  ;;  %v14030_v0 = vld [vmem:[#allocation22_spill] sm:$0xff] }
 0x486   : > { %v8380_v60 = vpop.f32.mrf.mxu0  ;;  %v14038_v36 = vld [vmem:[#allocation61_spill] sm:$0xff] }
 0x487   : > { %8512 = vst.msk [vmem:[%s10967_s4 + $0x40] sm:$0xff] %vm3302_vm15, %v8480_v5  ;;  %v8483_v22 = vsub.f32 %v14017_v52, %v8389_v49  ;;  %v8381_v43 = vadd.f32 %v8380_v60, %v8220_v62  ;;  %v9765_v23 = vpop.f32.mrf.mxu1  ;;  %v14029_v5 = vld [vmem:[#allocation63_spill] sm:$0xff]  ;;  %v8249_v52 = vadd.f32 %v9749_v1, %v8088_v28 }
 0x488   : > { %v9877_v46 = vpop.f32.mrf.mxu0  ;;  %v9655_v49 = vadd.f32 %v14029_v5, %v14028_v37  ;;  %v14043_v5 = vld [vmem:[#allocation29_spill] sm:$0xff] }
 0x489   : > { %8515 = vst.msk [vmem:[%s10967_s4 + $0x58] sm:$0xff] %vm3302_vm15, %v8483_v22  ;;  %v8481_v57 = vsub.f32 %v14018_v11, %v8381_v43  ;;  %v8402_v6 = vadd.f32 %v9877_v46, %v8241_v2  ;;  %v9766_v56 = vpop.f32.mrf.mxu1  ;;  %v8091_v22 = vadd.f32 %v9640_v33, %v13565_v8  ;;  %v14031_v43 = vld [vmem:[#allocation58_spill] sm:$0xff]  ;;  %v14032_v2 = vld [vmem:[#allocation59_spill] sm:$0xff] }
 0x48a   : > { %v8393_v25 = vpop.f32.mrf.mxu0  ;;  %v9649_v13 = vadd.f32 %v14032_v2, %v14031_v43  ;;  %v9767_v46 = vadd.f32 %v9766_v56, %v9765_v23  ;;  %v14036_v23 = vld [vmem:[#allocation25_spill] sm:$0xff] }
 0x48b   : > { %8513 = vst.msk [vmem:[%s10967_s4 + $0x48] sm:$0xff] %vm3302_vm15, %v8481_v57  ;;  %v8486_v31 = vsub.f32 %v14020_v21, %v8402_v6  ;;  %v8394_v24 = vadd.f32 %v8393_v25, %v8233_v30  ;;  %v9768_v3 = vpop.f32.mrf.mxu1  ;;  %v8260_v57 = vadd.f32 %v9758_v14, %v8099_v15  ;;  %v8112_v6 = vadd.f32 %v9655_v49, %v13565_v8  ;;  %v14034_v30 = vld [vmem:[#allocation64_spill] sm:$0xff] }
 0x48c   : > { %v9878_v59 = vpop.f32.mrf.mxu0  ;;  %v9658_v4 = vadd.f32 %v14035_v40, %v14034_v30  ;;  %v9761_v25 = vadd.f32 %v13655_v58, %v13644_v61 }
 0x48d   : > { %8518 = vst.msk [vmem:[%s10967_s4 + $0x70] sm:$0xff] %vm3302_vm15, %v8486_v31  ;;  %v8484_v53 = vsub.f32 %v14024_v45, %v8394_v24  ;;  %v8405_v41 = vadd.f32 %v9878_v59, %v8244_v20  ;;  %v9769_v42 = vpop.f32.mrf.mxu1  ;;  %v8252_v31 = vadd.f32 %v9752_v39, %v8091_v22  ;;  %v8104_v24 = vadd.f32 %v9649_v13, %v13565_v8  ;;  %v14037_v20 = vld [vmem:[#allocation60_spill] sm:$0xff]  ;;  %v14039_v59 = vld [vmem:[#allocation28_spill] sm:$0xff] }
 0x48e   : > { %v8396_v54 = vpop.f32.mrf.mxu0  ;;  %v9652_v50 = vadd.f32 %v14038_v36, %v14037_v20  ;;  %v9770_v38 = vadd.f32 %v9769_v42, %v9768_v3  ;;  %v8273_v1 = vadd.f32 %v9767_v46, %v8112_v6  ;;  %v8115_v45 = vadd.f32 %v9658_v4, %v13565_v8  ;;  %v14045_v22 = vld [vmem:[#allocation32_spill] sm:$0xff]  ;;  %v14050_v20 = vld [vmem:[#allocation33_spill] sm:$0xff] }
 0x48f   : > { %8516 = vst.msk [vmem:[%s10967_s4 + $0x60] sm:$0xff] %vm3302_vm15, %v8484_v53  ;;  %v8487_v9 = vsub.f32 %v14027_v27, %v8405_v41  ;;  %v8397_v51 = vadd.f32 %v8396_v54, %v8236_v44  ;;  %v9771_v12 = vpop.f32.mrf.mxu1  ;;  %v9764_v41 = vadd.f32 %v13674_v18, %v13664_v19  ;;  %v14040_v44 = vld [vmem:[#allocation26_spill] sm:$0xff]  ;;  %v8265_v29 = vadd.f32 %v9761_v25, %v8104_v24  ;;  %v14041_v54 = vld [vmem:[#allocation31_spill] sm:$0xff] }
 0x490   : > { %v9881_v62 = vpop.f32.mrf.mxu0  ;;  %v8107_v47 = vadd.f32 %v9652_v50, %v13565_v8  ;;  %v8276_v19 = vadd.f32 %v9770_v38, %v8115_v45  ;;  %v14042_v18 = vld [vmem:[#allocation14_spill] sm:$0xff] }
 0x491   : > { %8519 = vst.msk [vmem:[%s10967_s4 + $0x78] sm:$0xff] %vm3302_vm15, %v8487_v9  ;;  %v8485_v34 = vsub.f32 %v14030_v0, %v8397_v51  ;;  %v8418_v60 = vadd.f32 %v9881_v62, %v8257_v32  ;;  %v9772_v48 = vpop.f32.mrf.mxu1  ;;  %v8128_v32 = vadd.f32 %v14042_v18, %v13565_v8 }
 0x492   : > { %v8409_v16 = vpop.f32.mrf.mxu0  ;;  %v9773_v37 = vadd.f32 %v9772_v48, %v9771_v12  ;;  %v8268_v0 = vadd.f32 %v9764_v41, %v8107_v47  ;;  %v14054_v47 = vld [vmem:[#allocation51_spill] sm:$0xff] }
 0x493   : > { %8517 = vst.msk [vmem:[%s10967_s4 + $0x68] sm:$0xff] %vm3302_vm15, %v8485_v34  ;;  %v8490_v11 = vsub.f32 %v14033_v55, %v8418_v60  ;;  %v8410_v35 = vadd.f32 %v8409_v16, %v8249_v52  ;;  %v9774_v26 = vpop.f32.mrf.mxu1  ;;  %v14044_v34 = vld [vmem:[#allocation6_spill] sm:$0xff]  ;;  %v14046_v16 = vld [vmem:[#allocation41_spill] sm:$0xff] }
 0x494   : > { %v9882_v17 = vpop.f32.mrf.mxu0  ;;  %v8120_v60 = vadd.f32 %v14044_v34, %v13565_v8  ;;  %v8131_v46 = vadd.f32 %v14046_v16, %v13565_v8 }
 0x495   : > { %8522 = vst.msk [vmem:[%s10967_s4 + $0x90] sm:$0xff] %vm3302_vm15, %v8490_v11  ;;  %v8488_v56 = vsub.f32 %v14036_v23, %v8410_v35  ;;  %v8421_v63 = vadd.f32 %v9882_v17, %v8260_v57  ;;  %v9775_v21 = vpop.f32.mrf.mxu1  ;;  %v14047_v35 = vld [vmem:[#allocation30_spill] sm:$0xff]  ;;  %v14048_v17 = vld [vmem:[#allocation13_spill] sm:$0xff]  ;;  %v14049_v23 = vld [vmem:[#allocation35_spill] sm:$0xff] }
 0x496   : > { %v8412_v7 = vpop.f32.mrf.mxu0  ;;  %v9776_v11 = vadd.f32 %v9775_v21, %v9774_v26  ;;  %v8281_v40 = vadd.f32 %v9773_v37, %v8120_v60  ;;  %v8123_v25 = vadd.f32 %v14048_v17, %v13565_v8 }
 0x497   : > { %8520 = vst.msk [vmem:[%s10967_s4 + $0x80] sm:$0xff] %vm3302_vm15, %v8488_v56  ;;  %v8491_v61 = vsub.f32 %v14039_v59, %v8421_v63  ;;  %v8413_v58 = vadd.f32 %v8412_v7, %v8252_v31  ;;  %v9777_v10 = vpop.f32.mrf.mxu1 }
 0x498   : > { %v9885_v53 = vpop.f32.mrf.mxu0  ;;  %v8284_v38 = vadd.f32 %v9776_v11, %v8123_v25 }
 0x499   : > { %8523 = vst.msk [vmem:[%s10967_s4 + $0x98] sm:$0xff] %vm3302_vm15, %v8491_v61  ;;  %v8489_v28 = vsub.f32 %v14040_v44, %v8413_v58  ;;  %v8434_v3 = vadd.f32 %v9885_v53, %v8273_v1  ;;  %v9778_v42 = vpop.f32.mrf.mxu1  ;;  %v14051_v61 = vld [vmem:[#allocation43_spill] sm:$0xff] }
 0x49a   : > { %v8425_v33 = vpop.f32.mrf.mxu0  ;;  %v9779_v27 = vadd.f32 %v9778_v42, %v9777_v10  ;;  %v8136_v58 = vadd.f32 %v14051_v61, %v13565_v8  ;;  %v14052_v10 = vld [vmem:[#allocation36_spill] sm:$0xff] }
 0x49b   : > { %8521 = vst.msk [vmem:[%s10967_s4 + $0x88] sm:$0xff] %vm3302_vm15, %v8489_v28  ;;  %v8494_v14 = vsub.f32 %v14041_v54, %v8434_v3  ;;  %v8426_v9 = vadd.f32 %v8425_v33, %v8265_v29  ;;  %v9780_v51 = vpop.f32.mrf.mxu1  ;;  %v14053_v28 = vld [vmem:[#allocation34_spill] sm:$0xff]  ;;  %v8144_v33 = vadd.f32 %v14054_v47, %v13565_v8 }
 0x49c   : > { %v9886_v15 = vpop.f32.mrf.mxu0  ;;  %v8289_v48 = vadd.f32 %v9779_v27, %v8128_v32  ;;  %v14055_v27 = vld [vmem:[#allocation50_spill] sm:$0xff] }
 0x49d   : > { %8526 = vst.msk [vmem:[%s10967_s4 + $0xb0] sm:$0xff] %vm3302_vm15, %v8494_v14  ;;  %v8492_v49 = vsub.f32 %v14043_v5, %v8426_v9  ;;  %v8437_v62 = vadd.f32 %v9886_v15, %v8276_v19  ;;  %v9781_v39 = vpop.f32.mrf.mxu1  ;;  %v8139_v9 = vadd.f32 %v14055_v27, %v13565_v8  ;;  %v14056_v15 = vld [vmem:[#allocation37_spill] sm:$0xff] }
 0x49e   : > { %v8428_v52 = vpop.f32.mrf.mxu0  ;;  %v9782_v2 = vadd.f32 %v9781_v39, %v9780_v51 }
 0x49f   : > { %8524 = vst.msk [vmem:[%s10967_s4 + $0xa0] sm:$0xff] %vm3302_vm15, %v8492_v49  ;;  %v8495_v43 = vsub.f32 %v14045_v22, %v8437_v62  ;;  %v8429_v13 = vadd.f32 %v8428_v52, %v8268_v0  ;;  %v9783_v12 = vpop.f32.mrf.mxu1  ;;  %v14057_v62 = vld [vmem:[#allocation52_spill] sm:$0xff]  ;;  %v14058_v22 = vld [vmem:[#allocation39_spill] sm:$0xff] }
 0x4a0   : > { %v9889_v55 = vpop.f32.mrf.mxu0  ;;  %v8292_v26 = vadd.f32 %v9782_v2, %v8131_v46  ;;  %v8147_v39 = vadd.f32 %v14057_v62, %v13565_v8  ;;  %v14060_v8 = vld [vmem:[#allocation40_spill] sm:$0xff] }
 0x4a1   : > { %8527 = vst.msk [vmem:[%s10967_s4 + $0xb8] sm:$0xff] %vm3302_vm15, %v8495_v43  ;;  %v8493_v57 = vsub.f32 %v14047_v35, %v8429_v13  ;;  %v8450_v6 = vadd.f32 %v9889_v55, %v8289_v48  ;;  %v9784_v30 = vpop.f32.mrf.mxu1  ;;  %v14059_v13 = vld [vmem:[#allocation38_spill] sm:$0xff] }
 0x4a2   : > { %v8441_v4 = vpop.f32.mrf.mxu0  ;;  %v9785_v24 = vadd.f32 %v9784_v30, %v9783_v12 }
 0x4a3   : > { %8525 = vst.msk [vmem:[%s10967_s4 + $0xa8] sm:$0xff] %vm3302_vm15, %v8493_v57  ;;  %v8498_v56 = vsub.f32 %v14049_v23, %v8450_v6  ;;  %v8442_v63 = vadd.f32 %v8441_v4, %v8281_v40  ;;  %v9786_v31 = vpop.f32.mrf.mxu1 }
 0x4a4   : > { %v9890_v21 = vpop.f32.mrf.mxu0  ;;  %v8297_v29 = vadd.f32 %v9785_v24, %v8136_v58 }
 0x4a5   : > { %8530 = vst.msk [vmem:[%s10967_s4 + $0xd0] sm:$0xff] %vm3302_vm15, %v8498_v56  ;;  %v8496_v36 = vsub.f32 %v14050_v20, %v8442_v63  ;;  %v8453_v50 = vadd.f32 %v9890_v21, %v8292_v26  ;;  %v9787_v7 = vpop.f32.mrf.mxu1 }
 0x4a6   : > { %v8444_v59 = vpop.f32.mrf.mxu0  ;;  %v9788_v44 = vadd.f32 %v9787_v7, %v9786_v31 }
 0x4a7   : > { %8528 = vst.msk [vmem:[%s10967_s4 + $0xc0] sm:$0xff] %vm3302_vm15, %v8496_v36  ;;  %v8499_v1 = vsub.f32 %v14052_v10, %v8453_v50  ;;  %v8445_v45 = vadd.f32 %v8444_v59, %v8284_v38  ;;  %v9789_v53 = vpop.f32.mrf.mxu1 }
 0x4a8   : > { %v9893_v41 = vpop.f32.mrf.mxu0  ;;  %v8300_v49 = vadd.f32 %v9788_v44, %v8139_v9 }
 0x4a9   : > { %8531 = vst.msk [vmem:[%s10967_s4 + $0xd8] sm:$0xff] %vm3302_vm15, %v8499_v1  ;;  %v8497_v3 = vsub.f32 %v14053_v28, %v8445_v45  ;;  %v9790_v42 = vpop.f32.mrf.mxu1 }
 0x4aa   : > { %v9791_v54 = vadd.f32 %v9790_v42, %v9789_v53  ;;  %v8457_v14 = vpop.f32.mrf.mxu0 }
 0x4ab   : > { %8529 = vst.msk [vmem:[%s10967_s4 + $0xc8] sm:$0xff] %vm3302_vm15, %v8497_v3  ;;  %v8458_v51 = vadd.f32 %v8457_v14, %v8297_v29  ;;  %v9792_v19 = vpop.f32.mrf.mxu1 }
 0x4ac   : > { %v8305_v18 = vadd.f32 %v9791_v54, %v8144_v33  ;;  %v9894_v32 = vpop.f32.mrf.mxu0 }
 0x4ad   : > { %v8500_v37 = vsub.f32 %v14056_v15, %v8458_v51  ;;  %v9793_v5 = vpop.f32.mrf.mxu1 }
 0x4ae   : > { %v8466_v0 = vadd.f32 %v9893_v41, %v8305_v18  ;;  %v9794_v34 = vadd.f32 %v9793_v5, %v9792_v19  ;;  %v8460_v60 = vpop.f32.mrf.mxu0 }
 0x4af   : > { %8532 = vst.msk [vmem:[%s10967_s4 + $0xe0] sm:$0xff] %vm3302_vm15, %v8500_v37  ;;  %v8461_v52 = vadd.f32 %v8460_v60, %v8300_v49 }
 0x4b0   : > { %v8502_v43 = vsub.f32 %v14058_v22, %v8466_v0  ;;  %v8308_v2 = vadd.f32 %v9794_v34, %v8147_v39 }
 0x4b1   : > { %v8501_v12 = vsub.f32 %v14059_v13, %v8461_v52 }
 0x4b2   : > { %8534 = vst.msk [vmem:[%s10967_s4 + $0xf0] sm:$0xff] %vm3302_vm15, %v8502_v43  ;;  %v8469_v48 = vadd.f32 %v9894_v32, %v8308_v2 }
 0x4b3   : > { %8533 = vst.msk [vmem:[%s10967_s4 + $0xe8] sm:$0xff] %vm3302_vm15, %v8501_v12 }
 0x4b4   : > { %v8503_v16 = vsub.f32 %v14060_v8, %v8469_v48 }
 0x4b6   : > { %8535 = vst.msk [vmem:[%s10967_s4 + $0xf8] sm:$0xff] %vm3302_vm15, %v8503_v16 }
 0x4b7   : > { %10447 = shalt.err (!%p10444_p4)
}
 0x4b8   : > { %s10448_s24 = scalar_lea.hbm %s13807_s29, 4096  ;;  %s10452_s9 = scalar_lea.hbm %s13859_s3, 8192 }
 0x4b9   : > { %p10449_p7 = scmp.ne.s32.totalorder %s13807_s29, %s10448_s24  ;;  %p10453_p10 = scmp.lt.s32.totalorder %s13807_s29, %s13859_s3 }
 0x4ba   : > { %p10454_p11 = scmp.lt.s32.totalorder %s10452_s9, %s10448_s24 }
 0x4bb   : > { %p10450_p8 = pnand %p10449_p7, %p10568_p5 }
 0x4bc   : > { %p10455_p12 = por %p10454_p11, %p10453_p10 }
 0x4bd   : > { %p10451_p9 = pneg %p10450_p8 }
 0x4bf   : > { %p10456_p13 = pnand %p10455_p12, %p10451_p9 }
 0x4c1   : > { %10459 = shalt.err (!%p10456_p13)
}
 0x4c2   : > { %s10508_s17 = smov 128   ;;  %s10509_s26 = smov 8  }
 0x4c3   : > { %9927 = dma.vmem_to_hbm [thread:$0]  (%p10568_p5), %s13809_s25, 4096, %s13807_s29, %s13816_s16, %s10508_s17, %s10508_s17, %s10509_s26  }
 0x4c4 PF: > { %p9933_p0 = scmp.ge.s32.totalorder %s10498_s15, 2  ;;  %s8565_s19 = sand.u32 1, %s10486_s12  }
 0x4c5   : > { %s8566_s20 = scalar_lea.sflag [#allocation4], %s8565_s19 }
 0x4c6   : > { %p9930_p1 = pnand %p9933_p0, %p10572_p6 }
 0x4c8   : > { %p9931_p2 = pneg %p9930_p1 }
 0x4ca   : > { %10481 = dma.done.wait (%p9931_p2), %s8566_s20, 4096  }
 0x4cb   : > { %10483 = vsyncadd (%p9931_p2), %s8566_s20, 4294963200  ;;  %p13_p3 = scmp.ge.s32.totalorder %s10555_s18, 4   ;;  %s14061_s12 = smov %s10490_s13 }
 0x4cc   : > { %s14062_s13 = smov %s10494_s14  ;;  %s14063_s14 = smov %s10566_s21 }
 0x4cd   : > { %s14064_s15 = smov %s10555_s18  ;;  %15 = sbr.rel (!%p13_p3) target bundleno = 3 (0x3), region = 93 }
 0x4d2   :  { %8571 = vsyncpa [#allocation4], 1 }
 0x4d3   :  { %8573 = vsyncpa [#allocation4 + $0x1], 1 }

</bundles_post_ra>
